<compile_context>
chip_gen: v7x
topology: tpu7x:2x2x1
jax: 0.10.0
libtpu: 0.0.40
codegen_flags: <defaults>
</compile_context>

<pallas_src>
import jax
import jax.numpy as jnp
from jax.experimental import pallas as pl
from jax.experimental.pallas import tpu as pltpu


# ----------------------------------------------------------------------------
# Fused SPP kernel: cv1 -> (p5, p9, p13 via nested max5) -> cv2
# ----------------------------------------------------------------------------
def _make_spp_kernel(H, W, c_):
    M = H * W

    def pool5(t, w_shift_masks, neg):
        # Width pass: +-1 / +-2 flat-row shifts == column shifts inside a row.
        # pltpu.roll runs on the XLU; the precomputed masks reject elements that
        # rolled in from a different image row (or wrapped around the tile).
        acc = t
        for shift, mask in w_shift_masks:
            shifted = pltpu.roll(t, shift, axis=0)
            acc = jnp.maximum(acc, jnp.where(mask, shifted, neg))
        # Height pass: +-W / +-2W row shifts.  W is a multiple of 8 for typical
        # SPP feature maps, so these slices/concats stay vreg-aligned.
        out = acc
        for s in (W, 2 * W):
            if s >= M:
                continue
            pad = jnp.full((s, t.shape[1]), neg, dtype=t.dtype)
            out = jnp.maximum(out, jnp.concatenate([acc[s:, :], pad], axis=0))
            out = jnp.maximum(out, jnp.concatenate([pad, acc[:M - s, :]], axis=0))
        return out

    def kernel(wcol_ref, x_ref, w1_ref, s1_ref, b1_ref,
               w2a_ref, w2b_ref, w2c_ref, w2d_ref, s2_ref, b2_ref, o_ref):
        f32 = jnp.float32

        # ---- cv1: 1x1 conv + (folded) BN + SiLU --------------------------------
        y = jnp.dot(x_ref[...], w1_ref[...], preferred_element_type=f32)
        y = y * s1_ref[...] + b1_ref[...]
        y = y * jax.nn.sigmoid(y)                                     # SiLU

        # ---- width-pass shift masks (shared by all three pool passes) ---------
        neg = jnp.array(-jnp.inf, dtype=f32)
        rr = jax.lax.broadcasted_iota(jnp.int32, (M, c_), 0)          # flat row id
        wc = jnp.broadcast_to(wcol_ref[...], (M, c_))                 # column id
        w_shift_masks = []
        for shift in (1, 2, M - 1, M - 2):
            dr = pltpu.roll(rr, shift, axis=0) - rr
            dw = pltpu.roll(wc, shift, axis=0) - wc
            # Valid iff the rolled-in element comes from the same image row
            # (dr == dw) and lies inside the +-2 column window.  Both tests are
            # independent of the roll-direction convention and reject wrap-around.
            mask = jnp.logical_and(dr == dw,
                                   jnp.logical_and(dw >= -2, dw <= 2))
            w_shift_masks.append((shift, mask))

        # ---- pools (SPPF nesting) interleaved with cv2 partial matmuls ---------
        z = jnp.dot(y, w2a_ref[...], preferred_element_type=f32)
        p5 = pool5(y, w_shift_masks, neg)                             # k=5
        z = z + jnp.dot(p5, w2b_ref[...], preferred_element_type=f32)
        p9 = pool5(p5, w_shift_masks, neg)                            # k=9
        z = z + jnp.dot(p9, w2c_ref[...], preferred_element_type=f32)
        p13 = pool5(p9, w_shift_masks, neg)                           # k=13
        z = z + jnp.dot(p13, w2d_ref[...], preferred_element_type=f32)

        # ---- cv2 epilogue: folded BN + SiLU ------------------------------------
        z = z * s2_ref[...] + b2_ref[...]
        o_ref[...] = (z * jax.nn.sigmoid(z)).astype(o_ref.dtype)

    return kernel


# ----------------------------------------------------------------------------
# Parameter construction (deterministic, synthetic) with BN folding
# ----------------------------------------------------------------------------
def _make_conv_bn(key, cin, cout, eps=1e-5):
    kw, kg, kb, km, kv = jax.random.split(key, 5)
    w = 0.1 * jax.random.normal(kw, (cin, cout), jnp.float32)   # == torch (Cout,Cin,1,1).T
    gamma = 1.0 + 0.1 * jax.random.normal(kg, (cout,), jnp.float32)
    beta = 0.1 * jax.random.normal(kb, (cout,), jnp.float32)
    mean = 0.1 * jax.random.normal(km, (cout,), jnp.float32)
    var = jnp.abs(jax.random.normal(kv, (cout,), jnp.float32)) + 0.5
    scale = gamma / jnp.sqrt(var + eps)
    bias = beta - mean * scale
    return w, scale, bias


def init_spp_params(key, c1, c2, ks=(5, 9, 13)):
    c_ = c1 // 2
    k1, k2 = jax.random.split(key, 2)
    return {
        "cv1": _make_conv_bn(k1, c1, c_),
        "cv2": _make_conv_bn(k2, c_ * (len(ks) + 1), c2),
    }


# ----------------------------------------------------------------------------
# SPP forward (wrapper: layout transposes / weight splits are glue)
# ----------------------------------------------------------------------------
def spp_forward(x_nchw, params, ks=(5, 9, 13)):
    # The fused kernel relies on max9 = max5∘max5, max13 = max5∘max5∘max5.
    assert tuple(ks) == (5, 9, 13), "fused SPP kernel assumes k=(5, 9, 13)"
    N, c1, H, W = x_nchw.shape
    M = H * W
    w1, s1, b1 = params["cv1"]
    w2, s2, b2 = params["cv2"]
    c_ = w1.shape[1]
    c2 = w2.shape[1]

    x2d = jnp.transpose(x_nchw, (0, 2, 3, 1)).reshape(N * M, c1)       # NCHW -> (N*H*W, C)
    wcol = (jnp.arange(M, dtype=jnp.int32) % W).reshape(M, 1)          # column index per row
    # Split W2 into the four row-blocks multiplying [y, p5, p9, p13].
    w2a, w2b, w2c, w2d = (w2[i * c_:(i + 1) * c_, :] for i in range(4))

    out2d = pl.pallas_call(
        _make_spp_kernel(H, W, c_),
        out_shape=jax.ShapeDtypeStruct((N * M, c2), x_nchw.dtype),
        grid_spec=pltpu.PrefetchScalarGridSpec(
            num_scalar_prefetch=0,
            grid=(N,),
            in_specs=[
                pl.BlockSpec((M, 1), lambda n: (0, 0)),                # wcol
                pl.BlockSpec((M, c1), lambda n: (n, 0)),               # x (one batch elem)
                pl.BlockSpec((c1, c_), lambda n: (0, 0)),              # w1
                pl.BlockSpec((1, c_), lambda n: (0, 0)),               # s1
                pl.BlockSpec((1, c_), lambda n: (0, 0)),               # b1
                pl.BlockSpec((c_, c2), lambda n: (0, 0)),              # w2a
                pl.BlockSpec((c_, c2), lambda n: (0, 0)),              # w2b
                pl.BlockSpec((c_, c2), lambda n: (0, 0)),              # w2c
                pl.BlockSpec((c_, c2), lambda n: (0, 0)),              # w2d
                pl.BlockSpec((1, c2), lambda n: (0, 0)),               # s2
                pl.BlockSpec((1, c2), lambda n: (0, 0)),               # b2
            ],
            out_specs=pl.BlockSpec((M, c2), lambda n: (n, 0)),
        ),
        compiler_params=pltpu.CompilerParams(dimension_semantics=("parallel",)),
    )(wcol, x2d, w1, s1.reshape(1, c_), b1.reshape(1, c_),
      w2a, w2b, w2c, w2d, s2.reshape(1, c2), b2.reshape(1, c2))

    return jnp.transpose(out2d.reshape(N, H, W, c2), (0, 3, 1, 2))     # NHWC -> NCHW


# ----------------------------------------------------------------------------
# Pure-JAX reference for verification
# ----------------------------------------------------------------------------
def spp_reference(x_nchw, params, ks=(5, 9, 13)):
    x = jnp.transpose(x_nchw, (0, 2, 3, 1))

    def cbs(t, p):
        w, s, b = p
        y = jnp.einsum("nhwc,cd->nhwd", t, w) * s + b
        return y * jax.nn.sigmoid(y)

    def mp(t, k):
        p = k // 2
        return jax.lax.reduce_window(
            t, -jnp.inf, jax.lax.max,
            (1, k, k, 1), (1, 1, 1, 1),
            [(0, 0), (p, p), (p, p), (0, 0)])

    y = cbs(x, params["cv1"])
    cat = jnp.concatenate([y] + [mp(y, k) for k in ks], axis=-1)
    z = cbs(cat, params["cv2"])
    return jnp.transpose(z, (0, 3, 1, 2))


if __name__ == "__main__":
    key = jax.random.PRNGKey(0)
    kx, kp = jax.random.split(key)

    N, C1, H, W = 2, 4, 16, 16
    C2 = 8
    x = jax.random.normal(kx, (N, C1, H, W), jnp.float32)
    params = init_spp_params(kp, C1, C2)

    spp_jit = jax.jit(spp_forward)
    out = jax.block_until_ready(spp_jit(x, params))
    ref = jax.block_until_ready(spp_reference(x, params))

    assert out.shape == (N, C2, H, W), out.shape
    err = float(jnp.max(jnp.abs(out - ref)))
    assert jnp.allclose(out, ref, atol=1e-5, rtol=1e-5), err
    print("KERNEL_OK")
</pallas_src>

<mosaic_0001>
module attributes {stable_mosaic.version = 11 : i64} {
  func.func @kernel(%arg0: i32, %arg1: memref<256x1xi32, #tpu.memory_space<vmem>>, %arg2: memref<256x4xf32, #tpu.memory_space<vmem>>, %arg3: memref<4x2xf32, #tpu.memory_space<vmem>>, %arg4: memref<1x2xf32, #tpu.memory_space<vmem>>, %arg5: memref<1x2xf32, #tpu.memory_space<vmem>>, %arg6: memref<2x8xf32, #tpu.memory_space<vmem>>, %arg7: memref<2x8xf32, #tpu.memory_space<vmem>>, %arg8: memref<2x8xf32, #tpu.memory_space<vmem>>, %arg9: memref<2x8xf32, #tpu.memory_space<vmem>>, %arg10: memref<1x8xf32, #tpu.memory_space<vmem>>, %arg11: memref<1x8xf32, #tpu.memory_space<vmem>>, %arg12: memref<256x8xf32, #tpu.memory_space<vmem>>) attributes {dimension_semantics = [#tpu.dimension_semantics<parallel>], iteration_bounds = array<i64: 2>, scalar_prefetch = 0 : i64, scratch_operands = 0 : i64, tpu.core_type = #tpu.core_type<tc>, window_params = [{pipeline_mode = #tpu.pipeline_mode<synchronous>, transform_indices = @transform_0, window_bounds = array<i64: 256, 1>}, {transform_indices = @transform_1, window_bounds = array<i64: 256, 4>}, {pipeline_mode = #tpu.pipeline_mode<synchronous>, transform_indices = @transform_2, window_bounds = array<i64: 4, 2>}, {pipeline_mode = #tpu.pipeline_mode<synchronous>, transform_indices = @transform_3, window_bounds = array<i64: 1, 2>}, {pipeline_mode = #tpu.pipeline_mode<synchronous>, transform_indices = @transform_4, window_bounds = array<i64: 1, 2>}, {pipeline_mode = #tpu.pipeline_mode<synchronous>, transform_indices = @transform_5, window_bounds = array<i64: 2, 8>}, {pipeline_mode = #tpu.pipeline_mode<synchronous>, transform_indices = @transform_6, window_bounds = array<i64: 2, 8>}, {pipeline_mode = #tpu.pipeline_mode<synchronous>, transform_indices = @transform_7, window_bounds = array<i64: 2, 8>}, {pipeline_mode = #tpu.pipeline_mode<synchronous>, transform_indices = @transform_8, window_bounds = array<i64: 2, 8>}, {pipeline_mode = #tpu.pipeline_mode<synchronous>, transform_indices = @transform_9, window_bounds = array<i64: 1, 8>}, {pipeline_mode = #tpu.pipeline_mode<synchronous>, transform_indices = @transform_10, window_bounds = array<i64: 1, 8>}, {transform_indices = @transform_11, window_bounds = array<i64: 256, 8>}]} {
    %c0 = arith.constant 0 : index
    %c0_0 = arith.constant 0 : index
    %0 = vector.load %arg2[%c0, %c0_0] : memref<256x4xf32, #tpu.memory_space<vmem>>, vector<256x4xf32>
    %c0_1 = arith.constant 0 : index
    %c0_2 = arith.constant 0 : index
    %1 = vector.load %arg3[%c0_1, %c0_2] : memref<4x2xf32, #tpu.memory_space<vmem>>, vector<4x2xf32>
    %cst = arith.constant dense<0.000000e+00> : vector<256x2xf32>
    %2 = tpu.matmul %0, %1, %cst {dimension_numbers = #tpu.dot_dimension_numbers<[1], [0], [0], [1], [0, 0, 1, 1], [], []>} : vector<256x4xf32>, vector<4x2xf32>, vector<256x2xf32> -> vector<256x2xf32>
    %c0_3 = arith.constant 0 : index
    %c0_4 = arith.constant 0 : index
    %3 = vector.load %arg4[%c0_3, %c0_4] : memref<1x2xf32, #tpu.memory_space<vmem>>, vector<1x2xf32>
    %4 = vector.broadcast %3 : vector<1x2xf32> to vector<256x2xf32>
    %5 = arith.mulf %2, %4 : vector<256x2xf32>
    %c0_5 = arith.constant 0 : index
    %c0_6 = arith.constant 0 : index
    %6 = vector.load %arg5[%c0_5, %c0_6] : memref<1x2xf32, #tpu.memory_space<vmem>>, vector<1x2xf32>
    %7 = vector.broadcast %6 : vector<1x2xf32> to vector<256x2xf32>
    %8 = arith.addf %5, %7 : vector<256x2xf32>
    %9 = arith.negf %8 : vector<256x2xf32>
    %10 = math.exp %9 : vector<256x2xf32>
    %cst_7 = arith.constant 1.000000e+00 : f32
    %11 = vector.broadcast %cst_7 : f32 to vector<256x2xf32>
    %12 = arith.addf %11, %10 : vector<256x2xf32>
    %13 = arith.divf %11, %12 : vector<256x2xf32>
    %14 = arith.mulf %8, %13 : vector<256x2xf32>
    %15 = tpu.iota {dimensions = array<i32: 0>} : vector<256x2xi32>
    %c0_8 = arith.constant 0 : index
    %c0_9 = arith.constant 0 : index
    %16 = vector.load %arg1[%c0_8, %c0_9] : memref<256x1xi32, #tpu.memory_space<vmem>>, vector<256x1xi32>
    %17 = vector.shape_cast %16 : vector<256x1xi32> to vector<256x1xi32>
    %18 = vector.broadcast %17 : vector<256x1xi32> to vector<256x2xi32>
    %c1_i32 = arith.constant 1 : i32
    %19 = tpu.dynamic_rotate %15 by %c1_i32 dim 0 : vector<256x2xi32>, i32 -> vector<256x2xi32>
    %20 = arith.subi %19, %15 : vector<256x2xi32>
    %c1_i32_10 = arith.constant 1 : i32
    %21 = tpu.dynamic_rotate %18 by %c1_i32_10 dim 0 : vector<256x2xi32>, i32 -> vector<256x2xi32>
    %22 = arith.subi %21, %18 : vector<256x2xi32>
    %23 = arith.cmpi eq, %20, %22 : vector<256x2xi32>
    %c-2_i32 = arith.constant -2 : i32
    %24 = vector.broadcast %c-2_i32 : i32 to vector<256x2xi32>
    %25 = arith.cmpi sge, %22, %24 : vector<256x2xi32>
    %c2_i32 = arith.constant 2 : i32
    %26 = vector.broadcast %c2_i32 : i32 to vector<256x2xi32>
    %27 = arith.cmpi sle, %22, %26 : vector<256x2xi32>
    %28 = arith.andi %25, %27 : vector<256x2xi1>
    %29 = arith.andi %23, %28 : vector<256x2xi1>
    %c2_i32_11 = arith.constant 2 : i32
    %30 = tpu.dynamic_rotate %15 by %c2_i32_11 dim 0 : vector<256x2xi32>, i32 -> vector<256x2xi32>
    %31 = arith.subi %30, %15 : vector<256x2xi32>
    %c2_i32_12 = arith.constant 2 : i32
    %32 = tpu.dynamic_rotate %18 by %c2_i32_12 dim 0 : vector<256x2xi32>, i32 -> vector<256x2xi32>
    %33 = arith.subi %32, %18 : vector<256x2xi32>
    %34 = arith.cmpi eq, %31, %33 : vector<256x2xi32>
    %c-2_i32_13 = arith.constant -2 : i32
    %35 = vector.broadcast %c-2_i32_13 : i32 to vector<256x2xi32>
    %36 = arith.cmpi sge, %33, %35 : vector<256x2xi32>
    %c2_i32_14 = arith.constant 2 : i32
    %37 = vector.broadcast %c2_i32_14 : i32 to vector<256x2xi32>
    %38 = arith.cmpi sle, %33, %37 : vector<256x2xi32>
    %39 = arith.andi %36, %38 : vector<256x2xi1>
    %40 = arith.andi %34, %39 : vector<256x2xi1>
    %c255_i32 = arith.constant 255 : i32
    %41 = tpu.dynamic_rotate %15 by %c255_i32 dim 0 : vector<256x2xi32>, i32 -> vector<256x2xi32>
    %42 = arith.subi %41, %15 : vector<256x2xi32>
    %c255_i32_15 = arith.constant 255 : i32
    %43 = tpu.dynamic_rotate %18 by %c255_i32_15 dim 0 : vector<256x2xi32>, i32 -> vector<256x2xi32>
    %44 = arith.subi %43, %18 : vector<256x2xi32>
    %45 = arith.cmpi eq, %42, %44 : vector<256x2xi32>
    %c-2_i32_16 = arith.constant -2 : i32
    %46 = vector.broadcast %c-2_i32_16 : i32 to vector<256x2xi32>
    %47 = arith.cmpi sge, %44, %46 : vector<256x2xi32>
    %c2_i32_17 = arith.constant 2 : i32
    %48 = vector.broadcast %c2_i32_17 : i32 to vector<256x2xi32>
    %49 = arith.cmpi sle, %44, %48 : vector<256x2xi32>
    %50 = arith.andi %47, %49 : vector<256x2xi1>
    %51 = arith.andi %45, %50 : vector<256x2xi1>
    %c254_i32 = arith.constant 254 : i32
    %52 = tpu.dynamic_rotate %15 by %c254_i32 dim 0 : vector<256x2xi32>, i32 -> vector<256x2xi32>
    %53 = arith.subi %52, %15 : vector<256x2xi32>
    %c254_i32_18 = arith.constant 254 : i32
    %54 = tpu.dynamic_rotate %18 by %c254_i32_18 dim 0 : vector<256x2xi32>, i32 -> vector<256x2xi32>
    %55 = arith.subi %54, %18 : vector<256x2xi32>
    %56 = arith.cmpi eq, %53, %55 : vector<256x2xi32>
    %c-2_i32_19 = arith.constant -2 : i32
    %57 = vector.broadcast %c-2_i32_19 : i32 to vector<256x2xi32>
    %58 = arith.cmpi sge, %55, %57 : vector<256x2xi32>
    %c2_i32_20 = arith.constant 2 : i32
    %59 = vector.broadcast %c2_i32_20 : i32 to vector<256x2xi32>
    %60 = arith.cmpi sle, %55, %59 : vector<256x2xi32>
    %61 = arith.andi %58, %60 : vector<256x2xi1>
    %62 = arith.andi %56, %61 : vector<256x2xi1>
    %c0_21 = arith.constant 0 : index
    %c0_22 = arith.constant 0 : index
    %63 = vector.load %arg6[%c0_21, %c0_22] : memref<2x8xf32, #tpu.memory_space<vmem>>, vector<2x8xf32>
    %cst_23 = arith.constant dense<0.000000e+00> : vector<256x8xf32>
    %64 = tpu.matmul %14, %63, %cst_23 {dimension_numbers = #tpu.dot_dimension_numbers<[1], [0], [0], [1], [0, 0, 1, 1], [], []>} : vector<256x2xf32>, vector<2x8xf32>, vector<256x8xf32> -> vector<256x8xf32>
    %c1_i32_24 = arith.constant 1 : i32
    %65 = tpu.dynamic_rotate %14 by %c1_i32_24 dim 0 : vector<256x2xf32>, i32 -> vector<256x2xf32>
    %cst_25 = arith.constant 0xFF800000 : f32
    %66 = vector.broadcast %cst_25 : f32 to vector<256x2xf32>
    %67 = arith.select %29, %65, %66 : vector<256x2xi1>, vector<256x2xf32>
    %68 = arith.maximumf %14, %67 : vector<256x2xf32>
    %c2_i32_26 = arith.constant 2 : i32
    %69 = tpu.dynamic_rotate %14 by %c2_i32_26 dim 0 : vector<256x2xf32>, i32 -> vector<256x2xf32>
    %cst_27 = arith.constant 0xFF800000 : f32
    %70 = vector.broadcast %cst_27 : f32 to vector<256x2xf32>
    %71 = arith.select %40, %69, %70 : vector<256x2xi1>, vector<256x2xf32>
    %72 = arith.maximumf %68, %71 : vector<256x2xf32>
    %c255_i32_28 = arith.constant 255 : i32
    %73 = tpu.dynamic_rotate %14 by %c255_i32_28 dim 0 : vector<256x2xf32>, i32 -> vector<256x2xf32>
    %cst_29 = arith.constant 0xFF800000 : f32
    %74 = vector.broadcast %cst_29 : f32 to vector<256x2xf32>
    %75 = arith.select %51, %73, %74 : vector<256x2xi1>, vector<256x2xf32>
    %76 = arith.maximumf %72, %75 : vector<256x2xf32>
    %c254_i32_30 = arith.constant 254 : i32
    %77 = tpu.dynamic_rotate %14 by %c254_i32_30 dim 0 : vector<256x2xf32>, i32 -> vector<256x2xf32>
    %cst_31 = arith.constant 0xFF800000 : f32
    %78 = vector.broadcast %cst_31 : f32 to vector<256x2xf32>
    %79 = arith.select %62, %77, %78 : vector<256x2xi1>, vector<256x2xf32>
    %80 = arith.maximumf %76, %79 : vector<256x2xf32>
    %cst_32 = arith.constant 0xFF800000 : f32
    %81 = vector.broadcast %cst_32 : f32 to vector<16x2xf32>
    %82 = vector.extract_strided_slice %80 {offsets = [16, 0], sizes = [240, 2], strides = [1, 1]} : vector<256x2xf32> to vector<240x2xf32>
    %83 = tpu.concatenate %82, %81 in 0 : vector<240x2xf32>, vector<16x2xf32> -> vector<256x2xf32>
    %84 = arith.maximumf %80, %83 : vector<256x2xf32>
    %85 = vector.extract_strided_slice %80 {offsets = [0, 0], sizes = [240, 2], strides = [1, 1]} : vector<256x2xf32> to vector<240x2xf32>
    %86 = tpu.concatenate %81, %85 in 0 : vector<16x2xf32>, vector<240x2xf32> -> vector<256x2xf32>
    %87 = arith.maximumf %84, %86 : vector<256x2xf32>
    %cst_33 = arith.constant 0xFF800000 : f32
    %88 = vector.broadcast %cst_33 : f32 to vector<32x2xf32>
    %89 = vector.extract_strided_slice %80 {offsets = [32, 0], sizes = [224, 2], strides = [1, 1]} : vector<256x2xf32> to vector<224x2xf32>
    %90 = tpu.concatenate %89, %88 in 0 : vector<224x2xf32>, vector<32x2xf32> -> vector<256x2xf32>
    %91 = arith.maximumf %87, %90 : vector<256x2xf32>
    %92 = vector.extract_strided_slice %80 {offsets = [0, 0], sizes = [224, 2], strides = [1, 1]} : vector<256x2xf32> to vector<224x2xf32>
    %93 = tpu.concatenate %88, %92 in 0 : vector<32x2xf32>, vector<224x2xf32> -> vector<256x2xf32>
    %94 = arith.maximumf %91, %93 : vector<256x2xf32>
    %c0_34 = arith.constant 0 : index
    %c0_35 = arith.constant 0 : index
    %95 = vector.load %arg7[%c0_34, %c0_35] : memref<2x8xf32, #tpu.memory_space<vmem>>, vector<2x8xf32>
    %cst_36 = arith.constant dense<0.000000e+00> : vector<256x8xf32>
    %96 = tpu.matmul %94, %95, %cst_36 {dimension_numbers = #tpu.dot_dimension_numbers<[1], [0], [0], [1], [0, 0, 1, 1], [], []>} : vector<256x2xf32>, vector<2x8xf32>, vector<256x8xf32> -> vector<256x8xf32>
    %97 = arith.addf %64, %96 : vector<256x8xf32>
    %c1_i32_37 = arith.constant 1 : i32
    %98 = tpu.dynamic_rotate %94 by %c1_i32_37 dim 0 : vector<256x2xf32>, i32 -> vector<256x2xf32>
    %cst_38 = arith.constant 0xFF800000 : f32
    %99 = vector.broadcast %cst_38 : f32 to vector<256x2xf32>
    %100 = arith.select %29, %98, %99 : vector<256x2xi1>, vector<256x2xf32>
    %101 = arith.maximumf %94, %100 : vector<256x2xf32>
    %c2_i32_39 = arith.constant 2 : i32
    %102 = tpu.dynamic_rotate %94 by %c2_i32_39 dim 0 : vector<256x2xf32>, i32 -> vector<256x2xf32>
    %cst_40 = arith.constant 0xFF800000 : f32
    %103 = vector.broadcast %cst_40 : f32 to vector<256x2xf32>
    %104 = arith.select %40, %102, %103 : vector<256x2xi1>, vector<256x2xf32>
    %105 = arith.maximumf %101, %104 : vector<256x2xf32>
    %c255_i32_41 = arith.constant 255 : i32
    %106 = tpu.dynamic_rotate %94 by %c255_i32_41 dim 0 : vector<256x2xf32>, i32 -> vector<256x2xf32>
    %cst_42 = arith.constant 0xFF800000 : f32
    %107 = vector.broadcast %cst_42 : f32 to vector<256x2xf32>
    %108 = arith.select %51, %106, %107 : vector<256x2xi1>, vector<256x2xf32>
    %109 = arith.maximumf %105, %108 : vector<256x2xf32>
    %c254_i32_43 = arith.constant 254 : i32
    %110 = tpu.dynamic_rotate %94 by %c254_i32_43 dim 0 : vector<256x2xf32>, i32 -> vector<256x2xf32>
    %cst_44 = arith.constant 0xFF800000 : f32
    %111 = vector.broadcast %cst_44 : f32 to vector<256x2xf32>
    %112 = arith.select %62, %110, %111 : vector<256x2xi1>, vector<256x2xf32>
    %113 = arith.maximumf %109, %112 : vector<256x2xf32>
    %cst_45 = arith.constant 0xFF800000 : f32
    %114 = vector.broadcast %cst_45 : f32 to vector<16x2xf32>
    %115 = vector.extract_strided_slice %113 {offsets = [16, 0], sizes = [240, 2], strides = [1, 1]} : vector<256x2xf32> to vector<240x2xf32>
    %116 = tpu.concatenate %115, %114 in 0 : vector<240x2xf32>, vector<16x2xf32> -> vector<256x2xf32>
    %117 = arith.maximumf %113, %116 : vector<256x2xf32>
    %118 = vector.extract_strided_slice %113 {offsets = [0, 0], sizes = [240, 2], strides = [1, 1]} : vector<256x2xf32> to vector<240x2xf32>
    %119 = tpu.concatenate %114, %118 in 0 : vector<16x2xf32>, vector<240x2xf32> -> vector<256x2xf32>
    %120 = arith.maximumf %117, %119 : vector<256x2xf32>
    %cst_46 = arith.constant 0xFF800000 : f32
    %121 = vector.broadcast %cst_46 : f32 to vector<32x2xf32>
    %122 = vector.extract_strided_slice %113 {offsets = [32, 0], sizes = [224, 2], strides = [1, 1]} : vector<256x2xf32> to vector<224x2xf32>
    %123 = tpu.concatenate %122, %121 in 0 : vector<224x2xf32>, vector<32x2xf32> -> vector<256x2xf32>
    %124 = arith.maximumf %120, %123 : vector<256x2xf32>
    %125 = vector.extract_strided_slice %113 {offsets = [0, 0], sizes = [224, 2], strides = [1, 1]} : vector<256x2xf32> to vector<224x2xf32>
    %126 = tpu.concatenate %121, %125 in 0 : vector<32x2xf32>, vector<224x2xf32> -> vector<256x2xf32>
    %127 = arith.maximumf %124, %126 : vector<256x2xf32>
    %c0_47 = arith.constant 0 : index
    %c0_48 = arith.constant 0 : index
    %128 = vector.load %arg8[%c0_47, %c0_48] : memref<2x8xf32, #tpu.memory_space<vmem>>, vector<2x8xf32>
    %cst_49 = arith.constant dense<0.000000e+00> : vector<256x8xf32>
    %129 = tpu.matmul %127, %128, %cst_49 {dimension_numbers = #tpu.dot_dimension_numbers<[1], [0], [0], [1], [0, 0, 1, 1], [], []>} : vector<256x2xf32>, vector<2x8xf32>, vector<256x8xf32> -> vector<256x8xf32>
    %130 = arith.addf %97, %129 : vector<256x8xf32>
    %c1_i32_50 = arith.constant 1 : i32
    %131 = tpu.dynamic_rotate %127 by %c1_i32_50 dim 0 : vector<256x2xf32>, i32 -> vector<256x2xf32>
    %cst_51 = arith.constant 0xFF800000 : f32
    %132 = vector.broadcast %cst_51 : f32 to vector<256x2xf32>
    %133 = arith.select %29, %131, %132 : vector<256x2xi1>, vector<256x2xf32>
    %134 = arith.maximumf %127, %133 : vector<256x2xf32>
    %c2_i32_52 = arith.constant 2 : i32
    %135 = tpu.dynamic_rotate %127 by %c2_i32_52 dim 0 : vector<256x2xf32>, i32 -> vector<256x2xf32>
    %cst_53 = arith.constant 0xFF800000 : f32
    %136 = vector.broadcast %cst_53 : f32 to vector<256x2xf32>
    %137 = arith.select %40, %135, %136 : vector<256x2xi1>, vector<256x2xf32>
    %138 = arith.maximumf %134, %137 : vector<256x2xf32>
    %c255_i32_54 = arith.constant 255 : i32
    %139 = tpu.dynamic_rotate %127 by %c255_i32_54 dim 0 : vector<256x2xf32>, i32 -> vector<256x2xf32>
    %cst_55 = arith.constant 0xFF800000 : f32
    %140 = vector.broadcast %cst_55 : f32 to vector<256x2xf32>
    %141 = arith.select %51, %139, %140 : vector<256x2xi1>, vector<256x2xf32>
    %142 = arith.maximumf %138, %141 : vector<256x2xf32>
    %c254_i32_56 = arith.constant 254 : i32
    %143 = tpu.dynamic_rotate %127 by %c254_i32_56 dim 0 : vector<256x2xf32>, i32 -> vector<256x2xf32>
    %cst_57 = arith.constant 0xFF800000 : f32
    %144 = vector.broadcast %cst_57 : f32 to vector<256x2xf32>
    %145 = arith.select %62, %143, %144 : vector<256x2xi1>, vector<256x2xf32>
    %146 = arith.maximumf %142, %145 : vector<256x2xf32>
    %cst_58 = arith.constant 0xFF800000 : f32
    %147 = vector.broadcast %cst_58 : f32 to vector<16x2xf32>
    %148 = vector.extract_strided_slice %146 {offsets = [16, 0], sizes = [240, 2], strides = [1, 1]} : vector<256x2xf32> to vector<240x2xf32>
    %149 = tpu.concatenate %148, %147 in 0 : vector<240x2xf32>, vector<16x2xf32> -> vector<256x2xf32>
    %150 = arith.maximumf %146, %149 : vector<256x2xf32>
    %151 = vector.extract_strided_slice %146 {offsets = [0, 0], sizes = [240, 2], strides = [1, 1]} : vector<256x2xf32> to vector<240x2xf32>
    %152 = tpu.concatenate %147, %151 in 0 : vector<16x2xf32>, vector<240x2xf32> -> vector<256x2xf32>
    %153 = arith.maximumf %150, %152 : vector<256x2xf32>
    %cst_59 = arith.constant 0xFF800000 : f32
    %154 = vector.broadcast %cst_59 : f32 to vector<32x2xf32>
    %155 = vector.extract_strided_slice %146 {offsets = [32, 0], sizes = [224, 2], strides = [1, 1]} : vector<256x2xf32> to vector<224x2xf32>
    %156 = tpu.concatenate %155, %154 in 0 : vector<224x2xf32>, vector<32x2xf32> -> vector<256x2xf32>
    %157 = arith.maximumf %153, %156 : vector<256x2xf32>
    %158 = vector.extract_strided_slice %146 {offsets = [0, 0], sizes = [224, 2], strides = [1, 1]} : vector<256x2xf32> to vector<224x2xf32>
    %159 = tpu.concatenate %154, %158 in 0 : vector<32x2xf32>, vector<224x2xf32> -> vector<256x2xf32>
    %160 = arith.maximumf %157, %159 : vector<256x2xf32>
    %c0_60 = arith.constant 0 : index
    %c0_61 = arith.constant 0 : index
    %161 = vector.load %arg9[%c0_60, %c0_61] : memref<2x8xf32, #tpu.memory_space<vmem>>, vector<2x8xf32>
    %cst_62 = arith.constant dense<0.000000e+00> : vector<256x8xf32>
    %162 = tpu.matmul %160, %161, %cst_62 {dimension_numbers = #tpu.dot_dimension_numbers<[1], [0], [0], [1], [0, 0, 1, 1], [], []>} : vector<256x2xf32>, vector<2x8xf32>, vector<256x8xf32> -> vector<256x8xf32>
    %163 = arith.addf %130, %162 : vector<256x8xf32>
    %c0_63 = arith.constant 0 : index
    %c0_64 = arith.constant 0 : index
    %164 = vector.load %arg10[%c0_63, %c0_64] : memref<1x8xf32, #tpu.memory_space<vmem>>, vector<1x8xf32>
    %165 = vector.broadcast %164 : vector<1x8xf32> to vector<256x8xf32>
    %166 = arith.mulf %163, %165 : vector<256x8xf32>
    %c0_65 = arith.constant 0 : index
    %c0_66 = arith.constant 0 : index
    %167 = vector.load %arg11[%c0_65, %c0_66] : memref<1x8xf32, #tpu.memory_space<vmem>>, vector<1x8xf32>
    %168 = vector.broadcast %167 : vector<1x8xf32> to vector<256x8xf32>
    %169 = arith.addf %166, %168 : vector<256x8xf32>
    %170 = arith.negf %169 : vector<256x8xf32>
    %171 = math.exp %170 : vector<256x8xf32>
    %cst_67 = arith.constant 1.000000e+00 : f32
    %172 = vector.broadcast %cst_67 : f32 to vector<256x8xf32>
    %173 = arith.addf %172, %171 : vector<256x8xf32>
    %174 = arith.divf %172, %173 : vector<256x8xf32>
    %175 = arith.mulf %169, %174 : vector<256x8xf32>
    %c0_68 = arith.constant 0 : index
    %c0_69 = arith.constant 0 : index
    %176 = vector.load %arg12[%c0_68, %c0_69] : memref<256x8xf32, #tpu.memory_space<vmem>>, vector<256x8xf32>
    tpu.vector_store %arg12[%c0_68, %c0_69], %175 {strides = array<i32>} : memref<256x8xf32, #tpu.memory_space<vmem>>, vector<256x8xf32>,
    return
  }
  func.func @transform_0(%arg0: i32) -> (i32, i32) {
    %c0_i32 = arith.constant 0 : i32
    %c0_i32_0 = arith.constant 0 : i32
    %c0_i32_1 = arith.constant 0 : i32
    return %c0_i32, %c0_i32_0 : i32, i32
  }
  func.func @transform_1(%arg0: i32) -> (i32, i32) {
    %c0_i32 = arith.constant 0 : i32
    %c0_i32_0 = arith.constant 0 : i32
    return %arg0, %c0_i32 : i32, i32
  }
  func.func @transform_2(%arg0: i32) -> (i32, i32) {
    %c0_i32 = arith.constant 0 : i32
    %c0_i32_0 = arith.constant 0 : i32
    %c0_i32_1 = arith.constant 0 : i32
    return %c0_i32, %c0_i32_0 : i32, i32
  }
  func.func @transform_3(%arg0: i32) -> (i32, i32) {
    %c0_i32 = arith.constant 0 : i32
    %c0_i32_0 = arith.constant 0 : i32
    %c0_i32_1 = arith.constant 0 : i32
    return %c0_i32, %c0_i32_0 : i32, i32
  }
  func.func @transform_4(%arg0: i32) -> (i32, i32) {
    %c0_i32 = arith.constant 0 : i32
    %c0_i32_0 = arith.constant 0 : i32
    %c0_i32_1 = arith.constant 0 : i32
    return %c0_i32, %c0_i32_0 : i32, i32
  }
  func.func @transform_5(%arg0: i32) -> (i32, i32) {
    %c0_i32 = arith.constant 0 : i32
    %c0_i32_0 = arith.constant 0 : i32
    %c0_i32_1 = arith.constant 0 : i32
    return %c0_i32, %c0_i32_0 : i32, i32
  }
  func.func @transform_6(%arg0: i32) -> (i32, i32) {
    %c0_i32 = arith.constant 0 : i32
    %c0_i32_0 = arith.constant 0 : i32
    %c0_i32_1 = arith.constant 0 : i32
    return %c0_i32, %c0_i32_0 : i32, i32
  }
  func.func @transform_7(%arg0: i32) -> (i32, i32) {
    %c0_i32 = arith.constant 0 : i32
    %c0_i32_0 = arith.constant 0 : i32
    %c0_i32_1 = arith.constant 0 : i32
    return %c0_i32, %c0_i32_0 : i32, i32
  }
  func.func @transform_8(%arg0: i32) -> (i32, i32) {
    %c0_i32 = arith.constant 0 : i32
    %c0_i32_0 = arith.constant 0 : i32
    %c0_i32_1 = arith.constant 0 : i32
    return %c0_i32, %c0_i32_0 : i32, i32
  }
  func.func @transform_9(%arg0: i32) -> (i32, i32) {
    %c0_i32 = arith.constant 0 : i32
    %c0_i32_0 = arith.constant 0 : i32
    %c0_i32_1 = arith.constant 0 : i32
    return %c0_i32, %c0_i32_0 : i32, i32
  }
  func.func @transform_10(%arg0: i32) -> (i32, i32) {
    %c0_i32 = arith.constant 0 : i32
    %c0_i32_0 = arith.constant 0 : i32
    %c0_i32_1 = arith.constant 0 : i32
    return %c0_i32, %c0_i32_0 : i32, i32
  }
  func.func @transform_11(%arg0: i32) -> (i32, i32) {
    %c0_i32 = arith.constant 0 : i32
    %c0_i32_0 = arith.constant 0 : i32
    return %arg0, %c0_i32 : i32, i32
  }
}

</mosaic_0001>

<bundles_post_ra>
// kernel: spp_forward.1
= control target key start
LH: loop header
LB: loop body
LE: loop exit
PB: predicated region body
PF: predicated region fallthrough
CT: control target
= control target key end

     0   :  { %s7352_s17 = smov 0   ;;  %s17197_s0 = inlined_call_operand.vmem [shape: s32[256,1], index: 0, kind: input, shape index: {}]   ;;  %s17198_s1 = inlined_call_operand.vmem [shape: f32[512,4], index: 1, kind: input, shape index: {}]   ;;  %s17199_s2 = inlined_call_operand.vmem [shape: f32[4,2], index: 2, kind: input, shape index: {}]   ;;  %s17200_s3 = inlined_call_operand.vmem [shape: f32[1,2], index: 3, kind: input, shape index: {}]   ;;  %s17201_s4 = inlined_call_operand.vmem [shape: f32[1,2], index: 4, kind: input, shape index: {}]   ;;  %s17202_s5 = inlined_call_operand.vmem [shape: f32[2,8], index: 5, kind: input, shape index: {}]   ;;  %s17203_s6 = inlined_call_operand.vmem [shape: f32[2,8], index: 6, kind: input, shape index: {}]   ;;  %s17204_s7 = inlined_call_operand.vmem [shape: f32[2,8], index: 7, kind: input, shape index: {}]   ;;  %s17205_s8 = inlined_call_operand.vmem [shape: f32[2,8], index: 8, kind: input, shape index: {}]   ;;  %s17206_s9 = inlined_call_operand.vmem [shape: f32[1,8], index: 9, kind: input, shape index: {}]   ;;  %s17207_s10 = inlined_call_operand.vmem [shape: f32[1,8], index: 10, kind: input, shape index: {}]   ;;  %s17208_s11 = inlined_call_operand.vmem [shape: f32[512,8], index: 11, kind: output, shape index: {}]  }
   0x1 LB: > { %s6253_s18 = sadd.s32 4294967295, %s7289_s17   ;;  %p6257_p0 = scmp.ge.s32.totalorder %s7289_s17, 1  ;;  %s7289_s17 = sphi %s7352_s17, %s21_s17  }
   0x2   : > { %p338_p1 = scmp.lt.s32.totalorder %s7289_s17, 3 }
   0x4   : > { %p339_p2 = pnand %p6257_p0, %p338_p1 }
   0x6   : > { %342 = sbr.rel (%p339_p2) target bundleno = 1602 (0x642), region = 64 }
   0xd   : > { %v422_v0 = vld [vmem:[%s17199_s2] sm:$0xf]  ;;  %vm520_vm0 = vcmask 1043456   ;;  %s6258_s21 = sshll.u32 %s6253_s18, 5  ;;  %v7291_v1 = vmov 0   ;;  %v1087_v2 = vld [vmem:[%s17197_s0 + $0x18] sm:$0xff] }
   0xe   : > { %6662 = vmatprep.subr.msk.mxu0 %vm520_vm0, %v422_v0  ;;  %p379_p3 = scmp.lt.s32.totalorder %s6258_s21, 63  ;;  %7020 = vset.pattern.permute.xlu1 %v7291_v1  ;;  %v1085_v3 = vld [vmem:[%s17197_s0 + $0x8] sm:$0xff]  ;;  %v1088_v4 = vld [vmem:[%s17197_s0 + $0x20] sm:$0xff]  ;;  %v1086_v5 = vld [vmem:[%s17197_s0 + $0x10] sm:$0xff]  ;;  %vm423_vm1 = vcmask 31744  }
   0xf   : > { %6663 = vmatpush3.msk.msra.mxu0 %vm520_vm0, %v422_v0  ;;  %7019 = vset.pattern.permute.xlu0 %v7291_v1  ;;  %v1090_v9 = vld [vmem:[%s17197_s0 + $0x30] sm:$0xff]  ;;  %v1089_v10 = vld [vmem:[%s17197_s0 + $0x28] sm:$0xff]  ;;  %v1091_v13 = vld [vmem:[%s17197_s0 + $0x38] sm:$0xff] }
  0x10   : > { %s21482_s21 = smov (!%p379_p3, %s6258_s21), 63  ;;  %1126 = vperm.xlu1 %7020, %v1087_v2   ;;  %1120 = vperm.xlu0 %7019, %v1085_v3   ;;  %v1084_v14 = vld [vmem:[%s17197_s0] sm:$0xff]  ;;  %v1113_v21 = vld [vmem:[%s17197_s0 + $0xe8] sm:$0xff]  ;;  %v1114_v22 = vld [vmem:[%s17197_s0 + $0xf0] sm:$0xff]  ;;  %v1051_v2 = vlaneseq }
  0x11   : > { %s6259_s30 = sshll.u32 %s21482_s21, 3  ;;  %v1092_v17 = vld [vmem:[%s17197_s0 + $0x40] sm:$0xff]  ;;  %v1115_v25 = vld [vmem:[%s17197_s0 + $0xf8] sm:$0xff]  ;;  %v1093_v26 = vld [vmem:[%s17197_s0 + $0x48] sm:$0xff] }
  0x12   : > { %s7383_s14 = scalar_lea.vmem %s17198_s1, %s6259_s30  ;;  %v1112_v18 = vld [vmem:[%s17197_s0 + $0xe0] sm:$0xff]  ;;  %v1110_v29 = vld [vmem:[%s17197_s0 + $0xd0] sm:$0xff]  ;;  %v1111_v30 = vld [vmem:[%s17197_s0 + $0xd8] sm:$0xff]  ;;  %v7533_v3 = vshrl.u32 %v1051_v2, 7  ;;  %s16961_s26 = scalar_lea.vmem %s17208_s11, %s6259_s30 }
  0x13   : > { %v390_v6 = vld [vmem:[%s7383_s14] sm:$0xff]  ;;  %v391_v7 = vld [vmem:[%s7383_s14 + $0x8] sm:$0xff]  ;;  %v392_v8 = vld [vmem:[%s7383_s14 + $0x10] sm:$0xff] }
  0x14   : > { %1129 = vperm.xlu1 %7020, %v1088_v4   ;;  %1123 = vperm.xlu0 %7019, %v1086_v5   ;;  %v393_v11 = vld [vmem:[%s7383_s14 + $0x18] sm:$0xff]  ;;  %v394_v12 = vld [vmem:[%s7383_s14 + $0x20] sm:$0xff]  ;;  %v395_v15 = vld [vmem:[%s7383_s14 + $0x28] sm:$0xff]  ;;  %v7536_v4 = vadd.s32 32, %v7533_v3  ;;  %vm17327_vm2 = vcmp.lt.s32.totalorder %v7533_v3, 1  ;;  %vm17328_vm3 = vcmp.lt.s32.totalorder %v7533_v3, 2 }
  0x15   : > { %6664 = vmatprep.mubr.msk.f32.mxu0 %vm423_vm1, %v390_v6  ;;  %v396_v16 = vld [vmem:[%s7383_s14 + $0x30] sm:$0xff]  ;;  %v397_v19 = vld [vmem:[%s7383_s14 + $0x38] sm:$0xff]  ;;  %v398_v20 = vld [vmem:[%s7383_s14 + $0x40] sm:$0xff]  ;;  %v7541_v6 = vadd.s32 24, %v7533_v3  ;;  %vm17330_vm4 = vcmp.lt.s32.totalorder %v7533_v3, 7  ;;  %vm17331_vm5 = vcmp.lt.s32.totalorder %v7533_v3, 6 }
  0x16   : > { %6665 = vmatmul.mubr.msk.f32.vlgmr.msra.gmra.mrb[0].mxu0 %vm423_vm1, %v391_v7  ;;  %v399_v23 = vld [vmem:[%s7383_s14 + $0x48] sm:$0xff]  ;;  %v400_v24 = vld [vmem:[%s7383_s14 + $0x50] sm:$0xff]  ;;  %v401_v27 = vld [vmem:[%s7383_s14 + $0x58] sm:$0xff]  ;;  %v1216_v7 = vrot.slane %v7536_v4, 7 }
  0x17   : > { %6667 = vmatprep.mubr.msk.f32.mxu0 %vm423_vm1, %v392_v8  ;;  %v402_v28 = vld [vmem:[%s7383_s14 + $0x60] sm:$0xff]  ;;  %v403_v31 = vld [vmem:[%s7383_s14 + $0x68] sm:$0xff]  ;;  %v404_v32 = vld [vmem:[%s7383_s14 + $0x70] sm:$0xff]  ;;  %v1569_v8 = vrot.slane %v7536_v4, 6 }
  0x18   : > { %1135 = vperm.xlu1 %7020, %v1090_v9   ;;  %1132 = vperm.xlu0 %7019, %v1089_v10   ;;  %v1094_v33 = vld [vmem:[%s17197_s0 + $0x50] sm:$0xff]  ;;  %v1095_v34 = vld [vmem:[%s17197_s0 + $0x58] sm:$0xff]  ;;  %v406_v36 = vld [vmem:[%s7383_s14 + $0x80] sm:$0xff]  ;;  %v1922_v9 = vrot.slane %v7536_v4, 1 }
  0x19   : > { %v405_v35 = vld [vmem:[%s7383_s14 + $0x78] sm:$0xff]  ;;  %v1096_v37 = vld [vmem:[%s17197_s0 + $0x60] sm:$0xff]  ;;  %v1097_v38 = vld [vmem:[%s17197_s0 + $0x68] sm:$0xff] }
  0x1a   : > { %6668 = vmatmul.mubr.msk.f32.gmra.mrb[2].mxu0 %vm423_vm1, %v393_v11  ;;  %v407_v39 = vld [vmem:[%s7383_s14 + $0x88] sm:$0xff]  ;;  %v408_v40 = vld [vmem:[%s7383_s14 + $0x90] sm:$0xff]  ;;  %v1099_v42 = vld [vmem:[%s17197_s0 + $0x78] sm:$0xff]  ;;  %v1215_v11 = vrot.slane %v7541_v6, 7 }
  0x1b   : > { %6670 = vmatprep.mubr.msk.f32.mxu0 %vm423_vm1, %v394_v12  ;;  %v1098_v41 = vld [vmem:[%s17197_s0 + $0x70] sm:$0xff]  ;;  %v409_v43 = vld [vmem:[%s7383_s14 + $0x98] sm:$0xff]  ;;  %v410_v44 = vld [vmem:[%s7383_s14 + $0xa0] sm:$0xff]  ;;  %v7550_v12 = vadd.s32 16, %v7533_v3 }
  0x1c   : > { %1138 = vperm.xlu0 %7019, %v1091_v13   ;;  %1117 = vperm.xlu1 %7020, %v1084_v14   ;;  %v1100_v45 = vld [vmem:[%s17197_s0 + $0x80] sm:$0xff]  ;;  %v1101_v46 = vld [vmem:[%s17197_s0 + $0x88] sm:$0xff]  ;;  %v412_v48 = vld [vmem:[%s7383_s14 + $0xb0] sm:$0xff]  ;;  %v1568_v13 = vrot.slane %v7541_v6, 6  ;;  %v1921_v14 = vrot.slane %v7541_v6, 1 }
  0x1d   : > { %v411_v47 = vld [vmem:[%s7383_s14 + $0xa8] sm:$0xff]  ;;  %v1102_v49 = vld [vmem:[%s17197_s0 + $0x90] sm:$0xff]  ;;  %v1103_v50 = vld [vmem:[%s17197_s0 + $0x98] sm:$0xff]  ;;  %18042 = vst [vmem:[#allocation2_spill] sm:$0xff] %v7550_v12 }
  0x1e   : > { %6671 = vmatmul.mubr.msk.f32.gmra.mrb[4].mxu0 %vm423_vm1, %v395_v15  ;;  %v413_v51 = vld [vmem:[%s7383_s14 + $0xb8] sm:$0xff]  ;;  %v414_v52 = vld [vmem:[%s7383_s14 + $0xc0] sm:$0xff]  ;;  %v1105_v54 = vld [vmem:[%s17197_s0 + $0xa8] sm:$0xff]  ;;  %v17223_v15 = vrot.slane %v7536_v4, 2 }
  0x1f   : > { %6673 = vmatprep.mubr.msk.f32.mxu0 %vm423_vm1, %v396_v16  ;;  %v1104_v53 = vld [vmem:[%s17197_s0 + $0xa0] sm:$0xff]  ;;  %v415_v55 = vld [vmem:[%s7383_s14 + $0xc8] sm:$0xff]  ;;  %v416_v56 = vld [vmem:[%s7383_s14 + $0xd0] sm:$0xff]  ;;  %v7560_v16 = vsel %vm17327_vm2, %v1215_v11, %v1216_v7 }
  0x20   : > { %1141 = vperm.xlu0 %7019, %v1092_v17   ;;  %1201 = vperm.xlu1 %7020, %v1112_v18   ;;  %v1106_v57 = vld [vmem:[%s17197_s0 + $0xb0] sm:$0xff]  ;;  %v1107_v58 = vld [vmem:[%s17197_s0 + $0xb8] sm:$0xff]  ;;  %v418_v60 = vld [vmem:[%s7383_s14 + $0xe0] sm:$0xff]  ;;  %v7570_v18 = vsel %vm17328_vm3, %v1568_v13, %v1569_v8 }
  0x21   : > { %v417_v59 = vld [vmem:[%s7383_s14 + $0xd8] sm:$0xff]  ;;  %v1108_v61 = vld [vmem:[%s17197_s0 + $0xc0] sm:$0xff]  ;;  %v1109_v62 = vld [vmem:[%s17197_s0 + $0xc8] sm:$0xff]  ;;  %18043 = vst [vmem:[#allocation3_spill] sm:$0xff] %v7570_v18 }
  0x22   : > { %6674 = vmatmul.mubr.msk.f32.gmra.mrb[6].mxu0 %vm423_vm1, %v397_v19  ;;  %v419_v63 = vld [vmem:[%s7383_s14 + $0xe8] sm:$0xff]  ;;  %v420_v0 = vld [vmem:[%s7383_s14 + $0xf0] sm:$0xff]  ;;  %v421_v1 = vld [vmem:[%s7383_s14 + $0xf8] sm:$0xff]  ;;  %v7576_v19 = vsel %vm17330_vm4, %v1921_v14, %v1922_v9 }
  0x23   : > { %6676 = vmatprep.mubr.msk.f32.mxu0 %vm423_vm1, %v398_v20  ;;  %18044 = vst [vmem:[#allocation4_spill] sm:$0xff] %v7576_v19  ;;  %v2274_v20 = vrot.slane %v7541_v6, 2 }
  0x24   : > { %1204 = vperm.xlu0 %7019, %v1113_v21   ;;  %1207 = vperm.xlu1 %7020, %v1114_v22   ;;  %v7580_v21 = vadd.s32 8, %v7533_v3  ;;  %v1214_v22 = vrot.slane %v7550_v12, 7 }
  0x26   : > { %6677 = vmatmul.mubr.msk.f32.gmra.mrb[8].mxu0 %vm423_vm1, %v399_v23  ;;  %18045 = vst [vmem:[#allocation5_spill] sm:$0xff] %v7580_v21  ;;  %v7588_v23 = vsel %vm17331_vm5, %v2274_v20, %v17223_v15 }
  0x27   : > { %6679 = vmatprep.mubr.msk.f32.mxu0 %vm423_vm1, %v400_v24  ;;  %18046 = vst [vmem:[#allocation6_spill] sm:$0xff] %v7588_v23  ;;  %v1567_v24 = vrot.slane %v7550_v12, 6  ;;  %v18083_v23 = vrot.slane %v7536_v4, 2 }
  0x28   : > { %1210 = vperm.xlu0 %7019, %v1115_v25   ;;  %1144 = vperm.xlu1 %7020, %v1093_v26   ;;  %v1920_v25 = vrot.slane %v7550_v12, 1 }
  0x2a   : > { %6680 = vmatmul.mubr.msk.f32.gmra.mrb[10].mxu0 %vm423_vm1, %v401_v27 }
  0x2b   : > { %6682 = vmatprep.mubr.msk.f32.mxu0 %vm423_vm1, %v402_v28 }
  0x2c   : > { %1195 = vperm.xlu0 %7019, %v1110_v29   ;;  %1198 = vperm.xlu1 %7020, %v1111_v30   ;;  %v17209_v30 = vrot.slane %v7550_v12, 2 }
  0x2e   : > { %6683 = vmatmul.mubr.msk.f32.gmra.mrb[12].mxu0 %vm423_vm1, %v403_v31  ;;  %v1213_v31 = vrot.slane %v7580_v21, 7 }
  0x2f   : > { %6685 = vmatprep.mubr.msk.f32.mxu0 %vm423_vm1, %v404_v32  ;;  %v1566_v32 = vrot.slane %v7580_v21, 6 }
  0x30   : > { %1147 = vperm.xlu0 %7019, %v1094_v33   ;;  %1150 = vperm.xlu1 %7020, %v1095_v34   ;;  %v17214_v33 = vrot.slane %v7533_v3, 7  ;;  %v17213_v34 = vrot.slane %v7533_v3, 6 }
  0x32   : > { %6686 = vmatmul.mubr.msk.f32.gmra.mrb[14].mxu0 %vm423_vm1, %v405_v35 }
  0x33   : > { %6688 = vmatprep.mubr.msk.f32.mxu0 %vm423_vm1, %v406_v36  ;;  %v7609_v36 = vsel %vm17327_vm2, %v1214_v22, %v1215_v11 }
  0x34   : > { %1153 = vperm.xlu0 %7019, %v1096_v37   ;;  %1156 = vperm.xlu1 %7020, %v1097_v38   ;;  %v1919_v37 = vrot.slane %v7580_v21, 1 }
  0x36   : > { %6689 = vmatmul.mubr.msk.f32.gmra.mrb[16].mxu0 %vm423_vm1, %v407_v39  ;;  %v17212_v39 = vrot.slane %v7533_v3, 1 }
  0x37   : > { %6691 = vmatprep.mubr.msk.f32.mxu0 %vm423_vm1, %v408_v40  ;;  %v7617_v40 = vsel %vm17327_vm2, %v1213_v31, %v1214_v22 }
  0x38   : > { %1159 = vperm.xlu0 %7019, %v1098_v41   ;;  %1162 = vperm.xlu1 %7020, %v1099_v42   ;;  %v7621_v41 = vsel %vm17328_vm3, %v1567_v24, %v1568_v13  ;;  %v7625_v42 = vsel %vm17328_vm3, %v1566_v32, %v1567_v24 }
  0x39   : > { %18047 = vst [vmem:[#allocation7_spill] sm:$0xff] %v7621_v41 }
  0x3a   : > { %6692 = vmatmul.mubr.msk.f32.gmra.mrb[18].mxu0 %vm423_vm1, %v409_v43  ;;  %v7629_v43 = vsel %vm17330_vm4, %v1920_v25, %v1921_v14 }
  0x3b   : > { %6694 = vmatprep.mubr.msk.f32.mxu0 %vm423_vm1, %v410_v44  ;;  %v7633_v44 = vsel %vm17330_vm4, %v1919_v37, %v1920_v25 }
  0x3c   : > { %1165 = vperm.xlu0 %7019, %v1100_v45   ;;  %1168 = vperm.xlu1 %7020, %v1101_v46   ;;  %18048 = vst [vmem:[#allocation8_spill] sm:$0xff] %v7633_v44  ;;  %v7639_v45 = vsel %vm17331_vm5, %v17209_v30, %v2274_v20  ;;  %v7642_v46 = vadd.s32 40, %v7533_v3 }
  0x3e   : > { %6695 = vmatmul.mubr.msk.f32.gmra.mrb[20].mxu0 %vm423_vm1, %v411_v47  ;;  %v17211_v47 = vrot.slane %v7533_v3, 2  ;;  %v1923_v2 = vrot.slane %v7642_v46, 1 }
  0x3f   : > { %6697 = vmatprep.mubr.msk.f32.mxu0 %vm423_vm1, %v412_v48  ;;  %v7646_v48 = vadd.s32 48, %v7533_v3 }
  0x40   : > { %1171 = vperm.xlu0 %7019, %v1102_v49   ;;  %1174 = vperm.xlu1 %7020, %v1103_v50   ;;  %v7652_v49 = vsel %vm17327_vm2, %v17214_v33, %v1213_v31  ;;  %v7658_v50 = vsel %vm17328_vm3, %v17213_v34, %v1566_v32 }
  0x41   : > { %18049 = vst [vmem:[#allocation9_spill] sm:$0xff] %v7646_v48  ;;  %18050 = vst [vmem:[#allocation10_spill] sm:$0xff] %v7652_v49  ;;  %v17221_v11 = vrot.slane %v7646_v48, 1 }
  0x42   : > { %6698 = vmatmul.mubr.msk.f32.gmra.mrb[22].mxu0 %vm423_vm1, %v413_v51  ;;  %18051 = vst [vmem:[#allocation11_spill] sm:$0xff] %v7658_v50  ;;  %v17210_v51 = vrot.slane %v7580_v21, 2 }
  0x43   : > { %6700 = vmatprep.mubr.msk.f32.mxu0 %vm423_vm1, %v414_v52 }
  0x44   : > { %1177 = vperm.xlu0 %7019, %v1104_v53   ;;  %1180 = vperm.xlu1 %7020, %v1105_v54   ;;  %v7701_v14 = vsel %vm17331_vm5, %v17211_v47, %v17210_v51  ;;  %v7743_v54 = vsel %vm17330_vm4, %v1922_v9, %v1923_v2 }
  0x45   : > { %18053 = vst [vmem:[#allocation13_spill] sm:$0xff] %v7701_v14  ;;  %18056 = vst [vmem:[#allocation16_spill] sm:$0xff] %v7743_v54 }
  0x46   : > { %6701 = vmatmul.mubr.msk.f32.gmra.mrb[24].mxu0 %vm423_vm1, %v415_v55 }
  0x47   : > { %6703 = vmatprep.mubr.msk.f32.mxu0 %vm423_vm1, %v416_v56  ;;  %v7673_v56 = vsel %vm17330_vm4, %v17212_v39, %v1919_v37 }
  0x48   : > { %1183 = vperm.xlu0 %7019, %v1106_v57   ;;  %1186 = vperm.xlu1 %7020, %v1107_v58   ;;  %18052 = vst [vmem:[#allocation12_spill] sm:$0xff] %v7673_v56 }
  0x4a   : > { %6704 = vmatmul.mubr.msk.f32.gmra.mrb[26].mxu0 %vm423_vm1, %v417_v59 }
  0x4b   : > { %6706 = vmatprep.mubr.msk.f32.mxu0 %vm423_vm1, %v418_v60 }
  0x4c   : > { %1189 = vperm.xlu0 %7019, %v1108_v61   ;;  %1192 = vperm.xlu1 %7020, %v1109_v62   ;;  %v17216_v61 = vrot.slane %v7642_v46, 7  ;;  %v17215_v62 = vrot.slane %v7642_v46, 6 }
  0x4e   : > { %6707 = vmatmul.mubr.msk.f32.gmra.mrb[28].mxu0 %vm423_vm1, %v419_v63 }
  0x4f   : > { %6709 = vmatprep.mubr.msk.f32.mxu0 %vm423_vm1, %v420_v0  ;;  %v7727_v0 = vsel %vm17328_vm3, %v1569_v8, %v17215_v62 }
  0x50   : > { %18054 = vst [vmem:[#allocation14_spill] sm:$0xff] %v7727_v0 }
  0x52   : > { %6710 = vmatmul.mubr.msk.f32.gmra.mrb[30].mxu0 %vm423_vm1, %v421_v1  ;;  %v7719_v1 = vsel %vm17327_vm2, %v1216_v7, %v17216_v61  ;;  %v7737_v7 = vsel %vm17330_vm4, %v1923_v2, %v17221_v11 }
  0x53   : > { %18055 = vst [vmem:[#allocation15_spill] sm:$0xff] %v7737_v7  ;;  %v18109_v7 = vrot.slane %v7646_v48, 1 }
  0x8f   : > { %v7538_v5 = vpop.permute.xlu0 %1120  ;;  %v7546_v10 = vpop.permute.xlu1 %1126 }
  0x90   : > { %v1312_v20 = vrot.slane %v7546_v10, 7  ;;  %v1665_v31 = vrot.slane %v7546_v10, 6  ;;  %v2018_v32 = vrot.slane %v7546_v10, 1  ;;  %v2371_v37 = vrot.slane %v7546_v10, 2 }
  0x91   : > { %v17220_v30 = vrot.slane %v7538_v5, 7  ;;  %v17217_v58 = vrot.slane %v7538_v5, 6  ;;  %v17218_v9 = vrot.slane %v7538_v5, 1  ;;  %v17219_v2 = vrot.slane %v7538_v5, 2 }
  0x92   : > { %v18126_v19 = vrot.slane %v7538_v5, 1 }
  0x93   : > { %v7564_v17 = vpop.permute.xlu0 %1123  ;;  %v7592_v26 = vpop.permute.xlu1 %1129 }
  0x94   : > { %v17226_v22 = vrot.slane %v7592_v26, 7  ;;  %v17225_v24 = vrot.slane %v7592_v26, 6  ;;  %v17224_v25 = vrot.slane %v7592_v26, 1  ;;  %v17222_v51 = vrot.slane %v7592_v26, 2 }
  0x95   : > { %v1311_v35 = vrot.slane %v7564_v17, 7  ;;  %v1664_v29 = vrot.slane %v7564_v17, 6  ;;  %v2017_v53 = vrot.slane %v7564_v17, 1  ;;  %v2370_v27 = vrot.slane %v7564_v17, 2 }
  0x96   : > { %v1368_v8 = vsel %vm17327_vm2, %v1312_v20, %v17226_v22  ;;  %v1721_v28 = vsel %vm17328_vm3, %v1665_v31, %v17225_v24  ;;  %v2074_v60 = vsel %vm17330_vm4, %v2018_v32, %v17224_v25  ;;  %v2427_v52 = vsel %vm17331_vm5, %v2371_v37, %v17222_v51 }
  0x97   : > { %v7612_v38 = vpop.permute.xlu0 %1132  ;;  %v7667_v55 = vpop.permute.xlu1 %1135  ;;  %v7776_v33 = vsub.s32 %v1368_v8, %v7592_v26  ;;  %v7779_v62 = vsub.s32 %v1721_v28, %v7592_v26  ;;  %v7782_v57 = vsub.s32 %v2074_v60, %v7546_v10  ;;  %v1370_v47 = vsel %vm17327_vm2, %v17220_v30, %v1311_v35 }
  0x98   : > { %v1369_v39 = vsel %vm17327_vm2, %v1311_v35, %v1312_v20  ;;  %v1722_v34 = vsel %vm17328_vm3, %v1664_v29, %v1665_v31  ;;  %v1723_v28 = vsel %vm17328_vm3, %v17217_v58, %v1664_v29  ;;  %v2075_v60 = vsel %vm17330_vm4, %v2017_v53, %v2018_v32 }
  0x99   : > { %v2076_v61 = vsel %vm17330_vm4, %v17218_v9, %v2017_v53  ;;  %v2429_v35 = vsel %vm17331_vm5, %v17219_v2, %v2370_v27  ;;  %v7810_v31 = vadd.s32 224, %v7533_v3  ;;  %v7813_v29 = vsub.s32 %v2427_v52, %v7546_v10 }
  0x9a   : > { %v7816_v32 = vsub.s32 %v1370_v47, %v7564_v17  ;;  %v2428_v58 = vsel %vm17331_vm5, %v2370_v27, %v2371_v37  ;;  %v7823_v9 = vadd.s32 232, %v7533_v3  ;;  %v7826_v2 = vsub.s32 %v1369_v39, %v7546_v10 }
  0x9b   : > { %v7685_v63 = vpop.permute.xlu0 %1138  ;;  %v7729_v13 = vpop.permute.xlu1 %1117  ;;  %18057 = vst [vmem:[#allocation17_spill] sm:$0xff] %v7810_v31  ;;  %v7829_v30 = vsub.s32 %v1723_v28, %v7564_v17  ;;  %v7832_v52 = vsub.s32 %v1722_v34, %v7546_v10  ;;  %v7836_v11 = vsub.s32 %v2076_v61, %v7538_v5  ;;  %v7839_v27 = vsub.s32 %v2075_v60, %v7564_v17 }
  0x9c   : > { %18058 = vst [vmem:[#allocation18_spill] sm:$0xff] %v7823_v9  ;;  %v7842_v37 = vsub.s32 %v2429_v35, %v7538_v5  ;;  %v17230_v39 = vrot.slane %v7810_v31, 1  ;;  %v7846_v51 = vsub.s32 %v2428_v58, %v7564_v17  ;;  %v17231_v10 = vrot.slane %v7823_v9, 1 }
  0x9d   : > { %18059 = vst [vmem:[#allocation19_spill] sm:$0xff] %v7836_v11  ;;  %v1314_v17 = vrot.slane %v7612_v38, 7  ;;  %v1667_v58 = vrot.slane %v7612_v38, 6  ;;  %v2020_v15 = vrot.slane %v7612_v38, 1  ;;  %v2276_v25 = vrot.slane %v7642_v46, 2 }
  0x9e   : > { %18060 = vst [vmem:[#allocation20_spill] sm:$0xff] %v7842_v37  ;;  %v1953_v35 = vsel %vm17330_vm4, %v17230_v39, %v17231_v10  ;;  %v2373_v60 = vrot.slane %v7612_v38, 2  ;;  %v7877_v61 = vadd.s32 56, %v7533_v3  ;;  %v18064_v10 = vrot.slane %v7667_v55, 7 }
  0x9f   : > { %v7758_v59 = vpop.permute.xlu0 %1141  ;;  %v7798_v8 = vpop.permute.xlu1 %1201  ;;  %v2011_v22 = vsub.s32 %v1953_v35, %v7810_v31  ;;  %v18066_v11 = vrot.slane %v7667_v55, 6  ;;  %v18067_v37 = vmov 0  ;;  %v7958_v54 = vsel %vm17331_vm5, %v18083_v23, %v2276_v25 }
  0xa0   : > { %v17227_v20 = vrot.slane %v7798_v8, 1  ;;  %18062 = vst [vmem:[#allocation22_spill] sm:$0xff] %v7877_v61  ;;  %v1366_v44 = vsel %vm17327_vm2, %v1314_v17, %v18064_v10  ;;  %18084 = vst [vmem:[#allocation26_spill] sm:$0xff] %v7958_v54  ;;  %v18115_v54 = vrot.slane %v7646_v48, 2  ;;  %v18173_v18 = vrot.slane %v7798_v8, 6 }
  0xa1   : > { %vm1439_vm1 = vcmp.ge.s32.totalorder %v7816_v32, 4294967294 }
  0xa3   : > { %v7820_v53 = vpop.permute.xlu0 %1204  ;;  %v7881_v28 = vpop.permute.xlu1 %1207 }
  0xa4   : > { %v17228_v47 = vrot.slane %v7820_v53, 1  ;;  %v18070_v50 = vrot.slane %v7881_v28, 7  ;;  %v18071_v10 = vrot.slane %v7820_v53, 7 }
  0xa6   : > { %v2049_v34 = vsel %vm17330_vm4, %v17227_v20, %v17228_v47  ;;  %v7885_v20 = vadd.s32 240, %v7533_v3  ;;  %v1719_v47 = vsel %vm17328_vm3, %v1667_v58, %v18066_v11  ;;  %v1342_v21 = vsel %vm17327_vm2, %v18071_v10, %v18070_v50 }
  0xa7   : > { %v7864_v24 = vsub.s32 %v2049_v34, %v7798_v8  ;;  %v18065_v34 = vrot.slane %v7592_v26, 7  ;;  %v18073_v11 = vrot.slane %v7820_v53, 6  ;;  %v1403_v50 = vsub.s32 %v1342_v21, %v7881_v28 }
  0xa8   : > { %18063 = vst [vmem:[#allocation23_spill] sm:$0xff] %v7885_v20 }
  0xa9   : > { %18061 = vst [vmem:[#allocation21_spill] sm:$0xff] %v7864_v24  ;;  %v1367_v35 = vsel %vm17327_vm2, %v18065_v34, %v1314_v17  ;;  %vm7902_vm6 = vcmp.eq.s32.totalorder %v2011_v22, %v7864_v24  ;;  %v18072_v34 = vrot.slane %v7881_v28, 6  ;;  %v18075_v24 = vrot.slane %v7667_v55, 1 }
  0xaa   : > { %v18068_v37 = vsel %vm7902_vm6, 4294967295, %v18067_v37  ;;  %v18076_v17 = vrot.slane %v7592_v26, 1  ;;  %vm1467_vm7 = vcmp.ge.s32.totalorder %v1403_v50, 4294967294  ;;  %vm1499_vm8 = vcmp.le.s32.totalorder %v1403_v50, 2 }
  0xab   : > { %18069 = vst [vmem:[#allocation24_spill] sm:$0xff] %v18068_v37  ;;  %v1695_v22 = vsel %vm17328_vm3, %v18073_v11, %v18072_v34  ;;  %v18074_v37 = vrot.slane %v7592_v26, 6  ;;  %v2072_v49 = vsel %vm17330_vm4, %v2020_v15, %v18075_v24  ;;  %v18077_v34 = vrot.slane %v7646_v48, 2  ;;  %vm1531_vm9 = vmand %vm1467_vm7, %vm1499_vm8 }
  0xac   : > { %v1756_v10 = vsub.s32 %v1695_v22, %v7881_v28  ;;  %v2073_v56 = vsel %vm17330_vm4, %v18076_v17, %v2020_v15  ;;  %v18081_v24 = vrot.slane %v7885_v20, 6  ;;  %v18082_v22 = vrot.slane %v7823_v9, 6 }
  0xad   : > { %v1720_v39 = vsel %vm17328_vm3, %v18074_v37, %v1667_v58  ;;  %v7938_v11 = vsel %vm17331_vm5, %v2276_v25, %v18077_v34  ;;  %v18079_v37 = vrot.slane %v7885_v20, 7  ;;  %v18080_v58 = vrot.slane %v7823_v9, 7 }
  0xae   : > { %18078 = vst [vmem:[#allocation25_spill] sm:$0xff] %v7938_v11  ;;  %v1599_v15 = vsel %vm17328_vm3, %v18082_v22, %v18081_v24  ;;  %vm1820_vm10 = vcmp.ge.s32.totalorder %v1756_v10, 4294967294  ;;  %vm1852_vm11 = vcmp.le.s32.totalorder %v1756_v10, 2  ;;  %v7967_v22 = vsub.s32 %v1366_v44, %v7667_v55  ;;  %v8030_v11 = vpop.permute.xlu0 %1210 }
  0xaf   : > { %v1246_v21 = vsel %vm17327_vm2, %v18080_v58, %v18079_v37  ;;  %v1660_v34 = vsub.s32 %v1599_v15, %v7885_v20  ;;  %v17248_v58 = vrot.slane %v7877_v61, 7  ;;  %vm1884_vm14 = vmand %vm1820_vm10, %vm1852_vm11  ;;  %v18086_v15 = vmov 0 }
  0xb0   : > { %v1307_v17 = vsub.s32 %v1246_v21, %v7885_v20  ;;  %v7964_v21 = vsub.s32 %v1367_v35, %v7612_v38  ;;  %18085 = vst [vmem:[#allocation27_spill] sm:$0xff] %v7967_v22  ;;  %v7976_v37 = vsub.s32 %v1720_v39, %v7612_v38  ;;  %v7982_v35 = vsub.s32 %v2073_v56, %v7592_v26 }
  0xb1   : > { %vm1788_vm13 = vcmp.eq.s32.totalorder %v1660_v34, %v1756_v10  ;;  %v1669_v44 = vrot.slane %v7685_v63, 6  ;;  %v18092_v10 = vmov 0  ;;  %v18096_v56 = vrot.slane %v7667_v55, 2 }
  0xb2   : > { %vm1435_vm12 = vcmp.eq.s32.totalorder %v1307_v17, %v1403_v50  ;;  %18089 = vst [vmem:[#allocation29_spill] sm:$0xff] %v7976_v37  ;;  %v7979_v50 = vsub.s32 %v1719_v47, %v7667_v55  ;;  %18091 = vst [vmem:[#allocation31_spill] sm:$0xff] %v7982_v35  ;;  %v7990_v17 = vsub.s32 %v2072_v49, %v7612_v38  ;;  %v18097_v25 = vrot.slane %v7592_v26, 2 }
  0xb3   : > { %vm7971_vm15 = vmand %vm1435_vm12, %vm1531_vm9  ;;  %v2425_v23 = vsel %vm17331_vm5, %v2373_v60, %v18096_v56  ;;  %v18098_v49 = vrot.slane %v7646_v48, 7  ;;  %v18100_v39 = vrot.slane %v7685_v63, 7  ;;  %v18101_v47 = vrot.slane %v7667_v55, 7 }
  0xb4   : > { %v18087_v15 = vsel %vm7971_vm15, 4294967295, %v18086_v15  ;;  %18090 = vst [vmem:[#allocation30_spill] sm:$0xff] %v7979_v50  ;;  %vm7985_vm0 = vmand %vm1788_vm13, %vm1884_vm14  ;;  %v2426_v24 = vsel %vm17331_vm5, %v18097_v25, %v2373_v60  ;;  %v2022_v25 = vrot.slane %v7685_v63, 1  ;;  %v18105_v50 = vrot.slane %v7667_v55, 6 }
  0xb5   : > { %18088 = vst [vmem:[#allocation28_spill] sm:$0xff] %v18087_v15  ;;  %v18093_v10 = vsel %vm7985_vm0, 4294967295, %v18092_v10  ;;  %18095 = vst [vmem:[#allocation33_spill] sm:$0xff] %v7990_v17  ;;  %v8011_v34 = vsel %vm17327_vm2, %v18098_v49, %v17248_v58  ;;  %v1365_v56 = vsel %vm17327_vm2, %v18101_v47, %v18100_v39  ;;  %v18103_v15 = vrot.slane %v7646_v48, 6 }
  0xb6   : > { %18094 = vst [vmem:[#allocation32_spill] sm:$0xff] %v18093_v10  ;;  %18099 = vst [vmem:[#allocation34_spill] sm:$0xff] %v8011_v34  ;;  %v18102_v10 = vrot.slane %v7877_v61, 6  ;;  %v1718_v39 = vsel %vm17328_vm3, %v18105_v50, %v1669_v44  ;;  %v8043_v49 = vsub.s32 %v2425_v23, %v7612_v38  ;;  %v18108_v58 = vrot.slane %v7877_v61, 1 }
  0xb7   : > { %v8062_v38 = vadd.s32 64, %v7533_v3  ;;  %v18114_v23 = vrot.slane %v7877_v61, 2  ;;  %v18118_v47 = vrot.slane %v7667_v55, 2  ;;  %v18124_v34 = vrot.slane %v7729_v13, 6 }
  0xb8   : > { %v8025_v60 = vsel %vm17328_vm3, %v18103_v15, %v18102_v10  ;;  %v8040_v10 = vsub.s32 %v2426_v24, %v7592_v26  ;;  %18107 = vst [vmem:[#allocation37_spill] sm:$0xff] %v8043_v49  ;;  %v8051_v22 = vsel %vm17330_vm4, %v18109_v7, %v18108_v58  ;;  %v8057_v15 = vsub.s32 %v1365_v56, %v7685_v63 }
  0xb9   : > { %18104 = vst [vmem:[#allocation35_spill] sm:$0xff] %v8025_v60  ;;  %18110 = vst [vmem:[#allocation38_spill] sm:$0xff] %v8051_v22  ;;  %v8065_v24 = vsub.s32 %v1718_v39, %v7685_v63  ;;  %v18113_v7 = vrot.slane %v7667_v55, 1  ;;  %v8077_v56 = vsel %vm17331_vm5, %v18115_v54, %v18114_v23  ;;  %v18117_v39 = vrot.slane %v7685_v63, 2 }
  0xba   : > { %18106 = vst [vmem:[#allocation36_spill] sm:$0xff] %v8040_v10  ;;  %18111 = vst [vmem:[#allocation39_spill] sm:$0xff] %v8057_v15  ;;  %v18119_v60 = vrot.slane %v7538_v5, 7  ;;  %v18121_v23 = vrot.slane %v8030_v11, 1  ;;  %v18122_v26 = vrot.slane %v7881_v28, 1  ;;  %v18123_v22 = vrot.slane %v7538_v5, 6 }
  0xbb   : > { %18112 = vst [vmem:[#allocation40_spill] sm:$0xff] %v8065_v24  ;;  %v2071_v58 = vsel %vm17330_vm4, %v18113_v7, %v2022_v25  ;;  %18116 = vst [vmem:[#allocation41_spill] sm:$0xff] %v8077_v56  ;;  %v2424_v7 = vsel %vm17331_vm5, %v18118_v47, %v18117_v39  ;;  %v18120_v24 = vrot.slane %v7729_v13, 7  ;;  %v18141_v14 = vrot.slane %v8062_v38, 6 }
  0xbc   : > { %v8100_v50 = vsel %vm17330_vm4, %v18122_v26, %v18121_v23  ;;  %v1724_v47 = vsel %vm17328_vm3, %v18124_v34, %v18123_v22  ;;  %v8117_v26 = vsub.s32 %v2071_v58, %v7667_v55  ;;  %v8133_v23 = vsub.s32 %v2424_v7, %v7667_v55 }
  0xbd   : > { %v1371_v54 = vsel %vm17327_vm2, %v18120_v24, %v18119_v60  ;;  %v8114_v24 = vld [vmem:[%s17200_s3] ss:$0 sm:$0xff]  ;;  %v18127_v60 = vrot.slane %v7729_v13, 1  ;;  %v8139_v35 = vsub.s32 %v1724_v47, %v7538_v5  ;;  %v18132_v58 = vrot.slane %v7729_v13, 2 }
  0xbe   : > { %18125 = vst [vmem:[#allocation42_spill] sm:$0xff] %v8117_v26  ;;  %v17268_v26 = vrot.slane %v8030_v11, 2  ;;  %18128 = vst [vmem:[#allocation43_spill] sm:$0xff] %v8133_v23  ;;  %v8136_v22 = vsub.s32 %v1371_v54, %v7538_v5  ;;  %v18133_v55 = vrot.slane %v7758_v59, 7  ;;  %v18134_v7 = vrot.slane %v7685_v63, 7 }
  0xbf   : > { %v2077_v39 = vsel %vm17330_vm4, %v18127_v60, %v18126_v19  ;;  %18130 = vst [vmem:[#allocation45_spill] sm:$0xff] %v8139_v35  ;;  %v18131_v60 = vrot.slane %v7538_v5, 2  ;;  %v18135_v47 = vrot.slane %v7758_v59, 6  ;;  %v8163_v5 = vld [vmem:[%s17201_s4] ss:$0 sm:$0xff]  ;;  %v18142_v35 = vrot.slane %v7877_v61, 6 }
  0xc0   : > { %18129 = vst [vmem:[#allocation44_spill] sm:$0xff] %v8136_v22  ;;  %v1364_v54 = vsel %vm17327_vm2, %v18134_v7, %v18133_v55  ;;  %v17275_v7 = vrot.slane %v8062_v38, 2  ;;  %v18197_v37 = vrot.slane %v7885_v20, 7  ;;  %vm1471_vm7 = vcmp.le.s32.totalorder %v7816_v32, 2 }
  0xc1   : > { %v2430_v49 = vsel %vm17331_vm5, %v18132_v58, %v18131_v60  ;;  %v1717_v56 = vsel %vm17328_vm3, %v1669_v44, %v18135_v47  ;;  %v18137_v58 = vrot.slane %v8062_v38, 7  ;;  %v18138_v60 = vrot.slane %v7877_v61, 7 }
  0xc2   : > { %v18140_v44 = vrot.slane %v7881_v28, 2  ;;  %v8191_v22 = vsel %vm17328_vm3, %v18142_v35, %v18141_v14  ;;  %v8201_v23 = vsub.s32 %v2430_v49, %v7729_v13  ;;  %v8204_v15 = vsub.s32 %v1364_v54, %v7758_v59 }
  0xc3   : > { %v8174_v55 = vsel %vm17327_vm2, %v18138_v60, %v18137_v58  ;;  %18143 = vst [vmem:[#allocation48_spill] sm:$0xff] %v8191_v22  ;;  %v18144_v58 = vrot.slane %v7758_v59, 1  ;;  %v8207_v14 = vsub.s32 %v1717_v56, %v7758_v59  ;;  %v18150_v54 = vrot.slane %v8062_v38, 1 }
  0xc4   : > { %18139 = vst [vmem:[#allocation47_spill] sm:$0xff] %v8174_v55  ;;  %v8183_v47 = vsel %vm17331_vm5, %v18140_v44, %v17268_v26  ;;  %18145 = vst [vmem:[#allocation49_spill] sm:$0xff] %v8201_v23  ;;  %v18151_v56 = vrot.slane %v7877_v61, 1  ;;  %v18156_v23 = vrot.slane %v7758_v59, 2  ;;  %v18162_v55 = vrot.slane %v7642_v46, 6 }
  0xc5   : > { %v2070_v60 = vsel %vm17330_vm4, %v2022_v25, %v18144_v58  ;;  %18146 = vst [vmem:[#allocation50_spill] sm:$0xff] %v8204_v15  ;;  %18147 = vst [vmem:[#allocation51_spill] sm:$0xff] %v8207_v14  ;;  %v18159_v14 = vrot.slane %v7642_v46, 7  ;;  %vm1473_vm9 = vcmp.le.s32.totalorder %v7776_v33, 2  ;;  %vm18294_vm0 = vcmp.ge.s32.totalorder %v7826_v2, 4294967294 }
  0xe9   : > { %v6666_v34 = vpop.f32.mrb[0].mxu0 }
  0xea   : > { %v590_v0 = vpop.f32.mrb[1].mxu0  ;;  %v757_v19 = vmul.f32 %v6666_v34, %v8114_v24  ;;  %v8166_v34 = vsub.s32 %v2077_v39, %v7729_v13 }
  0xeb   : > { %v756_v25 = vmul.f32 %v8114_v24, %v590_v0  ;;  %v8230_v0 = vsub.s32 %v2070_v60, %v7685_v63 }
  0xec   : > { %18136 = vst [vmem:[#allocation46_spill] sm:$0xff] %v8166_v34  ;;  %v8210_v35 = vadd.f32 %v8163_v5, %v757_v19  ;;  %v8227_v19 = vsel %vm17330_vm4, %v18151_v56, %v18150_v54  ;;  %v18157_v54 = vrot.slane %v7685_v63, 2 }
  0xed   : > { %v6669_v39 = vpop.f32.mrb[2].mxu0  ;;  %18152 = vst [vmem:[#allocation54_spill] sm:$0xff] %v8227_v19  ;;  %18153 = vst [vmem:[#allocation55_spill] sm:$0xff] %v8230_v0  ;;  %v18158_v0 = vrot.slane %v7646_v48, 7  ;;  %v8270_v56 = vadd.f32 %v8163_v5, %v756_v25 }
  0xee   : > { %v759_v44 = vmul.f32 %v6669_v39, %v8114_v24  ;;  %v600_v26 = vpop.f32.mrb[3].mxu0  ;;  %18148 = vst [vmem:[#allocation52_spill] sm:$0xff] %v8210_v35  ;;  %v2423_v60 = vsel %vm17331_vm5, %v18157_v54, %v18156_v23  ;;  %v6298_v22 = vmul.f32 -1.442695, %v8210_v35 }
  0xef   : > { %v758_v58 = vmul.f32 %v8114_v24, %v600_v26  ;;  %18164 = vst [vmem:[#allocation59_spill] sm:$0xff] %v8270_v56  ;;  %v6297_v25 = vmul.f32 -1.442695, %v8270_v56 }
  0xf0   : > { %v8217_v34 = vadd.f32 %v8163_v5, %v759_v44  ;;  %v18154_v44 = vrot.slane %v7877_v61, 2 }
  0xf1   : > { %v8233_v26 = vadd.f32 %v8163_v5, %v758_v58  ;;  %v6672_v39 = vpop.f32.mrb[4].mxu0 }
  0xf2   : > { %18149 = vst [vmem:[#allocation53_spill] sm:$0xff] %v8217_v34  ;;  %v8241_v49 = vsel %vm17331_vm5, %v18154_v44, %v17275_v7  ;;  %v610_v58 = vpop.f32.mrb[5].mxu0  ;;  %v8257_v44 = vsel %vm17327_vm2, %v18159_v14, %v18158_v0  ;;  %v18161_v7 = vrot.slane %v7646_v48, 6  ;;  %v6300_v0 = vmul.f32 -1.442695, %v8217_v34 }
  0xf3   : > { %18155 = vst [vmem:[#allocation56_spill] sm:$0xff] %v8241_v49  ;;  %18160 = vst [vmem:[#allocation57_spill] sm:$0xff] %v8257_v44  ;;  %v6299_v15 = vmul.f32 -1.442695, %v8233_v26  ;;  %v760_v14 = vmul.f32 %v8114_v24, %v610_v58  ;;  %v761_v10 = vmul.f32 %v6672_v39, %v8114_v24  ;;  %v18169_v58 = vrot.slane %v7823_v9, 7 }
  0xf4   : > { %v8265_v23 = vsel %vm17328_vm3, %v18162_v55, %v18161_v7  ;;  %v8280_v7 = vsub.s32 %v2423_v60, %v7685_v63  ;;  %v18167_v63 = vrot.slane %v7820_v53, 7  ;;  %v18168_v60 = vrot.slane %v7798_v8, 7 }
  0xf5   : > { %18163 = vst [vmem:[#allocation58_spill] sm:$0xff] %v8265_v23  ;;  %v6675_v41 = vpop.f32.mrb[6].mxu0  ;;  %7021 = vpow2.f32 %v6299_v15  ;;  %v8290_v19 = vadd.f32 %v8163_v5, %v760_v14  ;;  %v18170_v15 = vrot.slane %v7810_v31, 7  ;;  %v18172_v14 = vrot.slane %v7820_v53, 6 }
  0xf6   : > { %18165 = vst [vmem:[#allocation60_spill] sm:$0xff] %v8280_v7  ;;  %v620_v55 = vpop.f32.mrb[7].mxu0  ;;  %v1343_v54 = vsel %vm17327_vm2, %v18168_v60, %v18167_v63  ;;  %7023 = vpow2.f32 %v6298_v22  ;;  %v2397_v22 = vrot.slane %v7820_v53, 2  ;;  %v8316_v60 = vadd.s32 248, %v7533_v3 }
  0xf7   : > { %18166 = vst [vmem:[#allocation61_spill] sm:$0xff] %v8290_v19  ;;  %v8305_v39 = vsel %vm17327_vm2, %v18170_v15, %v18169_v58  ;;  %v1696_v49 = vsel %vm17328_vm3, %v18173_v18, %v18172_v14  ;;  %7025 = vpow2.f32 %v6300_v0  ;;  %v762_v7 = vmul.f32 %v8114_v24, %v620_v55 }
  0xf8   : > { %18171 = vst [vmem:[#allocation62_spill] sm:$0xff] %v8305_v39  ;;  %18174 = vst [vmem:[#allocation63_spill] sm:$0xff] %v8316_v60  ;;  %v8320_v58 = vsub.s32 %v1343_v54, %v7820_v53  ;;  %v8325_v18 = vadd.f32 %v8163_v5, %v761_v10  ;;  %v6301_v0 = vmul.f32 -1.442695, %v8290_v19  ;;  %v763_v14 = vmul.f32 %v6675_v41, %v8114_v24 }
  0xf9   : > { %v6678_v48 = vpop.f32.mrb[8].mxu0  ;;  %v1340_v44 = vrot.slane %v8030_v11, 7  ;;  %7027 = vpow2.f32 %v6297_v25  ;;  %v18177_v55 = vrot.slane %v7823_v9, 6  ;;  %v18178_v15 = vrot.slane %v7810_v31, 6 }
  0xfa   : > { %18175 = vst [vmem:[#allocation64_spill] sm:$0xff] %v8320_v58  ;;  %18176 = vst [vmem:[#allocation65_spill] sm:$0xff] %v8325_v18  ;;  %v630_v63 = vpop.f32.mrb[9].mxu0  ;;  %v8341_v10 = vsub.s32 %v1696_v49, %v7820_v53  ;;  %v18181_v41 = vrot.slane %v7798_v8, 2  ;;  %v18182_v25 = vrot.slane %v7885_v20, 1  ;;  %v18183_v54 = vrot.slane %v7823_v9, 1 }
  0xfb   : > { %v8338_v23 = vsel %vm17328_vm3, %v18178_v15, %v18177_v55  ;;  %v18185_v31 = vrot.slane %v7881_v28, 1  ;;  %v18186_v15 = vrot.slane %v7820_v53, 1  ;;  %v1243_v55 = vrot.slane %v8316_v60, 7 }
  0xfc   : > { %18179 = vst [vmem:[#allocation66_spill] sm:$0xff] %v8338_v23  ;;  %18180 = vst [vmem:[#allocation67_spill] sm:$0xff] %v8341_v10  ;;  %v2402_v58 = vsel %vm17331_vm5, %v18181_v41, %v2397_v22  ;;  %v8353_v39 = vsel %vm17330_vm4, %v18183_v54, %v18182_v25  ;;  %v8363_v10 = vadd.f32 %v8163_v5, %v762_v7  ;;  %v18188_v41 = vrot.slane %v7885_v20, 2 }
  0xfd   : > { %18184 = vst [vmem:[#allocation68_spill] sm:$0xff] %v8353_v39  ;;  %v2048_v49 = vsel %vm17330_vm4, %v18186_v15, %v18185_v31  ;;  %v18189_v19 = vrot.slane %v7823_v9, 2  ;;  %v18191_v25 = vrot.slane %v7881_v28, 2  ;;  %v1693_v31 = vrot.slane %v8030_v11, 6  ;;  %v8378_v15 = vpop.f32.mrb[10].mxu0 }
  0xfe   : > { %18187 = vst [vmem:[#allocation69_spill] sm:$0xff] %v8363_v10  ;;  %v6302_v7 = vmul.f32 -1.442695, %v8325_v18  ;;  %7029 = vpow2.f32 %v6301_v0  ;;  %v8382_v56 = vadd.f32 %v8163_v5, %v763_v14  ;;  %v18192_v34 = vrot.slane %v7729_v13, 7  ;;  %v8402_v18 = vpop.permute.xlu1 %1144 }
  0xff   : > { %v8371_v54 = vsel %vm17331_vm5, %v18189_v19, %v18188_v41  ;;  %v2401_v61 = vsel %vm17331_vm5, %v2397_v22, %v18191_v25  ;;  %v8388_v41 = vpop.f32.mrb[11].mxu0  ;;  %v8393_v25 = vsub.s32 %v2402_v58, %v7798_v8  ;;  %v8396_v17 = vsub.s32 %v2048_v49, %v7820_v53  ;;  %18196 = vst [vmem:[#allocation73_spill] sm:$0xff] %v8402_v18  ;;  %v7022_v35 = vpop.eup %7021 }
 0x100   : > { %18190 = vst [vmem:[#allocation70_spill] sm:$0xff] %v8371_v54  ;;  %v1372_v19 = vsel %vm17327_vm2, %v1340_v44, %v18192_v34  ;;  %v18195_v0 = vrot.slane %v7881_v28, 7  ;;  %v8410_v58 = vsel %vm17327_vm2, %v18197_v37, %v1243_v55  ;;  %v18199_v49 = vrot.slane %v7533_v3, 7 }
 0x101   : > { %18193 = vst [vmem:[#allocation71_spill] sm:$0xff] %v8393_v25  ;;  %18194 = vst [vmem:[#allocation72_spill] sm:$0xff] %v8396_v17  ;;  %v6303_v25 = vmul.f32 -1.442695, %v8363_v10  ;;  %v8423_v39 = vsub.s32 %v2401_v61, %v7820_v53  ;;  %v8426_v37 = vsub.s32 %v1372_v19, %v7729_v13  ;;  %v8428_v17 = vpop.f32.mrb[12].mxu0  ;;  %7031 = vpow2.f32 %v6302_v7 }
 0x102   : > { %v1341_v14 = vsel %vm17327_vm2, %v18195_v0, %v1340_v44  ;;  %18198 = vst [vmem:[#allocation74_spill] sm:$0xff] %v8410_v58  ;;  %v8416_v22 = vsel %vm17327_vm2, %v1243_v55, %v18199_v49  ;;  %v1596_v44 = vrot.slane %v8316_v60, 6  ;;  %v7024_v0 = vpop.eup %7023  ;;  %18203 = vst [vmem:[#allocation78_spill] sm:$0xff] %v8428_v17  ;;  %v6304_v55 = vmul.f32 -1.442695, %v8382_v56  ;;  %v8438_v54 = vpop.f32.mrb[13].mxu0 }
 0x103   : > { %18200 = vst [vmem:[#allocation75_spill] sm:$0xff] %v8416_v22  ;;  %18201 = vst [vmem:[#allocation76_spill] sm:$0xff] %v8423_v39  ;;  %v7026_v23 = vpop.eup %7025  ;;  %v8432_v49 = vsub.s32 %v1341_v14, %v8030_v11  ;;  %v18205_v10 = vrot.slane %v7881_v28, 6  ;;  %v925_v53 = vadd.f32 1.0, %v7022_v35  ;;  %v18207_v7 = vrot.slane %v7729_v13, 6 }
 0x104   : > { %18202 = vst [vmem:[#allocation77_spill] sm:$0xff] %v8426_v37  ;;  %18206 = vst [vmem:[#allocation80_spill] sm:$0xff] %v8438_v54  ;;  %v924_v39 = vadd.f32 1.0, %v7024_v0  ;;  %v18210_v35 = vrot.slane %v7533_v3, 6  ;;  %v7028_v58 = vpop.eup %7027  ;;  %v926_v22 = vadd.f32 1.0, %v7026_v23  ;;  %7033 = vpow2.f32 %v6303_v25  ;;  %v18331_v54 = vld [vmem:[#allocation39_spill] sm:$0xff] }
 0x105   : > { %18204 = vst [vmem:[#allocation79_spill] sm:$0xff] %v8432_v49  ;;  %v1694_v34 = vsel %vm17328_vm3, %v18205_v10, %v1693_v31  ;;  %v1725_v14 = vsel %vm17328_vm3, %v1693_v31, %v18207_v7  ;;  %v18208_v49 = vrot.slane %v7885_v20, 6  ;;  %v764_v31 = vmul.f32 %v8114_v24, %v630_v63  ;;  %v8465_v7 = vpop.permute.xlu1 %1198 }
 0x106   : > { %v8458_v61 = vsel %vm17328_vm3, %v1596_v44, %v18210_v35  ;;  %v8463_v0 = vadd.s32 72, %v7533_v3  ;;  %18213 = vst [vmem:[#allocation84_spill] sm:$0xff] %v8465_v7  ;;  %7035 = vpow2.f32 %v6304_v55  ;;  %v765_v20 = vmul.f32 %v6678_v48, %v8114_v24 }
 0x107   : > { %v8452_v10 = vsel %vm17328_vm3, %v18208_v49, %v1596_v44  ;;  %18211 = vst [vmem:[#allocation82_spill] sm:$0xff] %v8458_v61  ;;  %v8467_v49 = vpop.f32.mrb[14].mxu0  ;;  %7037 = vrcp.f32 %v925_v53  ;;  %v8479_v25 = vsub.s32 %v1725_v14, %v7729_v13  ;;  %v923_v55 = vadd.f32 1.0, %v7028_v58 }
 0x108   : > { %18209 = vst [vmem:[#allocation81_spill] sm:$0xff] %v8452_v10  ;;  %18212 = vst [vmem:[#allocation83_spill] sm:$0xff] %v8463_v0  ;;  %v8472_v19 = vpop.f32.mrb[15].mxu0  ;;  %v7030_v37 = vpop.eup %7029  ;;  %7039 = vrcp.f32 %v924_v39  ;;  %v18217_v48 = vrot.slane %v7533_v3, 1  ;;  %v18218_v44 = vrot.slane %v8316_v60, 1  ;;  %v18220_v53 = vrot.slane %v7798_v8, 7 }
 0x109   : > { %18214 = vst [vmem:[#allocation85_spill] sm:$0xff] %v8467_v49  ;;  %18215 = vst [vmem:[#allocation86_spill] sm:$0xff] %v8472_v19  ;;  %v18221_v23 = vrot.slane %v8465_v7, 7  ;;  %7041 = vrcp.f32 %v926_v22  ;;  %v8500_v39 = vadd.f32 %v8163_v5, %v764_v31  ;;  %v18223_v58 = vrot.slane %v7729_v13, 1  ;;  %v8509_v10 = vpop.f32.mrb[16].mxu0 }
 0x10a   : > { %18216 = vst [vmem:[#allocation87_spill] sm:$0xff] %v8479_v25  ;;  %v8487_v35 = vsel %vm17330_vm4, %v18218_v44, %v18217_v48  ;;  %v18224_v14 = vrot.slane %v8030_v11, 1  ;;  %18225 = vst [vmem:[#allocation90_spill] sm:$0xff] %v8509_v10  ;;  %v8514_v22 = vadd.f32 %v8163_v5, %v765_v20  ;;  %v18227_v31 = vrot.slane %v7533_v3, 2  ;;  %v8526_v48 = vpop.f32.mrb[17].mxu0  ;;  %v18299_v10 = vld [vmem:[#allocation33_spill] sm:$0xff] }
 0x10b   : > { %18219 = vst [vmem:[#allocation88_spill] sm:$0xff] %v8487_v35  ;;  %v8495_v63 = vsel %vm17327_vm2, %v18221_v23, %v18220_v53  ;;  %18222 = vst [vmem:[#allocation89_spill] sm:$0xff] %v8500_v39  ;;  %v18228_v23 = vrot.slane %v8316_v60, 2  ;;  %v927_v20 = vadd.f32 1.0, %v7030_v37  ;;  %v8531_v61 = vsub.s32 %v1694_v34, %v8030_v11 }
 0x10c   : > { %v2078_v44 = vsel %vm17330_vm4, %v18224_v14, %v18223_v58  ;;  %18226 = vst [vmem:[#allocation91_spill] sm:$0xff] %v8514_v22  ;;  %18230 = vst [vmem:[#allocation93_spill] sm:$0xff] %v8526_v48  ;;  %v18233_v14 = vsub.s32 %v7617_v40, %v7550_v12  ;;  %7043 = vrcp.f32 %v923_v55  ;;  %v18238_v25 = vrot.slane %v8030_v11, 2 }
 0x10d   : > { %v8522_v53 = vsel %vm17331_vm5, %v18228_v23, %v18227_v31  ;;  %18231 = vst [vmem:[#allocation94_spill] sm:$0xff] %v8531_v61  ;;  %v8537_v31 = vsub.s32 %v8100_v50, %v7881_v28  ;;  %v7032_v23 = vpop.eup %7031  ;;  %v8550_v34 = vsub.s32 %v2078_v44, %v8030_v11  ;;  %v18237_v50 = vrot.slane %v7729_v13, 2 }
 0x10e   : > { %18229 = vst [vmem:[#allocation92_spill] sm:$0xff] %v8522_v53  ;;  %vm8545_vm14 = vcmp.eq.s32.totalorder %v18233_v14, %v7816_v32  ;;  %v6305_v40 = vmul.f32 -1.442695, %v8500_v39  ;;  %v18239_v44 = vrot.slane %v8463_v0, 7  ;;  %v18240_v13 = vrot.slane %v8062_v38, 7 }
 0x10f   : > { %18232 = vst [vmem:[#allocation95_spill] sm:$0xff] %v8537_v31  ;;  %18236 = vst [vmem:[#allocation96_spill] sm:$0xff] %v8550_v34  ;;  %v2431_v58 = vsel %vm17331_vm5, %v18238_v25, %v18237_v50  ;;  %v767_v25 = vmul.f32 %v8378_v15, %v8114_v24  ;;  %v8574_v50 = vpop.f32.mrb[18].mxu0  ;;  %v6306_v31 = vmul.f32 -1.442695, %v8514_v22  ;;  %v18242_v55 = vrot.slane %v8402_v18, 7  ;;  %v7034_v34 = vpop.eup %7033 }
 0x110   : > { %v8570_v14 = vsel %vm17327_vm2, %v18240_v13, %v18239_v44  ;;  %18241 = vst [vmem:[#allocation97_spill] sm:$0xff] %v8574_v50  ;;  %v18243_v53 = vrot.slane %v7758_v59, 7  ;;  %v18244_v44 = vrot.slane %v8463_v0, 6  ;;  %v18245_v13 = vrot.slane %v8062_v38, 6  ;;  %v8594_v61 = vpop.f32.mrb[19].mxu0  ;;  %v7036_v50 = vpop.eup %7035  ;;  %v18402_v22 = vld [vmem:[#allocation6_spill] sm:$0xff] }
 0x111   : > { %18247 = vst [vmem:[#allocation99_spill] sm:$0xff] %v8594_v61  ;;  %v928_v9 = vadd.f32 1.0, %v7032_v23  ;;  %7045 = vrcp.f32 %v927_v20  ;;  %v8611_v35 = vsub.s32 %v8183_v47, %v7881_v28  ;;  %v8614_v20 = vsub.s32 %v2431_v58, %v8030_v11  ;;  %v8763_v19 = vpop.f32.mrb[20].mxu0 }
 0x112   : > { %v1363_v60 = vsel %vm17327_vm2, %v18243_v53, %v18242_v55  ;;  %v8591_v15 = vsel %vm17328_vm3, %v18245_v13, %v18244_v44  ;;  %v17329_v53 = vrot.slane %v8402_v18, 1  ;;  %v766_v55 = vmul.f32 %v8114_v24, %v8388_v41  ;;  %v7038_v41 = vpop.eup %7037 }
 0x113   : > { %18246 = vst [vmem:[#allocation98_spill] sm:$0xff] %v8591_v15  ;;  %v18248_v44 = vsub.s32 %v7625_v42, %v7550_v12  ;;  %18251 = vst [vmem:[#allocation100_spill] sm:$0xff] %v8611_v35  ;;  %v18253_v42 = vsub.s32 %v7560_v16, %v7536_v4  ;;  %7047 = vpow2.f32 %v6305_v40  ;;  %v8632_v28 = vsub.s32 %v1363_v60, %v8402_v18  ;;  %v7040_v47 = vpop.eup %7039 }
 0x114   : > { %18252 = vst [vmem:[#allocation101_spill] sm:$0xff] %v8614_v20  ;;  %v8636_v16 = vadd.f32 %v8163_v5, %v767_v25  ;;  %v18257_v58 = vsub.s32 %v7629_v43, %v7550_v12  ;;  %v929_v60 = vadd.f32 1.0, %v7034_v34  ;;  %7049 = vpow2.f32 %v6306_v31 }
 0x115   : > { %vm8605_vm2 = vcmp.eq.s32.totalorder %v18248_v44, %v7829_v30  ;;  %vm8623_vm12 = vcmp.eq.s32.totalorder %v18253_v42, %v7776_v33  ;;  %v18260_v25 = vrot.slane %v8402_v18, 6  ;;  %v18261_v23 = vrot.slane %v7758_v59, 6  ;;  %v18384_v42 = vld [vmem:[#allocation27_spill] sm:$0xff] }
 0x116   : > { %18256 = vst [vmem:[#allocation102_spill] sm:$0xff] %v8636_v16  ;;  %vm8642_vm13 = vcmp.eq.s32.totalorder %v18257_v58, %v7839_v27  ;;  %v7042_v58 = vpop.eup %7041  ;;  %v18262_v11 = vsub.s32 %v7609_v36, %v7541_v6  ;;  %7051 = vrcp.f32 %v928_v9  ;;  %v18265_v31 = vrot.slane %v8463_v0, 1 }
 0x117   : > { %v1716_v43 = vsel %vm17328_vm3, %v18261_v23, %v18260_v25  ;;  %v18266_v34 = vrot.slane %v8062_v38, 1  ;;  %v18268_v23 = vrot.slane %v7758_v59, 1  ;;  %vm8685_vm3 = vmand %vm1439_vm1, %vm1471_vm7  ;;  %v18272_v25 = vsub.s32 %v7639_v45, %v7550_v12  ;;  %v7044_v12 = vpop.eup %7043 }
 0x118   : > { %vm8660_vm11 = vcmp.eq.s32.totalorder %v18262_v11, %v7826_v2  ;;  %v8679_v11 = vadd.f32 %v8163_v5, %v766_v55  ;;  %v18276_v5 = vrot.slane %v8463_v0, 2  ;;  %v18277_v55 = vrot.slane %v8062_v38, 2  ;;  %vm8785_vm10 = vmand %vm8545_vm14, %vm8685_vm3 }
 0x119   : > { %v8670_v40 = vsel %vm17330_vm4, %v18266_v34, %v18265_v31  ;;  %v2069_v36 = vsel %vm17330_vm4, %v18268_v23, %v17329_v53  ;;  %vm8693_vm8 = vcmp.eq.s32.totalorder %v18272_v25, %v7846_v51  ;;  %v8698_v34 = vmul.f32 %v7038_v41, %v8233_v26  ;;  %v8708_v23 = vpop.permute.xlu0 %1195  ;;  %v18420_v25 = vld [vmem:[#allocation9_spill] sm:$0xff] }
 0x11a   : > { %18267 = vst [vmem:[#allocation103_spill] sm:$0xff] %v8670_v40  ;;  %18269 = vst [vmem:[#allocation104_spill] sm:$0xff] %v8679_v11  ;;  %v8706_v32 = vsel %vm17331_vm5, %v18277_v55, %v18276_v5  ;;  %v8711_v53 = vadd.s32 208, %v7533_v3  ;;  %v8714_v45 = vadd.s32 216, %v7533_v3  ;;  %vm18282_vm1 = vcmp.ge.s32.totalorder %v7776_v33, 4294967294  ;;  %v18288_v5 = vld [vmem:[#allocation29_spill] sm:$0xff] }
 0x11b   : > { %18275 = vst [vmem:[#allocation105_spill] sm:$0xff] %v8698_v34  ;;  %18278 = vst [vmem:[#allocation106_spill] sm:$0xff] %v8706_v32  ;;  %v18285_v41 = vsub.s32 %v7719_v1, %v7642_v46  ;;  %v8737_v33 = vsub.s32 %v1716_v43, %v8402_v18  ;;  %v18290_v55 = vrot.slane %v8402_v18, 2  ;;  %v18291_v35 = vrot.slane %v7758_v59, 2  ;;  %v18297_v43 = vld [vmem:[#allocation52_spill] sm:$0xff]  ;;  %v18329_v32 = vld [vmem:[#allocation59_spill] sm:$0xff] }
 0x11c   : > { %18279 = vst [vmem:[#allocation107_spill] sm:$0xff] %v8708_v23  ;;  %18280 = vst [vmem:[#allocation108_spill] sm:$0xff] %v8711_v53  ;;  %v6308_v1 = vmul.f32 -1.442695, %v8636_v16  ;;  %v8756_v48 = vmul.f32 %v7040_v47, %v18297_v43  ;;  %7053 = vrcp.f32 %v929_v60  ;;  %v18305_v18 = vmov 0 }
 0x11d   : > { %18281 = vst [vmem:[#allocation109_spill] sm:$0xff] %v8714_v45  ;;  %vm8720_vm7 = vmand %vm18282_vm1, %vm1473_vm9  ;;  %vm8730_vm5 = vcmp.eq.s32.totalorder %v18285_v41, %v7964_v21  ;;  %vm18292_vm9 = vcmp.lt.s32.totalorder %v7533_v3, 6  ;;  %vm18293_vm1 = vcmp.le.s32.totalorder %v7826_v2, 2  ;;  %v930_v41 = vadd.f32 1.0, %v7036_v50  ;;  %v18303_v2 = vld [vmem:[#allocation3_spill] sm:$0xff] }
 0x11e   : > { %18289 = vst [vmem:[#allocation29_spill] sm:$0xff] %v8737_v33  ;;  %v2422_v20 = vsel %vm18292_vm9, %v18291_v35, %v18290_v55  ;;  %vm8751_vm15 = vmand %vm18294_vm0, %vm18293_vm1  ;;  %v18300_v35 = vld [vmem:[#allocation53_spill] sm:$0xff]  ;;  %v18304_v49 = vsub.s32 %v18303_v2, %v7536_v4  ;;  %vm18307_vm1 = vcmp.le.s32.totalorder %v7779_v62, 2  ;;  %vm18308_vm4 = vcmp.ge.s32.totalorder %v7779_v62, 4294967294  ;;  %v18323_v2 = vld [vmem:[#allocation36_spill] sm:$0xff] }
 0x11f   : > { %18298 = vst [vmem:[#allocation52_spill] sm:$0xff] %v8756_v48  ;;  %v8761_v55 = vmul.f32 %v7042_v58, %v18300_v35  ;;  %18302 = vst [vmem:[#allocation53_spill] sm:$0xff] %v8763_v19  ;;  %v18309_v47 = vmov 0  ;;  %v18311_v50 = vmov 0  ;;  %v18316_v58 = vmov 0  ;;  %v18351_v35 = vld [vmem:[#allocation4_spill] sm:$0xff] }
 0x120   : > { %vm8769_vm0 = vcmp.eq.s32.totalorder %v18304_v49, %v7779_v62  ;;  %vm8777_vm9 = vmand %vm18308_vm4, %vm18307_vm1  ;;  %v18312_v50 = vsel %vm8785_vm10, 4294967295, %v18311_v50  ;;  %v18314_v49 = vld [vmem:[#allocation7_spill] sm:$0xff]  ;;  %v8800_v43 = vsub.s32 %v2069_v36, %v7758_v59  ;;  %v6307_v9 = vmul.f32 -1.442695, %v8679_v11  ;;  %v7046_v62 = vpop.eup %7045 }
 0x121   : > { %18301 = vst [vmem:[#allocation33_spill] sm:$0xff] %v8761_v55  ;;  %v18306_v18 = vsel %vm8769_vm0, 4294967295, %v18305_v18  ;;  %v18310_v47 = vsel %vm8777_vm9, 4294967295, %v18309_v47  ;;  %18313 = vst [vmem:[#allocation3_spill] sm:$0xff] %v18312_v50  ;;  %v18315_v60 = vsub.s32 %v18314_v49, %v7541_v6  ;;  %vm18319_vm3 = vcmp.le.s32.totalorder %v7829_v30, 2 }
 0x122   : > { %18318 = vst [vmem:[#allocation7_spill] sm:$0xff] %v8800_v43  ;;  %vm18320_vm4 = vcmp.ge.s32.totalorder %v7829_v30, 4294967294  ;;  %v2627_v36 = vrot.slane %v8698_v34, 7  ;;  %v8817_v49 = vsub.s32 %v2422_v20, %v7758_v59  ;;  %vm18325_vm0 = vcmp.le.s32.totalorder %v7832_v52, 2  ;;  %v18464_v43 = vld [vmem:[#allocation30_spill] sm:$0xff] }
 0x123   : > { %vm8793_vm6 = vcmp.eq.s32.totalorder %v18315_v60, %v7832_v52  ;;  %vm8809_vm14 = vmand %vm18320_vm4, %vm18319_vm3  ;;  %vm18326_vm3 = vcmp.ge.s32.totalorder %v7832_v52, 4294967294  ;;  %v18327_v30 = vmov 0  ;;  %v8830_v19 = vmul.f32 %v7044_v12, %v18329_v32  ;;  %v18365_v32 = vld [vmem:[#allocation34_spill] sm:$0xff] }
 0x124   : > { %v18317_v58 = vsel %vm8793_vm6, 4294967295, %v18316_v58  ;;  %18324 = vst [vmem:[#allocation36_spill] sm:$0xff] %v8817_v49  ;;  %vm8825_vm4 = vmand %vm18326_vm3, %vm18325_vm0  ;;  %7055 = vpow2.f32 %v6308_v1  ;;  %v18332_v20 = vrot.slane %v8465_v7, 7  ;;  %v18333_v60 = vrot.slane %v8708_v23, 7  ;;  %v18339_v1 = vld [vmem:[#allocation14_spill] sm:$0xff]  ;;  %v18343_v49 = vld [vmem:[#allocation37_spill] sm:$0xff] }
 0x125   : > { %v18328_v30 = vsel %vm8825_vm4, 4294967295, %v18327_v30  ;;  %18330 = vst [vmem:[#allocation59_spill] sm:$0xff] %v8830_v19  ;;  %vm18334_vm9 = vcmp.lt.s32.totalorder %v7533_v3, 1  ;;  %vm18335_vm0 = vcmp.le.s32.totalorder %v7839_v27, 2  ;;  %vm18336_vm3 = vcmp.ge.s32.totalorder %v7839_v27, 4294967294  ;;  %v18370_v23 = vld [vmem:[#allocation61_spill] sm:$0xff] }
 0x126   : > { %v1345_v52 = vsel %vm18334_vm9, %v18333_v60, %v18332_v20  ;;  %vm8845_vm4 = vmand %vm18336_vm3, %vm18335_vm0  ;;  %v18340_v59 = vsub.s32 %v18339_v1, %v7642_v46  ;;  %7057 = vrcp.f32 %v930_v41  ;;  %v7048_v20 = vpop.eup %7047  ;;  %v18344_v1 = vmov 0 }
 0x127   : > { %vm8866_vm0 = vmand %vm8605_vm2, %vm8809_vm14  ;;  %7059 = vpow2.f32 %v6307_v9  ;;  %v7050_v27 = vpop.eup %7049  ;;  %v18348_v13 = vmov 0  ;;  %v18352_v17 = vsub.s32 %v18351_v35, %v7541_v6  ;;  %v18353_v9 = vmov 0 }
 0x128   : > { %vm8854_vm1 = vcmp.eq.s32.totalorder %v18340_v59, %v18288_v5  ;;  %v18345_v1 = vsel %vm8866_vm0, 4294967295, %v18344_v1  ;;  %v18347_v59 = vld [vmem:[#allocation31_spill] sm:$0xff]  ;;  %vm8879_vm2 = vmand %vm8623_vm12, %vm8720_vm7  ;;  %vm18355_vm3 = vcmp.le.s32.totalorder %v7782_v57, 2  ;;  %vm18356_vm9 = vcmp.ge.s32.totalorder %v7782_v57, 4294967294  ;;  %v7052_v15 = vpop.eup %7051 }
 0x129   : > { %18346 = vst [vmem:[#allocation39_spill] sm:$0xff] %v18345_v1  ;;  %v18349_v13 = vsel %vm8879_vm2, 4294967295, %v18348_v13  ;;  %vm8887_vm14 = vcmp.eq.s32.totalorder %v18352_v17, %v7782_v57  ;;  %vm8895_vm6 = vmand %vm18356_vm9, %vm18355_vm3  ;;  %vm18359_vm12 = vcmp.le.s32.totalorder %v7846_v51, 2  ;;  %vm18360_vm7 = vcmp.ge.s32.totalorder %v7846_v51, 4294967294  ;;  %v18366_v57 = vld [vmem:[#allocation22_spill] sm:$0xff]  ;;  %v7054_v44 = vpop.eup %7053 }
 0x12a   : > { %18350 = vst [vmem:[#allocation14_spill] sm:$0xff] %v18349_v13  ;;  %v18354_v9 = vsel %vm8887_vm14, 4294967295, %v18353_v9  ;;  %vm8903_vm2 = vmand %vm18360_vm7, %vm18359_vm12  ;;  %v18363_v17 = vrot.slane %v8756_v48, 7  ;;  %vm18364_vm14 = vcmp.lt.s32.totalorder %v7533_v3, 1  ;;  %v18367_v41 = vsub.s32 %v18365_v32, %v18366_v57 }
 0x12b   : > { %v8920_v11 = vmul.f32 %v7046_v62, %v18370_v23  ;;  %v18372_v51 = vrot.slane %v8714_v45, 7  ;;  %v18373_v16 = vrot.slane %v8711_v53, 7  ;;  %vm18374_vm3 = vmmov %vm18364_vm14  ;;  %v18377_v32 = vmov 0  ;;  %v18540_v62 = vld [vmem:[#allocation38_spill] sm:$0xff] }
 0x12c   : > { %v2686_v35 = vsel %vm18364_vm14, %v18363_v17, %v2627_v36  ;;  %vm8915_vm9 = vcmp.eq.s32.totalorder %v18367_v41, %v18331_v54  ;;  %v8931_v17 = vsub.s32 %v1345_v52, %v8465_v7  ;;  %vm8937_vm14 = vmand %vm8642_vm13, %vm8845_vm4  ;;  %v2754_v23 = vrot.slane %v8756_v48, 6  ;;  %v18419_v52 = vld [vmem:[#allocation57_spill] sm:$0xff] }
 0x12d   : > { %18371 = vst [vmem:[#allocation37_spill] sm:$0xff] %v8920_v11  ;;  %v8928_v40 = vsel %vm18374_vm3, %v18373_v16, %v18372_v51  ;;  %v18378_v32 = vsel %vm8937_vm14, 4294967295, %v18377_v32  ;;  %vm18380_vm12 = vcmp.le.s32.totalorder %v7964_v21, 2  ;;  %vm18381_vm7 = vcmp.ge.s32.totalorder %v7964_v21, 4294967294  ;;  %v18385_v51 = vld [vmem:[#allocation15_spill] sm:$0xff] }
 0x12e   : > { %18375 = vst [vmem:[#allocation31_spill] sm:$0xff] %v8928_v40  ;;  %18376 = vst [vmem:[#allocation4_spill] sm:$0xff] %v8931_v17  ;;  %v18386_v41 = vsub.s32 %v18385_v51, %v7642_v46  ;;  %v18389_v21 = vmov 0  ;;  %v18392_v16 = vrot.slane %v8761_v55, 7  ;;  %v2755_v17 = vrot.slane %v8698_v34, 6  ;;  %v18394_v51 = vld [vmem:[#allocation40_spill] sm:$0xff] }
 0x12f   : > { %18379 = vst [vmem:[#allocation34_spill] sm:$0xff] %v18378_v32  ;;  %vm8949_vm3 = vmand %vm18381_vm7, %vm18380_vm12  ;;  %vm18393_vm7 = vcmp.lt.s32.totalorder %v7533_v3, 1  ;;  %v18395_v61 = vmov 0  ;;  %v18400_v53 = vmov 0  ;;  %v2691_v31 = vsel %vm8785_vm10, %v2686_v35, -inf }
 0x130   : > { %vm8960_vm14 = vcmp.eq.s32.totalorder %v18386_v41, %v18299_v10  ;;  %vm8968_vm12 = vmand %vm8660_vm11, %vm8751_vm15  ;;  %v2685_v12 = vsel %vm18393_vm7, %v2627_v36, %v18392_v16  ;;  %v931_v41 = vadd.f32 1.0, %v7048_v20  ;;  %v18398_v36 = vld [vmem:[#allocation16_spill] sm:$0xff]  ;;  %v18403_v24 = vsub.s32 %v18402_v22, %v7541_v6  ;;  %v18492_v6 = vld [vmem:[#allocation51_spill] sm:$0xff] }
 0x131   : > { %v18390_v21 = vsel %vm8968_vm12, 4294967295, %v18389_v21  ;;  %vm8983_vm15 = vmand %vm8693_vm8, %vm8903_vm2  ;;  %v18399_v16 = vsub.s32 %v18398_v36, %v7536_v4  ;;  %v18404_v7 = vmov 0  ;;  %vm18406_vm2 = vcmp.le.s32.totalorder %v7813_v29, 2 }
 0x132   : > { %18391 = vst [vmem:[#allocation22_spill] sm:$0xff] %v18390_v21  ;;  %v18396_v61 = vsel %vm8983_vm15, 4294967295, %v18395_v61  ;;  %vm9004_vm8 = vcmp.eq.s32.totalorder %v18403_v24, %v7813_v29  ;;  %vm18407_vm7 = vcmp.ge.s32.totalorder %v7813_v29, 4294967294  ;;  %v18408_v36 = vmov 0  ;;  %vm9020_vm4 = vmand %vm8730_vm5, %vm8949_vm3  ;;  %v18417_v29 = vld [vmem:[#allocation65_spill] sm:$0xff]  ;;  %v18428_v24 = vld [vmem:[#allocation35_spill] sm:$0xff] }
 0x133   : > { %18397 = vst [vmem:[#allocation61_spill] sm:$0xff] %v18396_v61  ;;  %vm8993_vm11 = vcmp.eq.s32.totalorder %v18399_v16, %v18347_v59  ;;  %v18405_v7 = vsel %vm9004_vm8, 4294967295, %v18404_v7  ;;  %vm9012_vm13 = vmand %vm18407_vm7, %vm18406_vm2  ;;  %v18410_v35 = vmov 0  ;;  %vm18413_vm10 = vcmp.le.s32.totalorder %v18288_v5, 2 }
 0x134   : > { %v18401_v53 = vsel %vm8993_vm11, 4294967295, %v18400_v53  ;;  %v18409_v36 = vsel %vm9012_vm13, 4294967295, %v18408_v36  ;;  %v18411_v35 = vsel %vm9020_vm4, 4294967295, %v18410_v35  ;;  %vm18414_vm8 = vcmp.ge.s32.totalorder %v18288_v5, 4294967294 }
 0x135   : > { %18412 = vst [vmem:[#allocation27_spill] sm:$0xff] %v18411_v35  ;;  %vm9028_vm11 = vmand %vm18414_vm8, %vm18413_vm10  ;;  %v9033_v22 = vmul.f32 %v7052_v15, %v18417_v29  ;;  %v18421_v16 = vsub.s32 %v18419_v52, %v18420_v25  ;;  %v18422_v20 = vmov 0  ;;  %v932_v50 = vadd.f32 1.0, %v7050_v27  ;;  %v18433_v29 = vld [vmem:[#allocation50_spill] sm:$0xff] }
 0x136   : > { %vm18424_vm10 = vcmp.le.s32.totalorder %v18299_v10, 2  ;;  %vm18425_vm3 = vcmp.ge.s32.totalorder %v18299_v10, 4294967294  ;;  %v2883_v27 = vrot.slane %v8698_v34, 1  ;;  %v18429_v5 = vsub.s32 %v18428_v24, %v18366_v57  ;;  %v18432_v10 = vld [vmem:[#allocation43_spill] sm:$0xff]  ;;  %v18439_v24 = vld [vmem:[#allocation26_spill] sm:$0xff] }
 0x137   : > { %18418 = vst [vmem:[#allocation15_spill] sm:$0xff] %v9033_v22  ;;  %vm9040_vm5 = vcmp.eq.s32.totalorder %v18421_v16, %v18384_v42  ;;  %vm9050_vm8 = vmand %vm18425_vm3, %vm18424_vm10  ;;  %v2692_v16 = vsel %vm8968_vm12, %v2685_v12, -inf  ;;  %v18430_v40 = vmov 0  ;;  %vm18434_vm12 = vnez %v18310_v47 }
 0x138   : > { %v18423_v20 = vsel %vm9040_vm5, 4294967295, %v18422_v20  ;;  %vm9063_vm2 = vcmp.eq.s32.totalorder %v18429_v5, %v18394_v51  ;;  %vm18435_vm4 = vnez %v18306_v18  ;;  %v18436_v12 = vmov 0 }
 0x139   : > { %v18431_v40 = vsel %vm9063_vm2, 4294967295, %v18430_v40  ;;  %vm9075_vm13 = vmand %vm18435_vm4, %vm18434_vm12  ;;  %v18440_v5 = vsub.s32 %v18439_v24, %v7536_v4  ;;  %v18441_v52 = vmov 0  ;;  %vm18443_vm3 = vnez %v18328_v30  ;;  %v7056_v4 = vpop.eup %7055 }
 0x13a   : > { %v18437_v12 = vsel %vm9075_vm13, 4294967295, %v18436_v12  ;;  %vm18444_vm5 = vnez %v18317_v58  ;;  %v18445_v47 = vmov 0  ;;  %v2723_v18 = vmax.f32 %v8698_v34, %v2691_v31 }
 0x13b   : > { %18438 = vst [vmem:[#allocation40_spill] sm:$0xff] %v18437_v12  ;;  %vm9083_vm2 = vcmp.eq.s32.totalorder %v18440_v5, %v18323_v2  ;;  %vm9091_vm7 = vmand %vm18444_vm5, %vm18443_vm3  ;;  %vm18448_vm4 = vcmp.lt.s32.totalorder %v7533_v3, 2  ;;  %7061 = vrcp.f32 %v931_v41  ;;  %v18449_v24 = vrot.slane %v8756_v48, 7 }
 0x13c   : > { %v18442_v52 = vsel %vm9083_vm2, 4294967295, %v18441_v52  ;;  %v18446_v47 = vsel %vm9091_vm7, 4294967295, %v18445_v47  ;;  %v2814_v21 = vsel %vm18448_vm4, %v2754_v23, %v2755_v17  ;;  %v18450_v5 = vrot.slane %v8830_v19, 7  ;;  %vm18454_vm5 = vmmov %vm18448_vm4 }
 0x13d   : > { %18447 = vst [vmem:[#allocation16_spill] sm:$0xff] %v18446_v47  ;;  %vm18451_vm12 = vcmp.lt.s32.totalorder %v7533_v3, 1  ;;  %v18453_v30 = vrot.slane %v8830_v19, 6  ;;  %vm18456_vm3 = vcmp.le.s32.totalorder %v18323_v2, 2  ;;  %vm18457_vm4 = vcmp.ge.s32.totalorder %v18323_v2, 4294967294  ;;  %vm18461_vm13 = vmmov %vm18454_vm5  ;;  %v18512_v47 = vld [vmem:[#allocation42_spill] sm:$0xff] }
 0x13e   : > { %v9105_v58 = vsel %vm18451_vm12, %v18450_v5, %v18449_v24  ;;  %vm9117_vm10 = vmand %vm18457_vm4, %vm18456_vm3  ;;  %v18460_v45 = vrot.slane %v8761_v55, 6  ;;  %v18462_v5 = vld [vmem:[#allocation69_spill] sm:$0xff]  ;;  %v2724_v33 = vmax.f32 %v8761_v55, %v2692_v16  ;;  %vm18471_vm4 = vcmp.ge.s32.totalorder %v18331_v54, 4294967294 }
 0x13f   : > { %18452 = vst [vmem:[#allocation6_spill] sm:$0xff] %v9105_v58  ;;  %v9111_v31 = vsel %vm18454_vm5, %v18453_v30, %v2754_v23  ;;  %v9126_v58 = vmul.f32 %v7054_v44, %v18462_v5  ;;  %v7058_v23 = vpop.eup %7057  ;;  %v18465_v30 = vld [vmem:[#allocation25_spill] sm:$0xff]  ;;  %v18474_v44 = vrot.slane %v8920_v11, 7  ;;  %7063 = vrcp.f32 %v932_v50 }
 0x140   : > { %18455 = vst [vmem:[#allocation65_spill] sm:$0xff] %v9111_v31  ;;  %v2813_v24 = vsel %vm18461_vm13, %v2755_v17, %v18460_v45  ;;  %v18466_v2 = vsub.s32 %v18465_v30, %v7642_v46  ;;  %v18467_v31 = vmov 0  ;;  %vm18470_vm13 = vcmp.le.s32.totalorder %v18331_v54, 2  ;;  %v18476_v30 = vld [vmem:[#allocation47_spill] sm:$0xff]  ;;  %v7060_v54 = vpop.eup %7059 }
 0x141   : > { %18463 = vst [vmem:[#allocation57_spill] sm:$0xff] %v9126_v58  ;;  %vm9143_vm2 = vmand %vm18471_vm4, %vm18470_vm13  ;;  %v2630_v17 = vrot.slane %v9033_v22, 7  ;;  %v18475_v46 = vrot.slane %v8761_v55, 7  ;;  %v18477_v16 = vsub.s32 %v18476_v30, %v8062_v38  ;;  %v18480_v39 = vrot.slane %v8756_v48, 1 }
 0x142   : > { %vm9134_vm3 = vcmp.eq.s32.totalorder %v18466_v2, %v18343_v49  ;;  %v18478_v2 = vmov 0  ;;  %vm18482_vm13 = vcmp.lt.s32.totalorder %v7533_v3, 7  ;;  %vm18487_vm4 = vcmp.le.s32.totalorder %v18343_v49, 2 }
 0x143   : > { %v18468_v31 = vsel %vm9134_vm3, 4294967295, %v18467_v31  ;;  %v2684_v5 = vsel %vm18451_vm12, %v18475_v46, %v18474_v44  ;;  %vm9158_vm5 = vcmp.eq.s32.totalorder %v18477_v16, %v18433_v29  ;;  %vm9174_vm12 = vmand %vm8854_vm1, %vm9028_vm11  ;;  %v18484_v44 = vmov 0 }
 0x144   : > { %18469 = vst [vmem:[#allocation9_spill] sm:$0xff] %v18468_v31  ;;  %v18479_v2 = vsel %vm9158_vm5, 4294967295, %v18478_v2  ;;  %v18481_v31 = vrot.slane %v8830_v19, 1  ;;  %v18485_v44 = vsel %vm9174_vm12, 4294967295, %v18484_v44  ;;  %vm18488_vm5 = vcmp.ge.s32.totalorder %v18343_v49, 4294967294 }
 0x145   : > { %18486 = vst [vmem:[#allocation43_spill] sm:$0xff] %v18485_v44  ;;  %vm9182_vm3 = vmand %vm18488_vm5, %vm18487_vm4  ;;  %v9196_v46 = vsub.s32 %v8495_v63, %v7798_v8  ;;  %v2820_v49 = vsel %vm9091_vm7, %v2813_v24, -inf  ;;  %v18494_v16 = vrot.slane %v8761_v55, 2  ;;  %vm18496_vm5 = vcmp.lt.s32.totalorder %v7533_v3, 6 }
 0x146   : > { %v9168_v0 = vsel %vm18482_vm13, %v18481_v31, %v18480_v39  ;;  %v2819_v39 = vsel %vm8866_vm0, %v2814_v21, -inf  ;;  %v18491_v31 = vrot.slane %v8761_v55, 1  ;;  %v18495_v21 = vrot.slane %v8698_v34, 2  ;;  %v18522_v34 = vld [vmem:[#allocation55_spill] sm:$0xff] }
 0x147   : > { %18483 = vst [vmem:[#allocation35_spill] sm:$0xff] %v9168_v0  ;;  %18493 = vst [vmem:[#allocation50_spill] sm:$0xff] %v9196_v46  ;;  %v2851_v30 = vmax.f32 %v2723_v18, %v2819_v39  ;;  %vm18498_vm4 = vcmp.le.s32.totalorder %v18347_v59, 2  ;;  %v2757_v63 = vrot.slane %v8920_v11, 6  ;;  %v18502_v18 = vld [vmem:[#allocation58_spill] sm:$0xff]  ;;  %v18504_v39 = vmov 0 }
 0x148   : > { %v2941_v37 = vsel %vm18482_vm13, %v2883_v27, %v18491_v31  ;;  %v9206_v1 = vsel %vm18496_vm5, %v18495_v21, %v18494_v16  ;;  %vm18499_vm13 = vcmp.ge.s32.totalorder %v18347_v59, 4294967294  ;;  %v18503_v24 = vsub.s32 %v18502_v18, %v18420_v25 }
 0x149   : > { %18497 = vst [vmem:[#allocation26_spill] sm:$0xff] %v9206_v1  ;;  %vm9212_vm1 = vmand %vm18499_vm13, %vm18498_vm4  ;;  %v18506_v16 = vrot.slane %v8756_v48, 1  ;;  %vm18507_vm5 = vcmp.lt.s32.totalorder %v7533_v3, 7  ;;  %v18509_v59 = vmov 0  ;;  %vm18513_vm0 = vnez %v18354_v9 }
 0x14a   : > { %vm9221_vm11 = vcmp.eq.s32.totalorder %v18503_v24, %v18464_v43  ;;  %vm9235_vm4 = vmand %vm8915_vm9, %vm9143_vm2  ;;  %v18514_v18 = vmov 0  ;;  %v9252_v60 = vmul.f32 %v7058_v23, %v8382_v56  ;;  %v2631_v45 = vrot.slane %v9126_v58, 7  ;;  %v18538_v23 = vld [vmem:[#allocation60_spill] sm:$0xff] }
 0x14b   : > { %v18505_v39 = vsel %vm9221_vm11, 4294967295, %v18504_v39  ;;  %v9229_v21 = vsel %vm18507_vm5, %v18506_v16, %v2883_v27  ;;  %v18510_v59 = vsel %vm9235_vm4, 4294967295, %v18509_v59  ;;  %vm9245_vm11 = vmand %vm18513_vm0, %vm8895_vm6  ;;  %vm18517_vm5 = vnez %v18349_v13 }
 0x14c   : > { %18508 = vst [vmem:[#allocation69_spill] sm:$0xff] %v9229_v21  ;;  %18511 = vst [vmem:[#allocation30_spill] sm:$0xff] %v18510_v59  ;;  %v18515_v18 = vsel %vm9245_vm11, 4294967295, %v18514_v18  ;;  %v2693_v27 = vsel %vm18517_vm5, %v2684_v5, -inf  ;;  %v9255_v24 = vmax.f32 %v2724_v33, %v2820_v49  ;;  %vm18519_vm9 = vnez %v18378_v32  ;;  %v18763_v59 = vld [vmem:[#allocation73_spill] sm:$0xff] }
 0x14d   : > { %18516 = vst [vmem:[#allocation25_spill] sm:$0xff] %v18515_v18  ;;  %18518 = vst [vmem:[#allocation47_spill] sm:$0xff] %v9252_v60  ;;  %v2947_v16 = vsel %vm18519_vm9, %v2941_v37, -inf  ;;  %v18520_v9 = vrot.slane %v8920_v11, 7  ;;  %vm18521_vm6 = vcmp.lt.s32.totalorder %v7533_v3, 1  ;;  %vm18523_vm13 = vcmp.le.s32.totalorder %v18384_v42, 2 }
 0x14e   : > { %vm18524_vm7 = vcmp.ge.s32.totalorder %v18384_v42, 4294967294  ;;  %vm9278_vm9 = vmand %vm8960_vm14, %vm9050_vm8  ;;  %v18527_v33 = vmov 0  ;;  %vm18531_vm0 = vcmp.ge.s32.totalorder %v18394_v51, 4294967294  ;;  %v2885_v5 = vrot.slane %v8920_v11, 1  ;;  %v18534_v37 = vld [vmem:[#allocation48_spill] sm:$0xff] }
 0x14f   : > { %v2683_v46 = vsel %vm18521_vm6, %v18520_v9, %v2630_v17  ;;  %vm9270_vm5 = vmand %vm18524_vm7, %vm18523_vm13  ;;  %v18528_v33 = vsel %vm9278_vm9, 4294967295, %v18527_v33  ;;  %vm18530_vm6 = vcmp.le.s32.totalorder %v18394_v51, 2  ;;  %v18535_v49 = vsub.s32 %v18534_v37, %v8062_v38  ;;  %v9306_v51 = vpop.f32.mrb[21].mxu0 }
 0x150   : > { %18529 = vst [vmem:[#allocation51_spill] sm:$0xff] %v18528_v33  ;;  %vm9289_vm7 = vmand %vm18531_vm0, %vm18530_vm6  ;;  %v9308_v26 = vmax.f32 %v2851_v30, %v2947_v16  ;;  %v18541_v15 = vsub.s32 %v18540_v62, %v18420_v25  ;;  %v18542_v32 = vmov 0  ;;  %vm18544_vm6 = vnez %v18401_v53 }
 0x151   : > { %vm9300_vm14 = vcmp.eq.s32.totalorder %v18535_v49, %v18492_v6  ;;  %vm9322_vm2 = vmand %vm18544_vm6, %vm9212_vm1  ;;  %v18545_v37 = vmov 0  ;;  %v2725_v49 = vmax.f32 %v8920_v11, %v2693_v27  ;;  %v18548_v30 = vrot.slane %v8761_v55, 6 }
 0x152   : > { %18539 = vst [vmem:[#allocation58_spill] sm:$0xff] %v9308_v26  ;;  %vm9314_vm0 = vcmp.eq.s32.totalorder %v18541_v15, %v18512_v47  ;;  %v18546_v37 = vsel %vm9322_vm2, 4294967295, %v18545_v37  ;;  %vm18549_vm8 = vcmp.lt.s32.totalorder %v7533_v3, 2  ;;  %v934_v62 = vadd.f32 1.0, %v7056_v4  ;;  %v7062_v4 = vpop.eup %7061 }
 0x153   : > { %v18543_v32 = vsel %vm9314_vm0, 4294967295, %v18542_v32  ;;  %18547 = vst [vmem:[#allocation42_spill] sm:$0xff] %v18546_v37  ;;  %v2812_v16 = vsel %vm18549_vm8, %v18548_v30, %v2757_v63  ;;  %vm18550_vm13 = vnez %v18409_v36  ;;  %vm18551_vm15 = vnez %v18405_v7 }
 0x154   : > { %vm9335_vm0 = vmand %vm18551_vm15, %vm18550_vm13  ;;  %v18552_v31 = vmov 0  ;;  %vm18555_vm1 = vnez %v18411_v35  ;;  %vm18556_vm6 = vnez %v18423_v20  ;;  %v18557_v27 = vmov 0  ;;  %v18565_v20 = vld [vmem:[#allocation41_spill] sm:$0xff] }
 0x155   : > { %v18553_v31 = vsel %vm9335_vm0, 4294967295, %v18552_v31  ;;  %v2694_v53 = vsel %vm18555_vm1, %v2683_v46, -inf  ;;  %vm9346_vm9 = vmand %vm18556_vm6, %vm9270_vm5  ;;  %vm18560_vm8 = vcmp.lt.s32.totalorder %v7533_v3, 1  ;;  %v933_v36 = vadd.f32 1.0, %v7060_v54 }
 0x156   : > { %18554 = vst [vmem:[#allocation55_spill] sm:$0xff] %v18553_v31  ;;  %v18558_v27 = vsel %vm9346_vm9, 4294967295, %v18557_v27  ;;  %v2682_v7 = vsel %vm18560_vm8, %v2630_v17, %v2631_v45  ;;  %vm18561_vm1 = vnez %v18431_v40  ;;  %v18562_v46 = vmov 0 }
 0x157   : > { %18559 = vst [vmem:[#allocation48_spill] sm:$0xff] %v18558_v27  ;;  %vm9358_vm0 = vmand %vm18561_vm1, %vm9289_vm7  ;;  %v18566_v56 = vsub.s32 %v18565_v20, %v18420_v25  ;;  %v18567_v17 = vmov 0  ;;  %vm18569_vm6 = vcmp.le.s32.totalorder %v18432_v10, 2  ;;  %vm18570_vm8 = vcmp.ge.s32.totalorder %v18432_v10, 4294967294 }
 0x158   : > { %v18563_v46 = vsel %vm9358_vm0, 4294967295, %v18562_v46  ;;  %vm9374_vm15 = vmand %vm18570_vm8, %vm18569_vm6  ;;  %v18573_v40 = vrot.slane %v9033_v22, 6  ;;  %vm18574_vm7 = vcmp.lt.s32.totalorder %v7533_v3, 2  ;;  %v3013_v30 = vrot.slane %v8920_v11, 2  ;;  %v7064_v11 = vpop.eup %7063 }
 0x159   : > { %18564 = vst [vmem:[#allocation60_spill] sm:$0xff] %v18563_v46  ;;  %vm9366_vm5 = vcmp.eq.s32.totalorder %v18566_v56, %v18432_v10  ;;  %vm18575_vm1 = vcmp.le.s32.totalorder %v18433_v29, 2  ;;  %vm18576_vm13 = vcmp.ge.s32.totalorder %v18433_v29, 4294967294  ;;  %vm18579_vm6 = vnez %v18442_v52  ;;  %v18586_v10 = vld [vmem:[#allocation54_spill] sm:$0xff] }
 0x15a   : > { %v18568_v17 = vsel %vm9366_vm5, 4294967295, %v18567_v17  ;;  %v2811_v42 = vsel %vm18574_vm7, %v2757_v63, %v18573_v40  ;;  %vm9387_vm0 = vmand %vm18576_vm13, %vm18575_vm1  ;;  %v18580_v63 = vmov 0  ;;  %vm18583_vm7 = vnez %v18437_v12 }
 0x15b   : > { %vm9397_vm8 = vmand %vm18579_vm6, %vm9117_vm10  ;;  %v2821_v56 = vsel %vm18583_vm7, %v2812_v16, -inf  ;;  %v18584_v29 = vrot.slane %v9033_v22, 1  ;;  %vm18585_vm13 = vcmp.lt.s32.totalorder %v7533_v3, 7  ;;  %v18587_v20 = vsub.s32 %v18586_v10, %v18366_v57 }
 0x15c   : > { %v18581_v63 = vsel %vm9397_vm8, 4294967295, %v18580_v63  ;;  %v18588_v41 = vmov 0  ;;  %v2759_v52 = vrot.slane %v9126_v58, 6  ;;  %v2887_v15 = vrot.slane %v9126_v58, 1 }
 0x15d   : > { %18582 = vst [vmem:[#allocation38_spill] sm:$0xff] %v18581_v63  ;;  %v2939_v40 = vsel %vm18585_vm13, %v2885_v5, %v18584_v29  ;;  %vm9411_vm1 = vcmp.eq.s32.totalorder %v18587_v20, %v18522_v34  ;;  %v2726_v16 = vmax.f32 %v9033_v22, %v2694_v53  ;;  %v2853_v12 = vmax.f32 %v2725_v49, %v2821_v56  ;;  %v18594_v20 = vld [vmem:[#allocation83_spill] sm:$0xff]  ;;  %v18598_v49 = vld [vmem:[#allocation9_spill] sm:$0xff] }
 0x15e   : > { %v18589_v41 = vsel %vm9411_vm1, 4294967295, %v18588_v41  ;;  %vm18590_vm10 = vcmp.le.s32.totalorder %v18464_v43, 2  ;;  %vm18591_vm6 = vcmp.ge.s32.totalorder %v18464_v43, 4294967294  ;;  %v2695_v10 = vsel %vm9346_vm9, %v2682_v7, -inf }
 0x15f   : > { %vm9422_vm13 = vmand %vm18591_vm6, %vm18590_vm10  ;;  %v18595_v35 = vsub.s32 %v8570_v14, %v18594_v20  ;;  %7065 = vrcp.f32 %v934_v62  ;;  %vm18599_vm1 = vnez %v18598_v49  ;;  %v18600_v43 = vmov 0  ;;  %v18611_v62 = vld [vmem:[#allocation89_spill] sm:$0xff] }
 0x160   : > { %vm9440_vm10 = vmand %vm18599_vm1, %vm9182_vm3  ;;  %v18603_v53 = vrot.slane %v8761_v55, 1  ;;  %vm18604_vm6 = vcmp.lt.s32.totalorder %v7533_v3, 7  ;;  %vm18605_vm9 = vnez %v18479_v2  ;;  %v18606_v14 = vmov 0  ;;  %v18613_v49 = vld [vmem:[#allocation29_spill] sm:$0xff] }
 0x161   : > { %vm9432_vm7 = vcmp.eq.s32.totalorder %v18595_v35, %v8632_v28  ;;  %v18601_v43 = vsel %vm9440_vm10, 4294967295, %v18600_v43  ;;  %vm9452_vm5 = vmand %vm18605_vm9, %vm9387_vm0  ;;  %v18609_v35 = vrot.slane %v9252_v60, 7  ;;  %vm18610_vm3 = vcmp.lt.s32.totalorder %v7533_v3, 1 }
 0x162   : > { %18602 = vst [vmem:[#allocation41_spill] sm:$0xff] %v18601_v43  ;;  %v2940_v7 = vsel %vm18604_vm6, %v18603_v53, %v2885_v5  ;;  %v18607_v14 = vsel %vm9452_vm5, 4294967295, %v18606_v14  ;;  %v9461_v56 = vmul.f32 %v7062_v4, %v18611_v62  ;;  %7067 = vrcp.f32 %v933_v36  ;;  %v18620_v4 = vld [vmem:[#allocation7_spill] sm:$0xff]  ;;  %vm18632_vm1 = vmmov %vm18604_vm6 }
 0x163   : > { %18608 = vst [vmem:[#allocation54_spill] sm:$0xff] %v18607_v14  ;;  %v2681_v50 = vsel %vm18610_vm3, %v2631_v45, %v18609_v35  ;;  %v2822_v2 = vsel %vm9174_vm12, %v2811_v42, -inf  ;;  %v2949_v5 = vsel %vm9322_vm2, %v2939_v40, -inf  ;;  %v18614_v25 = vrot.slane %v9033_v22, 2  ;;  %v18621_v42 = vld [vmem:[#allocation56_spill] sm:$0xff] }
 0x164   : > { %18612 = vst [vmem:[#allocation83_spill] sm:$0xff] %v9461_v56  ;;  %vm18615_vm9 = vcmp.lt.s32.totalorder %v7533_v3, 6  ;;  %vm18616_vm0 = vcmp.le.s32.totalorder %v18492_v6, 2  ;;  %vm18617_vm3 = vcmp.ge.s32.totalorder %v18492_v6, 4294967294  ;;  %v18622_v40 = vsub.s32 %v18621_v42, %v18366_v57 }
 0x165   : > { %v3067_v53 = vsel %vm18615_vm9, %v3013_v30, %v18614_v25  ;;  %vm9477_vm5 = vmand %vm18617_vm3, %vm18616_vm0  ;;  %vm18625_vm9 = vnez %v18505_v39  ;;  %v18626_v6 = vmov 0  ;;  %v2727_v62 = vmax.f32 %v9126_v58, %v2695_v10 }
 0x166   : > { %vm9488_vm12 = vcmp.eq.s32.totalorder %v18622_v40, %v18538_v23  ;;  %vm9496_vm0 = vmand %vm18625_vm9, %vm9422_vm13  ;;  %v18629_v25 = vrot.slane %v9033_v22, 6  ;;  %vm18630_vm3 = vcmp.lt.s32.totalorder %v7533_v3, 2  ;;  %v18631_v57 = vrot.slane %v9033_v22, 1  ;;  %v18633_v40 = vld [vmem:[#allocation91_spill] sm:$0xff] }
 0x167   : > { %v18627_v6 = vsel %vm9496_vm0, 4294967295, %v18626_v6  ;;  %v9510_v29 = vmul.f32 %v7064_v11, %v18633_v40  ;;  %v2948_v39 = vsel %vm9245_vm11, %v2940_v7, -inf  ;;  %v2981_v44 = vmax.f32 %v2853_v12, %v2949_v5  ;;  %v18642_v7 = vld [vmem:[#allocation98_spill] sm:$0xff]  ;;  %v18650_v40 = vld [vmem:[#allocation103_spill] sm:$0xff] }
 0x168   : > { %18628 = vst [vmem:[#allocation9_spill] sm:$0xff] %v18627_v6  ;;  %v2810_v36 = vsel %vm18630_vm3, %v18629_v25, %v2759_v52  ;;  %v2938_v42 = vsel %vm18632_vm1, %v18631_v57, %v2887_v15  ;;  %v18635_v37 = vrot.slane %v8761_v55, 2  ;;  %vm18636_vm13 = vcmp.lt.s32.totalorder %v7533_v3, 6 }
 0x169   : > { %18634 = vst [vmem:[#allocation89_spill] sm:$0xff] %v9510_v29  ;;  %vm18638_vm9 = vcmp.le.s32.totalorder %v18512_v47, 2  ;;  %vm18639_vm3 = vcmp.ge.s32.totalorder %v18512_v47, 4294967294  ;;  %v2696_v11 = vsel %vm9235_vm4, %v2681_v50, -inf  ;;  %v18643_v12 = vsub.s32 %v18642_v7, %v18594_v20 }
 0x16a   : > { %v9518_v10 = vsel %vm18636_vm13, %v18635_v37, %v3013_v30  ;;  %vm9524_vm6 = vmand %vm18639_vm3, %vm18638_vm9  ;;  %v2854_v37 = vmax.f32 %v2726_v16, %v2822_v2  ;;  %v3077_v30 = vsel %vm9397_vm8, %v3067_v53, -inf  ;;  %vm18646_vm13 = vcmp.le.s32.totalorder %v18522_v34, 2  ;;  %v9764_v16 = vld [vmem:[%s17201_s4] ss:$0 sm:$0xff] }
 0x16b   : > { %18637 = vst [vmem:[#allocation29_spill] sm:$0xff] %v9518_v10  ;;  %vm9534_vm1 = vcmp.eq.s32.totalorder %v18643_v12, %v18613_v49  ;;  %vm18647_vm9 = vcmp.ge.s32.totalorder %v18522_v34, 4294967294  ;;  %v3015_v50 = vrot.slane %v9126_v58, 2  ;;  %v2633_v57 = vrot.slane %v9461_v56, 7 }
 0x16c   : > { %vm9544_vm3 = vmand %vm18647_vm9, %vm18646_vm13  ;;  %v18651_v7 = vsub.s32 %v18650_v40, %v8062_v38  ;;  %v18654_v34 = vmov 0  ;;  %vm18657_vm9 = vcmp.le.s32.totalorder %v18538_v23, 2  ;;  %vm18658_vm8 = vcmp.ge.s32.totalorder %v18538_v23, 4294967294 }
 0x16d   : > { %vm9562_vm13 = vmand %vm9300_vm14, %vm9477_vm5  ;;  %v18661_v53 = vrot.slane %v9252_v60, 6  ;;  %vm18662_vm4 = vcmp.lt.s32.totalorder %v7533_v3, 2  ;;  %v2823_v9 = vsel %vm9496_vm0, %v2810_v36, -inf  ;;  %vm18663_vm14 = vnez %v18528_v33 }
 0x16e   : > { %vm9554_vm11 = vcmp.eq.s32.totalorder %v18651_v7, %v18620_v4  ;;  %v18655_v34 = vsel %vm9562_vm13, 4294967295, %v18654_v34  ;;  %vm9570_vm2 = vmand %vm18658_vm8, %vm18657_vm9  ;;  %v2950_v45 = vsel %vm18663_vm14, %v2938_v42, -inf  ;;  %v2889_v40 = vrot.slane %v9461_v56, 1  ;;  %v7066_v42 = vpop.eup %7065 }
 0x16f   : > { %18656 = vst [vmem:[#allocation7_spill] sm:$0xff] %v18655_v34  ;;  %v2809_v12 = vsel %vm18662_vm4, %v2759_v52, %v18661_v53  ;;  %vm18664_vm5 = vnez %v18543_v32  ;;  %v18665_v23 = vmov 0  ;;  %v2728_v7 = vmax.f32 %v9252_v60, %v2696_v11 }
 0x170   : > { %vm9587_vm8 = vmand %vm18664_vm5, %vm9524_vm6  ;;  %v2855_v58 = vmax.f32 %v2727_v62, %v2823_v9  ;;  %v18668_v52 = vrot.slane %v9252_v60, 1  ;;  %vm18669_vm4 = vcmp.lt.s32.totalorder %v7533_v3, 7  ;;  %v9598_v53 = vmax.f32 %v9255_v24, %v2948_v39  ;;  %v18679_v9 = vld [vmem:[#allocation108_spill] sm:$0xff]  ;;  %v9621_v39 = vpop.f32.mrb[22].mxu0 }
 0x171   : > { %v18666_v23 = vsel %vm9587_vm8, 4294967295, %v18665_v23  ;;  %v9603_v25 = vmax.f32 %v2981_v44, %v3077_v30  ;;  %vm18673_vm6 = vcmp.le.s32.totalorder %v8632_v28, 2  ;;  %vm18674_vm5 = vcmp.ge.s32.totalorder %v8632_v28, 4294967294 }
 0x172   : > { %18667 = vst [vmem:[#allocation56_spill] sm:$0xff] %v18666_v23  ;;  %v2937_v36 = vsel %vm18669_vm4, %v2887_v15, %v18668_v52  ;;  %18670 = vst [vmem:[#allocation91_spill] sm:$0xff] %v9598_v53  ;;  %v18677_v15 = vld [vmem:[#allocation109_spill] sm:$0xff]  ;;  %v18680_v52 = vrot.slane %v18679_v9, 6  ;;  %vm18681_vm4 = vcmp.lt.s32.totalorder %v7533_v3, 2  ;;  %vm18682_vm14 = vnez %v18568_v17 }
 0x173   : > { %18672 = vst [vmem:[#allocation98_spill] sm:$0xff] %v9603_v25  ;;  %vm9609_vm0 = vmand %vm18674_vm5, %vm18673_vm6  ;;  %v18678_v11 = vrot.slane %v18677_v15, 6  ;;  %v18683_v28 = vmov 0  ;;  %vm18686_vm6 = vnez %v18563_v46  ;;  %v2982_v30 = vmax.f32 %v2854_v37, %v2950_v45  ;;  %v18796_v25 = vld [vmem:[#allocation85_spill] sm:$0xff] }
 0x174   : > { %vm9627_vm9 = vmand %vm18682_vm14, %vm9374_vm15  ;;  %v2824_v44 = vsel %vm18686_vm6, %v2809_v12, -inf  ;;  %v18687_v32 = vrot.slane %v9033_v22, 2  ;;  %vm18688_vm5 = vcmp.lt.s32.totalorder %v7533_v3, 6  ;;  %v2951_v17 = vsel %vm9587_vm8, %v2937_v36, -inf }
 0x175   : > { %v9619_v24 = vsel %vm18681_vm4, %v18680_v52, %v18678_v11  ;;  %v18684_v28 = vsel %vm9627_vm9, 4294967295, %v18683_v28  ;;  %v18689_v52 = vrot.slane %v9252_v60, 7  ;;  %vm18690_vm4 = vcmp.lt.s32.totalorder %v7533_v3, 1  ;;  %vm18692_vm15 = vmmov %vm18688_vm5 }
 0x176   : > { %18685 = vst [vmem:[#allocation103_spill] sm:$0xff] %v18684_v28  ;;  %v3066_v11 = vsel %vm18688_vm5, %v18687_v32, %v3015_v50  ;;  %v18691_v55 = vrot.slane %v9252_v60, 2  ;;  %vm18693_vm14 = vnez %v18589_v41  ;;  %v18694_v37 = vmov 0 }
 0x177   : > { %v2680_v54 = vsel %vm18690_vm4, %v18689_v52, %v2633_v57  ;;  %vm9651_vm6 = vmand %vm18693_vm14, %vm9544_vm3  ;;  %v2761_v45 = vrot.slane %v9461_v56, 6  ;;  %v18697_v32 = vrot.slane %v9252_v60, 1  ;;  %vm18698_vm5 = vcmp.lt.s32.totalorder %v7533_v3, 7  ;;  %v7068_v52 = vpop.eup %7067 }
 0x178   : > { %v3065_v12 = vsel %vm18692_vm15, %v3015_v50, %v18691_v55  ;;  %v18695_v37 = vsel %vm9651_vm6, 4294967295, %v18694_v37  ;;  %v2856_v22 = vmax.f32 %v2728_v7, %v2824_v44  ;;  %v2983_v46 = vmax.f32 %v2855_v58, %v2951_v17  ;;  %vm9669_vm3 = vmand %vm9432_vm7, %vm9609_vm0 }
 0x179   : > { %18696 = vst [vmem:[#allocation109_spill] sm:$0xff] %v18695_v37  ;;  %v2936_v36 = vsel %vm18698_vm5, %v18697_v32, %v2889_v40  ;;  %v2762_v55 = vrot.slane %v9510_v29, 6  ;;  %v18699_v47 = vrot.slane %v9510_v29, 7  ;;  %v18700_v50 = vmov 0 }
 0x17a   : > { %v18701_v50 = vsel %vm9669_vm3, 4294967295, %v18700_v50  ;;  %v3078_v32 = vsel %vm9440_vm10, %v3066_v11, -inf  ;;  %v2890_v58 = vrot.slane %v9510_v29, 1  ;;  %vm18703_vm15 = vnez %v18607_v14 }
 0x17b   : > { %v2679_v41 = vsel %vm18690_vm4, %v2633_v57, %v18699_v47  ;;  %18702 = vst [vmem:[#allocation110_spill] sm:$0xff] %v18701_v50  ;;  %v2697_v7 = vsel %vm18703_vm15, %v2680_v54, -inf  ;;  %v3017_v44 = vrot.slane %v9461_v56, 2  ;;  %vm18704_vm14 = vcmp.le.s32.totalorder %v18613_v49, 2  ;;  %v18718_v47 = vld [vmem:[#allocation104_spill] sm:$0xff] }
 0x17c   : > { %vm18705_vm5 = vcmp.ge.s32.totalorder %v18613_v49, 4294967294  ;;  %v3079_v13 = vsel %vm9627_vm9, %v3065_v12, -inf  ;;  %v9685_v57 = vmax.f32 %v2982_v30, %v3078_v32  ;;  %v3018_v62 = vrot.slane %v9510_v29, 2  ;;  %v18716_v12 = vld [vmem:[#allocation102_spill] sm:$0xff] }
 0x17d   : > { %vm1863_vm4 = vmand %vm18705_vm5, %vm18704_vm14  ;;  %v2952_v11 = vsel %vm9651_vm6, %v2936_v36, -inf  ;;  %vm18707_vm7 = vcmp.le.s32.totalorder %v18620_v4, 2  ;;  %vm18708_vm0 = vcmp.ge.s32.totalorder %v18620_v4, 4294967294  ;;  %v18711_v49 = vmov 0 }
 0x17e   : > { %18706 = vst [vmem:[#allocation111_spill] sm:$0xff] %v9685_v57  ;;  %vm9694_vm8 = vmand %vm18708_vm0, %vm18707_vm7  ;;  %v18714_v30 = vrot.slane %v9252_v60, 6  ;;  %vm18715_vm5 = vcmp.lt.s32.totalorder %v7533_v3, 2  ;;  %v2698_v4 = vsel %vm9669_vm3, %v2679_v41, -inf  ;;  %v9713_v36 = vmul.f32 %v7066_v42, %v18716_v12  ;;  %v9732_v42 = vld [vmem:[%s17200_s3] ss:$0 sm:$0xff] }
 0x17f   : > { %vm9702_vm14 = vmand %vm9488_vm12, %vm9570_vm2  ;;  %v9716_v32 = vmul.f32 %v7068_v52, %v18718_v47  ;;  %v9718_v2 = vmax.f32 %v2983_v46, %v3079_v13  ;;  %v2729_v35 = vmax.f32 %v9461_v56, %v2697_v7  ;;  %v18725_v52 = vld [vmem:[#allocation78_spill] sm:$0xff]  ;;  %vm18726_vm7 = vcmp.lt.s32.totalorder %v7533_v3, 7  ;;  %v18733_v12 = vld [vmem:[#allocation80_spill] sm:$0xff] }
 0x180   : > { %v18712_v49 = vsel %vm9702_vm14, 4294967295, %v18711_v49  ;;  %v2808_v17 = vsel %vm18715_vm5, %v18714_v30, %v2761_v45  ;;  %18717 = vst [vmem:[#allocation102_spill] sm:$0xff] %v9713_v36  ;;  %vm18721_vm12 = vmmov %vm18715_vm5  ;;  %v18722_v30 = vmov 0  ;;  %v769_v46 = vmul.f32 %v9732_v42, %v18725_v52 }
 0x181   : > { %18713 = vst [vmem:[#allocation112_spill] sm:$0xff] %v18712_v49  ;;  %18719 = vst [vmem:[#allocation104_spill] sm:$0xff] %v9716_v32  ;;  %v2807_v37 = vsel %vm18721_vm12, %v2761_v45, %v2762_v55  ;;  %v9738_v41 = vsel %vm18726_vm7, %v2889_v40, %v2890_v58  ;;  %v2984_v7 = vmax.f32 %v2856_v22, %v2952_v11  ;;  %v18728_v45 = vrot.slane %v9252_v60, 2 }
 0x182   : > { %18720 = vst [vmem:[#allocation113_spill] sm:$0xff] %v9718_v2  ;;  %vm9725_vm2 = vmand %vm9534_vm1, %vm1863_vm4  ;;  %vm18729_vm1 = vcmp.lt.s32.totalorder %v7533_v3, 6  ;;  %v18730_v13 = vmov 0  ;;  %v768_v47 = vmul.f32 %v9732_v42, %v18733_v12  ;;  %v2825_v40 = vsel %vm9562_vm13, %v2808_v17, -inf }
 0x183   : > { %v18723_v30 = vsel %vm9725_vm2, 4294967295, %v18722_v30  ;;  %18727 = vst [vmem:[#allocation78_spill] sm:$0xff] %v9738_v41  ;;  %v3064_v5 = vsel %vm18729_vm1, %v18728_v45, %v3017_v44  ;;  %vm9748_vm4 = vmand %vm9554_vm11, %vm9694_vm8  ;;  %v2730_v11 = vmax.f32 %v9510_v29, %v2698_v4  ;;  %v9767_v54 = vadd.f32 %v9764_v16, %v769_v46 }
 0x184   : > { %18724 = vst [vmem:[#allocation114_spill] sm:$0xff] %v18723_v30  ;;  %v18731_v13 = vsel %vm9748_vm4, 4294967295, %v18730_v13  ;;  %vm18734_vm0 = vmmov %vm18729_vm1  ;;  %v2826_v52 = vsel %vm9725_vm2, %v2807_v37, -inf  ;;  %v2635_v17 = vrot.slane %v9716_v32, 7  ;;  %v9776_v12 = vmax.f32 %v2729_v35, %v2825_v40  ;;  %v18741_v37 = vld [vmem:[#allocation84_spill] sm:$0xff]  ;;  %v9806_v35 = vpop.f32.mrb[23].mxu0 }
 0x185   : > { %18732 = vst [vmem:[#allocation115_spill] sm:$0xff] %v18731_v13  ;;  %v9758_v22 = vsel %vm18734_vm0, %v3017_v44, %v3018_v62  ;;  %v9774_v44 = vadd.f32 %v9764_v16, %v768_v47  ;;  %v3080_v4 = vsel %vm9702_vm14, %v3064_v5, -inf  ;;  %v2763_v45 = vrot.slane %v9716_v32, 6  ;;  %vm18745_vm12 = vmmov %vm18715_vm5 }
 0x186   : > { %18735 = vst [vmem:[#allocation80_spill] sm:$0xff] %v9758_v22  ;;  %18736 = vst [vmem:[#allocation116_spill] sm:$0xff] %v9776_v12  ;;  %v9784_v60 = vmax.f32 %v2984_v7, %v3080_v4  ;;  %v2891_v47 = vrot.slane %v9716_v32, 1  ;;  %v9789_v30 = vmax.f32 %v2730_v11, %v2826_v52  ;;  %v3019_v5 = vrot.slane %v9716_v32, 2  ;;  %v9804_v52 = vpop.permute.xlu0 %1147 }
 0x187   : > { %v6310_v40 = vmul.f32 -1.442695, %v9767_v54  ;;  %v18739_v46 = vrot.slane %v9713_v36, 7  ;;  %vm18740_vm11 = vcmp.lt.s32.totalorder %v7533_v3, 1  ;;  %v1689_v56 = vrot.slane %v18741_v37, 6  ;;  %vm18748_vm1 = vmmov %vm18726_vm7 }
 0x188   : > { %18737 = vst [vmem:[#allocation117_spill] sm:$0xff] %v9784_v60  ;;  %18738 = vst [vmem:[#allocation118_spill] sm:$0xff] %v9789_v30  ;;  %v6309_v11 = vmul.f32 -1.442695, %v9774_v44  ;;  %v18742_v34 = vrot.slane %v9510_v29, 7  ;;  %v9816_v28 = vadd.s32 80, %v7533_v3  ;;  %v9827_v29 = vsel %vm18745_vm12, %v2762_v55, %v2763_v45 }
 0x189   : > { %v9798_v7 = vsel %vm18740_vm11, %v2635_v17, %v18739_v46  ;;  %vm18743_vm8 = vmmov %vm18740_vm11  ;;  %v1319_v4 = vrot.slane %v9804_v52, 7  ;;  %v18744_v23 = vrot.slane %v9713_v36, 6  ;;  %v1672_v46 = vrot.slane %v9804_v52, 6 }
 0x18a   : > { %v9812_v49 = vsel %vm18743_vm8, %v18742_v34, %v2635_v17  ;;  %v18746_v34 = vrot.slane %v9713_v36, 1  ;;  %v9838_v43 = vsel %vm18748_vm1, %v2890_v58, %v2891_v47  ;;  %v18750_v18 = vrot.slane %v9713_v36, 2  ;;  %vm18752_vm11 = vmmov %vm18734_vm0  ;;  %v18756_v58 = vld [vmem:[#allocation107_spill] sm:$0xff] }
 0x18b   : > { %v9823_v6 = vsel %vm18715_vm5, %v2763_v45, %v18744_v23  ;;  %18749 = vst [vmem:[#allocation119_spill] sm:$0xff] %v9838_v43  ;;  %v2042_v55 = vrot.slane %v18741_v37, 1  ;;  %7069 = vpow2.f32 %v6310_v40  ;;  %v9849_v45 = vsel %vm18752_vm11, %v3018_v62, %v3019_v5  ;;  %vm18755_vm8 = vmmov %vm18715_vm5 }
 0x18c   : > { %v9833_v17 = vsel %vm18726_vm7, %v2891_v47, %v18746_v34  ;;  %v9844_v23 = vsel %vm18734_vm0, %v3019_v5, %v18750_v18  ;;  %18753 = vst [vmem:[#allocation121_spill] sm:$0xff] %v9849_v45  ;;  %v18754_v34 = vrot.slane %v7798_v8, 6  ;;  %v18757_v47 = vrot.slane %v18756_v58, 6  ;;  %v18758_v18 = vld [vmem:[#allocation17_spill] sm:$0xff]  ;;  %vm18761_vm12 = vmmov %vm18748_vm1 }
 0x18d   : > { %18747 = vst [vmem:[#allocation84_spill] sm:$0xff] %v9833_v17  ;;  %18751 = vst [vmem:[#allocation120_spill] sm:$0xff] %v9844_v23  ;;  %7071 = vpow2.f32 %v6309_v11  ;;  %v18759_v50 = vrot.slane %v18758_v18, 1  ;;  %v18760_v14 = vrot.slane %v18677_v15, 1  ;;  %v1222_v5 = vrot.slane %v9816_v28, 7 }
 0x18e   : > { %v1697_v33 = vsel %vm18755_vm8, %v1689_v56, %v18754_v34  ;;  %v1698_v63 = vsel %vm18715_vm5, %v18757_v47, %v1689_v56  ;;  %v18764_v34 = vrot.slane %v18763_v59, 7  ;;  %vm18765_vm7 = vcmp.lt.s32.totalorder %v7533_v3, 1  ;;  %vm18767_vm1 = vmmov %vm18715_vm5 }
 0x18f   : > { %v9865_v40 = vsel %vm18761_vm12, %v18760_v14, %v18759_v50  ;;  %v1575_v11 = vrot.slane %v9816_v28, 6  ;;  %v18766_v47 = vrot.slane %v18763_v59, 6  ;;  %v9879_v14 = vpop.permute.xlu1 %1150  ;;  %v9882_v50 = vadd.s32 88, %v7533_v3  ;;  %vm18770_vm0 = vmmov %vm18761_vm12 }
 0x190   : > { %18762 = vst [vmem:[#allocation107_spill] sm:$0xff] %v9865_v40  ;;  %v1362_v27 = vsel %vm18765_vm7, %v18764_v34, %v1319_v4  ;;  %v9885_v62 = vsub.s32 %v1698_v63, %v18741_v37  ;;  %v18769_v60 = vrot.slane %v7798_v8, 1  ;;  %v2395_v56 = vrot.slane %v18741_v37, 2  ;;  %vm18773_vm11 = vmmov %vm18770_vm0 }
 0x191   : > { %v1715_v23 = vsel %vm18767_vm1, %v18766_v47, %v1672_v46  ;;  %18768 = vst [vmem:[#allocation73_spill] sm:$0xff] %v9882_v50  ;;  %v9894_v57 = vsub.s32 %v1697_v33, %v7798_v8  ;;  %v18772_v47 = vrot.slane %v18756_v58, 1  ;;  %v1383_v63 = vsub.s32 %v1362_v27, %v9804_v52  ;;  %vm18775_vm8 = vmmov %vm18765_vm7 }
 0x192   : > { %v2050_v34 = vsel %vm18770_vm0, %v2042_v55, %v18769_v60  ;;  %v2025_v2 = vrot.slane %v9804_v52, 1  ;;  %v18774_v60 = vrot.slane %v18594_v20, 7  ;;  %v1736_v33 = vsub.s32 %v1715_v23, %v9804_v52  ;;  %vm18782_vm12 = vmmov %vm18767_vm1 }
 0x193   : > { %18771 = vst [vmem:[#allocation122_spill] sm:$0xff] %v9894_v57  ;;  %v2051_v30 = vsel %vm18773_vm11, %v18772_v47, %v2042_v55  ;;  %v1928_v57 = vrot.slane %v9816_v28, 1  ;;  %v9911_v12 = vsub.s32 %v2050_v34, %v18741_v37  ;;  %v18777_v55 = vrot.slane %v18758_v18, 2  ;;  %vm18789_vm0 = vmmov %vm18775_vm8 }
 0x194   : > { %v1266_v45 = vsel %vm18775_vm8, %v18774_v60, %v1222_v5  ;;  %v18778_v27 = vrot.slane %v18677_v15, 2  ;;  %vm18779_vm5 = vcmp.lt.s32.totalorder %v7533_v3, 6  ;;  %v18781_v22 = vrot.slane %v18594_v20, 6 }
 0x195   : > { %18776 = vst [vmem:[#allocation123_spill] sm:$0xff] %v9911_v12  ;;  %v9927_v40 = vsub.s32 %v2051_v30, %v18756_v58  ;;  %v18784_v34 = vrot.slane %v7798_v8, 2  ;;  %vm18785_vm7 = vmmov %vm18779_vm5  ;;  %v18786_v41 = vrot.slane %v18756_v58, 2  ;;  %v1287_v30 = vsub.s32 %v1266_v45, %v9816_v28 }
 0x196   : > { %v9919_v47 = vsel %vm18779_vm5, %v18778_v27, %v18777_v55  ;;  %v1619_v60 = vsel %vm18782_vm12, %v18781_v22, %v1575_v11  ;;  %vm18787_vm1 = vmmov %vm18779_vm5  ;;  %v18788_v27 = vrot.slane %v9879_v14, 7  ;;  %vm1447_vm11 = vcmp.ge.s32.totalorder %v1383_v63, 4294967294 }
 0x197   : > { %18780 = vst [vmem:[#allocation124_spill] sm:$0xff] %v9919_v47  ;;  %18783 = vst [vmem:[#allocation125_spill] sm:$0xff] %v9927_v40  ;;  %v9933_v12 = vsel %vm18785_vm7, %v2395_v56, %v18784_v34  ;;  %v9939_v55 = vsel %vm18787_vm1, %v18786_v41, %v2395_v56  ;;  %v18790_v8 = vrot.slane %v18763_v59, 1  ;;  %vm18791_vm8 = vcmp.lt.s32.totalorder %v7533_v3, 7  ;;  %v7070_v40 = vpop.eup %7069 }
 0x198   : > { %v1361_v22 = vsel %vm18789_vm0, %v1319_v4, %v18788_v27  ;;  %vm1479_vm5 = vcmp.le.s32.totalorder %v1383_v63, 2  ;;  %v1640_v41 = vsub.s32 %v1619_v60, %v9816_v28  ;;  %v18792_v56 = vrot.slane %v18594_v20, 1  ;;  %vm18793_vm7 = vmmov %vm18791_vm8  ;;  %v7072_v27 = vpop.eup %7071 }
 0x199   : > { %v2068_v34 = vsel %vm18791_vm8, %v18790_v8, %v2025_v2  ;;  %v18794_v45 = vrot.slane %v9882_v50, 7  ;;  %vm18795_vm1 = vmmov %vm18789_vm0  ;;  %v1384_v8 = vsub.s32 %v1361_v22, %v9879_v14  ;;  %v771_v53 = vmul.f32 %v9732_v42, %v18796_v25 }
 0x19a   : > { %v1972_v4 = vsel %vm18793_vm7, %v18792_v56, %v1928_v57  ;;  %v2088_v60 = vsub.s32 %v2068_v34, %v18763_v59  ;;  %v17480_v10 = vrot.slane %v9882_v50, 6  ;;  %v936_v31 = vadd.f32 1.0, %v7070_v40  ;;  %vm18798_vm8 = vmmov %vm18782_vm12 }
 0x19b   : > { %v1265_v13 = vsel %vm18795_vm1, %v1222_v5, %v18794_v45  ;;  %v18797_v21 = vrot.slane %v9879_v14, 6  ;;  %v9972_v22 = vadd.f32 %v9764_v16, %v771_v53  ;;  %v18799_v45 = vld [vmem:[#allocation86_spill] sm:$0xff]  ;;  %v935_v25 = vadd.f32 1.0, %v7072_v27  ;;  %vm1511_vm1 = vmand %vm1447_vm11, %vm1479_vm5 }
 0x19c   : > { %v770_v23 = vmul.f32 %v9732_v42, %v18799_v45  ;;  %vm1415_vm7 = vcmp.eq.s32.totalorder %v1287_v30, %v1383_v63  ;;  %v1992_v34 = vsub.s32 %v1972_v4, %v18594_v20  ;;  %v1288_v40 = vsub.s32 %v1265_v13, %v9882_v50  ;;  %v9993_v30 = vpop.f32.mrb[24].mxu0 }
 0x19d   : > { %v1714_v5 = vsel %vm18798_vm8, %v1672_v46, %v18797_v21  ;;  %vm1448_vm12 = vcmp.ge.s32.totalorder %v1384_v8, 4294967294  ;;  %vm1480_vm0 = vcmp.le.s32.totalorder %v1384_v8, 2  ;;  %v18800_v56 = vrot.slane %v9879_v14, 1  ;;  %vm9995_vm11 = vmand %vm1415_vm7, %vm1511_vm1 }
 0x19e   : > { %vm18801_vm8 = vcmp.lt.s32.totalorder %v7533_v3, 7  ;;  %v9985_v53 = vadd.f32 %v9764_v16, %v770_v23  ;;  %vm18802_vm13 = vcmp.lt.s32.totalorder %v7533_v3, 2  ;;  %v1737_v63 = vsub.s32 %v1714_v5, %v9879_v14  ;;  %vm10010_vm2 = vmand %vm1448_vm12, %vm1480_vm0 }
 0x19f   : > { %v2067_v21 = vsel %vm18801_vm8, %v2025_v2, %v18800_v56  ;;  %v1618_v46 = vsel %vm18802_vm13, %v1575_v11, %v17480_v10  ;;  %v6312_v13 = vmul.f32 -1.442695, %v9972_v22  ;;  %7073 = vrcp.f32 %v936_v31 }
 0x1a0   : > { %v18803_v4 = vmov 0  ;;  %vm2184_vm5 = vcmp.le.s32.totalorder %v2088_v60, 2  ;;  %v18806_v2 = vrot.slane %v9882_v50, 1  ;;  %v6311_v27 = vmul.f32 -1.442695, %v9985_v53 }
 0x1a1   : > { %v18804_v4 = vsel %vm9995_vm11, 4294967295, %v18803_v4  ;;  %7075 = vrcp.f32 %v935_v25  ;;  %vm10004_vm13 = vcmp.eq.s32.totalorder %v1288_v40, %v1384_v8  ;;  %v2089_v56 = vsub.s32 %v2067_v21, %v9804_v52 }
 0x1a2   : > { %18805 = vst [vmem:[#allocation85_spill] sm:$0xff] %v18804_v4  ;;  %v1971_v23 = vsel %vm18801_vm8, %v1928_v57, %v18806_v2  ;;  %v10016_v5 = vadd.s32 96, %v7533_v3  ;;  %vm10018_vm7 = vcmp.eq.s32.totalorder %v1640_v41, %v1736_v33  ;;  %vm18814_vm1 = vcmp.le.s32.totalorder %v1736_v33, 2 }
 0x1a3   : > { %vm18815_vm8 = vcmp.ge.s32.totalorder %v1736_v33, 4294967294  ;;  %v2281_v8 = vrot.slane %v9816_v28, 2  ;;  %v2378_v25 = vrot.slane %v9804_v52, 2  ;;  %v1641_v40 = vsub.s32 %v1618_v46, %v9882_v50  ;;  %v10039_v33 = vpop.permute.xlu0 %1153 }
 0x1a4   : > { %18811 = vst [vmem:[#allocation86_spill] sm:$0xff] %v10016_v5  ;;  %vm10024_vm14 = vmand %vm18815_vm8, %vm18814_vm1  ;;  %vm18818_vm12 = vcmp.ge.s32.totalorder %v2088_v60, 4294967294  ;;  %v2699_v41 = vsel %vm9995_vm11, %v9812_v49, -inf  ;;  %7077 = vpow2.f32 %v6312_v13  ;;  %vm10041_vm8 = vcmp.eq.s32.totalorder %v1992_v34, %v2088_v60 }
 0x1a5   : > { %vm10032_vm0 = vmand %vm18818_vm12, %vm2184_vm5  ;;  %v18823_v46 = vmov 0  ;;  %v1993_v10 = vsub.s32 %v1971_v23, %v9816_v28  ;;  %7079 = vpow2.f32 %v6311_v27  ;;  %v17484_v49 = vrot.slane %v10039_v33, 7 }
 0x1a6   : > { %vm10049_vm5 = vmand %vm10004_vm13, %vm10010_vm2  ;;  %v18826_v60 = vmov 0  ;;  %vm2153_vm6 = vcmp.ge.s32.totalorder %v2089_v56, 4294967294  ;;  %vm2185_vm1 = vcmp.le.s32.totalorder %v2089_v56, 2  ;;  %v17483_v34 = vrot.slane %v9882_v50, 2 }
 0x1a7   : > { %v18824_v46 = vsel %vm10049_vm5, 4294967295, %v18823_v46  ;;  %vm10059_vm12 = vmand %vm10018_vm7, %vm10024_vm14  ;;  %v18829_v11 = vrot.slane %v18763_v59, 2  ;;  %vm18830_vm2 = vcmp.lt.s32.totalorder %v7533_v3, 6  ;;  %vm10069_vm13 = vcmp.eq.s32.totalorder %v1641_v40, %v1737_v63 }
 0x1a8   : > { %18825 = vst [vmem:[#allocation126_spill] sm:$0xff] %v18824_v46  ;;  %v18827_v60 = vsel %vm10059_vm12, 4294967295, %v18826_v60  ;;  %vm18833_vm9 = vcmp.le.s32.totalorder %v1737_v63, 2  ;;  %vm18834_vm14 = vcmp.ge.s32.totalorder %v1737_v63, 4294967294  ;;  %v17487_v31 = vrot.slane %v9879_v14, 2 }
 0x1a9   : > { %18828 = vst [vmem:[#allocation127_spill] sm:$0xff] %v18827_v60  ;;  %v2421_v23 = vsel %vm18830_vm2, %v18829_v11, %v2378_v25  ;;  %vm1865_vm7 = vmand %vm18834_vm14, %vm18833_vm9  ;;  %v10081_v13 = vsub.s32 %v9933_v12, %v18741_v37  ;;  %v18836_v40 = vmov 0  ;;  %v2731_v63 = vmax.f32 %v9716_v32, %v2699_v41  ;;  %v7074_v27 = vpop.eup %7073 }
 0x1aa   : > { %vm10087_vm2 = vmand %vm10041_vm8, %vm10032_vm0  ;;  %v2700_v11 = vsel %vm10049_vm5, %v9798_v7, -inf  ;;  %v10097_v45 = vsub.s32 %v9939_v55, %v18756_v58  ;;  %v18840_v12 = vrot.slane %v18594_v20, 2  ;;  %vm18841_vm9 = vcmp.lt.s32.totalorder %v7533_v3, 6 }
 0x1ab   : > { %18835 = vst [vmem:[#allocation128_spill] sm:$0xff] %v10081_v13  ;;  %v18837_v40 = vsel %vm10087_vm2, 4294967295, %v18836_v40  ;;  %vm10105_vm0 = vcmp.eq.s32.totalorder %v1993_v10, %v2089_v56  ;;  %vm10111_vm8 = vmand %vm2153_vm6, %vm2185_vm1  ;;  %v18846_v7 = vrot.slane %v9879_v14, 7  ;;  %vm18847_vm14 = vcmp.lt.s32.totalorder %v7533_v3, 1 }
 0x1ac   : > { %18838 = vst [vmem:[#allocation129_spill] sm:$0xff] %v18837_v40  ;;  %18839 = vst [vmem:[#allocation130_spill] sm:$0xff] %v10097_v45  ;;  %v10103_v37 = vsel %vm18841_vm9, %v18840_v12, %v2281_v8  ;;  %v10122_v2 = vsub.s32 %v2421_v23, %v18763_v59  ;;  %v18848_v10 = vmov 0  ;;  %vm18851_vm6 = vcmp.lt.s32.totalorder %v7533_v3, 6  ;;  %v7076_v23 = vpop.eup %7075 }
 0x1ad   : > { %v1360_v55 = vsel %vm18847_vm14, %v18846_v7, %v17484_v49  ;;  %vm10126_vm9 = vmand %vm10069_vm13, %vm1865_vm7  ;;  %v10134_v56 = vsel %vm18851_vm6, %v2281_v8, %v17483_v34  ;;  %v18852_v12 = vrot.slane %v10016_v5, 7  ;;  %v18853_v57 = vrot.slane %v9882_v50, 7 }
 0x1ae   : > { %v18849_v10 = vsel %vm10126_vm9, 4294967295, %v18848_v10  ;;  %vm18854_vm1 = vmmov %vm18847_vm14  ;;  %v2827_v7 = vsel %vm10059_vm12, %v9827_v29, -inf  ;;  %v2732_v34 = vmax.f32 %v9713_v36, %v2700_v11  ;;  %v18856_v49 = vrot.slane %v10039_v33, 6  ;;  %v7078_v41 = vpop.eup %7077 }
 0x1af   : > { %18850 = vst [vmem:[#allocation131_spill] sm:$0xff] %v18849_v10  ;;  %v1264_v59 = vsel %vm18854_vm1, %v18853_v57, %v18852_v12  ;;  %vm18855_vm13 = vmmov %vm18851_vm6  ;;  %v18857_v32 = vrot.slane %v9879_v14, 6  ;;  %vm18858_vm7 = vcmp.lt.s32.totalorder %v7533_v3, 2  ;;  %v10157_v12 = vpop.f32.mrb[25].mxu0  ;;  %v10161_v45 = vmax.f32 %v2731_v63, %v2827_v7 }
 0x1b0   : > { %v2420_v8 = vsel %vm18855_vm13, %v2378_v25, %v17487_v31  ;;  %vm10170_vm14 = vmand %vm10105_vm0, %vm10111_vm8  ;;  %v18860_v11 = vmov 0  ;;  %v2828_v63 = vsel %vm10126_vm9, %v9823_v6, -inf  ;;  %v1289_v7 = vsub.s32 %v1264_v59, %v10016_v5  ;;  %v7080_v59 = vpop.eup %7079 }
 0x1b1   : > { %v1713_v57 = vsel %vm18858_vm7, %v18857_v32, %v18856_v49  ;;  %18859 = vst [vmem:[#allocation132_spill] sm:$0xff] %v10161_v45  ;;  %v18861_v11 = vsel %vm10170_vm14, 4294967295, %v18860_v11  ;;  %v1385_v32 = vsub.s32 %v1360_v55, %v10039_v33  ;;  %v10182_v25 = vadd.s32 104, %v7533_v3  ;;  %vm18867_vm0 = vmmov %vm18858_vm7 }
 0x1b2   : > { %18862 = vst [vmem:[#allocation133_spill] sm:$0xff] %v18861_v11  ;;  %v10185_v21 = vmul.f32 %v7074_v27, %v9767_v54  ;;  %v10188_v29 = vsub.s32 %v2420_v8, %v9804_v52  ;;  %v18865_v55 = vrot.slane %v10016_v5, 6  ;;  %v18866_v49 = vrot.slane %v9882_v50, 6  ;;  %v10208_v27 = vpop.permute.xlu1 %1156 }
 0x1b3   : > { %18863 = vst [vmem:[#allocation134_spill] sm:$0xff] %v10182_v25  ;;  %v10197_v6 = vsub.s32 %v1713_v57, %v10039_v33  ;;  %v10200_v10 = vmul.f32 %v7076_v23, %v9774_v44  ;;  %v10202_v60 = vmax.f32 %v2732_v34, %v2828_v63  ;;  %v1930_v52 = vrot.slane %v10016_v5, 1 }
 0x1b4   : > { %18864 = vst [vmem:[#allocation135_spill] sm:$0xff] %v10185_v21  ;;  %v1617_v31 = vsel %vm18867_vm0, %v18866_v49, %v18865_v55  ;;  %vm1449_vm8 = vcmp.ge.s32.totalorder %v1385_v32, 4294967294  ;;  %vm1481_vm6 = vcmp.le.s32.totalorder %v1385_v32, 2  ;;  %v2027_v8 = vrot.slane %v10039_v33, 1  ;;  %v18884_v55 = vld [vmem:[#allocation90_spill] sm:$0xff] }
 0x1b5   : > { %18868 = vst [vmem:[#allocation136_spill] sm:$0xff] %v10200_v10  ;;  %18869 = vst [vmem:[#allocation137_spill] sm:$0xff] %v10202_v60  ;;  %v17498_v57 = vrot.slane %v10208_v27, 7  ;;  %v938_v49 = vadd.f32 1.0, %v7078_v41  ;;  %vm10212_vm1 = vcmp.eq.s32.totalorder %v1289_v7, %v1385_v32  ;;  %v1642_v34 = vsub.s32 %v1617_v31, %v10016_v5 }
 0x1b6   : > { %v937_v54 = vadd.f32 1.0, %v7080_v59  ;;  %v18872_v7 = vrot.slane %v10039_v33, 7  ;;  %vm18873_vm0 = vcmp.lt.s32.totalorder %v7533_v3, 1  ;;  %v2637_v63 = vrot.slane %v10200_v10, 7  ;;  %vm1513_vm9 = vmand %vm1449_vm8, %vm1481_vm6 }
 0x1b7   : > { %v2765_v59 = vrot.slane %v10200_v10, 6  ;;  %v2893_v46 = vrot.slane %v10200_v10, 1  ;;  %v18874_v4 = vrot.slane %v9879_v14, 1  ;;  %vm18875_vm13 = vcmp.lt.s32.totalorder %v7533_v3, 7 }
 0x1b8   : > { %v1359_v41 = vsel %vm18873_vm0, %v18872_v7, %v17498_v57  ;;  %7081 = vrcp.f32 %v938_v49  ;;  %v18876_v57 = vrot.slane %v10182_v25, 7  ;;  %v18877_v23 = vrot.slane %v10016_v5, 7 }
 0x1b9   : > { %v2066_v47 = vsel %vm18875_vm13, %v18874_v4, %v2027_v8  ;;  %v1386_v13 = vsub.s32 %v1359_v41, %v10208_v27  ;;  %7083 = vrcp.f32 %v937_v54  ;;  %vm10248_vm7 = vcmp.eq.s32.totalorder %v1642_v34, %v10197_v6 }
 0x1ba   : > { %v1263_v31 = vsel %vm18873_vm0, %v18877_v23, %v18876_v57  ;;  %v18880_v4 = vrot.slane %v9882_v50, 1  ;;  %v2090_v57 = vsub.s32 %v2066_v47, %v9879_v14  ;;  %v2283_v23 = vrot.slane %v10016_v5, 2 }
 0x1bb   : > { %v18881_v54 = vrot.slane %v10208_v27, 6  ;;  %v18882_v34 = vrot.slane %v10039_v33, 6  ;;  %vm18883_vm0 = vcmp.lt.s32.totalorder %v7533_v3, 2  ;;  %v773_v45 = vmul.f32 %v9732_v42, %v18884_v55  ;;  %v18889_v55 = vld [vmem:[#allocation93_spill] sm:$0xff] }
 0x1bc   : > { %v1970_v49 = vsel %vm18875_vm13, %v18880_v4, %v1930_v52  ;;  %v18885_v4 = vrot.slane %v10185_v21, 7  ;;  %vm18886_vm13 = vcmp.lt.s32.totalorder %v7533_v3, 1  ;;  %v1290_v47 = vsub.s32 %v1263_v31, %v10182_v25 }
 0x1bd   : > { %v1712_v7 = vsel %vm18883_vm0, %v18882_v34, %v18881_v54  ;;  %v18887_v17 = vrot.slane %v10208_v27, 1  ;;  %vm18888_vm12 = vcmp.lt.s32.totalorder %v7533_v3, 7  ;;  %v10282_v34 = vadd.f32 %v9764_v16, %v773_v45  ;;  %vm18891_vm0 = vmmov %vm18886_vm13 }
 0x1be   : > { %v10273_v32 = vsel %vm18886_vm13, %v2637_v63, %v18885_v4  ;;  %v772_v11 = vmul.f32 %v9732_v42, %v18889_v55  ;;  %v18890_v4 = vrot.slane %v9713_v36, 7  ;;  %vm10292_vm13 = vmand %vm10212_vm1, %vm1513_vm9  ;;  %v18892_v41 = vmov 0 }
 0x1bf   : > { %v2065_v54 = vsel %vm18888_vm12, %v2027_v8, %v18887_v17  ;;  %v18893_v41 = vsel %vm10292_vm13, 4294967295, %v18892_v41  ;;  %v1994_v43 = vsub.s32 %v1970_v49, %v9882_v50  ;;  %v18895_v17 = vrot.slane %v10182_v25, 6 }
 0x1c0   : > { %v2676_v31 = vsel %vm18891_vm0, %v18890_v4, %v2637_v63  ;;  %18894 = vst [vmem:[#allocation90_spill] sm:$0xff] %v18893_v41  ;;  %v18896_v45 = vrot.slane %v10016_v5, 6  ;;  %vm18897_vm12 = vcmp.lt.s32.totalorder %v7533_v3, 2  ;;  %v1739_v55 = vsub.s32 %v1712_v7, %v10208_v27 }
 0x1c1   : > { %v18898_v40 = vrot.slane %v10185_v21, 6  ;;  %vm18899_vm0 = vmmov %vm18897_vm12  ;;  %v18900_v63 = vrot.slane %v9713_v36, 6  ;;  %vm2154_vm1 = vcmp.ge.s32.totalorder %v2090_v57, 4294967294  ;;  %vm2186_vm8 = vcmp.le.s32.totalorder %v2090_v57, 2 }
 0x1c2   : > { %v1616_v8 = vsel %vm18897_vm12, %v18896_v45, %v18895_v17  ;;  %vm18901_vm9 = vmmov %vm18899_vm0  ;;  %v2380_v4 = vrot.slane %v10039_v33, 2  ;;  %vm10315_vm6 = vcmp.eq.s32.totalorder %v1290_v47, %v1386_v13  ;;  %vm18904_vm12 = vcmp.le.s32.totalorder %v1386_v13, 2 }
 0x1c3   : > { %v10308_v44 = vsel %vm18899_vm0, %v2765_v59, %v18898_v40  ;;  %v2804_v49 = vsel %vm18901_vm9, %v18900_v63, %v2765_v59  ;;  %vm18905_vm5 = vcmp.ge.s32.totalorder %v1386_v13, 4294967294  ;;  %v18906_v7 = vrot.slane %v10182_v25, 1 }
 0x1c4   : > { %vm1514_vm10 = vmand %vm18905_vm5, %vm18904_vm12  ;;  %vm18907_vm0 = vcmp.lt.s32.totalorder %v7533_v3, 7  ;;  %v2091_v17 = vsub.s32 %v2065_v54, %v10039_v33  ;;  %vm18908_vm9 = vcmp.le.s32.totalorder %v10197_v6, 2  ;;  %vm18909_vm11 = vcmp.ge.s32.totalorder %v10197_v6, 4294967294 }
 0x1c5   : > { %v1969_v40 = vsel %vm18907_vm0, %v1930_v52, %v18906_v7  ;;  %vm10330_vm3 = vmand %vm18909_vm11, %vm18908_vm9  ;;  %v2701_v47 = vsel %vm10292_vm13, %v2676_v31, -inf  ;;  %v1643_v13 = vsub.s32 %v1616_v8, %v10182_v25  ;;  %v6314_v45 = vmul.f32 -1.442695, %v10282_v34  ;;  %v7082_v7 = vpop.eup %7081 }
 0x1c6   : > { %v10339_v63 = vadd.f32 %v9764_v16, %v772_v11  ;;  %vm10341_vm5 = vcmp.eq.s32.totalorder %v1994_v43, %v2090_v57  ;;  %vm10345_vm12 = vmand %vm2154_vm1, %vm2186_vm8  ;;  %v18916_v8 = vmov 0  ;;  %vm1835_vm9 = vcmp.le.s32.totalorder %v1739_v55, 2  ;;  %v7084_v57 = vpop.eup %7083 }
 0x1c7   : > { %vm10353_vm0 = vmand %vm10315_vm6, %vm1514_vm10  ;;  %v1995_v43 = vsub.s32 %v1969_v40, %v10016_v5  ;;  %7085 = vpow2.f32 %v6314_v45  ;;  %v18919_v41 = vrot.slane %v10185_v21, 1  ;;  %vm18920_vm8 = vcmp.lt.s32.totalorder %v7533_v3, 7  ;;  %v10379_v45 = vpop.f32.mrb[26].mxu0 }
 0x1c8   : > { %v18917_v8 = vsel %vm10353_vm0, 4294967295, %v18916_v8  ;;  %v6313_v11 = vmul.f32 -1.442695, %v10339_v63  ;;  %v18922_v31 = vrot.slane %v9713_v36, 1  ;;  %vm18923_vm10 = vmmov %vm18920_vm8  ;;  %v18925_v40 = vmov 0 }
 0x1c9   : > { %18918 = vst [vmem:[#allocation93_spill] sm:$0xff] %v18917_v8  ;;  %v10363_v54 = vsel %vm18920_vm8, %v2893_v46, %v18919_v41  ;;  %vm10375_vm6 = vmand %vm10248_vm7, %vm10330_vm3  ;;  %vm2155_vm1 = vcmp.ge.s32.totalorder %v2091_v17, 4294967294  ;;  %vm2187_vm11 = vcmp.le.s32.totalorder %v2091_v17, 2  ;;  %v18928_v41 = vmov 0 }
 0x1ca   : > { %18921 = vst [vmem:[#allocation138_spill] sm:$0xff] %v10363_v54  ;;  %v10369_v26 = vsel %vm18923_vm10, %v18922_v31, %v2893_v46  ;;  %v18926_v40 = vsel %vm10375_vm6, 4294967295, %v18925_v40  ;;  %vm10385_vm8 = vmand %vm10341_vm5, %vm10345_vm12  ;;  %v18931_v46 = vrot.slane %v9882_v50, 2  ;;  %vm18932_vm10 = vcmp.lt.s32.totalorder %v7533_v3, 6 }
 0x1cb   : > { %18924 = vst [vmem:[#allocation139_spill] sm:$0xff] %v10369_v26  ;;  %18927 = vst [vmem:[#allocation140_spill] sm:$0xff] %v18926_v40  ;;  %v18929_v41 = vsel %vm10385_vm8, 4294967295, %v18928_v41  ;;  %v18934_v59 = vrot.slane %v9879_v14, 2  ;;  %v2733_v1 = vmax.f32 %v10200_v10, %v2701_v47  ;;  %vm10400_vm7 = vcmp.eq.s32.totalorder %v1643_v13, %v1739_v55 }
 0x1cc   : > { %18930 = vst [vmem:[#allocation141_spill] sm:$0xff] %v18929_v41  ;;  %v10393_v60 = vsel %vm18932_vm10, %v18931_v46, %v2283_v23  ;;  %vm18935_vm3 = vmmov %vm18932_vm10  ;;  %v10405_v52 = vmul.f32 %v7082_v7, %v9972_v22  ;;  %vm18939_vm5 = vcmp.ge.s32.totalorder %v1739_v55, 4294967294  ;;  %v18942_v46 = vrot.slane %v10182_v25, 2 }
 0x1cd   : > { %18933 = vst [vmem:[#allocation142_spill] sm:$0xff] %v10393_v60  ;;  %v2419_v31 = vsel %vm18935_vm3, %v18934_v59, %v2380_v4  ;;  %vm10409_vm12 = vmand %vm18939_vm5, %vm1835_vm9  ;;  %v2702_v47 = vsel %vm10353_vm0, %v10273_v32, -inf  ;;  %7087 = vpow2.f32 %v6313_v11  ;;  %v10423_v22 = vmul.f32 %v7084_v57, %v9985_v53 }
 0x1ce   : > { %18938 = vst [vmem:[#allocation143_spill] sm:$0xff] %v10405_v52  ;;  %vm18943_vm10 = vmmov %vm18935_vm3  ;;  %vm10425_vm3 = vcmp.eq.s32.totalorder %v1995_v43, %v2091_v17  ;;  %v10441_v32 = vadd.s32 112, %v7533_v3  ;;  %v18953_v53 = vrot.slane %v10185_v21, 2  ;;  %v18954_v43 = vrot.slane %v10200_v10, 2 }
 0x1cf   : > { %v10417_v59 = vsel %vm18943_vm10, %v2283_v23, %v18942_v46  ;;  %18945 = vst [vmem:[#allocation145_spill] sm:$0xff] %v10423_v22  ;;  %vm10430_vm9 = vmand %vm2155_vm1, %vm2187_vm11  ;;  %v18950_v23 = vrot.slane %v10208_v27, 2  ;;  %v10438_v46 = vpop.permute.xlu0 %1159  ;;  %v18958_v57 = vrot.slane %v9713_v36, 2  ;;  %v10465_v48 = vsub.s32 %v2419_v31, %v9879_v14  ;;  %v10495_v31 = vpop.f32.mrb[27].mxu0 }
 0x1d0   : > { %18944 = vst [vmem:[#allocation144_spill] sm:$0xff] %v10417_v59  ;;  %vm18951_vm5 = vmmov %vm18943_vm10  ;;  %v18957_v11 = vmov %v18954_v43  ;;  %v1323_v8 = vrot.slane %v10438_v46, 7  ;;  %v2639_v13 = vrot.slane %v10423_v22, 7  ;;  %v1226_v55 = vrot.slane %v10441_v32, 7 }
 0x1d1   : > { %v2418_v7 = vsel %vm18951_vm5, %v2380_v4, %v18950_v23  ;;  %18952 = vst [vmem:[#allocation146_spill] sm:$0xff] %v10441_v32  ;;  %vm18955_vm10 = vmmov %vm18951_vm5  ;;  %v2829_v23 = vsel %vm10375_vm6, %v2804_v49, -inf  ;;  %v2734_v49 = vmax.f32 %v10185_v21, %v2702_v47  ;;  %v18969_v61 = vrot.slane %v10208_v27, 7  ;;  %v7086_v47 = vpop.eup %7085 }
 0x1d2   : > { %v10449_v17 = vsel %vm18955_vm10, %v18954_v43, %v18953_v53  ;;  %vm18959_vm11 = vmmov %vm18951_vm5  ;;  %v10467_v53 = vmax.f32 %v2733_v1, %v2829_v23  ;;  %v18962_v43 = vmov 0  ;;  %v18965_v1 = vmov 0 }
 0x1d3   : > { %18956 = vst [vmem:[#allocation147_spill] sm:$0xff] %v10449_v17  ;;  %v10457_v4 = vsel %vm18959_vm11, %v18958_v57, %v18957_v11  ;;  %vm10473_vm1 = vmand %vm10400_vm7, %vm10409_vm12  ;;  %v10493_v14 = vsub.s32 %v2418_v7, %v10039_v33  ;;  %v2767_v23 = vrot.slane %v10423_v22, 6  ;;  %vm18970_vm7 = vcmp.lt.s32.totalorder %v7533_v3, 1  ;;  %v10509_v7 = vpop.permute.xlu1 %1162 }
 0x1d4   : > { %18960 = vst [vmem:[#allocation148_spill] sm:$0xff] %v10457_v4  ;;  %18961 = vst [vmem:[#allocation149_spill] sm:$0xff] %v10467_v53  ;;  %v18963_v43 = vsel %vm10473_vm1, 4294967295, %v18962_v43  ;;  %v2830_v57 = vsel %vm10473_vm1, %v10308_v44, -inf  ;;  %v1358_v33 = vsel %vm18970_vm7, %v18969_v61, %v1323_v8  ;;  %v10512_v19 = vadd.s32 120, %v7533_v3 }
 0x1d5   : > { %18964 = vst [vmem:[#allocation150_spill] sm:$0xff] %v18963_v43  ;;  %vm10486_vm5 = vmand %vm10425_vm3, %vm10430_vm9  ;;  %v10515_v11 = vmax.f32 %v2734_v49, %v2830_v57  ;;  %v1579_v43 = vrot.slane %v10441_v32, 6  ;;  %v1676_v40 = vrot.slane %v10438_v46, 6  ;;  %v18973_v17 = vrot.slane %v10405_v52, 7 }
 0x1d6   : > { %v18966_v1 = vsel %vm10486_vm5, 4294967295, %v18965_v1  ;;  %18968 = vst [vmem:[#allocation152_spill] sm:$0xff] %v10493_v14  ;;  %18971 = vst [vmem:[#allocation153_spill] sm:$0xff] %v10512_v19  ;;  %v18975_v57 = vrot.slane %v10182_v25, 7  ;;  %v1387_v6 = vsub.s32 %v1358_v33, %v10438_v46  ;;  %v2029_v36 = vrot.slane %v10438_v46, 1 }
 0x1d7   : > { %18967 = vst [vmem:[#allocation151_spill] sm:$0xff] %v18966_v1  ;;  %18972 = vst [vmem:[#allocation154_spill] sm:$0xff] %v10515_v11  ;;  %v7088_v61 = vpop.eup %7087  ;;  %v18977_v44 = vrot.slane %v10185_v21, 7  ;;  %v18979_v53 = vrot.slane %v10405_v52, 6  ;;  %vm18980_vm10 = vcmp.lt.s32.totalorder %v7533_v3, 2  ;;  %v940_v54 = vadd.f32 1.0, %v7086_v47 }
 0x1d8   : > { %vm18974_vm12 = vmmov %vm18970_vm7  ;;  %v18981_v33 = vrot.slane %v10185_v21, 6  ;;  %v939_v4 = vadd.f32 1.0, %v7088_v61  ;;  %v1932_v26 = vrot.slane %v10441_v32, 1  ;;  %v18985_v47 = vrot.slane %v10182_v25, 6 }
 0x1d9   : > { %v10529_v49 = vsel %vm18974_vm12, %v2639_v13, %v18973_v17  ;;  %vm18976_vm3 = vmmov %vm18970_vm7  ;;  %v10547_v17 = vsel %vm18980_vm10, %v2767_v23, %v18979_v53  ;;  %v18987_v41 = vrot.slane %v10208_v27, 6  ;;  %7089 = vrcp.f32 %v940_v54 }
 0x1da   : > { %v1262_v10 = vsel %vm18976_vm3, %v18975_v57, %v1226_v55  ;;  %vm18978_vm9 = vmmov %vm18976_vm3  ;;  %7091 = vrcp.f32 %v939_v4  ;;  %v17554_v59 = vrot.slane %v10509_v7, 1  ;;  %v18993_v14 = vrot.slane %v10182_v25, 1 }
 0x1db   : > { %v10541_v11 = vsel %vm18978_vm9, %v18977_v44, %v2639_v13  ;;  %vm18982_vm11 = vmmov %vm18980_vm10  ;;  %v18983_v13 = vrot.slane %v10509_v7, 7  ;;  %v1291_v53 = vsub.s32 %v1262_v10, %v10441_v32  ;;  %vm1451_vm9 = vcmp.ge.s32.totalorder %v1387_v6, 4294967294 }
 0x1dc   : > { %v10554_v1 = vsel %vm18982_vm11, %v18981_v33, %v2767_v23  ;;  %vm18984_vm7 = vmmov %vm18976_vm3  ;;  %v18989_v33 = vrot.slane %v10208_v27, 1  ;;  %vm18990_vm11 = vcmp.lt.s32.totalorder %v7533_v3, 7  ;;  %v17553_v10 = vrot.slane %v10509_v7, 6 }
 0x1dd   : > { %v1357_v44 = vsel %vm18984_vm7, %v1323_v8, %v18983_v13  ;;  %vm18986_vm12 = vmmov %vm18980_vm10  ;;  %v18991_v13 = vrot.slane %v10512_v19, 7  ;;  %v19017_v50 = vrot.slane %v10405_v52, 2 }
 0x1de   : > { %v1615_v57 = vsel %vm18986_vm12, %v18985_v47, %v1579_v43  ;;  %vm18988_vm3 = vmmov %vm18980_vm10  ;;  %vm1483_vm10 = vcmp.le.s32.totalorder %v1387_v6, 2  ;;  %v2064_v8 = vsel %vm18990_vm11, %v18989_v33, %v2029_v36  ;;  %v1388_v5 = vsub.s32 %v1357_v44, %v10509_v7 }
 0x1df   : > { %v1711_v23 = vsel %vm18988_vm3, %v18987_v41, %v1676_v40  ;;  %v1261_v47 = vsel %vm18984_vm7, %v1226_v55, %v18991_v13  ;;  %v17555_v41 = vrot.slane %v10512_v19, 6  ;;  %vm18992_vm12 = vmmov %vm18988_vm3  ;;  %v1644_v54 = vsub.s32 %v1615_v57, %v10441_v32  ;;  %v18995_v13 = vld [vmem:[#allocation97_spill] sm:$0xff] }
 0x1e0   : > { %v1740_v61 = vsub.s32 %v1711_v23, %v10438_v46  ;;  %v1710_v33 = vsel %vm18992_vm12, %v1676_v40, %v17553_v10  ;;  %vm18994_vm3 = vmmov %vm18990_vm11  ;;  %v2092_v44 = vsub.s32 %v2064_v8, %v10208_v27  ;;  %v775_v4 = vmul.f32 %v9732_v42, %v18995_v13  ;;  %v18997_v8 = vld [vmem:[#allocation99_spill] sm:$0xff] }
 0x1e1   : > { %v1968_v55 = vsel %vm18994_vm3, %v18993_v14, %v1932_v26  ;;  %vm1419_vm11 = vcmp.eq.s32.totalorder %v1291_v53, %v1387_v6  ;;  %vm1515_vm7 = vmand %vm1451_vm9, %vm1483_vm10  ;;  %v1292_v40 = vsub.s32 %v1261_v47, %v10512_v19  ;;  %v1741_v23 = vsub.s32 %v1710_v33, %v10509_v7 }
 0x1e2   : > { %v17557_v57 = vrot.slane %v10512_v19, 1  ;;  %vm1452_vm12 = vcmp.ge.s32.totalorder %v1388_v5, 4294967294  ;;  %vm1484_vm1 = vcmp.le.s32.totalorder %v1388_v5, 2  ;;  %vm18996_vm3 = vcmp.lt.s32.totalorder %v7533_v3, 2  ;;  %vm10614_vm10 = vmand %vm1419_vm11, %vm1515_vm7 }
 0x1e3   : > { %v1614_v14 = vsel %vm18996_vm3, %v1579_v43, %v17555_v41  ;;  %v774_v13 = vmul.f32 %v9732_v42, %v18997_v8  ;;  %vm1804_vm6 = vcmp.ge.s32.totalorder %v1740_v61, 4294967294  ;;  %vm1836_vm0 = vcmp.le.s32.totalorder %v1740_v61, 2  ;;  %vm10624_vm5 = vmand %vm1452_vm12, %vm1484_vm1 }
 0x1e4   : > { %vm18998_vm9 = vcmp.lt.s32.totalorder %v7533_v3, 7  ;;  %v10612_v53 = vadd.f32 %v9764_v16, %v775_v4  ;;  %v18999_v47 = vmov 0  ;;  %v1996_v33 = vsub.s32 %v1968_v55, %v10182_v25 }
 0x1e5   : > { %v2063_v6 = vsel %vm18998_vm9, %v2029_v36, %v17554_v59  ;;  %v19000_v47 = vsel %vm10614_vm10, 4294967295, %v18999_v47  ;;  %vm2188_vm13 = vcmp.le.s32.totalorder %v2092_v44, 2  ;;  %v2382_v43 = vrot.slane %v10438_v46, 2  ;;  %vm19006_vm7 = vmmov %vm18998_vm9 }
 0x1e6   : > { %19001 = vst [vmem:[#allocation97_spill] sm:$0xff] %v19000_v47  ;;  %vm10620_vm15 = vcmp.eq.s32.totalorder %v1292_v40, %v1388_v5  ;;  %v1645_v36 = vsub.s32 %v1614_v14, %v10512_v19  ;;  %v1967_v55 = vsel %vm19006_vm7, %v1932_v26, %v17557_v57  ;;  %vm10633_vm9 = vmand %vm1804_vm6, %vm1836_vm0  ;;  %vm1837_vm3 = vcmp.le.s32.totalorder %v1741_v23, 2 }
 0x1e7   : > { %v2093_v5 = vsub.s32 %v2063_v6, %v10438_v46  ;;  %v6316_v40 = vmul.f32 -1.442695, %v10612_v53  ;;  %v10640_v59 = vadd.f32 %v9764_v16, %v774_v13  ;;  %v19009_v14 = vrot.slane %v10405_v52, 1  ;;  %vm19011_vm1 = vmmov %vm19006_vm7 }
 0x1e8   : > { %v19010_v41 = vrot.slane %v10423_v22, 1  ;;  %v19014_v57 = vrot.slane %v10185_v21, 1  ;;  %vm19015_vm0 = vmmov %vm19011_vm1  ;;  %v19018_v13 = vrot.slane %v10423_v22, 2  ;;  %vm19019_vm6 = vcmp.lt.s32.totalorder %v7533_v3, 6 }
 0x1e9   : > { %vm1772_vm12 = vcmp.eq.s32.totalorder %v1644_v54, %v1740_v61  ;;  %vm19021_vm7 = vcmp.ge.s32.totalorder %v2092_v44, 4294967294  ;;  %vm10672_vm11 = vcmp.eq.s32.totalorder %v1996_v33, %v2092_v44  ;;  %7093 = vpow2.f32 %v6316_v40 }
 0x1ea   : > { %v10648_v0 = vsel %vm19011_vm1, %v19010_v41, %v19009_v14  ;;  %v19013_v26 = vmov %v19010_v41  ;;  %v10664_v60 = vsel %vm19019_vm6, %v19018_v13, %v19017_v50  ;;  %vm10668_vm1 = vmand %vm19021_vm7, %vm2188_vm13  ;;  %v7090_v14 = vpop.eup %7089  ;;  %v19026_v50 = vmov 0 }
 0x1eb   : > { %19012 = vst [vmem:[#allocation99_spill] sm:$0xff] %v10648_v0  ;;  %v10656_v6 = vsel %vm19015_vm0, %v19014_v57, %v19013_v26  ;;  %19020 = vst [vmem:[#allocation156_spill] sm:$0xff] %v10664_v60  ;;  %v2703_v57 = vsel %vm10614_vm10, %v10541_v11, -inf  ;;  %v7092_v54 = vpop.eup %7091  ;;  %vm10688_vm13 = vcmp.eq.s32.totalorder %v1645_v36, %v1741_v23  ;;  %vm19031_vm6 = vcmp.ge.s32.totalorder %v1741_v23, 4294967294  ;;  %v10841_v60 = vpop.permute.xlu1 %1168 }
 0x1ec   : > { %19016 = vst [vmem:[#allocation155_spill] sm:$0xff] %v10656_v6  ;;  %vm10683_vm0 = vmand %vm10620_vm15, %vm10624_vm5  ;;  %v1997_v10 = vsub.s32 %v1967_v55, %v10441_v32  ;;  %v6315_v8 = vmul.f32 -1.442695, %v10640_v59  ;;  %v19034_v40 = vmov 0  ;;  %v19037_v36 = vrot.slane %v10441_v32, 2 }
 0x1ed   : > { %v19027_v50 = vsel %vm10683_vm0, 4294967295, %v19026_v50  ;;  %vm10694_vm7 = vmand %vm19031_vm6, %vm1837_vm3  ;;  %v19038_v23 = vrot.slane %v10182_v25, 2  ;;  %vm19039_vm5 = vcmp.lt.s32.totalorder %v7533_v3, 6  ;;  %v19041_v55 = vrot.slane %v10208_v27, 2 }
 0x1ee   : > { %19028 = vst [vmem:[#allocation157_spill] sm:$0xff] %v19027_v50  ;;  %vm10703_vm15 = vmand %vm1772_vm12, %vm10633_vm9  ;;  %vm2157_vm6 = vcmp.ge.s32.totalorder %v2093_v5, 4294967294  ;;  %vm2189_vm10 = vcmp.le.s32.totalorder %v2093_v5, 2  ;;  %v19043_v4 = vmov 0  ;;  %v2735_v33 = vmax.f32 %v10423_v22, %v2703_v57 }
 0x1ef   : > { %v19035_v40 = vsel %vm10703_vm15, 4294967295, %v19034_v40  ;;  %v10713_v26 = vsel %vm19039_vm5, %v19038_v23, %v19037_v36  ;;  %vm19042_vm3 = vmmov %vm19039_vm5  ;;  %v2704_v36 = vsel %vm10683_vm0, %v10529_v49, -inf  ;;  %7095 = vpow2.f32 %v6315_v8 }
 0x1f0   : > { %19036 = vst [vmem:[#allocation158_spill] sm:$0xff] %v19035_v40  ;;  %19040 = vst [vmem:[#allocation159_spill] sm:$0xff] %v10713_v26  ;;  %v2417_v13 = vsel %vm19042_vm3, %v19041_v55, %v2382_v43  ;;  %v10732_v23 = vadd.s32 128, %v7533_v3  ;;  %v19047_v55 = vrot.slane %v10423_v22, 2  ;;  %v19048_v41 = vrot.slane %v10185_v21, 2 }
 0x1f1   : > { %vm10723_vm9 = vmand %vm10672_vm11, %vm10668_vm1  ;;  %v10743_v61 = vmul.f32 %v7090_v14, %v10282_v34  ;;  %v10746_v57 = vmul.f32 %v7092_v54, %v10339_v63  ;;  %v19053_v49 = vmov 0  ;;  %v19056_v8 = vrot.slane %v10512_v19, 2  ;;  %v10764_v34 = vpop.permute.xlu0 %1165 }
 0x1f2   : > { %v19044_v4 = vsel %vm10723_vm9, 4294967295, %v19043_v4  ;;  %19046 = vst [vmem:[#allocation161_spill] sm:$0xff] %v10732_v23  ;;  %vm19049_vm12 = vmmov %vm19042_vm3  ;;  %v19057_v22 = vrot.slane %v10441_v32, 2  ;;  %vm2125_vm5 = vcmp.eq.s32.totalorder %v1997_v10, %v2093_v5  ;;  %v19060_v14 = vrot.slane %v10509_v7, 2 }
 0x1f3   : > { %19045 = vst [vmem:[#allocation160_spill] sm:$0xff] %v19044_v4  ;;  %v10740_v18 = vsel %vm19049_vm12, %v19048_v41, %v19047_v55  ;;  %19051 = vst [vmem:[#allocation163_spill] sm:$0xff] %v10743_v61  ;;  %v1325_v44 = vrot.slane %v10764_v34, 7  ;;  %v10775_v11 = vsub.s32 %v2417_v13, %v10208_v27  ;;  %v2736_v5 = vmax.f32 %v10405_v52, %v2704_v36  ;;  %v7094_v27 = vpop.eup %7093 }
 0x1f4   : > { %19050 = vst [vmem:[#allocation162_spill] sm:$0xff] %v10740_v18  ;;  %19052 = vst [vmem:[#allocation164_spill] sm:$0xff] %v10746_v57  ;;  %v19068_v63 = vrot.slane %v10509_v7, 7  ;;  %v3025_v36 = vrot.slane %v10746_v57, 2  ;;  %v19073_v40 = vrot.slane %v10732_v23, 6  ;;  %v19074_v21 = vrot.slane %v10512_v19, 6 }
 0x1f5   : > { %vm10752_vm11 = vmand %vm10688_vm13, %vm10694_vm7  ;;  %19062 = vst [vmem:[#allocation167_spill] sm:$0xff] %v10775_v11  ;;  %vm19069_vm7 = vcmp.lt.s32.totalorder %v7533_v3, 1  ;;  %vm19075_vm12 = vcmp.lt.s32.totalorder %v7533_v3, 2  ;;  %v10851_v0 = vadd.s32 136, %v7533_v3  ;;  %v19088_v32 = vrot.slane %v10509_v7, 6 }
 0x1f6   : > { %v19054_v49 = vsel %vm10752_vm11, 4294967295, %v19053_v49  ;;  %vm19058_vm1 = vmmov %vm19042_vm3  ;;  %v1356_v13 = vsel %vm19069_vm7, %v19068_v63, %v1325_v44  ;;  %v19094_v6 = vrot.slane %v10405_v52, 1  ;;  %v19101_v18 = vrot.slane %v10512_v19, 1 }
 0x1f7   : > { %19055 = vst [vmem:[#allocation165_spill] sm:$0xff] %v19054_v49  ;;  %v10762_v55 = vsel %vm19058_vm1, %v19057_v22, %v19056_v8  ;;  %vm2221_vm3 = vmand %vm2157_vm6, %vm2189_vm10  ;;  %v2831_v22 = vsel %vm10703_vm15, %v10554_v1, -inf  ;;  %v1228_v8 = vrot.slane %v10732_v23, 7  ;;  %v19064_v1 = vmov 0 }
 0x1f8   : > { %19059 = vst [vmem:[#allocation166_spill] sm:$0xff] %v10762_v55  ;;  %vm19061_vm13 = vmmov %vm19058_vm1  ;;  %v10784_v41 = vmax.f32 %v2735_v33, %v2831_v22  ;;  %v2832_v33 = vsel %vm10752_vm11, %v10547_v17, -inf  ;;  %v1678_v17 = vrot.slane %v10764_v34, 6  ;;  %v19071_v49 = vrot.slane %v10512_v19, 7 }
 0x1f9   : > { %v2416_v54 = vsel %vm19061_vm13, %v2382_v43, %v19060_v14  ;;  %v2641_v14 = vrot.slane %v10746_v57, 7  ;;  %vm10792_vm10 = vmand %vm2125_vm5, %vm2221_vm3  ;;  %v2769_v43 = vrot.slane %v10746_v57, 6  ;;  %v19078_v22 = vrot.slane %v10405_v52, 7  ;;  %19082 = vst [vmem:[#allocation172_spill] sm:$0xff] %v10851_v0 }
 0x1fa   : > { %19063 = vst [vmem:[#allocation168_spill] sm:$0xff] %v10784_v41  ;;  %v19065_v1 = vsel %vm10792_vm10, 4294967295, %v19064_v1  ;;  %v10797_v10 = vsub.s32 %v2416_v54, %v10438_v46  ;;  %v2897_v46 = vrot.slane %v10746_v57, 1  ;;  %v10811_v54 = vmax.f32 %v2736_v5, %v2832_v33  ;;  %vm19072_vm6 = vmmov %vm19069_vm7  ;;  %v7096_v41 = vpop.eup %7095 }
 0x1fb   : > { %19066 = vst [vmem:[#allocation169_spill] sm:$0xff] %v19065_v1  ;;  %v1260_v63 = vsel %vm19072_vm6, %v19071_v49, %v1228_v8  ;;  %v1613_v5 = vsel %vm19075_vm12, %v19074_v21, %v19073_v40  ;;  %v19076_v33 = vrot.slane %v10743_v61, 7  ;;  %vm19077_vm1 = vmmov %vm19072_vm6  ;;  %v942_v49 = vadd.f32 1.0, %v7094_v27 }
 0x1fc   : > { %19067 = vst [vmem:[#allocation170_spill] sm:$0xff] %v10797_v10  ;;  %19070 = vst [vmem:[#allocation171_spill] sm:$0xff] %v10811_v54  ;;  %v1389_v54 = vsub.s32 %v1356_v13, %v10764_v34  ;;  %v19080_v21 = vrot.slane %v10743_v61, 6  ;;  %v19083_v27 = vrot.slane %v10405_v52, 6  ;;  %vm19086_vm7 = vcmp.lt.s32.totalorder %v7533_v3, 7 }
 0x1fd   : > { %v10832_v50 = vsel %vm19077_vm1, %v2641_v14, %v19076_v33  ;;  %vm19079_vm5 = vmmov %vm19077_vm1  ;;  %v2031_v33 = vrot.slane %v10764_v34, 1  ;;  %v1934_v10 = vrot.slane %v10732_v23, 1  ;;  %7097 = vrcp.f32 %v942_v49 }
 0x1fe   : > { %v10838_v47 = vsel %vm19079_vm5, %v19078_v22, %v2641_v14  ;;  %vm19081_vm3 = vmmov %vm19075_vm12  ;;  %v19085_v22 = vrot.slane %v10743_v61, 1  ;;  %v1293_v14 = vsub.s32 %v1260_v63, %v10732_v23  ;;  %vm1485_vm5 = vcmp.le.s32.totalorder %v1389_v54, 2 }
 0x1ff   : > { %v10847_v40 = vsel %vm19081_vm3, %v2769_v43, %v19080_v21  ;;  %vm19084_vm13 = vmmov %vm19081_vm3  ;;  %v941_v21 = vadd.f32 1.0, %v7096_v41  ;;  %v19097_v49 = vrot.slane %v10851_v0, 7  ;;  %v19112_v25 = vrot.slane %v10851_v0, 6 }
 0x200   : > { %v10858_v13 = vsel %vm19084_vm13, %v19083_v27, %v2769_v43  ;;  %v10864_v1 = vsel %vm19086_vm7, %v2897_v46, %v19085_v22  ;;  %vm19089_vm6 = vmmov %vm19081_vm3  ;;  %v19090_v43 = vrot.slane %v10841_v60, 7  ;;  %v19128_v41 = vrot.slane %v10841_v60, 1 }
 0x201   : > { %19087 = vst [vmem:[#allocation173_spill] sm:$0xff] %v10864_v1  ;;  %v1709_v55 = vsel %vm19089_vm6, %v19088_v32, %v1678_v17  ;;  %vm19091_vm12 = vmmov %vm19077_vm1  ;;  %vm1453_vm1 = vcmp.ge.s32.totalorder %v1389_v54, 4294967294  ;;  %7099 = vrcp.f32 %v941_v21  ;;  %v19092_v32 = vrot.slane %v10509_v7, 1 }
 0x202   : > { %v1355_v27 = vsel %vm19091_vm12, %v1325_v44, %v19090_v43  ;;  %v1742_v22 = vsub.s32 %v1709_v55, %v10764_v34  ;;  %vm19093_vm3 = vmmov %vm19086_vm7  ;;  %vm10896_vm6 = vcmp.eq.s32.totalorder %v1293_v14, %v1389_v54  ;;  %v19105_v14 = vrot.slane %v10732_v23, 2 }
 0x203   : > { %v2062_v63 = vsel %vm19093_vm3, %v19092_v32, %v2031_v33  ;;  %vm19095_vm13 = vmmov %vm19093_vm3  ;;  %v1390_v55 = vsub.s32 %v1355_v27, %v10841_v60  ;;  %v1646_v32 = vsub.s32 %v1613_v5, %v10732_v23  ;;  %v19109_v43 = vrot.slane %v10841_v60, 6 }
 0x204   : > { %v10888_v44 = vsel %vm19095_vm13, %v19094_v6, %v2897_v46  ;;  %vm19098_vm7 = vmmov %vm19091_vm12  ;;  %v2094_v27 = vsub.s32 %v2062_v63, %v10509_v7  ;;  %vm19107_vm13 = vcmp.lt.s32.totalorder %v7533_v3, 6  ;;  %v19111_v63 = vld [vmem:[#allocation53_spill] sm:$0xff]  ;;  %vm19136_vm10 = vcmp.lt.s32.totalorder %v7533_v3, 7 }
 0x205   : > { %19096 = vst [vmem:[#allocation174_spill] sm:$0xff] %v10888_v44  ;;  %v1259_v21 = vsel %vm19098_vm7, %v1228_v8, %v19097_v49  ;;  %vm19102_vm12 = vmmov %vm19093_vm3  ;;  %v19106_v49 = vrot.slane %v10512_v19, 2  ;;  %vm19110_vm7 = vcmp.lt.s32.totalorder %v7533_v3, 2  ;;  %v777_v4 = vmul.f32 %v9732_v42, %v19111_v63 }
 0x206   : > { %v1966_v6 = vsel %vm19102_vm12, %v19101_v18, %v1934_v10  ;;  %vm10907_vm3 = vmand %vm1453_vm1, %vm1485_vm5  ;;  %v1708_v18 = vsel %vm19110_vm7, %v1678_v17, %v19109_v43  ;;  %vm1806_vm1 = vcmp.ge.s32.totalorder %v1742_v22, 4294967294  ;;  %vm1838_vm5 = vcmp.le.s32.totalorder %v1742_v22, 2 }
 0x207   : > { %v10918_v5 = vsel %vm19107_vm13, %v19106_v49, %v19105_v14  ;;  %v1294_v46 = vsub.s32 %v1259_v21, %v10851_v0  ;;  %v19113_v14 = vrot.slane %v10732_v23, 6  ;;  %vm19114_vm13 = vmmov %vm19110_vm7  ;;  %v19115_v43 = vrot.slane %v10743_v61, 2 }
 0x208   : > { %19108 = vst [vmem:[#allocation175_spill] sm:$0xff] %v10918_v5  ;;  %vm19116_vm7 = vcmp.lt.s32.totalorder %v7533_v3, 6  ;;  %v19118_v21 = vrot.slane %v10405_v52, 2  ;;  %vm10951_vm11 = vmand %vm10896_vm6, %vm10907_vm3  ;;  %v1743_v17 = vsub.s32 %v1708_v18, %v10841_v60  ;;  %vm19129_vm6 = vcmp.lt.s32.totalorder %v7533_v3, 7 }
 0x209   : > { %v1612_v49 = vsel %vm19114_vm13, %v19113_v14, %v19112_v25  ;;  %v10939_v54 = vsel %vm19116_vm7, %v3025_v36, %v19115_v43  ;;  %vm19119_vm12 = vmmov %vm19116_vm7  ;;  %v19121_v25 = vmov 0  ;;  %v1998_v14 = vsub.s32 %v1966_v6, %v10512_v19  ;;  %v10957_v43 = vpop.f32.mrb[28].mxu0 }
 0x20a   : > { %19117 = vst [vmem:[#allocation53_spill] sm:$0xff] %v10939_v54  ;;  %v10945_v63 = vsel %vm19119_vm12, %v19118_v21, %v3025_v36  ;;  %v19122_v25 = vsel %vm10951_vm11, 4294967295, %v19121_v25  ;;  %vm10959_vm13 = vcmp.eq.s32.totalorder %v1646_v32, %v1742_v22  ;;  %vm10964_vm12 = vmand %vm1806_vm1, %vm1838_vm5  ;;  %v2061_v8 = vsel %vm19129_vm6, %v2031_v33, %v19128_v41 }
 0x20b   : > { %19120 = vst [vmem:[#allocation176_spill] sm:$0xff] %v10945_v63  ;;  %19123 = vst [vmem:[#allocation177_spill] sm:$0xff] %v19122_v25  ;;  %v10973_v6 = vadd.f32 %v9764_v16, %v777_v4  ;;  %v776_v18 = vmul.f32 %v9732_v42, %v9306_v51  ;;  %v19130_v22 = vrot.slane %v10764_v34, 2  ;;  %v19131_v21 = vrot.slane %v10509_v7, 2  ;;  %v7098_v4 = vpop.eup %7097 }
 0x20c   : > { %vm19132_vm3 = vmmov %vm19116_vm7  ;;  %vm1422_vm1 = vcmp.eq.s32.totalorder %v1294_v46, %v1390_v55  ;;  %vm19133_vm5 = vcmp.le.s32.totalorder %v1390_v55, 2  ;;  %vm19134_vm7 = vcmp.ge.s32.totalorder %v1390_v55, 4294967294  ;;  %v1647_v16 = vsub.s32 %v1612_v49, %v10851_v0  ;;  %v7100_v41 = vpop.eup %7099 }
 0x20d   : > { %v2415_v54 = vsel %vm19132_vm3, %v19131_v21, %v19130_v22  ;;  %vm1518_vm6 = vmand %vm19134_vm7, %vm19133_vm5  ;;  %v2705_v51 = vsel %vm10951_vm11, %v10838_v47, -inf  ;;  %v19135_v42 = vrot.slane %v10851_v0, 1  ;;  %v19137_v55 = vmov 0  ;;  %v11023_v21 = vpop.f32.mrb[29].mxu0 }
 0x20e   : > { %vm10999_vm3 = vmand %vm10959_vm13, %vm10964_vm12  ;;  %vm11003_vm5 = vcmp.eq.s32.totalorder %v1998_v14, %v2094_v27  ;;  %vm1807_vm7 = vcmp.ge.s32.totalorder %v1743_v17, 4294967294  ;;  %vm1839_vm15 = vcmp.le.s32.totalorder %v1743_v17, 2  ;;  %v2095_v47 = vsub.s32 %v2061_v8, %v10764_v34  ;;  %v11018_v14 = vld [vmem:[%s17201_s4] ss:$0 sm:$0xff] }
 0x20f   : > { %v1965_v33 = vsel %vm19136_vm10, %v1934_v10, %v19135_v42  ;;  %v19138_v55 = vsel %vm10999_vm3, 4294967295, %v19137_v55  ;;  %vm11008_vm0 = vmand %vm1422_vm1, %vm1518_vm6  ;;  %v19142_v49 = vmov 0  ;;  %v6318_v36 = vmul.f32 -1.442695, %v10973_v6 }
 0x210   : > { %19139 = vst [vmem:[#allocation178_spill] sm:$0xff] %v19138_v55  ;;  %v19143_v49 = vsel %vm11008_vm0, 4294967295, %v19142_v49  ;;  %v11021_v22 = vadd.f32 %v11018_v14, %v776_v18  ;;  %vm19145_vm10 = vcmp.le.s32.totalorder %v2094_v27, 2  ;;  %vm19146_vm13 = vcmp.ge.s32.totalorder %v2094_v27, 4294967294  ;;  %vm11048_vm6 = vmand %vm1807_vm7, %vm1839_vm15 }
 0x211   : > { %19144 = vst [vmem:[#allocation179_spill] sm:$0xff] %v19143_v49  ;;  %vm11027_vm12 = vmand %vm19146_vm13, %vm19145_vm10  ;;  %v2737_v42 = vmax.f32 %v10746_v57, %v2705_v51  ;;  %vm11032_vm1 = vcmp.eq.s32.totalorder %v1647_v16, %v1743_v17  ;;  %v1999_v52 = vsub.s32 %v1965_v33, %v10732_v23  ;;  %v2706_v18 = vsel %vm11008_vm0, %v10832_v50, -inf  ;;  %v11110_v51 = vpop.f32.mrb[30].mxu0 }
 0x212   : > { %v11041_v10 = vmul.f32 %v7098_v4, %v10612_v53  ;;  %v11044_v27 = vmul.f32 %v7100_v41, %v10640_v59  ;;  %7101 = vpow2.f32 %v6318_v36  ;;  %v6317_v16 = vmul.f32 -1.442695, %v11021_v22  ;;  %v11059_v59 = vpop.permute.xlu0 %1171  ;;  %vm11065_vm15 = vmand %vm11003_vm5, %vm11027_vm12  ;;  %19174 = vst [vmem:[#allocation188_spill] sm:$0xff] %v11110_v51  ;;  %v11128_v49 = vpop.f32.mrb[31].mxu0 }
 0x213   : > { %v11054_v33 = vsub.s32 %v2415_v54, %v10509_v7  ;;  %v2833_v53 = vsel %vm10999_vm3, %v10858_v13, -inf  ;;  %vm2191_vm13 = vcmp.le.s32.totalorder %v2095_v47, 2  ;;  %v19156_v50 = vmov 0  ;;  %vm11096_vm5 = vmand %vm11032_vm1, %vm11048_vm6  ;;  %19178 = vst [vmem:[#allocation190_spill] sm:$0xff] %v11128_v49 }
 0x214   : > { %19151 = vst [vmem:[#allocation180_spill] sm:$0xff] %v11041_v10  ;;  %19152 = vst [vmem:[#allocation181_spill] sm:$0xff] %v11044_v27  ;;  %v19157_v50 = vsel %vm11065_vm15, 4294967295, %v19156_v50  ;;  %v19159_v17 = vrot.slane %v10851_v0, 2  ;;  %v19160_v7 = vrot.slane %v10732_v23, 2  ;;  %vm19161_vm7 = vcmp.lt.s32.totalorder %v7533_v3, 6 }
 0x215   : > { %19155 = vst [vmem:[#allocation182_spill] sm:$0xff] %v11054_v33  ;;  %19158 = vst [vmem:[#allocation183_spill] sm:$0xff] %v19157_v50  ;;  %v19163_v13 = vrot.slane %v10841_v60, 2  ;;  %v19164_v4 = vrot.slane %v10764_v34, 2  ;;  %v11084_v46 = vadd.s32 144, %v7533_v3  ;;  %v1327_v36 = vrot.slane %v11059_v59, 7 }
 0x216   : > { %v11075_v54 = vsel %vm19161_vm7, %v19160_v7, %v19159_v17  ;;  %vm19165_vm10 = vmmov %vm19161_vm7  ;;  %v11087_v8 = vmax.f32 %v2737_v42, %v2833_v53  ;;  %v19168_v17 = vmov 0  ;;  %v2738_v7 = vmax.f32 %v10743_v61, %v2706_v18 }
 0x217   : > { %19162 = vst [vmem:[#allocation184_spill] sm:$0xff] %v11075_v54  ;;  %v2414_v41 = vsel %vm19165_vm10, %v19164_v4, %v19163_v13  ;;  %19166 = vst [vmem:[#allocation185_spill] sm:$0xff] %v11084_v46  ;;  %v19169_v17 = vsel %vm11096_vm5, 4294967295, %v19168_v17  ;;  %7103 = vpow2.f32 %v6317_v16  ;;  %v2643_v42 = vrot.slane %v11044_v27, 7 }
 0x218   : > { %19167 = vst [vmem:[#allocation186_spill] sm:$0xff] %v11087_v8  ;;  %19170 = vst [vmem:[#allocation187_spill] sm:$0xff] %v19169_v17  ;;  %vm11103_vm12 = vcmp.eq.s32.totalorder %v1999_v52, %v2095_v47  ;;  %vm19173_vm10 = vcmp.ge.s32.totalorder %v2095_v47, 4294967294  ;;  %v11116_v16 = vsub.s32 %v2414_v41, %v10764_v34  ;;  %v2834_v52 = vsel %vm11096_vm5, %v10847_v40, -inf }
 0x219   : > { %vm2223_vm7 = vmand %vm19173_vm10, %vm2191_vm13  ;;  %v2771_v47 = vrot.slane %v11044_v27, 6  ;;  %v1230_v32 = vrot.slane %v11084_v46, 7  ;;  %v19176_v13 = vrot.slane %v10841_v60, 7  ;;  %vm19177_vm1 = vcmp.lt.s32.totalorder %v7533_v3, 1 }
 0x21a   : > { %19175 = vst [vmem:[#allocation189_spill] sm:$0xff] %v11116_v16  ;;  %v2899_v41 = vrot.slane %v11044_v27, 1  ;;  %vm11134_vm6 = vmand %vm11103_vm12, %vm2223_vm7  ;;  %v19179_v40 = vmov 0  ;;  %v11138_v18 = vmax.f32 %v2738_v7, %v2834_v52  ;;  %v19183_v17 = vrot.slane %v11041_v10, 7  ;;  %v11157_v52 = vpop.permute.xlu1 %1174 }
 0x21b   : > { %v1354_v4 = vsel %vm19177_vm1, %v19176_v13, %v1327_v36  ;;  %v19180_v40 = vsel %vm11134_vm6, 4294967295, %v19179_v40  ;;  %vm19184_vm13 = vmmov %vm19177_vm1  ;;  %v3027_v34 = vrot.slane %v11044_v27, 2  ;;  %v19185_v25 = vrot.slane %v11059_v59, 6 }
 0x21c   : > { %19181 = vst [vmem:[#allocation191_spill] sm:$0xff] %v19180_v40  ;;  %19182 = vst [vmem:[#allocation192_spill] sm:$0xff] %v11138_v18  ;;  %v11145_v13 = vsel %vm19184_vm13, %v2643_v42, %v19183_v17  ;;  %v19186_v8 = vrot.slane %v10841_v60, 6  ;;  %vm19187_vm12 = vcmp.lt.s32.totalorder %v7533_v3, 2  ;;  %v19188_v55 = vrot.slane %v10743_v61, 7  ;;  %v7102_v1 = vpop.eup %7101 }
 0x21d   : > { %vm19189_vm10 = vmmov %vm19177_vm1  ;;  %v1391_v18 = vsub.s32 %v1354_v4, %v11059_v59  ;;  %v11167_v40 = vadd.s32 152, %v7533_v3  ;;  %v19191_v63 = vrot.slane %v11041_v10, 6  ;;  %v2033_v53 = vrot.slane %v11059_v59, 1 }
 0x21e   : > { %v1707_v7 = vsel %vm19187_vm12, %v19186_v8, %v19185_v25  ;;  %v11163_v17 = vsel %vm19189_vm10, %v19188_v55, %v2643_v42  ;;  %vm19192_vm7 = vmmov %vm19187_vm12  ;;  %v19193_v8 = vrot.slane %v10743_v61, 6  ;;  %v19195_v42 = vrot.slane %v10851_v0, 7 }
 0x21f   : > { %19190 = vst [vmem:[#allocation193_spill] sm:$0xff] %v11167_v40  ;;  %v11174_v25 = vsel %vm19192_vm7, %v2771_v47, %v19191_v63  ;;  %vm19194_vm1 = vmmov %vm19192_vm7  ;;  %v19197_v44 = vrot.slane %v11041_v10, 1  ;;  %vm19198_vm12 = vcmp.lt.s32.totalorder %v7533_v3, 7  ;;  %v944_v63 = vadd.f32 1.0, %v7102_v1 }
 0x220   : > { %v11180_v55 = vsel %vm19194_vm1, %v19193_v8, %v2771_v47  ;;  %vm19196_vm13 = vmmov %vm19189_vm10  ;;  %v19200_v23 = vrot.slane %v11084_v46, 6  ;;  %v19201_v54 = vrot.slane %v10851_v0, 6  ;;  %v1744_v8 = vsub.s32 %v1707_v7, %v11059_v59 }
 0x221   : > { %v1258_v4 = vsel %vm19196_vm13, %v19195_v42, %v1230_v32  ;;  %v11191_v50 = vsel %vm19198_vm12, %v2899_v41, %v19197_v44  ;;  %vm19202_vm10 = vmmov %vm19194_vm1  ;;  %v19203_v42 = vrot.slane %v10743_v61, 1  ;;  %v19206_v5 = vrot.slane %v11041_v10, 2  ;;  %v7104_v33 = vpop.eup %7103 }
 0x222   : > { %19199 = vst [vmem:[#allocation194_spill] sm:$0xff] %v11191_v50  ;;  %v1611_v47 = vsel %vm19202_vm10, %v19201_v54, %v19200_v23  ;;  %vm19204_vm7 = vmmov %vm19198_vm12  ;;  %vm19207_vm1 = vcmp.lt.s32.totalorder %v7533_v3, 6  ;;  %v1936_v44 = vrot.slane %v11084_v46, 1  ;;  %v1295_v23 = vsub.s32 %v1258_v4, %v11084_v46 }
 0x223   : > { %v11204_v19 = vsel %vm19204_vm7, %v19203_v42, %v2899_v41  ;;  %v11210_v1 = vsel %vm19207_vm1, %v3027_v34, %v19206_v5  ;;  %v17619_v54 = vrot.slane %v11084_v46, 2  ;;  %v19209_v7 = vrot.slane %v11157_v52, 7  ;;  %vm19210_vm12 = vmmov %vm19196_vm13 }
 0x224   : > { %19205 = vst [vmem:[#allocation195_spill] sm:$0xff] %v11204_v19  ;;  %19208 = vst [vmem:[#allocation196_spill] sm:$0xff] %v11210_v1  ;;  %v943_v42 = vadd.f32 1.0, %v7104_v33  ;;  %vm1487_vm10 = vcmp.le.s32.totalorder %v1391_v18, 2  ;;  %v1648_v5 = vsub.s32 %v1611_v47, %v11084_v46  ;;  %v19211_v1 = vrot.slane %v10841_v60, 1 }
 0x225   : > { %v1353_v41 = vsel %vm19210_vm12, %v1327_v36, %v19209_v7  ;;  %v19212_v26 = vrot.slane %v10743_v61, 2  ;;  %7105 = vrcp.f32 %v944_v63  ;;  %vm1840_vm5 = vcmp.le.s32.totalorder %v1744_v8, 2 }
 0x226   : > { %v2060_v16 = vsel %vm19204_vm7, %v19211_v1, %v2033_v53  ;;  %7107 = vrcp.f32 %v943_v42  ;;  %v19214_v33 = vrot.slane %v11167_v40, 7  ;;  %v1392_v47 = vsub.s32 %v1353_v41, %v11157_v52 }
 0x227   : > { %v11229_v4 = vsel %vm19207_vm1, %v19212_v26, %v3027_v34  ;;  %v17624_v7 = vrot.slane %v11157_v52, 6  ;;  %vm11237_vm7 = vcmp.eq.s32.totalorder %v1295_v23, %v1391_v18  ;;  %vm19217_vm3 = vcmp.ge.s32.totalorder %v1391_v18, 4294967294 }
 0x228   : > { %19213 = vst [vmem:[#allocation197_spill] sm:$0xff] %v11229_v4  ;;  %v1257_v36 = vsel %vm19210_vm12, %v1230_v32, %v19214_v33  ;;  %vm1519_vm1 = vmand %vm19217_vm3, %vm1487_vm10  ;;  %v19218_v26 = vrot.slane %v10851_v0, 1  ;;  %vm19219_vm13 = vcmp.lt.s32.totalorder %v7533_v3, 7  ;;  %v2096_v63 = vsub.s32 %v2060_v16, %v10841_v60 }
 0x229   : > { %vm11248_vm12 = vcmp.eq.s32.totalorder %v1648_v5, %v1744_v8  ;;  %v19222_v23 = vrot.slane %v10851_v0, 2  ;;  %vm19223_vm0 = vcmp.lt.s32.totalorder %v7533_v3, 6  ;;  %v17625_v33 = vrot.slane %v11157_v52, 1 }
 0x22a   : > { %v1964_v34 = vsel %vm19219_vm13, %v19218_v26, %v1936_v44  ;;  %vm19225_vm3 = vcmp.ge.s32.totalorder %v1744_v8, 4294967294  ;;  %v1296_v5 = vsub.s32 %v1257_v36, %v11167_v40  ;;  %v19228_v26 = vrot.slane %v11059_v59, 6 }
 0x22b   : > { %v11258_v18 = vsel %vm19223_vm0, %v19222_v23, %v17619_v54  ;;  %vm11263_vm13 = vmand %vm19225_vm3, %vm1840_vm5  ;;  %vm19229_vm10 = vcmp.lt.s32.totalorder %v7533_v3, 2  ;;  %v11278_v54 = vld [vmem:[%s17200_s3] ss:$0 sm:$0xff]  ;;  %v19230_v36 = vmov 0  ;;  %v2000_v41 = vsub.s32 %v1964_v34, %v10851_v0 }
 0x22c   : > { %19224 = vst [vmem:[#allocation198_spill] sm:$0xff] %v11258_v18  ;;  %v1706_v42 = vsel %vm19229_vm10, %v19228_v26, %v17624_v7  ;;  %v779_v8 = vmul.f32 %v11278_v54, %v9621_v39  ;;  %vm11284_vm0 = vmand %vm11237_vm7, %vm1519_vm1  ;;  %vm1456_vm5 = vcmp.ge.s32.totalorder %v1392_v47, 4294967294  ;;  %vm1488_vm3 = vcmp.le.s32.totalorder %v1392_v47, 2 }
 0x22d   : > { %v19231_v36 = vsel %vm11284_vm0, 4294967295, %v19230_v36  ;;  %vm19233_vm10 = vcmp.lt.s32.totalorder %v7533_v3, 7  ;;  %vm2192_vm6 = vcmp.le.s32.totalorder %v2096_v63, 2  ;;  %v2707_v39 = vsel %vm11284_vm0, %v11163_v17, -inf  ;;  %vm11302_vm7 = vmand %vm11248_vm12, %vm11263_vm13 }
 0x22e   : > { %19232 = vst [vmem:[#allocation199_spill] sm:$0xff] %v19231_v36  ;;  %v2059_v26 = vsel %vm19233_vm10, %v2033_v53, %v17625_v33  ;;  %v778_v1 = vmul.f32 %v11278_v54, %v9806_v35  ;;  %v19234_v34 = vmov 0  ;;  %v19237_v7 = vrot.slane %v11167_v40, 6  ;;  %vm1520_vm13 = vmand %vm1456_vm5, %vm1488_vm3 }
 0x22f   : > { %v19235_v34 = vsel %vm11302_vm7, 4294967295, %v19234_v34  ;;  %v19238_v53 = vrot.slane %v11084_v46, 6  ;;  %vm19239_vm1 = vcmp.lt.s32.totalorder %v7533_v3, 2  ;;  %v1745_v17 = vsub.s32 %v1706_v42, %v11157_v52 }
 0x230   : > { %19236 = vst [vmem:[#allocation200_spill] sm:$0xff] %v19235_v34  ;;  %v11315_v35 = vadd.f32 %v11018_v14, %v779_v8  ;;  %vm11319_vm12 = vcmp.eq.s32.totalorder %v1296_v5, %v1392_v47  ;;  %v19242_v36 = vrot.slane %v11167_v40, 1  ;;  %v2097_v42 = vsub.s32 %v2059_v26, %v11059_v59 }
 0x231   : > { %v1610_v33 = vsel %vm19239_vm1, %v19238_v53, %v19237_v7  ;;  %vm11328_vm1 = vcmp.eq.s32.totalorder %v2000_v41, %v2096_v63  ;;  %v19245_v8 = vrot.slane %v11059_v59, 2  ;;  %v19246_v32 = vrot.slane %v10841_v60, 2 }
 0x232   : > { %v1963_v7 = vsel %vm19233_vm10, %v1936_v44, %v19242_v36  ;;  %vm19247_vm11 = vcmp.lt.s32.totalorder %v7533_v3, 6  ;;  %v2739_v5 = vmax.f32 %v11044_v27, %v2707_v39  ;;  %v2835_v23 = vsel %vm11302_vm7, %v11180_v55, -inf  ;;  %v7106_v44 = vpop.eup %7105 }
 0x233   : > { %v2413_v47 = vsel %vm19247_vm11, %v19246_v32, %v19245_v8  ;;  %vm19248_vm5 = vcmp.ge.s32.totalorder %v2096_v63, 4294967294  ;;  %v1649_v36 = vsub.s32 %v1610_v33, %v11167_v40  ;;  %v6320_v4 = vmul.f32 -1.442695, %v11315_v35  ;;  %v7108_v39 = vpop.eup %7107  ;;  %vm11356_vm11 = vmand %vm11319_vm12, %vm1520_vm13 }
 0x234   : > { %vm11344_vm3 = vmand %vm19248_vm5, %vm2192_vm6  ;;  %v11352_v32 = vadd.f32 %v11018_v14, %v778_v1  ;;  %v19251_v55 = vmov 0  ;;  %vm1809_vm6 = vcmp.ge.s32.totalorder %v1745_v17, 4294967294  ;;  %vm1841_vm10 = vcmp.le.s32.totalorder %v1745_v17, 2 }
 0x235   : > { %v19252_v55 = vsel %vm11356_vm11, 4294967295, %v19251_v55  ;;  %v2001_v63 = vsub.s32 %v1963_v7, %v11084_v46  ;;  %v19254_v33 = vrot.slane %v11167_v40, 2  ;;  %v19255_v8 = vrot.slane %v11084_v46, 2  ;;  %vm11385_vm12 = vmand %vm11328_vm1, %vm11344_vm3 }
 0x236   : > { %19253 = vst [vmem:[#allocation201_spill] sm:$0xff] %v19252_v55  ;;  %vm19256_vm5 = vcmp.lt.s32.totalorder %v7533_v3, 6  ;;  %v2708_v1 = vsel %vm11356_vm11, %v11145_v13, -inf  ;;  %7109 = vpow2.f32 %v6320_v4  ;;  %v11373_v16 = vadd.s32 160, %v7533_v3  ;;  %v11390_v4 = vpop.permute.xlu0 %1177  ;;  %vm11407_vm3 = vmand %vm1809_vm6, %vm1841_vm10 }
 0x237   : > { %v11367_v26 = vsel %vm19256_vm5, %v19255_v8, %v19254_v33  ;;  %v11376_v34 = vmul.f32 %v7106_v44, %v10973_v6  ;;  %v11379_v7 = vmul.f32 %v7108_v39, %v11021_v22  ;;  %v19261_v33 = vmov 0 }
 0x238   : > { %19257 = vst [vmem:[#allocation202_spill] sm:$0xff] %v11367_v26  ;;  %19258 = vst [vmem:[#allocation203_spill] sm:$0xff] %v11373_v16  ;;  %v19262_v33 = vsel %vm11385_vm12, 4294967295, %v19261_v33  ;;  %vm2193_vm13 = vcmp.le.s32.totalorder %v2097_v42, 2  ;;  %v6319_v13 = vmul.f32 -1.442695, %v11352_v32  ;;  %v11393_v8 = vsub.s32 %v2413_v47, %v10841_v60 }
 0x239   : > { %19259 = vst [vmem:[#allocation204_spill] sm:$0xff] %v11376_v34  ;;  %19260 = vst [vmem:[#allocation205_spill] sm:$0xff] %v11379_v7  ;;  %v11395_v6 = vmax.f32 %v2739_v5, %v2835_v23  ;;  %v1329_v53 = vrot.slane %v11390_v4, 7  ;;  %vm11401_vm1 = vcmp.eq.s32.totalorder %v1649_v36, %v1745_v17  ;;  %v19270_v23 = vrot.slane %v11157_v52, 2 }
 0x23a   : > { %19263 = vst [vmem:[#allocation206_spill] sm:$0xff] %v19262_v33  ;;  %19264 = vst [vmem:[#allocation207_spill] sm:$0xff] %v11393_v8  ;;  %v19271_v47 = vrot.slane %v11059_v59, 2  ;;  %7111 = vpow2.f32 %v6319_v13  ;;  %vm11419_vm7 = vcmp.eq.s32.totalorder %v2001_v63, %v2097_v42  ;;  %vm19274_vm11 = vcmp.ge.s32.totalorder %v2097_v42, 4294967294 }
 0x23b   : > { %19265 = vst [vmem:[#allocation208_spill] sm:$0xff] %v11395_v6  ;;  %vm11424_vm6 = vmand %vm19274_vm11, %vm2193_vm13  ;;  %v2740_v39 = vmax.f32 %v11041_v10, %v2708_v1  ;;  %v1232_v22 = vrot.slane %v11373_v16, 7  ;;  %v2645_v63 = vrot.slane %v11379_v7, 7  ;;  %v2773_v13 = vrot.slane %v11379_v7, 6 }
 0x23c   : > { %v2412_v5 = vsel %vm19256_vm5, %v19271_v47, %v19270_v23  ;;  %v2901_v47 = vrot.slane %v11379_v7, 1  ;;  %vm11441_vm11 = vmand %vm11401_vm1, %vm11407_vm3  ;;  %v19277_v1 = vmov 0  ;;  %v19281_v23 = vrot.slane %v11157_v52, 7 }
 0x23d   : > { %v19278_v1 = vsel %vm11441_vm11, 4294967295, %v19277_v1  ;;  %v11446_v55 = vsub.s32 %v2412_v5, %v11059_v59  ;;  %vm19282_vm10 = vcmp.lt.s32.totalorder %v7533_v3, 1  ;;  %v3029_v6 = vrot.slane %v11379_v7, 2  ;;  %vm11458_vm13 = vmand %vm11419_vm7, %vm11424_vm6 }
 0x23e   : > { %19279 = vst [vmem:[#allocation209_spill] sm:$0xff] %v19278_v1  ;;  %v1352_v60 = vsel %vm19282_vm10, %v19281_v23, %v1329_v53  ;;  %v19283_v44 = vmov 0  ;;  %v2836_v59 = vsel %vm11441_vm11, %v11174_v25, -inf  ;;  %v1682_v41 = vrot.slane %v11390_v4, 6  ;;  %vm19288_vm1 = vmmov %vm19282_vm10 }
 0x23f   : > { %19280 = vst [vmem:[#allocation210_spill] sm:$0xff] %v11446_v55  ;;  %v19284_v44 = vsel %vm11458_vm13, 4294967295, %v19283_v44  ;;  %v11466_v5 = vmax.f32 %v2740_v39, %v2836_v59  ;;  %v19287_v17 = vrot.slane %v11167_v40, 7  ;;  %v19289_v42 = vrot.slane %v11373_v16, 6  ;;  %vm19293_vm3 = vmmov %vm19288_vm1 }
 0x240   : > { %19285 = vst [vmem:[#allocation211_spill] sm:$0xff] %v19284_v44  ;;  %v19290_v19 = vrot.slane %v11167_v40, 6  ;;  %vm19291_vm7 = vcmp.lt.s32.totalorder %v7533_v3, 2  ;;  %v19292_v1 = vrot.slane %v11376_v34, 7  ;;  %v19294_v59 = vrot.slane %v11041_v10, 7  ;;  %vm19295_vm5 = vmmov %vm19288_vm1 }
 0x241   : > { %19286 = vst [vmem:[#allocation212_spill] sm:$0xff] %v11466_v5  ;;  %v1256_v36 = vsel %vm19288_vm1, %v19287_v17, %v1232_v22  ;;  %v19296_v17 = vrot.slane %v11376_v34, 6  ;;  %vm19297_vm6 = vmmov %vm19291_vm7  ;;  %v19298_v50 = vrot.slane %v11041_v10, 6  ;;  %v19300_v44 = vrot.slane %v11376_v34, 1 }
 0x242   : > { %v1609_v25 = vsel %vm19291_vm7, %v19290_v19, %v19289_v42  ;;  %v11485_v39 = vsel %vm19293_vm3, %v2645_v63, %v19292_v1  ;;  %v11491_v23 = vsel %vm19295_vm5, %v19294_v59, %v2645_v63  ;;  %v1393_v19 = vsub.s32 %v1352_v60, %v11390_v4  ;;  %v7110_v42 = vpop.eup %7109  ;;  %vm19299_vm10 = vmmov %vm19297_vm6 }
 0x243   : > { %v11497_v5 = vsel %vm19297_vm6, %v2773_v13, %v19296_v17  ;;  %v11504_v1 = vsel %vm19299_vm10, %v19298_v50, %v2773_v13  ;;  %vm19301_vm1 = vcmp.lt.s32.totalorder %v7533_v3, 7  ;;  %v19303_v59 = vrot.slane %v11041_v10, 1  ;;  %vm19310_vm5 = vmmov %vm19297_vm6 }
 0x244   : > { %v11510_v63 = vsel %vm19301_vm1, %v2901_v47, %v19300_v44  ;;  %vm19304_vm7 = vmmov %vm19301_vm1  ;;  %v2035_v60 = vrot.slane %v11390_v4, 1  ;;  %v19306_v33 = vrot.slane %v11376_v34, 2  ;;  %vm19307_vm3 = vcmp.lt.s32.totalorder %v7533_v3, 6 }
 0x245   : > { %19302 = vst [vmem:[#allocation213_spill] sm:$0xff] %v11510_v63  ;;  %v11516_v17 = vsel %vm19304_vm7, %v19303_v59, %v2901_v47  ;;  %v946_v13 = vadd.f32 1.0, %v7110_v42  ;;  %v19309_v46 = vrot.slane %v11157_v52, 6  ;;  %v1938_v26 = vrot.slane %v11373_v16, 1  ;;  %vm19312_vm6 = vmmov %vm19307_vm3  ;;  %v11539_v42 = vpop.permute.xlu1 %1180 }
 0x246   : > { %19305 = vst [vmem:[#allocation214_spill] sm:$0xff] %v11516_v17  ;;  %v11523_v50 = vsel %vm19307_vm3, %v3029_v6, %v19306_v33  ;;  %v19311_v0 = vrot.slane %v11041_v10, 2  ;;  %v1297_v59 = vsub.s32 %v1256_v36, %v11373_v16  ;;  %v1650_v18 = vsub.s32 %v1609_v25, %v11373_v16  ;;  %vm19317_vm3 = vmmov %vm19304_vm7 }
 0x247   : > { %19308 = vst [vmem:[#allocation215_spill] sm:$0xff] %v11523_v50  ;;  %v1705_v44 = vsel %vm19310_vm5, %v19309_v46, %v1682_v41  ;;  %v7112_v50 = vpop.eup %7111  ;;  %vm1457_vm10 = vcmp.ge.s32.totalorder %v1393_v19, 4294967294  ;;  %vm1489_vm1 = vcmp.le.s32.totalorder %v1393_v19, 2  ;;  %v11542_v46 = vadd.s32 168, %v7533_v3 }
 0x248   : > { %v11534_v47 = vsel %vm19312_vm6, %v19311_v0, %v3029_v6  ;;  %v17656_v55 = vrot.slane %v11539_v42, 7  ;;  %7113 = vrcp.f32 %v946_v13  ;;  %v945_v8 = vadd.f32 1.0, %v7112_v50 }
 0x249   : > { %19313 = vst [vmem:[#allocation216_spill] sm:$0xff] %v11534_v47  ;;  %19314 = vst [vmem:[#allocation217_spill] sm:$0xff] %v11542_v46  ;;  %v1746_v0 = vsub.s32 %v1705_v44, %v11390_v4  ;;  %v19315_v6 = vrot.slane %v11157_v52, 1  ;;  %v19316_v25 = vrot.slane %v11167_v40, 1  ;;  %v2388_v47 = vrot.slane %v11390_v4, 2 }
 0x24a   : > { %vm19318_vm5 = vcmp.lt.s32.totalorder %v7533_v3, 1  ;;  %7115 = vrcp.f32 %v945_v8  ;;  %vm11560_vm6 = vcmp.eq.s32.totalorder %v1297_v59, %v1393_v19  ;;  %v19321_v10 = vrot.slane %v11373_v16, 2 }
 0x24b   : > { %v2058_v36 = vsel %vm19304_vm7, %v19315_v6, %v2035_v60  ;;  %v1962_v33 = vsel %vm19317_vm3, %v19316_v25, %v1938_v26  ;;  %v1351_v50 = vsel %vm19318_vm5, %v1329_v53, %v17656_v55  ;;  %v17661_v6 = vrot.slane %v11542_v46, 6  ;;  %vm1521_vm7 = vmand %vm1457_vm10, %vm1489_vm1 }
 0x24c   : > { %v1394_v44 = vsub.s32 %v1351_v50, %v11539_v42  ;;  %v2098_v25 = vsub.s32 %v2058_v36, %v11157_v52  ;;  %v19322_v27 = vrot.slane %v11167_v40, 2  ;;  %vm19323_vm3 = vcmp.lt.s32.totalorder %v7533_v3, 6 }
 0x24d   : > { %v19325_v53 = vrot.slane %v11542_v46, 7  ;;  %v17664_v50 = vrot.slane %v11539_v42, 6  ;;  %vm1810_vm11 = vcmp.ge.s32.totalorder %v1746_v0, 4294967294  ;;  %vm1842_vm0 = vcmp.le.s32.totalorder %v1746_v0, 2 }
 0x24e   : > { %v11575_v8 = vsel %vm19323_vm3, %v19322_v27, %v19321_v10  ;;  %v2002_v19 = vsub.s32 %v1962_v33, %v11167_v40  ;;  %v17666_v36 = vrot.slane %v11542_v46, 1  ;;  %v19326_v10 = vrot.slane %v11373_v16, 6  ;;  %vm11598_vm3 = vmand %vm11560_vm6, %vm1521_vm7 }
 0x24f   : > { %19324 = vst [vmem:[#allocation218_spill] sm:$0xff] %v11575_v8  ;;  %v1255_v59 = vsel %vm19318_vm5, %v1232_v22, %v19325_v53  ;;  %vm19327_vm10 = vcmp.lt.s32.totalorder %v7533_v3, 2  ;;  %v17667_v53 = vrot.slane %v11539_v42, 1  ;;  %v19329_v33 = vmov 0 }
 0x250   : > { %v1298_v55 = vsub.s32 %v1255_v59, %v11542_v46  ;;  %v1608_v27 = vsel %vm19327_vm10, %v19326_v10, %v17661_v6  ;;  %vm19328_vm1 = vmmov %vm19327_vm10  ;;  %v19330_v33 = vsel %vm11598_vm3, 4294967295, %v19329_v33  ;;  %vm11602_vm5 = vcmp.eq.s32.totalorder %v1650_v18, %v1746_v0 }
 0x251   : > { %v1704_v22 = vsel %vm19328_vm1, %v1682_v41, %v17664_v50  ;;  %19331 = vst [vmem:[#allocation219_spill] sm:$0xff] %v19330_v33  ;;  %vm1458_vm13 = vcmp.ge.s32.totalorder %v1394_v44, 4294967294  ;;  %vm1490_vm12 = vcmp.le.s32.totalorder %v1394_v44, 2  ;;  %vm11607_vm10 = vmand %vm1810_vm11, %vm1842_vm0  ;;  %vm2194_vm15 = vcmp.le.s32.totalorder %v2098_v25, 2 }
 0x252   : > { %v1747_v10 = vsub.s32 %v1704_v22, %v11539_v42  ;;  %vm19336_vm6 = vcmp.lt.s32.totalorder %v7533_v3, 7  ;;  %v781_v18 = vmul.f32 %v11278_v54, %v9993_v30  ;;  %v2709_v0 = vsel %vm11598_vm3, %v11491_v23, -inf }
 0x253   : > { %v2057_v41 = vsel %vm19336_vm6, %v2035_v60, %v17667_v53  ;;  %v1651_v13 = vsub.s32 %v1608_v27, %v11542_v46  ;;  %vm19337_vm0 = vmmov %vm19336_vm6  ;;  %v17672_v50 = vrot.slane %v11542_v46, 2  ;;  %v19338_v61 = vrot.slane %v11157_v52, 2 }
 0x254   : > { %v1961_v22 = vsel %vm19337_vm0, %v1938_v26, %v17666_v36  ;;  %vm19339_vm11 = vcmp.lt.s32.totalorder %v7533_v3, 6  ;;  %vm11630_vm7 = vcmp.eq.s32.totalorder %v1298_v55, %v1394_v44  ;;  %vm11634_vm6 = vmand %vm1458_vm13, %vm1490_vm12  ;;  %v780_v26 = vmul.f32 %v11278_v54, %v10157_v12  ;;  %v7114_v36 = vpop.eup %7113 }
 0x255   : > { %v2411_v60 = vsel %vm19339_vm11, %v19338_v61, %v2388_v47  ;;  %vm11645_vm0 = vmand %vm11602_vm5, %vm11607_vm10  ;;  %v19344_v61 = vmov 0  ;;  %vm1811_vm11 = vcmp.ge.s32.totalorder %v1747_v10, 4294967294  ;;  %vm1843_vm1 = vcmp.le.s32.totalorder %v1747_v10, 2  ;;  %v7116_v27 = vpop.eup %7115 }
 0x256   : > { %v19345_v61 = vsel %vm11645_vm0, 4294967295, %v19344_v61  ;;  %v2099_v55 = vsub.s32 %v2057_v41, %v11390_v4  ;;  %v11651_v44 = vadd.f32 %v11018_v14, %v781_v18  ;;  %vm11653_vm12 = vcmp.eq.s32.totalorder %v2002_v19, %v2098_v25 }
 0x257   : > { %19346 = vst [vmem:[#allocation220_spill] sm:$0xff] %v19345_v61  ;;  %vm19349_vm13 = vcmp.ge.s32.totalorder %v2098_v25, 4294967294  ;;  %v2741_v59 = vmax.f32 %v11379_v7, %v2709_v0  ;;  %v2003_v41 = vsub.s32 %v1961_v22, %v11373_v16  ;;  %v11668_v18 = vsub.s32 %v2411_v60, %v11157_v52 }
 0x258   : > { %vm11659_vm3 = vmand %vm19349_vm13, %vm2194_vm15  ;;  %v2837_v19 = vsel %vm11645_vm0, %v11504_v1, -inf  ;;  %v19353_v25 = vmov 0  ;;  %vm11681_vm5 = vcmp.eq.s32.totalorder %v1651_v13, %v1747_v10  ;;  %v19358_v52 = vrot.slane %v11373_v16, 2 }
 0x259   : > { %19352 = vst [vmem:[#allocation221_spill] sm:$0xff] %v11668_v18  ;;  %vm11677_vm15 = vmand %vm11630_vm7, %vm11634_vm6  ;;  %vm19359_vm10 = vcmp.lt.s32.totalorder %v7533_v3, 6  ;;  %v11694_v1 = vmul.f32 %v7114_v36, %v11315_v35  ;;  %v11697_v60 = vmul.f32 %v7116_v27, %v11352_v32  ;;  %v19363_v13 = vrot.slane %v11539_v42, 2  ;;  %v11731_v27 = vpop.permute.xlu0 %1183 }
 0x25a   : > { %v19354_v25 = vsel %vm11677_vm15, 4294967295, %v19353_v25  ;;  %v11691_v22 = vsel %vm19359_vm10, %v19358_v52, %v17672_v50  ;;  %vm1875_vm7 = vmand %vm1811_vm11, %vm1843_vm1  ;;  %v2710_v23 = vsel %vm11677_vm15, %v11485_v39, -inf  ;;  %v19365_v35 = vmov 0 }
 0x25b   : > { %19355 = vst [vmem:[#allocation222_spill] sm:$0xff] %v19354_v25  ;;  %19360 = vst [vmem:[#allocation223_spill] sm:$0xff] %v11691_v22  ;;  %vm2195_vm0 = vcmp.le.s32.totalorder %v2099_v55, 2  ;;  %v6322_v32 = vmul.f32 -1.442695, %v11651_v44  ;;  %v11718_v36 = vadd.f32 %v11018_v14, %v780_v26  ;;  %vm11725_vm1 = vcmp.eq.s32.totalorder %v2003_v41, %v2099_v55 }
 0x25c   : > { %19361 = vst [vmem:[#allocation224_spill] sm:$0xff] %v11694_v1  ;;  %19362 = vst [vmem:[#allocation225_spill] sm:$0xff] %v11697_v60  ;;  %v19371_v26 = vmov 0  ;;  %v1331_v41 = vrot.slane %v11731_v27, 7  ;;  %v2647_v52 = vrot.slane %v11697_v60, 7  ;;  %v2775_v53 = vrot.slane %v11697_v60, 6 }
 0x25d   : > { %vm19364_vm6 = vmmov %vm19359_vm10  ;;  %vm2163_vm10 = vcmp.ge.s32.totalorder %v2099_v55, 4294967294  ;;  %7117 = vpow2.f32 %v6322_v32  ;;  %v6321_v12 = vmul.f32 -1.442695, %v11718_v36  ;;  %v2903_v50 = vrot.slane %v11697_v60, 1 }
 0x25e   : > { %v2410_v30 = vsel %vm19364_vm6, %v2388_v47, %v19363_v13  ;;  %vm11712_vm13 = vmand %vm11653_vm12, %vm11659_vm3  ;;  %v11720_v47 = vmax.f32 %v2741_v59, %v2837_v19  ;;  %v11741_v59 = vadd.s32 176, %v7533_v3  ;;  %v17681_v19 = vrot.slane %v11694_v1, 7 }
 0x25f   : > { %v19366_v35 = vsel %vm11712_vm13, 4294967295, %v19365_v35  ;;  %vm11735_vm3 = vmand %vm11681_vm5, %vm1875_vm7  ;;  %v11749_v0 = vsub.s32 %v2410_v30, %v11390_v4  ;;  %v2742_v13 = vmax.f32 %v11376_v34, %v2710_v23  ;;  %7119 = vpow2.f32 %v6321_v12 }
 0x260   : > { %19367 = vst [vmem:[#allocation226_spill] sm:$0xff] %v19366_v35  ;;  %19368 = vst [vmem:[#allocation227_spill] sm:$0xff] %v11720_v47  ;;  %v19372_v26 = vsel %vm11735_vm3, 4294967295, %v19371_v26  ;;  %v2838_v6 = vsel %vm11735_vm3, %v11497_v5, -inf  ;;  %v1234_v55 = vrot.slane %v11741_v59, 7  ;;  %v19376_v4 = vrot.slane %v11539_v42, 7 }
 0x261   : > { %19373 = vst [vmem:[#allocation228_spill] sm:$0xff] %v19372_v26  ;;  %19374 = vst [vmem:[#allocation229_spill] sm:$0xff] %v11741_v59  ;;  %v3031_v39 = vrot.slane %v11697_v60, 2  ;;  %v19378_v32 = vmov 0  ;;  %v1587_v5 = vrot.slane %v11741_v59, 6  ;;  %v1684_v12 = vrot.slane %v11731_v27, 6 }
 0x262   : > { %vm2227_vm11 = vmand %vm2163_vm10, %vm2195_vm0  ;;  %19375 = vst [vmem:[#allocation230_spill] sm:$0xff] %v11749_v0  ;;  %vm19377_vm0 = vcmp.lt.s32.totalorder %v7533_v3, 1  ;;  %v19383_v61 = vrot.slane %v11376_v34, 7  ;;  %v19385_v33 = vrot.slane %v11542_v46, 7  ;;  %vm19388_vm10 = vcmp.lt.s32.totalorder %v7533_v3, 2 }
 0x263   : > { %v1350_v30 = vsel %vm19377_vm0, %v19376_v4, %v1331_v41  ;;  %vm11768_vm12 = vmand %vm11725_vm1, %vm2227_vm11  ;;  %v11780_v4 = vmax.f32 %v2742_v13, %v2838_v6  ;;  %v19389_v23 = vrot.slane %v11376_v34, 6  ;;  %vm19392_vm11 = vcmp.lt.s32.totalorder %v7533_v3, 7 }
 0x264   : > { %v19379_v32 = vsel %vm11768_vm12, 4294967295, %v19378_v32  ;;  %vm19381_vm5 = vmmov %vm19377_vm0  ;;  %v1395_v6 = vsub.s32 %v1350_v30, %v11731_v27  ;;  %v19394_v13 = vrot.slane %v11376_v34, 1  ;;  %v19397_v47 = vrot.slane %v11694_v1, 2 }
 0x265   : > { %19380 = vst [vmem:[#allocation231_spill] sm:$0xff] %v19379_v32  ;;  %v11778_v26 = vsel %vm19381_vm5, %v2647_v52, %v17681_v19  ;;  %19382 = vst [vmem:[#allocation232_spill] sm:$0xff] %v11780_v4  ;;  %v19387_v4 = vrot.slane %v11694_v1, 6  ;;  %vm19398_vm5 = vcmp.lt.s32.totalorder %v7533_v3, 6  ;;  %v19402_v63 = vrot.slane %v11539_v42, 6  ;;  %v11837_v32 = vpop.permute.xlu1 %1186 }
 0x266   : > { %vm19384_vm7 = vmmov %vm19377_vm0  ;;  %v19405_v17 = vrot.slane %v11539_v42, 1  ;;  %v19408_v16 = vrot.slane %v11542_v46, 1  ;;  %v2390_v22 = vrot.slane %v11731_v27, 2  ;;  %v19409_v8 = vrot.slane %v11741_v59, 2 }
 0x267   : > { %v11790_v25 = vsel %vm19384_vm7, %v19383_v61, %v2647_v52  ;;  %vm19386_vm6 = vmmov %vm19377_vm0  ;;  %v11802_v10 = vsel %vm19388_vm10, %v2775_v53, %v19387_v4  ;;  %v19391_v52 = vrot.slane %v11694_v1, 1  ;;  %v7118_v35 = vpop.eup %7117  ;;  %v19412_v18 = vrot.slane %v11376_v34, 2 }
 0x268   : > { %v1254_v19 = vsel %vm19386_vm6, %v19385_v33, %v1234_v55  ;;  %vm19390_vm1 = vmmov %vm19388_vm10  ;;  %v948_v40 = vadd.f32 1.0, %v7118_v35  ;;  %vm19427_vm3 = vcmp.lt.s32.totalorder %v7533_v3, 2  ;;  %v19627_v11 = vmov 0 }
 0x269   : > { %v11808_v61 = vsel %vm19390_vm1, %v19389_v23, %v2775_v53  ;;  %v11814_v33 = vsel %vm19392_vm11, %v2903_v50, %v19391_v52  ;;  %vm19395_vm0 = vmmov %vm19392_vm11  ;;  %v11827_v53 = vsel %vm19398_vm5, %v3031_v39, %v19397_v47  ;;  %v19400_v23 = vrot.slane %v11542_v46, 6  ;;  %v7120_v7 = vpop.eup %7119 }
 0x26a   : > { %19393 = vst [vmem:[#allocation233_spill] sm:$0xff] %v11814_v33  ;;  %v11821_v4 = vsel %vm19395_vm0, %v19394_v13, %v2903_v50  ;;  %19399 = vst [vmem:[#allocation235_spill] sm:$0xff] %v11827_v53  ;;  %v1299_v50 = vsub.s32 %v1254_v19, %v11741_v59  ;;  %v19404_v13 = vrot.slane %v11731_v27, 1  ;;  %v11847_v53 = vadd.s32 184, %v7533_v3 }
 0x26b   : > { %19396 = vst [vmem:[#allocation234_spill] sm:$0xff] %v11821_v4  ;;  %vm19401_vm7 = vmmov %vm19390_vm1  ;;  %vm1491_vm11 = vcmp.le.s32.totalorder %v1395_v6, 2  ;;  %7121 = vrcp.f32 %v948_v40  ;;  %v19523_v33 = vmov 0  ;;  %v19610_v4 = vmov 0 }
 0x26c   : > { %v1607_v52 = vsel %vm19401_vm7, %v19400_v23, %v1587_v5  ;;  %vm19403_vm6 = vmmov %vm19390_vm1  ;;  %vm1459_vm1 = vcmp.ge.s32.totalorder %v1395_v6, 4294967294  ;;  %v19410_v23 = vrot.slane %v11542_v46, 2  ;;  %v19640_v57 = vrot.slane %v18679_v9, 2 }
 0x26d   : > { %v1703_v30 = vsel %vm19403_vm6, %v19402_v63, %v1684_v12  ;;  %vm19406_vm10 = vmmov %vm19395_vm0  ;;  %v19407_v63 = vrot.slane %v11741_v59, 1  ;;  %vm19416_vm6 = vcmp.lt.s32.totalorder %v7533_v3, 1 }
 0x26e   : > { %v2056_v47 = vsel %vm19406_vm10, %v19405_v17, %v19404_v13  ;;  %v1652_v17 = vsub.s32 %v1607_v52, %v11741_v59  ;;  %v1748_v13 = vsub.s32 %v1703_v30, %v11731_v27  ;;  %v11865_v0 = vsel %vm19398_vm5, %v19410_v23, %v19409_v8  ;;  %vm19413_vm7 = vmmov %vm19398_vm5 }
 0x26f   : > { %v1960_v19 = vsel %vm19395_vm0, %v19408_v16, %v19407_v63  ;;  %19411 = vst [vmem:[#allocation236_spill] sm:$0xff] %v11865_v0  ;;  %v11871_v16 = vsel %vm19413_vm7, %v19412_v18, %v3031_v39  ;;  %v2100_v35 = vsub.s32 %v2056_v47, %v11539_v42  ;;  %v19415_v30 = vrot.slane %v11837_v32, 7  ;;  %vm1523_vm0 = vmand %vm1459_vm1, %vm1491_vm11 }
 0x270   : > { %19414 = vst [vmem:[#allocation237_spill] sm:$0xff] %v11871_v16  ;;  %vm11879_vm10 = vcmp.eq.s32.totalorder %v1299_v50, %v1395_v6  ;;  %v2004_v23 = vsub.s32 %v1960_v19, %v11542_v46  ;;  %v17701_v18 = vrot.slane %v11847_v53, 6  ;;  %v947_v39 = vadd.f32 1.0, %v7120_v7  ;;  %vm19421_vm7 = vmmov %vm19416_vm6 }
 0x271   : > { %v1349_v63 = vsel %vm19416_vm6, %v1331_v41, %v19415_v30  ;;  %v19419_v52 = vrot.slane %v11539_v42, 2  ;;  %v19420_v41 = vrot.slane %v11847_v53, 7  ;;  %vm11897_vm6 = vcmp.eq.s32.totalorder %v1652_v17, %v1748_v13  ;;  %vm11906_vm11 = vmand %vm11879_vm10, %vm1523_vm0 }
 0x272   : > { %vm1844_vm15 = vcmp.le.s32.totalorder %v1748_v13, 2  ;;  %v1396_v7 = vsub.s32 %v1349_v63, %v11837_v32  ;;  %7123 = vrcp.f32 %v947_v39  ;;  %v17702_v30 = vrot.slane %v11837_v32, 6  ;;  %vm19428_vm10 = vmmov %vm19427_vm3 }
 0x273   : > { %v2409_v40 = vsel %vm19398_vm5, %v19419_v52, %v2390_v22  ;;  %v1253_v50 = vsel %vm19421_vm7, %v1234_v55, %v19420_v41  ;;  %v19424_v52 = vmov 0  ;;  %v1606_v55 = vsel %vm19427_vm3, %v1587_v5, %v17701_v18 }
 0x274   : > { %v1300_v6 = vsub.s32 %v1253_v50, %v11847_v53  ;;  %v19425_v52 = vsel %vm11906_vm11, 4294967295, %v19424_v52  ;;  %vm1460_vm5 = vcmp.ge.s32.totalorder %v1396_v7, 4294967294  ;;  %vm1492_vm7 = vcmp.le.s32.totalorder %v1396_v7, 2 }
 0x275   : > { %19426 = vst [vmem:[#allocation238_spill] sm:$0xff] %v19425_v52  ;;  %v17705_v17 = vrot.slane %v11847_v53, 1  ;;  %vm2196_vm1 = vcmp.le.s32.totalorder %v2100_v35, 2  ;;  %v2711_v63 = vsel %vm11906_vm11, %v11790_v25, -inf  ;;  %v1702_v8 = vsel %vm19428_vm10, %v1684_v12, %v17702_v30  ;;  %vm11938_vm10 = vmand %vm1460_vm5, %vm1492_vm7  ;;  %v19505_v52 = vld [vmem:[#allocation4_spill] sm:$0xff] }
 0x276   : > { %v2038_v39 = vrot.slane %v11837_v32, 1  ;;  %vm19429_vm0 = vcmp.ge.s32.totalorder %v1748_v13, 4294967294  ;;  %v1749_v5 = vsub.s32 %v1702_v8, %v11837_v32  ;;  %v2294_v50 = vrot.slane %v11847_v53, 2 }
 0x277   : > { %vm11925_vm12 = vmand %vm19429_vm0, %vm1844_vm15  ;;  %v783_v25 = vmul.f32 %v11278_v54, %v10379_v45  ;;  %vm11934_vm3 = vcmp.eq.s32.totalorder %v1300_v6, %v1396_v7  ;;  %v1653_v13 = vsub.s32 %v1606_v55, %v11847_v53  ;;  %v19436_v8 = vrot.slane %v11741_v59, 1  ;;  %v12034_v6 = vpop.permute.xlu0 %1189 }
 0x278   : > { %vm19437_vm15 = vcmp.lt.s32.totalorder %v7533_v3, 7  ;;  %v19438_v45 = vrot.slane %v11731_v27, 1  ;;  %vm11955_vm5 = vcmp.eq.s32.totalorder %v2004_v23, %v2100_v35  ;;  %vm19442_vm7 = vcmp.ge.s32.totalorder %v2100_v35, 4294967294 }
 0x279   : > { %v1959_v30 = vsel %vm19437_vm15, %v19436_v8, %v17705_v17  ;;  %vm19439_vm0 = vmmov %vm19437_vm15  ;;  %v11966_v47 = vsub.s32 %v2409_v40, %v11539_v42  ;;  %v782_v17 = vmul.f32 %v11278_v54, %v10495_v31  ;;  %v19446_v23 = vmov 0  ;;  %v7122_v40 = vpop.eup %7121 }
 0x27a   : > { %v2055_v7 = vsel %vm19439_vm0, %v19438_v45, %v2038_v39  ;;  %vm11961_vm11 = vmand %vm19442_vm7, %vm2196_vm1  ;;  %v2743_v35 = vmax.f32 %v11697_v60, %v2711_v63  ;;  %vm1845_vm0 = vcmp.le.s32.totalorder %v1749_v5, 2  ;;  %v11981_v42 = vadd.f32 %v11018_v14, %v783_v25  ;;  %v19625_v60 = vld [vmem:[#allocation13_spill] sm:$0xff] }
 0x27b   : > { %19445 = vst [vmem:[#allocation239_spill] sm:$0xff] %v11966_v47  ;;  %v2101_v8 = vsub.s32 %v2055_v7, %v11731_v27  ;;  %vm11975_vm15 = vmand %vm11897_vm6, %vm11925_vm12  ;;  %v19449_v54 = vmov 0  ;;  %v2005_v19 = vsub.s32 %v1959_v30, %v11741_v59  ;;  %v19452_v63 = vrot.slane %v11741_v59, 2  ;;  %v19540_v59 = vld [vmem:[#allocation44_spill] sm:$0xff]  ;;  %v19603_v47 = vld [vmem:[#allocation10_spill] sm:$0xff] }
 0x27c   : > { %v19447_v23 = vsel %vm11975_vm15, 4294967295, %v19446_v23  ;;  %v2839_v31 = vsel %vm11975_vm15, %v11808_v61, -inf  ;;  %vm11990_vm12 = vmand %vm11934_vm3, %vm11938_vm10  ;;  %vm19453_vm6 = vcmp.lt.s32.totalorder %v7533_v3, 6  ;;  %v19455_v61 = vrot.slane %v11837_v32, 2 }
 0x27d   : > { %19448 = vst [vmem:[#allocation240_spill] sm:$0xff] %v19447_v23  ;;  %v19450_v54 = vsel %vm11990_vm12, 4294967295, %v19449_v54  ;;  %v12001_v41 = vsel %vm19453_vm6, %v19452_v63, %v2294_v50  ;;  %vm19456_vm7 = vmmov %vm19453_vm6  ;;  %v19457_v18 = vmov 0  ;;  %vm12015_vm10 = vcmp.eq.s32.totalorder %v1653_v13, %v1749_v5  ;;  %v7124_v63 = vpop.eup %7123 }
 0x27e   : > { %19451 = vst [vmem:[#allocation241_spill] sm:$0xff] %v19450_v54  ;;  %19454 = vst [vmem:[#allocation242_spill] sm:$0xff] %v12001_v41  ;;  %v2408_v25 = vsel %vm19456_vm7, %v2390_v22, %v19455_v61  ;;  %vm2165_vm1 = vcmp.ge.s32.totalorder %v2101_v8, 4294967294  ;;  %vm2197_vm6 = vcmp.le.s32.totalorder %v2101_v8, 2  ;;  %v2712_v12 = vsel %vm11990_vm12, %v11778_v26, -inf }
 0x27f   : > { %vm12011_vm3 = vmand %vm11955_vm5, %vm11961_vm11  ;;  %v12023_v22 = vmul.f32 %v7122_v40, %v11651_v44  ;;  %vm19462_vm7 = vcmp.ge.s32.totalorder %v1749_v5, 4294967294  ;;  %v6324_v7 = vmul.f32 -1.442695, %v11981_v42  ;;  %v12032_v13 = vadd.f32 %v11018_v14, %v782_v17  ;;  %v19516_v5 = vld [vmem:[#allocation46_spill] sm:$0xff] }
 0x280   : > { %v19458_v18 = vsel %vm12011_vm3, 4294967295, %v19457_v18  ;;  %vm12026_vm15 = vmand %vm19462_vm7, %vm1845_vm0  ;;  %v12037_v55 = vadd.s32 192, %v7533_v3  ;;  %v12039_v26 = vmax.f32 %v2743_v35, %v2839_v31  ;;  %v12047_v40 = vsub.s32 %v2408_v25, %v11731_v27 }
 0x281   : > { %19459 = vst [vmem:[#allocation243_spill] sm:$0xff] %v19458_v18  ;;  %v12050_v14 = vmul.f32 %v7124_v63, %v11718_v36  ;;  %vm2133_vm11 = vcmp.eq.s32.totalorder %v2005_v19, %v2101_v8  ;;  %vm2229_vm5 = vmand %vm2165_vm1, %vm2197_vm6  ;;  %v2744_v17 = vmax.f32 %v11694_v1, %v2712_v12  ;;  %7125 = vpow2.f32 %v6324_v7 }
 0x282   : > { %19465 = vst [vmem:[#allocation244_spill] sm:$0xff] %v12039_v26  ;;  %19466 = vst [vmem:[#allocation245_spill] sm:$0xff] %v12047_v40  ;;  %v19467_v35 = vmov 0  ;;  %v6323_v27 = vmul.f32 -1.442695, %v12032_v13  ;;  %v17709_v36 = vrot.slane %v12037_v55, 7  ;;  %v19626_v34 = vsub.s32 %v19625_v60, %v7533_v3 }
 0x283   : > { %vm12059_vm0 = vmand %vm12015_vm10, %vm12026_vm15  ;;  %v17708_v31 = vrot.slane %v12034_v6, 7  ;;  %v17710_v8 = vrot.slane %v12037_v55, 6  ;;  %v19470_v45 = vmov 0  ;;  %v19473_v7 = vrot.slane %v11847_v53, 7 }
 0x284   : > { %v19468_v35 = vsel %vm12059_vm0, 4294967295, %v19467_v35  ;;  %v2840_v30 = vsel %vm12059_vm0, %v11802_v10, -inf  ;;  %vm12074_vm15 = vmand %vm2133_vm11, %vm2229_vm5  ;;  %7127 = vpow2.f32 %v6323_v27  ;;  %vm19474_vm1 = vcmp.lt.s32.totalorder %v7533_v3, 1 }
 0x285   : > { %19469 = vst [vmem:[#allocation246_spill] sm:$0xff] %v19468_v35  ;;  %v19471_v45 = vsel %vm12074_vm15, 4294967295, %v19470_v45  ;;  %v1252_v63 = vsel %vm19474_vm1, %v19473_v7, %v17709_v36  ;;  %v19475_v44 = vrot.slane %v11837_v32, 7  ;;  %vm19476_vm10 = vmmov %vm19474_vm1  ;;  %v12091_v61 = vmax.f32 %v2744_v17, %v2840_v30 }
 0x286   : > { %19472 = vst [vmem:[#allocation247_spill] sm:$0xff] %v19471_v45  ;;  %v19477_v19 = vrot.slane %v11847_v53, 6  ;;  %vm19478_vm6 = vcmp.lt.s32.totalorder %v7533_v3, 2  ;;  %v1301_v25 = vsub.s32 %v1252_v63, %v12037_v55  ;;  %v17712_v17 = vrot.slane %v12034_v6, 6 }
 0x287   : > { %v1348_v10 = vsel %vm19476_vm10, %v19475_v44, %v17708_v31  ;;  %v17711_v30 = vrot.slane %v12037_v55, 1  ;;  %v17715_v31 = vrot.slane %v12034_v6, 1  ;;  %v17718_v27 = vrot.slane %v12037_v55, 2  ;;  %vm19480_vm5 = vmmov %vm19478_vm6 }
 0x288   : > { %v1605_v7 = vsel %vm19478_vm6, %v19477_v19, %v17710_v8  ;;  %v1397_v44 = vsub.s32 %v1348_v10, %v12034_v6  ;;  %v19479_v63 = vrot.slane %v11837_v32, 6  ;;  %vm19486_vm6 = vcmp.lt.s32.totalorder %v7533_v3, 7 }
 0x289   : > { %v1654_v19 = vsub.s32 %v1605_v7, %v12037_v55  ;;  %v19485_v7 = vrot.slane %v11847_v53, 1  ;;  %vm19497_vm12 = vcmp.lt.s32.totalorder %v7533_v3, 7  ;;  %v19556_v46 = vrot.slane %v12037_v55, 6 }
 0x28a   : > { %vm1461_vm7 = vcmp.ge.s32.totalorder %v1397_v44, 4294967294  ;;  %vm1493_vm11 = vcmp.le.s32.totalorder %v1397_v44, 2  ;;  %v1701_v10 = vsel %vm19480_vm5, %v19479_v63, %v17712_v17  ;;  %vm12117_vm1 = vcmp.eq.s32.totalorder %v1301_v25, %v1397_v44  ;;  %vm19487_vm5 = vmmov %vm19486_vm6 }
 0x28b   : > { %vm12121_vm10 = vmand %vm1461_vm7, %vm1493_vm11  ;;  %v1750_v12 = vsub.s32 %v1701_v10, %v12034_v6  ;;  %v1958_v36 = vsel %vm19486_vm6, %v19485_v7, %v17711_v30  ;;  %v2054_v25 = vsel %vm19487_vm5, %v2038_v39, %v17715_v31  ;;  %vm19488_vm7 = vcmp.lt.s32.totalorder %v7533_v3, 6  ;;  %v7126_v35 = vpop.eup %7125 }
 0x28c   : > { %v2006_v44 = vsub.s32 %v1958_v36, %v11847_v53  ;;  %v2102_v63 = vsub.s32 %v2054_v25, %v11837_v32  ;;  %v2311_v10 = vsel %vm19488_vm7, %v2294_v50, %v17718_v27  ;;  %v19489_v7 = vrot.slane %v12034_v6, 2  ;;  %vm19491_vm11 = vmmov %vm19488_vm7 }
 0x28d   : > { %v19490_v30 = vrot.slane %v11837_v32, 2  ;;  %vm1814_vm6 = vcmp.ge.s32.totalorder %v1750_v12, 4294967294  ;;  %vm1846_vm5 = vcmp.le.s32.totalorder %v1750_v12, 2  ;;  %v3033_v25 = vrot.slane %v12050_v14, 2  ;;  %vm12159_vm7 = vmand %vm12117_vm1, %vm12121_vm10 }
 0x28e   : > { %v950_v31 = vadd.f32 1.0, %v7126_v35  ;;  %v19492_v50 = vmov 0  ;;  %vm2166_vm0 = vcmp.ge.s32.totalorder %v2102_v63, 4294967294  ;;  %v19496_v27 = vrot.slane %v11694_v1, 1  ;;  %vm12175_vm3 = vmand %vm1814_vm6, %vm1846_vm5  ;;  %v7128_v54 = vpop.eup %7127  ;;  %v19517_v35 = vld [vmem:[#allocation31_spill] sm:$0xff] }
 0x28f   : > { %v2407_v17 = vsel %vm19491_vm11, %v19490_v30, %v19489_v7  ;;  %v19493_v50 = vsel %vm12159_vm7, 4294967295, %v19492_v50  ;;  %vm2198_vm11 = vcmp.le.s32.totalorder %v2102_v63, 2  ;;  %v12163_v30 = vpop.permute.xlu1 %1192  ;;  %v19495_v7 = vrot.slane %v12050_v14, 1 }
 0x290   : > { %v2455_v36 = vsub.s32 %v2407_v17, %v11837_v32  ;;  %19494 = vst [vmem:[#allocation248_spill] sm:$0xff] %v19493_v50  ;;  %vm12171_vm15 = vcmp.eq.s32.totalorder %v1654_v19, %v1750_v12  ;;  %v2359_v8 = vsub.s32 %v2311_v10, %v11847_v53  ;;  %v19502_v17 = vrot.slane %v12050_v14, 7  ;;  %vm12192_vm6 = vmand %vm2166_vm0, %vm2198_vm11 }
 0x291   : > { %v2920_v32 = vsel %vm19497_vm12, %v19496_v27, %v19495_v7  ;;  %v19503_v39 = vrot.slane %v11694_v1, 7  ;;  %vm19504_vm1 = vcmp.lt.s32.totalorder %v7533_v3, 1  ;;  %7129 = vrcp.f32 %v950_v31  ;;  %vm12208_vm0 = vmand %vm12171_vm15, %vm12175_vm3 }
 0x292   : > { %vm12188_vm13 = vcmp.eq.s32.totalorder %v2006_v44, %v2102_v63  ;;  %v12199_v19 = vadd.s32 200, %v7533_v3  ;;  %v949_v10 = vadd.f32 1.0, %v7128_v54  ;;  %vm2519_vm5 = vcmp.ge.s32.totalorder %v2455_v36, 4294967294 }
 0x293   : > { %v2664_v23 = vsel %vm19504_vm1, %v19503_v39, %v19502_v17  ;;  %vm2551_vm1 = vcmp.le.s32.totalorder %v2455_v36, 2  ;;  %v1334_v39 = vrot.slane %v12163_v30, 7  ;;  %v19510_v31 = vmov 0  ;;  %vm12241_vm12 = vmand %vm12188_vm13, %vm12192_vm6 }
 0x294   : > { %v2713_v53 = vsel %vm12159_vm7, %v2664_v23, -inf  ;;  %v19511_v31 = vsel %vm12208_vm0, 4294967295, %v19510_v31  ;;  %v19513_v23 = vrot.slane %v12050_v14, 6  ;;  %v19514_v54 = vrot.slane %v11694_v1, 6 }
 0x295   : > { %19512 = vst [vmem:[#allocation4_spill] sm:$0xff] %v19511_v31  ;;  %vm19515_vm11 = vcmp.lt.s32.totalorder %v7533_v3, 2  ;;  %v1237_v63 = vrot.slane %v12199_v19, 7  ;;  %v1590_v7 = vrot.slane %v12199_v19, 6  ;;  %v1687_v17 = vrot.slane %v12163_v30, 6 }
 0x296   : > { %v2792_v44 = vsel %vm19515_vm11, %v19514_v54, %v19513_v23  ;;  %v19518_v50 = vsub.s32 %v19517_v35, %v18677_v15  ;;  %v19521_v23 = vrot.slane %v11694_v1, 2  ;;  %vm19522_vm11 = vcmp.lt.s32.totalorder %v7533_v3, 6  ;;  %v19604_v1 = vld [vmem:[#allocation5_spill] sm:$0xff] }
 0x297   : > { %7131 = vrcp.f32 %v949_v10  ;;  %v19524_v33 = vsel %vm12241_vm12, 4294967295, %v19523_v33  ;;  %v19526_v35 = vrot.slane %v18756_v58, 7  ;;  %vm19527_vm3 = vcmp.lt.s32.totalorder %v7533_v3, 1 }
 0x298   : > { %vm12227_vm15 = vcmp.eq.s32.totalorder %v19518_v50, %v19505_v52  ;;  %v12235_v54 = vsel %vm19522_vm11, %v19521_v23, %v3033_v25  ;;  %19525 = vst [vmem:[#allocation46_spill] sm:$0xff] %v19524_v33  ;;  %v2745_v50 = vmax.f32 %v12050_v14, %v2713_v53  ;;  %vm12250_vm10 = vcmp.eq.s32.totalorder %v2359_v8, %v2455_v36  ;;  %vm12256_vm11 = vmand %vm2519_vm5, %vm2551_vm1 }
 0x299   : > { %v1346_v45 = vsel %vm19527_vm3, %v1334_v39, %v19526_v35  ;;  %v19532_v12 = vrot.slane %v18679_v9, 7  ;;  %vm19533_vm13 = vmmov %vm19527_vm3  ;;  %v19534_v10 = vrot.slane %v12037_v55, 7  ;;  %v19536_v8 = vrot.slane %v12034_v6, 7 }
 0x29a   : > { %vm19535_vm6 = vmmov %vm19527_vm3  ;;  %v19537_v36 = vsub.s32 %v9619_v24, %v18677_v15  ;;  %v2968_v18 = vsel %vm12241_vm12, %v2920_v32, -inf  ;;  %v19547_v31 = vrot.slane %v12023_v22, 1  ;;  %v19550_v33 = vrot.slane %v12023_v22, 2 }
 0x29b   : > { %v1250_v53 = vsel %vm19533_vm13, %v1237_v63, %v19532_v12  ;;  %v1251_v23 = vsel %vm19535_vm6, %v19534_v10, %v1237_v63  ;;  %v1347_v35 = vsel %vm19527_vm3, %v19536_v8, %v1334_v39  ;;  %v2841_v12 = vsel %vm12208_vm0, %v2792_v44, -inf  ;;  %v19541_v39 = vld [vmem:[#allocation45_spill] sm:$0xff] }
 0x29c   : > { %vm12276_vm5 = vcmp.eq.s32.totalorder %v19537_v36, %v9885_v62  ;;  %v1302_v63 = vsub.s32 %v1251_v23, %v12199_v19  ;;  %v1398_v10 = vsub.s32 %v1347_v35, %v12163_v30  ;;  %v1303_v24 = vsub.s32 %v1250_v53, %v18679_v9  ;;  %v19546_v36 = vld [vmem:[#allocation49_spill] sm:$0xff] }
 0x29d   : > { %v1399_v8 = vsub.s32 %v1346_v45, %v18756_v58  ;;  %v19542_v44 = vrot.slane %v18679_v9, 6  ;;  %vm19543_vm0 = vcmp.lt.s32.totalorder %v7533_v3, 2  ;;  %v19544_v23 = vrot.slane %v18756_v58, 6 }
 0x29e   : > { %vm19545_vm12 = vmmov %vm19543_vm0  ;;  %v19548_v53 = vrot.slane %v12050_v14, 1  ;;  %vm19549_vm3 = vcmp.lt.s32.totalorder %v7533_v3, 7  ;;  %v12324_v41 = vmax.f32 %v2745_v50, %v2841_v12  ;;  %v19561_v50 = vrot.slane %v12034_v6, 6 }
 0x29f   : > { %v1603_v32 = vsel %vm19543_vm0, %v1590_v7, %v19542_v44  ;;  %v1699_v35 = vsel %vm19545_vm12, %v1687_v17, %v19544_v23  ;;  %vm19551_vm0 = vcmp.lt.s32.totalorder %v7533_v3, 6  ;;  %vm12320_vm12 = vmand %vm12250_vm10, %vm12256_vm11  ;;  %v19553_v23 = vmov 0 }
 0x2a0   : > { %v12308_v45 = vsel %vm19549_vm3, %v19548_v53, %v19547_v31  ;;  %v12314_v44 = vsel %vm19551_vm0, %v3033_v25, %v19550_v33  ;;  %v19554_v23 = vsel %vm12320_vm12, 4294967295, %v19553_v23  ;;  %vm19557_vm3 = vcmp.lt.s32.totalorder %v7533_v3, 2 }
 0x2a1   : > { %19552 = vst [vmem:[#allocation31_spill] sm:$0xff] %v12314_v44  ;;  %19555 = vst [vmem:[#allocation44_spill] sm:$0xff] %v19554_v23  ;;  %v1604_v31 = vsel %vm19557_vm3, %v19556_v46, %v1590_v7  ;;  %v12331_v53 = vmax.f32 %v12091_v61, %v2968_v18  ;;  %vm12336_vm0 = vcmp.eq.s32.totalorder %v1302_v63, %v1398_v10  ;;  %v7130_v61 = vpop.eup %7129  ;;  %v1943_v63 = vrot.slane %v12199_v19, 1 }
 0x2a2   : > { %v1656_v25 = vsub.s32 %v1603_v32, %v18679_v9  ;;  %vm19562_vm1 = vmmov %vm19557_vm3  ;;  %v1752_v18 = vsub.s32 %v1699_v35, %v18756_v58  ;;  %vm12346_vm3 = vcmp.eq.s32.totalorder %v1303_v24, %v1399_v8  ;;  %v1655_v27 = vsub.s32 %v1604_v31, %v12199_v19 }
 0x2a3   : > { %19558 = vst [vmem:[#allocation45_spill] sm:$0xff] %v12331_v53  ;;  %v1700_v46 = vsel %vm19562_vm1, %v19561_v50, %v1687_v17  ;;  %vm19565_vm6 = vcmp.le.s32.totalorder %v19505_v52, 2  ;;  %vm19566_vm13 = vcmp.ge.s32.totalorder %v19505_v52, 4294967294  ;;  %v12364_v24 = vmul.f32 %v7130_v61, %v11981_v42 }
 0x2a4   : > { %v12352_v12 = vsub.s32 %v1700_v46, %v12163_v30  ;;  %vm12359_vm10 = vmand %vm19566_vm13, %vm19565_vm6  ;;  %v2040_v35 = vrot.slane %v12163_v30, 1  ;;  %vm12368_vm7 = vcmp.eq.s32.totalorder %v1656_v25, %v1752_v18  ;;  %v2296_v50 = vrot.slane %v12199_v19, 2  ;;  %v7132_v46 = vpop.eup %7131  ;;  %v19575_v25 = vld [vmem:[#allocation12_spill] sm:$0xff] }
 0x2a5   : > { %vm19571_vm13 = vcmp.le.s32.totalorder %v9885_v62, 2  ;;  %vm19572_vm6 = vcmp.ge.s32.totalorder %v9885_v62, 4294967294  ;;  %v19576_v33 = vsub.s32 %v19575_v25, %v7533_v3  ;;  %v19577_v52 = vmov 0  ;;  %vm12404_vm1 = vmand %vm12227_vm15, %vm12359_vm10 }
 0x2a6   : > { %vm12378_vm9 = vmand %vm19572_vm6, %vm19571_vm13  ;;  %vm19579_vm2 = vcmp.le.s32.totalorder %v19516_v5, 2  ;;  %vm19580_vm13 = vcmp.ge.s32.totalorder %v19516_v5, 4294967294  ;;  %v19583_v61 = vmov 0  ;;  %v12411_v32 = vmul.f32 %v7132_v46, %v12032_v13 }
 0x2a7   : > { %vm12388_vm14 = vcmp.eq.s32.totalorder %v19576_v33, %v19516_v5  ;;  %vm12396_vm6 = vmand %vm19580_vm13, %vm19579_vm2  ;;  %v19584_v61 = vsel %vm12404_vm1, 4294967295, %v19583_v61  ;;  %vm12414_vm2 = vcmp.eq.s32.totalorder %v1655_v27, %v12352_v12  ;;  %v19586_v5 = vmov 0 }
 0x2a8   : > { %v19578_v52 = vsel %vm12388_vm14, 4294967295, %v19577_v52  ;;  %19585 = vst [vmem:[#allocation49_spill] sm:$0xff] %v19584_v61  ;;  %v19587_v5 = vsel %vm12414_vm2, 4294967295, %v19586_v5  ;;  %v19588_v17 = vrot.slane %v12037_v55, 1  ;;  %vm19589_vm13 = vcmp.lt.s32.totalorder %v7533_v3, 7 }
 0x2a9   : > { %vm19590_vm15 = vcmp.le.s32.totalorder %v1398_v10, 2  ;;  %vm19591_vm10 = vcmp.ge.s32.totalorder %v1398_v10, 4294967294  ;;  %v19594_v13 = vrot.slane %v18679_v9, 1  ;;  %vm19595_vm8 = vmmov %vm19589_vm13  ;;  %v19596_v46 = vrot.slane %v18756_v58, 1 }
 0x2aa   : > { %v1957_v26 = vsel %vm19589_vm13, %v19588_v17, %v1943_v63  ;;  %vm12425_vm11 = vmand %vm19591_vm10, %vm19590_vm15  ;;  %v19598_v17 = vrot.slane %v12034_v6, 1  ;;  %v19600_v10 = vmov 0  ;;  %v19606_v42 = vmov 0 }
 0x2ab   : > { %v1956_v27 = vsel %vm19595_vm8, %v1943_v63, %v19594_v13  ;;  %vm19597_vm4 = vmmov %vm19595_vm8  ;;  %v2651_v63 = vrot.slane %v12411_v32, 7  ;;  %v2779_v13 = vrot.slane %v12411_v32, 6  ;;  %vm19608_vm8 = vcmp.le.s32.totalorder %v19540_v59, 2 }
 0x2ac   : > { %v2052_v25 = vsel %vm19597_vm4, %v2040_v35, %v19596_v46  ;;  %vm19599_vm13 = vmmov %vm19597_vm4  ;;  %v19614_v40 = vmov 0  ;;  %vm19617_vm12 = vcmp.ge.s32.totalorder %v19541_v39, 4294967294  ;;  %vm19622_vm2 = vcmp.ge.s32.totalorder %v1399_v8, 4294967294 }
 0x2ad   : > { %v2053_v0 = vsel %vm19599_vm13, %v19598_v17, %v2040_v35  ;;  %vm12445_vm15 = vmand %vm12276_vm5, %vm12378_vm9  ;;  %v19605_v35 = vsub.s32 %v19603_v47, %v19604_v1  ;;  %vm19609_vm9 = vcmp.ge.s32.totalorder %v19540_v59, 4294967294  ;;  %v19612_v17 = vld [vmem:[#allocation11_spill] sm:$0xff]  ;;  %vm19616_vm13 = vcmp.le.s32.totalorder %v19541_v39, 2 }
 0x2ae   : > { %v19601_v10 = vsel %vm12445_vm15, 4294967295, %v19600_v10  ;;  %vm12465_vm5 = vmand %vm19609_vm9, %vm19608_vm8  ;;  %v19613_v46 = vsub.s32 %v19612_v17, %v19604_v1  ;;  %v2104_v17 = vsub.s32 %v2052_v25, %v12163_v30  ;;  %vm19634_vm8 = vcmp.lt.s32.totalorder %v7533_v3, 1 }
 0x2af   : > { %19602 = vst [vmem:[#allocation12_spill] sm:$0xff] %v19601_v10  ;;  %vm12457_vm4 = vcmp.eq.s32.totalorder %v19605_v35, %v19540_v59  ;;  %v19611_v4 = vsel %vm12465_vm5, 4294967295, %v19610_v4  ;;  %v19620_v59 = vld [vmem:[#allocation36_spill] sm:$0xff]  ;;  %vm19621_vm5 = vcmp.le.s32.totalorder %v1399_v8, 2  ;;  %v19631_v8 = vmov 0 }
 0x2b0   : > { %v19607_v42 = vsel %vm12457_vm4, 4294967295, %v19606_v42  ;;  %vm12473_vm10 = vcmp.eq.s32.totalorder %v19613_v46, %v19541_v39  ;;  %vm12481_vm4 = vmand %vm19617_vm12, %vm19616_vm13  ;;  %v2007_v46 = vsub.s32 %v1957_v26, %v12037_v55  ;;  %v2103_v39 = vsub.s32 %v2053_v0, %v12034_v6 }
 0x2b1   : > { %v19615_v40 = vsel %vm12473_vm10, 4294967295, %v19614_v40  ;;  %vm12489_vm14 = vmand %vm19622_vm2, %vm19621_vm5  ;;  %vm12501_vm12 = vcmp.eq.s32.totalorder %v19626_v34, %v19546_v36  ;;  %vm19629_vm2 = vcmp.le.s32.totalorder %v19546_v36, 2  ;;  %vm19630_vm5 = vcmp.ge.s32.totalorder %v19546_v36, 4294967294 }
 0x2b2   : > { %v19628_v11 = vsel %vm12501_vm12, 4294967295, %v19627_v11  ;;  %vm12509_vm13 = vmand %vm19630_vm5, %vm19629_vm2  ;;  %v19633_v0 = vrot.slane %v12364_v24, 7  ;;  %v19635_v26 = vrot.slane %v12364_v24, 6  ;;  %vm19636_vm9 = vcmp.lt.s32.totalorder %v7533_v3, 2 }
 0x2b3   : > { %v19632_v8 = vsel %vm12509_vm13, 4294967295, %v19631_v8  ;;  %vm12525_vm10 = vmand %vm12336_vm0, %vm12425_vm11  ;;  %v19637_v60 = vmov 0  ;;  %v2008_v36 = vsub.s32 %v1956_v27, %v12199_v19  ;;  %vm19641_vm2 = vcmp.lt.s32.totalorder %v7533_v3, 6 }
 0x2b4   : > { %v2661_v25 = vsel %vm19634_vm8, %v2651_v63, %v19633_v0  ;;  %v2789_v34 = vsel %vm19636_vm9, %v2779_v13, %v19635_v26  ;;  %v19638_v60 = vsel %vm12525_vm10, 4294967295, %v19637_v60  ;;  %v12534_v0 = vsel %vm19641_vm2, %v2296_v50, %v19640_v57  ;;  %vm19649_vm11 = vmmov %vm19641_vm2 }
 0x2b5   : > { %19639 = vst [vmem:[#allocation10_spill] sm:$0xff] %v19638_v60  ;;  %v19642_v49 = vrot.slane %v12023_v22, 7  ;;  %v2716_v16 = vsel %vm12404_vm1, %v2661_v25, -inf  ;;  %v19643_v33 = vrot.slane %v12364_v24, 1  ;;  %v19644_v44 = vrot.slane %v12411_v32, 1  ;;  %v19857_v60 = vld [vmem:[#allocation115_spill] sm:$0xff] }
 0x2b6   : > { %vm19645_vm0 = vcmp.lt.s32.totalorder %v7533_v3, 7  ;;  %v19647_v51 = vrot.slane %v12364_v24, 2  ;;  %v19648_v57 = vrot.slane %v12411_v32, 2  ;;  %vm19651_vm9 = vcmp.le.s32.totalorder %v1752_v18, 2 }
 0x2b7   : > { %v2662_v26 = vsel %vm19634_vm8, %v19642_v49, %v2651_v63  ;;  %v12548_v27 = vsel %vm19645_vm0, %v19644_v44, %v19643_v33  ;;  %vm19652_vm5 = vcmp.ge.s32.totalorder %v1752_v18, 4294967294  ;;  %v19653_v49 = vld [vmem:[#allocation106_spill] sm:$0xff]  ;;  %v19655_v25 = vmov 0 }
 0x2b8   : > { %19646 = vst [vmem:[#allocation5_spill] sm:$0xff] %v12548_v27  ;;  %v12556_v53 = vsel %vm19649_vm11, %v19648_v57, %v19647_v51  ;;  %vm1880_vm2 = vmand %vm19652_vm5, %vm19651_vm9  ;;  %v19654_v63 = vsub.s32 %v19653_v49, %v8062_v38  ;;  %v2748_v44 = vmax.f32 %v12364_v24, %v2716_v16  ;;  %v19657_v33 = vrot.slane %v12023_v22, 6  ;;  %v19675_v49 = vld [vmem:[#allocation19_spill] sm:$0xff] }
 0x2b9   : > { %19650 = vst [vmem:[#allocation11_spill] sm:$0xff] %v12556_v53  ;;  %vm19658_vm0 = vcmp.lt.s32.totalorder %v7533_v3, 2  ;;  %v2844_v51 = vsel %vm12445_vm15, %v2789_v34, -inf  ;;  %vm12579_vm11 = vmand %vm12346_vm3, %vm12489_vm14  ;;  %v19659_v38 = vmov 0  ;;  %vm19662_vm5 = vcmp.le.s32.totalorder %v12352_v12, 2 }
 0x2ba   : > { %vm12564_vm8 = vcmp.eq.s32.totalorder %v19654_v63, %v19620_v59  ;;  %v2790_v61 = vsel %vm19658_vm0, %v19657_v33, %v2779_v13  ;;  %v19660_v38 = vsel %vm12579_vm11, 4294967295, %v19659_v38  ;;  %vm19663_vm1 = vcmp.ge.s32.totalorder %v12352_v12, 4294967294  ;;  %vm12599_vm14 = vmand %vm12368_vm7, %vm1880_vm2 }
 0x2bb   : > { %v19656_v25 = vsel %vm12564_vm8, 4294967295, %v19655_v25  ;;  %19661 = vst [vmem:[#allocation36_spill] sm:$0xff] %v19660_v38  ;;  %vm12587_vm8 = vmand %vm19663_vm1, %vm19662_vm5  ;;  %vm2168_vm0 = vcmp.ge.s32.totalorder %v2104_v17, 4294967294  ;;  %vm2199_vm12 = vcmp.le.s32.totalorder %v2103_v39, 2  ;;  %vm2200_vm15 = vcmp.le.s32.totalorder %v2104_v17, 2  ;;  %v19827_v38 = vld [vmem:[#allocation65_spill] sm:$0xff] }
 0x2bc   : > { %v19666_v13 = vrot.slane %v12037_v55, 2  ;;  %vm19667_vm13 = vcmp.lt.s32.totalorder %v7533_v3, 6  ;;  %v12595_v35 = vmax.f32 %v2748_v44, %v2844_v51  ;;  %v19668_v34 = vmov 0  ;;  %vm12614_vm9 = vmand %vm2168_vm0, %vm2200_vm15 }
 0x2bd   : > { %v19669_v34 = vsel %vm12599_vm14, 4294967295, %v19668_v34  ;;  %vm12603_vm3 = vcmp.eq.s32.totalorder %v2007_v46, %v2103_v39  ;;  %vm12607_vm1 = vcmp.eq.s32.totalorder %v2008_v36, %v2104_v17  ;;  %v19678_v46 = vrot.slane %v12023_v22, 7 }
 0x2be   : > { %v2310_v7 = vsel %vm19667_vm13, %v19666_v13, %v2296_v50  ;;  %19670 = vst [vmem:[#allocation13_spill] sm:$0xff] %v19669_v34  ;;  %v2393_v50 = vrot.slane %v12163_v30, 2  ;;  %v19679_v63 = vrot.slane %v12050_v14, 7  ;;  %vm19680_vm7 = vcmp.lt.s32.totalorder %v7533_v3, 1  ;;  %v19822_v34 = vld [vmem:[#allocation163_spill] sm:$0xff] }
 0x2bf   : > { %v2360_v57 = vsub.s32 %v2310_v7, %v12037_v55  ;;  %v2715_v55 = vsel %vm12579_vm11, %v2662_v26, -inf  ;;  %v19681_v36 = vmov %v19657_v33  ;;  %v19682_v44 = vrot.slane %v12050_v14, 6 }
 0x2c0   : > { %v2663_v17 = vsel %vm19680_vm7, %v19679_v63, %v19678_v46  ;;  %vm19683_vm15 = vcmp.lt.s32.totalorder %v7533_v3, 2  ;;  %vm19684_vm13 = vcmp.ge.s32.totalorder %v2103_v39, 4294967294  ;;  %v2361_v26 = vsub.s32 %v12534_v0, %v12199_v19 }
 0x2c1   : > { %v2791_v33 = vsel %vm19683_vm15, %v19682_v44, %v19681_v36  ;;  %vm12637_vm5 = vmand %vm19684_vm13, %vm2199_vm12  ;;  %v2714_v13 = vsel %vm12525_vm10, %v2663_v17, -inf  ;;  %v2747_v7 = vmax.f32 %v12411_v32, %v2715_v55  ;;  %v2843_v46 = vsel %vm12599_vm14, %v2790_v61, -inf  ;;  %v19702_v55 = vld [vmem:[#allocation8_spill] sm:$0xff] }
 0x2c2   : > { %vm19687_vm7 = vnez %v19578_v52  ;;  %v19688_v39 = vmov 0  ;;  %vm19691_vm2 = vnez %v19587_v5  ;;  %v19692_v19 = vmov 0  ;;  %v19880_v36 = vld [vmem:[#allocation180_spill] sm:$0xff] }
 0x2c3   : > { %vm12652_vm15 = vmand %vm19687_vm7, %vm12396_vm6  ;;  %v19695_v61 = vrot.slane %v18756_v58, 2  ;;  %vm19696_vm14 = vcmp.lt.s32.totalorder %v7533_v3, 6  ;;  %v19697_v62 = vrot.slane %v12034_v6, 2  ;;  %v2746_v63 = vmax.f32 %v12023_v22, %v2714_v13 }
 0x2c4   : > { %v19689_v39 = vsel %vm12652_vm15, 4294967295, %v19688_v39  ;;  %vm12662_vm0 = vmand %vm19691_vm2, %vm12587_vm8  ;;  %v19699_v18 = vrot.slane %v12411_v32, 1  ;;  %v19700_v5 = vrot.slane %v12023_v22, 1  ;;  %vm19701_vm8 = vcmp.lt.s32.totalorder %v7533_v3, 7 }
 0x2c5   : > { %19690 = vst [vmem:[#allocation106_spill] sm:$0xff] %v19689_v39  ;;  %v19693_v19 = vsel %vm12662_vm0, 4294967295, %v19692_v19  ;;  %v2405_v52 = vsel %vm19696_vm14, %v2393_v50, %v19695_v61  ;;  %vm19698_vm6 = vmmov %vm19696_vm14  ;;  %v19703_v58 = vsub.s32 %v19702_v55, %v19604_v1  ;;  %v2842_v61 = vsel %vm12662_vm0, %v2791_v33, -inf }
 0x2c6   : > { %19694 = vst [vmem:[#allocation19_spill] sm:$0xff] %v19693_v19  ;;  %v2406_v0 = vsel %vm19698_vm6, %v19697_v62, %v2393_v50  ;;  %v2918_v17 = vsel %vm19701_vm8, %v19700_v5, %v19699_v18  ;;  %vm12693_vm14 = vmand %vm12607_vm1, %vm12614_vm9  ;;  %v19706_v50 = vmov 0  ;;  %v2457_v13 = vsub.s32 %v2405_v52, %v12163_v30  ;;  %v19838_v19 = vld [vmem:[#allocation105_spill] sm:$0xff] }
 0x2c7   : > { %vm12685_vm2 = vcmp.eq.s32.totalorder %v19703_v58, %v19675_v49  ;;  %v19707_v50 = vsel %vm12693_vm14, 4294967295, %v19706_v50  ;;  %v2456_v44 = vsub.s32 %v2406_v0, %v12034_v6  ;;  %v12701_v62 = vmax.f32 %v2747_v7, %v2843_v46  ;;  %vm19715_vm9 = vmmov %vm19701_vm8  ;;  %v19748_v0 = vld [vmem:[#allocation17_spill] sm:$0xff] }
 0x2c8   : > { %19708 = vst [vmem:[#allocation8_spill] sm:$0xff] %v19707_v50  ;;  %v19710_v18 = vsub.s32 %v10103_v37, %v18594_v20  ;;  %v19713_v16 = vrot.slane %v18677_v15, 1  ;;  %v19714_v5 = vrot.slane %v18679_v9, 1  ;;  %vm12723_vm1 = vmand %vm12603_vm3, %vm12637_vm5  ;;  %v19717_v30 = vmov 0 }
 0x2c9   : > { %19709 = vst [vmem:[#allocation249_spill] sm:$0xff] %v12701_v62  ;;  %v19718_v30 = vsel %vm12723_vm1, 4294967295, %v19717_v30  ;;  %v19720_v20 = vrot.slane %v18677_v15, 2  ;;  %v19721_v37 = vrot.slane %v18679_v9, 2  ;;  %v2874_v7 = vmax.f32 %v2746_v63, %v2842_v61  ;;  %v7282_v61 = vld [vmem:[%s17201_s4] ss:$0 sm:$0xff] }
 0x2ca   : > { %vm12707_vm7 = vcmp.eq.s32.totalorder %v19710_v18, %v10122_v2  ;;  %v12717_v6 = vsel %vm19715_vm9, %v19714_v5, %v19713_v16  ;;  %19719 = vst [vmem:[#allocation251_spill] sm:$0xff] %v19718_v30  ;;  %v2970_v46 = vsel %vm12693_vm14, %v2918_v17, -inf  ;;  %vm19723_vm8 = vnez %v19611_v4  ;;  %v19804_v5 = vld [vmem:[#allocation61_spill] sm:$0xff]  ;;  %v19856_v30 = vld [vmem:[#allocation98_spill] sm:$0xff] }
 0x2cb   : > { %19716 = vst [vmem:[#allocation250_spill] sm:$0xff] %v12717_v6  ;;  %v12733_v33 = vsel %vm19698_vm6, %v19721_v37, %v19720_v20  ;;  %vm19724_vm9 = vnez %v19607_v42  ;;  %v19725_v12 = vmov 0  ;;  %vm19728_vm5 = vnez %v19615_v40  ;;  %v19863_v62 = vld [vmem:[#allocation134_spill] sm:$0xff] }
 0x2cc   : > { %19722 = vst [vmem:[#allocation252_spill] sm:$0xff] %v12733_v33  ;;  %vm12741_vm3 = vmand %vm19724_vm9, %vm19723_vm8  ;;  %v19729_v51 = vmov 0  ;;  %vm19732_vm6 = vcmp.le.s32.totalorder %v19620_v59, 2  ;;  %vm19733_vm13 = vcmp.ge.s32.totalorder %v19620_v59, 4294967294  ;;  %vm12761_vm8 = vcmp.eq.s32.totalorder %v2360_v57, %v2456_v44 }
 0x2cd   : > { %v19726_v12 = vsel %vm12741_vm3, 4294967295, %v19725_v12  ;;  %vm12749_vm12 = vmand %vm19728_vm5, %vm12481_vm4  ;;  %vm2520_vm9 = vcmp.ge.s32.totalorder %v2456_v44, 4294967294  ;;  %v2969_v40 = vsel %vm12723_vm1, %v12308_v45, -inf  ;;  %vm19738_vm4 = vnez %v19632_v8  ;;  %v7281_v45 = vld [vmem:[%s17200_s3] ss:$0 sm:$0xff] }
 0x2ce   : > { %19727 = vst [vmem:[#allocation253_spill] sm:$0xff] %v19726_v12  ;;  %v19730_v51 = vsel %vm12749_vm12, 4294967295, %v19729_v51  ;;  %vm12757_vm11 = vmand %vm19733_vm13, %vm19732_vm6  ;;  %vm19739_vm5 = vnez %v19628_v11  ;;  %v19740_v47 = vmov 0  ;;  %v19743_v59 = vsub.s32 %v10134_v56, %v9816_v28 }
 0x2cf   : > { %19731 = vst [vmem:[#allocation254_spill] sm:$0xff] %v19730_v51  ;;  %vm12772_vm0 = vmand %vm19739_vm5, %vm19738_vm4  ;;  %v19744_v57 = vmov 0  ;;  %vm2552_vm6 = vcmp.le.s32.totalorder %v2456_v44, 2  ;;  %vm2553_vm14 = vcmp.le.s32.totalorder %v2457_v13, 2  ;;  %v3002_v52 = vmax.f32 %v2874_v7, %v2970_v46  ;;  %v19770_v46 = vld [vmem:[#allocation188_spill] sm:$0xff] }
 0x2d0   : > { %v19741_v47 = vsel %vm12772_vm0, 4294967295, %v19740_v47  ;;  %vm12780_vm13 = vcmp.eq.s32.totalorder %v19743_v59, %v10188_v29  ;;  %v785_v11 = vmul.f32 %v7281_v45, %v10957_v43  ;;  %vm12790_vm1 = vcmp.eq.s32.totalorder %v2361_v26, %v2457_v13  ;;  %vm2584_vm10 = vmand %vm2520_vm9, %vm2552_vm6  ;;  %v19772_v59 = vld [vmem:[#allocation73_spill] sm:$0xff] }
 0x2d1   : > { %19742 = vst [vmem:[#allocation255_spill] sm:$0xff] %v19741_v47  ;;  %v19745_v57 = vsel %vm12780_vm13, 4294967295, %v19744_v57  ;;  %v3001_v28 = vmax.f32 %v12324_v41, %v2969_v40  ;;  %v784_v56 = vmul.f32 %v7281_v45, %v11023_v21  ;;  %v19749_v63 = vrot.slane %v19748_v0, 7  ;;  %v19758_v41 = vld [vmem:[#allocation45_spill] sm:$0xff]  ;;  %v19771_v40 = vld [vmem:[#allocation142_spill] sm:$0xff] }
 0x2d2   : > { %v19750_v17 = vrot.slane %v18677_v15, 7  ;;  %vm19751_vm13 = vcmp.lt.s32.totalorder %v7533_v3, 1  ;;  %vm19752_vm4 = vnez %v19656_v25  ;;  %v19753_v26 = vmov 0 }
 0x2d3   : > { %vm12808_vm5 = vmand %vm19752_vm4, %vm12757_vm11  ;;  %vm19756_vm9 = vnez %v19554_v23  ;;  %vm19760_vm6 = vcmp.ge.s32.totalorder %v2457_v13, 4294967294  ;;  %v19761_v58 = vrot.slane %v12411_v32, 2  ;;  %v19762_v44 = vrot.slane %v12023_v22, 2  ;;  %v19872_v23 = vld [vmem:[#allocation129_spill] sm:$0xff] }
 0x2d4   : > { %v12802_v43 = vsel %vm19751_vm13, %v19750_v17, %v19749_v63  ;;  %v19754_v26 = vsel %vm12808_vm5, 4294967295, %v19753_v26  ;;  %v19757_v21 = vsel %vm19756_vm9, %v12235_v54, -inf  ;;  %vm2585_vm12 = vmand %vm19760_vm6, %vm2553_vm14  ;;  %vm19763_vm13 = vcmp.lt.s32.totalorder %v7533_v3, 6  ;;  %v19779_v17 = vld [vmem:[#allocation31_spill] sm:$0xff]  ;;  %v19892_v63 = vld [vmem:[#allocation18_spill] sm:$0xff] }
 0x2d5   : > { %19755 = vst [vmem:[#allocation256_spill] sm:$0xff] %v19754_v26  ;;  %v12817_v55 = vmax.f32 %v19758_v41, %v19757_v21  ;;  %v3046_v25 = vsel %vm19763_vm13, %v19762_v44, %v19761_v58  ;;  %v12829_v18 = vadd.f32 %v7282_v61, %v785_v11  ;;  %v19764_v54 = vrot.slane %v19748_v0, 6  ;;  %vm12845_vm14 = vmand %vm12761_vm8, %vm2584_vm10  ;;  %v19780_v58 = vld [vmem:[#allocation190_spill] sm:$0xff]  ;;  %v19905_v26 = vld [vmem:[#allocation120_spill] sm:$0xff] }
 0x2d6   : > { %v19765_v16 = vrot.slane %v18677_v15, 6  ;;  %vm19766_vm11 = vcmp.lt.s32.totalorder %v7533_v3, 2  ;;  %v19767_v37 = vmov 0  ;;  %v12849_v7 = vadd.f32 %v7282_v61, %v784_v56  ;;  %vm12862_vm6 = vmand %vm12790_vm1, %vm2585_vm12  ;;  %v19808_v41 = vld [vmem:[#allocation58_spill] sm:$0xff] }
 0x2d7   : > { %19759 = vst [vmem:[#allocation45_spill] sm:$0xff] %v12817_v55  ;;  %v19768_v37 = vsel %vm12845_vm14, 4294967295, %v19767_v37  ;;  %v787_v4 = vmul.f32 %v7281_v45, %v19770_v46  ;;  %v19773_v11 = vsub.s32 %v19771_v40, %v19772_v59  ;;  %v19776_v42 = vmov 0  ;;  %v12883_v40 = vld [vmem:[%s17202_s5] sm:$0x3] }
 0x2d8   : > { %v12837_v13 = vsel %vm19766_vm11, %v19765_v16, %v19764_v54  ;;  %19769 = vst [vmem:[#allocation257_spill] sm:$0xff] %v19768_v37  ;;  %v19777_v42 = vsel %vm12862_vm6, 4294967295, %v19776_v42  ;;  %v3097_v56 = vsel %vm12845_vm14, %v19779_v17, -inf  ;;  %v6326_v21 = vmul.f32 -1.442695, %v12829_v18  ;;  %19782 = vst [vmem:[#allocation73_spill] sm:$0xff] %v12883_v40 }
 0x2d9   : > { %vm12856_vm4 = vcmp.eq.s32.totalorder %v19773_v11, %v10465_v48  ;;  %19778 = vst [vmem:[#allocation188_spill] sm:$0xff] %v19777_v42  ;;  %v786_v44 = vmul.f32 %v7281_v45, %v19780_v58  ;;  %v3098_v54 = vsel %vm12862_vm6, %v3046_v25, -inf  ;;  %v12875_v16 = vmax.f32 %v3001_v28, %v3097_v56  ;;  %v19797_v17 = vld [vmem:[#allocation64_spill] sm:$0xff] }
 0x2da   : > { %v6325_v8 = vmul.f32 -1.442695, %v12849_v7  ;;  %vm19783_vm10 = vcmp.le.s32.totalorder %v19675_v49, 2  ;;  %vm19784_vm12 = vcmp.ge.s32.totalorder %v19675_v49, 4294967294  ;;  %vm19787_vm8 = vcmp.le.s32.totalorder %v10122_v2, 2  ;;  %v19799_v58 = vld [vmem:[#allocation52_spill] sm:$0xff] }
 0x2db   : > { %19781 = vst [vmem:[#allocation142_spill] sm:$0xff] %v12875_v16  ;;  %vm12889_vm1 = vmand %vm19784_vm12, %vm19783_vm10  ;;  %vm19788_vm13 = vcmp.ge.s32.totalorder %v10122_v2, 4294967294  ;;  %v12901_v25 = vmax.f32 %v3002_v52, %v3098_v54  ;;  %7133 = vpow2.f32 %v6326_v21  ;;  %v12903_v59 = vadd.f32 %v7282_v61, %v787_v4  ;;  %v3249_v49 = vld [vmem:[%s17203_s6] sm:$0x3]  ;;  %v19798_v21 = vld [vmem:[#allocation164_spill] sm:$0xff] }
 0x2dc   : > { %vm12897_vm11 = vmand %vm19788_vm13, %vm19787_vm8  ;;  %v12905_v11 = vadd.f32 %v7282_v61, %v786_v44  ;;  %vm19792_vm10 = vcmp.le.s32.totalorder %v10188_v29, 2  ;;  %vm19793_vm12 = vcmp.ge.s32.totalorder %v10188_v29, 4294967294  ;;  %7135 = vpow2.f32 %v6325_v8  ;;  %v4524_v52 = vld [vmem:[%s17204_s7] sm:$0x3]  ;;  %v19796_v61 = vld [vmem:[#allocation35_spill] sm:$0xff] }
 0x2dd   : > { %19791 = vst [vmem:[#allocation31_spill] sm:$0xff] %v12901_v25  ;;  %vm12914_vm6 = vmand %vm19793_vm12, %vm19792_vm10  ;;  %vm17821_vm8 = vcmask 1041408   ;;  %vm17799_vm13 = vcmask 15360   ;;  %v6328_v29 = vmul.f32 -1.442695, %v12903_v59  ;;  %v19800_v44 = vrot.slane %v19799_v58, 2 }
 0x2de   : > { %v6327_v56 = vmul.f32 -1.442695, %v12905_v11  ;;  %6912 = vmatprep.subr.msk.mxu1 %vm17821_vm8, %v12883_v40  ;;  %6788 = vmatprep.mubr.msk.f32.mxu1 %vm17799_vm13, %v19798_v21  ;;  %v19801_v54 = vld [vmem:[#allocation59_spill] sm:$0xff]  ;;  %vm19803_vm10 = vcmp.lt.s32.totalorder %v7533_v3, 6  ;;  %vm19805_vm12 = vnez %v19804_v5  ;;  %v19806_v4 = vld [vmem:[#allocation26_spill] sm:$0xff]  ;;  %vm12951_vm14 = vmand %vm12685_vm2, %vm12889_vm1  ;;  %v19809_v21 = vmov 0 }
 0x2df   : > { %v19802_v8 = vrot.slane %v19801_v54, 2  ;;  %v19807_v46 = vsel %vm19805_vm12, %v19806_v4, -inf  ;;  %v19810_v21 = vsel %vm12951_vm14, 4294967295, %v19809_v21  ;;  %v19815_v4 = vld [vmem:[#allocation152_spill] sm:$0xff]  ;;  %6913 = vmatpush3.msk.msra.mxu1 %vm17821_vm8, %v12883_v40  ;;  %6712 = vmatprep.subr.msk.mxu0 %vm17821_vm8, %v3249_v49  ;;  %v19818_v31 = vrot.slane %v19604_v1, 2  ;;  %v19948_v5 = vld [vmem:[#allocation149_spill] sm:$0xff] }
 0x2e0   : > { %v12945_v10 = vmax.f32 %v19808_v41, %v19807_v46  ;;  %19811 = vst [vmem:[#allocation190_spill] sm:$0xff] %v19810_v21  ;;  %v19816_v41 = vld [vmem:[#allocation2_spill] sm:$0xff]  ;;  %vm19819_vm2 = vcmp.lt.s32.totalorder %v7533_v3, 6  ;;  %v19820_v28 = vld [vmem:[#allocation20_spill] sm:$0xff]  ;;  %7137 = vpow2.f32 %v6328_v29  ;;  %vm19823_vm13 = vcmask 15360   ;;  %6812 = vmatprep.subr.msk.mxu1 %vm17821_vm8, %v4524_v52  ;;  %v19830_v29 = vld [vmem:[#allocation67_spill] sm:$0xff]  ;;  %6713 = vmatpush3.msk.msra.mxu0 %vm17821_vm8, %v3249_v49 }
 0x2e1   : > { %v12938_v20 = vsel %vm19803_vm10, %v19802_v8, %v19800_v44  ;;  %vm12959_vm10 = vmand %vm12707_vm7, %vm12897_vm11  ;;  %v19812_v44 = vmov 0  ;;  %v19817_v46 = vrot.slane %v19816_v41, 2  ;;  %vm2497_vm7 = vcmp.ge.s32.totalorder %v19820_v28, 4294967294  ;;  %v19821_v8 = vld [vmem:[#allocation167_spill] sm:$0xff]  ;;  %6789 = vmatmul.mubr.msk.f32.vlgmr.msra.gmra.mrb[0].mxu1 %vm19823_vm13, %v19822_v34  ;;  %v12998_v34 = vld [vmem:[%s17205_s8] sm:$0x3] }
 0x2e2   : > { %v19813_v44 = vsel %vm12959_vm10, 4294967295, %v19812_v44  ;;  %vm2529_vm1 = vcmp.le.s32.totalorder %v19820_v28, 2  ;;  %19829 = vst [vmem:[#allocation64_spill] sm:$0xff] %v12998_v34  ;;  %7139 = vpow2.f32 %v6327_v56  ;;  %vm19836_vm9 = vmmov %vm19823_vm13  ;;  %v19839_v2 = vrot.slane %v19838_v19, 2  ;;  %v19846_v49 = vld [vmem:[#allocation144_spill] sm:$0xff]  ;;  %6813 = vmatpush3.msk.msra.mxu1 %vm17821_vm8, %v4524_v52  ;;  %v19855_v19 = vld [vmem:[#allocation91_spill] sm:$0xff] }
 0x2e3   : > { %19814 = vst [vmem:[#allocation35_spill] sm:$0xff] %v19813_v44  ;;  %v2333_v45 = vsel %vm19819_vm2, %v19818_v31, %v19817_v46  ;;  %vm12985_vm12 = vmand %vm2497_vm7, %vm2529_vm1  ;;  %v19826_v46 = vld [vmem:[#allocation6_spill] sm:$0xff]  ;;  %vm19828_vm2 = vnez %v19730_v51  ;;  %vm19831_vm1 = vnez %v19745_v57  ;;  %v19840_v57 = vrot.slane %v19799_v58, 2  ;;  %v19862_v52 = vld [vmem:[#allocation159_spill] sm:$0xff] }
 0x2e4   : > { %v2337_v41 = vsub.s32 %v2333_v45, %v19604_v1  ;;  %v2690_v31 = vsel %vm12741_vm3, %v19826_v46, -inf  ;;  %v2818_v42 = vsel %vm19828_vm2, %v19827_v38, -inf  ;;  %vm13006_vm11 = vmand %vm19831_vm1, %vm12914_vm6  ;;  %v19832_v1 = vmov 0  ;;  %v19835_v45 = vld [vmem:[#allocation181_spill] sm:$0xff]  ;;  %v19891_v56 = vld [vmem:[#allocation62_spill] sm:$0xff] }
 0x2e5   : > { %v19833_v1 = vsel %vm13006_vm11, 4294967295, %v19832_v1  ;;  %6791 = vmatprep.mubr.msk.f32.mxu1 %vm19836_vm9, %v19835_v45  ;;  %v2722_v38 = vmax.f32 %v19799_v58, %v2690_v31  ;;  %v19837_v46 = vld [vmem:[#allocation69_spill] sm:$0xff]  ;;  %vm19841_vm6 = vcmp.lt.s32.totalorder %v7533_v3, 6  ;;  %vm19842_vm1 = vcmp.le.s32.totalorder %v10465_v48, 2  ;;  %v19847_v31 = vld [vmem:[#allocation86_spill] sm:$0xff]  ;;  %v7134_v6 = vpop.eup %7133  ;;  %v19904_v44 = vld [vmem:[#allocation132_spill] sm:$0xff] }
 0x2e6   : > { %19834 = vst [vmem:[#allocation164_spill] sm:$0xff] %v19833_v1  ;;  %v2946_v50 = vsel %vm12951_vm14, %v19837_v46, -inf  ;;  %v3070_v37 = vsel %vm19841_vm6, %v19840_v57, %v19839_v2  ;;  %vm19843_vm13 = vcmp.ge.s32.totalorder %v10465_v48, 4294967294  ;;  %v19848_v45 = vsub.s32 %v19846_v49, %v19847_v31  ;;  %v19851_v2 = vld [vmem:[#allocation55_spill] sm:$0xff]  ;;  %v19853_v57 = vld [vmem:[#allocation29_spill] sm:$0xff]  ;;  %v19859_v49 = vld [vmem:[#allocation78_spill] sm:$0xff] }
 0x2e7   : > { %vm13027_vm9 = vmand %vm19843_vm13, %vm19842_vm1  ;;  %vm2465_vm6 = vcmp.eq.s32.totalorder %v2337_v41, %v19820_v28  ;;  %vm19852_vm14 = vnez %v19851_v2  ;;  %vm19858_vm13 = vnez %v19857_v60  ;;  %v19864_v28 = vsub.s32 %v19862_v52, %v19863_v62  ;;  %v19874_v62 = vld [vmem:[#allocation119_spill] sm:$0xff]  ;;  %v19906_v60 = vld [vmem:[#allocation141_spill] sm:$0xff]  ;;  %v7136_v2 = vpop.eup %7135 }
 0x2e8   : > { %vm13035_vm7 = vcmp.eq.s32.totalorder %v19848_v45, %v19815_v4  ;;  %v19854_v48 = vsel %vm19852_vm14, %v19853_v57, -inf  ;;  %v19860_v31 = vsel %vm19858_vm13, %v19859_v49, -inf  ;;  %v19861_v45 = vld [vmem:[#allocation116_spill] sm:$0xff]  ;;  %vm13065_vm8 = vmand %vm2465_vm6, %vm12985_vm12  ;;  %v2850_v57 = vmax.f32 %v2722_v38, %v2818_v42  ;;  %v19879_v42 = vld [vmem:[#allocation21_spill] sm:$0xff] }
 0x2e9   : > { %v13046_v58 = vmax.f32 %v19855_v19, %v19854_v48  ;;  %v2985_v53 = vmax.f32 %v19861_v45, %v19860_v31  ;;  %vm13059_vm1 = vcmp.eq.s32.totalorder %v19864_v28, %v19821_v8  ;;  %v19867_v19 = vmov 0  ;;  %v19870_v48 = vld [vmem:[#allocation80_spill] sm:$0xff]  ;;  %v19871_v31 = vld [vmem:[#allocation113_spill] sm:$0xff]  ;;  %v19876_v28 = vld [vmem:[#allocation118_spill] sm:$0xff] }
 0x2ea   : > { %v19868_v19 = vsel %vm13065_vm8, 4294967295, %v19867_v19  ;;  %v3081_v49 = vsel %vm12808_vm5, %v19870_v48, -inf  ;;  %v3141_v45 = vmax.f32 %v19856_v30, %v19871_v31  ;;  %vm19873_vm13 = vnez %v19872_v23  ;;  %v19882_v48 = vld [vmem:[#allocation111_spill] sm:$0xff]  ;;  %v19911_v21 = vld [vmem:[#allocation77_spill] sm:$0xff]  ;;  %v19946_v51 = vld [vmem:[#allocation138_spill] sm:$0xff] }
 0x2eb   : > { %19869 = vst [vmem:[#allocation26_spill] sm:$0xff] %v19868_v19  ;;  %v19875_v52 = vsel %vm19873_vm13, %v19874_v62, -inf  ;;  %vm19877_vm14 = vcmask 1041408   ;;  %vm19881_vm5 = vcmask 15360   ;;  %v3074_v38 = vsel %vm13065_vm8, %v3070_v37, -inf  ;;  %v19912_v1 = vld [vmem:[#allocation87_spill] sm:$0xff] }
 0x2ec   : > { %v2986_v25 = vmax.f32 %v19876_v28, %v19875_v52  ;;  %6862 = vmatprep.subr.msk.mxu1 %vm19877_vm14, %v12998_v34  ;;  %vm19878_vm12 = vmmov %vm19877_vm14  ;;  %6792 = vmatmul.mubr.msk.f32.gmra.mrb[2].mxu1 %vm19881_vm5, %v19880_v36  ;;  %v3140_v62 = vmax.f32 %v13046_v58, %v19882_v48  ;;  %v13091_v52 = vmax.f32 %v2985_v53, %v3081_v49  ;;  %v19883_v28 = vld [vmem:[#allocation121_spill] sm:$0xff]  ;;  %v19884_v33 = vmov 0 }
 0x2ed   : > { %6762 = vmatprep.subr.msk.mxu0 %vm19878_vm12, %v12883_v40  ;;  %v3082_v27 = vsel %vm12959_vm10, %v19883_v28, -inf  ;;  %vm13100_vm14 = vmand %vm12856_vm4, %vm13027_vm9  ;;  %v19887_v36 = vld [vmem:[#allocation205_spill] sm:$0xff]  ;;  %v2978_v37 = vmax.f32 %v2850_v57, %v2946_v50  ;;  %v13107_v9 = vmax.f32 %v3141_v45, %v12945_v10  ;;  %v19893_v16 = vsub.s32 %v19891_v56, %v19892_v63  ;;  %v19989_v57 = vld [vmem:[#allocation147_spill] sm:$0xff] }
 0x2ee   : > { %v19885_v33 = vsel %vm13100_vm14, 4294967295, %v19884_v33  ;;  %6794 = vmatprep.mubr.msk.f32.mxu1 %vm19881_vm5, %v19887_v36  ;;  %v13109_v53 = vmax.f32 %v2986_v25, %v3082_v27  ;;  %v19890_v49 = vld [vmem:[#allocation117_spill] sm:$0xff]  ;;  %v19896_v36 = vld [vmem:[#allocation66_spill] sm:$0xff]  ;;  %v19902_v25 = vld [vmem:[#allocation84_spill] sm:$0xff]  ;;  %v3143_v56 = vmax.f32 %v19871_v31, %v13091_v52  ;;  %vm19907_vm5 = vnez %v19906_v60 }
 0x2ef   : > { %19886 = vst [vmem:[#allocation58_spill] sm:$0xff] %v19885_v33  ;;  %19888 = vst [vmem:[#allocation152_spill] sm:$0xff] %v13107_v9  ;;  %v3142_v28 = vmax.f32 %v19882_v48, %v19890_v49  ;;  %vm13117_vm4 = vcmp.eq.s32.totalorder %v19893_v16, %v19797_v17  ;;  %v19897_v50 = vsub.s32 %v19896_v36, %v19892_v63  ;;  %v19900_v27 = vld [vmem:[#allocation133_spill] sm:$0xff]  ;;  %v3083_v16 = vsel %vm13006_vm11, %v19905_v26, -inf  ;;  %v19908_v36 = vld [vmem:[#allocation139_spill] sm:$0xff] }
 0x2f0   : > { %19889 = vst [vmem:[#allocation2_spill] sm:$0xff] %v13109_v53  ;;  %vm19901_vm12 = vnez %v19900_v27  ;;  %v19910_v34 = vld [vmem:[#allocation137_spill] sm:$0xff]  ;;  %v951_v60 = vadd.f32 1.0, %v7136_v2  ;;  %v19916_v27 = vld [vmem:[#allocation148_spill] sm:$0xff]  ;;  %vm19917_vm6 = vcmp.le.s32.totalorder %v19797_v17, 2  ;;  %vm19918_vm2 = vcmp.ge.s32.totalorder %v19797_v17, 4294967294 }
 0x2f1   : > { %vm13125_vm9 = vcmp.eq.s32.totalorder %v19897_v50, %v19830_v29  ;;  %v19903_v45 = vsel %vm19901_vm12, %v19902_v25, -inf  ;;  %v19909_v50 = vsel %vm19907_vm5, %v19908_v36, -inf  ;;  %v952_v25 = vadd.f32 1.0, %v7134_v6  ;;  %v19913_v36 = vld [vmem:[#allocation204_spill] sm:$0xff]  ;;  %vm13163_vm10 = vmand %vm19918_vm2, %vm19917_vm6  ;;  %v19940_v33 = vld [vmem:[#allocation79_spill] sm:$0xff] }
 0x2f2   : > { %v2987_v23 = vmax.f32 %v19904_v44, %v19903_v45  ;;  %v2988_v19 = vmax.f32 %v19910_v34, %v19909_v50  ;;  %v3106_v44 = vmax.f32 %v2978_v37, %v3074_v38  ;;  %v3170_v26 = vmax.f32 %v3142_v28, %v13046_v58  ;;  %v19921_v2 = vld [vmem:[#allocation96_spill] sm:$0xff]  ;;  %v19923_v37 = vld [vmem:[#allocation225_spill] sm:$0xff]  ;;  %v19949_v9 = vld [vmem:[#allocation94_spill] sm:$0xff] }
 0x2f3   : > { %vm19914_vm5 = vcmask 15360   ;;  %v3171_v50 = vmax.f32 %v3143_v56, %v19856_v30  ;;  %v3084_v6 = vsel %vm13100_vm14, %v19916_v27, -inf  ;;  %7141 = vrcp.f32 %v952_v25  ;;  %v19957_v56 = vld [vmem:[#allocation72_spill] sm:$0xff]  ;;  %v19964_v41 = vld [vmem:[#allocation101_spill] sm:$0xff]  ;;  %vm13309_vm13 = vmand %vm13117_vm4, %vm13163_vm10 }
 0x2f4   : > { %6795 = vmatmul.mubr.msk.f32.gmra.mrb[4].mxu1 %vm19914_vm5, %v19913_v36  ;;  %v13153_v34 = vmax.f32 %v2987_v23, %v3083_v16  ;;  %v19922_v23 = vld [vmem:[#allocation123_spill] sm:$0xff]  ;;  %vm19924_vm8 = vmmov %vm19914_vm5  ;;  %v3138_v28 = vmax.f32 %v3106_v44, %v13046_v58  ;;  %v3168_v27 = vmax.f32 %v3140_v62, %v3106_v44  ;;  %v3200_v17 = vmax.f32 %v3170_v26, %v13109_v53  ;;  %v7138_v16 = vpop.eup %7137  ;;  %v19929_v36 = vld [vmem:[#allocation50_spill] sm:$0xff] }
 0x2f5   : > { %6797 = vmatprep.mubr.msk.f32.mxu1 %vm19924_vm8, %v19923_v37  ;;  %vm19925_vm2 = vcmp.le.s32.totalorder %v19815_v4, 2  ;;  %vm19926_vm6 = vcmp.ge.s32.totalorder %v19815_v4, 4294967294  ;;  %7143 = vrcp.f32 %v951_v60  ;;  %v13186_v37 = vmax.f32 %v2988_v19, %v3084_v6  ;;  %v7140_v26 = vpop.eup %7139  ;;  %v19935_v60 = vld [vmem:[#allocation122_spill] sm:$0xff] }
 0x2f6   : > { %19915 = vst [vmem:[#allocation20_spill] sm:$0xff] %v13153_v34  ;;  %vm13179_vm11 = vmand %vm19926_vm6, %vm19925_vm2  ;;  %v3201_v25 = vmax.f32 %v3171_v50, %v13153_v34  ;;  %v3144_v62 = vmax.f32 %v19890_v49, %v13109_v53  ;;  %vm19931_vm8 = vcmp.le.s32.totalorder %v19821_v8, 2  ;;  %vm19932_vm2 = vcmp.ge.s32.totalorder %v19821_v8, 4294967294 }
 0x2f7   : > { %19930 = vst [vmem:[#allocation167_spill] sm:$0xff] %v13186_v37  ;;  %vm13194_vm6 = vmand %vm19932_vm2, %vm19931_vm8  ;;  %v954_v45 = vadd.f32 1.0, %v7138_v16  ;;  %v13201_v19 = vmax.f32 %v3138_v28, %v19882_v48  ;;  %v13204_v50 = vmax.f32 %v3168_v27, %v19890_v49  ;;  %v13206_v6 = vmax.f32 %v3200_v17, %v3106_v44  ;;  %v19941_v16 = vld [vmem:[#allocation128_spill] sm:$0xff]  ;;  %v19944_v17 = vld [vmem:[#allocation151_spill] sm:$0xff] }
 0x2f8   : > { %vm19936_vm5 = vcmp.le.s32.totalorder %v19830_v29, 2  ;;  %vm19937_vm8 = vcmp.ge.s32.totalorder %v19830_v29, 4294967294  ;;  %v953_v28 = vadd.f32 1.0, %v7140_v26  ;;  %v19942_v27 = vld [vmem:[#allocation224_spill] sm:$0xff]  ;;  %vm19943_vm0 = vcmask 15360   ;;  %vm13260_vm14 = vmand %vm13059_vm1, %vm13194_vm6 }
 0x2f9   : > { %vm13212_vm2 = vmand %vm19937_vm8, %vm19936_vm5  ;;  %6798 = vmatmul.mubr.msk.f32.gmra.mrb[6].mxu1 %vm19943_vm0, %v19942_v27  ;;  %v13223_v44 = vmax.f32 %v3201_v25, %v12945_v10  ;;  %v3172_v29 = vmax.f32 %v3144_v62, %v19882_v48  ;;  %vm19945_vm5 = vnez %v19944_v17  ;;  %v19950_v26 = vmov 0  ;;  %v20056_v17 = vld [vmem:[#allocation81_spill] sm:$0xff] }
 0x2fa   : > { %v19947_v12 = vsel %vm19945_vm5, %v19946_v51, -inf  ;;  %vm13237_vm0 = vmand %vm13035_vm7, %vm13179_vm11  ;;  %v19953_v25 = vsub.s32 %v12802_v43, %v19748_v0  ;;  %7145 = vrcp.f32 %v954_v45  ;;  %vm19956_vm8 = vcmask 15360  }
 0x2fb   : > { %v2989_v40 = vmax.f32 %v19948_v5, %v19947_v12  ;;  %v19951_v26 = vsel %vm13237_vm0, 4294967295, %v19950_v26  ;;  %6800 = vmatprep.mubr.msk.f32.mxu1 %vm19956_vm8, %v12050_v14  ;;  %v19958_v43 = vmov 0  ;;  %v19961_v14 = vsub.s32 %v12837_v13, %v19748_v0  ;;  %v19972_v12 = vld [vmem:[#allocation24_spill] sm:$0xff]  ;;  %v19995_v5 = vld [vmem:[#allocation75_spill] sm:$0xff]  ;;  %v20007_v0 = vld [vmem:[#allocation82_spill] sm:$0xff] }
 0x2fc   : > { %19952 = vst [vmem:[#allocation163_spill] sm:$0xff] %v19951_v26  ;;  %vm13245_vm3 = vcmp.eq.s32.totalorder %v19953_v25, %v19929_v36  ;;  %v19959_v43 = vsel %vm13260_vm14, 4294967295, %v19958_v43  ;;  %7147 = vrcp.f32 %v953_v28  ;;  %v17863_v4 = vrot.slane %v13206_v6, 7  ;;  %v19967_v28 = vld [vmem:[#allocation107_spill] sm:$0xff]  ;;  %v19994_v25 = vld [vmem:[#allocation154_spill] sm:$0xff] }
 0x2fd   : > { %19960 = vst [vmem:[#allocation6_spill] sm:$0xff] %v19959_v43  ;;  %vm13268_vm8 = vcmp.eq.s32.totalorder %v19961_v14, %v19935_v60  ;;  %v17865_v14 = vrot.slane %v13223_v44, 7  ;;  %vm19965_vm11 = vcmp.le.s32.totalorder %v19879_v42, 2  ;;  %vm19966_vm7 = vcmp.ge.s32.totalorder %v19879_v42, 4294967294 }
 0x2fe   : > { %vm2235_vm12 = vmand %vm19966_vm7, %vm19965_vm11  ;;  %v19968_v27 = vsub.s32 %v19967_v28, %v18677_v15  ;;  %vm19971_vm6 = vcmask 15360   ;;  %v3202_v42 = vmax.f32 %v3172_v29, %v13186_v37  ;;  %vm19973_vm11 = vnez %v19972_v12  ;;  %v19983_v12 = vld [vmem:[#allocation124_spill] sm:$0xff] }
 0x2ff   : > { %6801 = vmatmul.mubr.msk.f32.gmra.mrb[8].mxu1 %vm19971_vm6, %v12023_v22  ;;  %vm13301_vm7 = vmand %vm19973_vm11, %vm2235_vm12  ;;  %v19974_v46 = vmov 0  ;;  %v19977_v22 = vmov 0  ;;  %v19980_v29 = vmov 0  ;;  %vm19987_vm10 = vcmask 15360   ;;  %v19990_v28 = vld [vmem:[#allocation160_spill] sm:$0xff] }
 0x300   : > { %vm13289_vm1 = vcmp.eq.s32.totalorder %v19968_v27, %v19922_v23  ;;  %v19975_v46 = vsel %vm13301_vm7, 4294967295, %v19974_v46  ;;  %v19978_v22 = vsel %vm13309_vm13, 4294967295, %v19977_v22  ;;  %vm13317_vm6 = vmand %vm13125_vm9, %vm13212_vm2  ;;  %v19984_v27 = vsub.s32 %v19983_v12, %v18677_v15  ;;  %6803 = vmatprep.mubr.msk.f32.mxu1 %vm19987_vm10, %v12411_v32  ;;  %v19992_v12 = vld [vmem:[#allocation155_spill] sm:$0xff] }
 0x301   : > { %19976 = vst [vmem:[#allocation65_spill] sm:$0xff] %v19975_v46  ;;  %19979 = vst [vmem:[#allocation67_spill] sm:$0xff] %v19978_v22  ;;  %v19981_v29 = vsel %vm13317_vm6, 4294967295, %v19980_v29  ;;  %vm19988_vm4 = vcmp.lt.s32.totalorder %v7533_v3, 1  ;;  %v3085_v8 = vsel %vm13237_vm0, %v19989_v57, -inf  ;;  %v3145_v15 = vmax.f32 %v13091_v52, %v13153_v34  ;;  %v20091_v34 = vld [vmem:[#allocation70_spill] sm:$0xff] }
 0x302   : > { %19982 = vst [vmem:[#allocation181_spill] sm:$0xff] %v19981_v29  ;;  %vm13325_vm12 = vcmp.eq.s32.totalorder %v19984_v27, %v19941_v16  ;;  %v3957_v55 = vsel %vm19988_vm4, %v17863_v4, %v17865_v14  ;;  %vm19991_vm9 = vnez %v19990_v28  ;;  %v19996_v13 = vsub.s32 %v19995_v5, %v7533_v3  ;;  %v20003_v4 = vld [vmem:[#allocation48_spill] sm:$0xff]  ;;  %v20006_v5 = vld [vmem:[#allocation162_spill] sm:$0xff]  ;;  %v7142_v14 = vpop.eup %7141 }
 0x303   : > { %v19993_v27 = vsel %vm19991_vm9, %v19992_v12, -inf  ;;  %v19997_v46 = vmov 0  ;;  %vm19999_vm11 = vcmp.le.s32.totalorder %v19911_v21, 2  ;;  %vm20000_vm10 = vcmp.ge.s32.totalorder %v19911_v21, 4294967294 }
 0x304   : > { %v2990_v32 = vmax.f32 %v19994_v25, %v19993_v27  ;;  %vm13351_vm2 = vcmp.eq.s32.totalorder %v19996_v13, %v19911_v21  ;;  %vm13359_vm4 = vmand %vm20000_vm10, %vm19999_vm11  ;;  %v20001_v57 = vmov 0  ;;  %vm20004_vm7 = vnez %v20003_v4 }
 0x305   : > { %v19998_v46 = vsel %vm13351_vm2, 4294967295, %v19997_v46  ;;  %v20002_v57 = vsel %vm13359_vm4, 4294967295, %v20001_v57  ;;  %v3970_v12 = vsel %vm20004_vm7, %v3957_v55, -inf  ;;  %v13366_v25 = vmax.f32 %v3202_v42, %v13046_v58 }
 0x306   : > { %v13368_v27 = vmax.f32 %v2989_v40, %v3085_v8  ;;  %v3086_v13 = vsel %vm13260_vm14, %v20006_v5, -inf  ;;  %v20008_v21 = vsub.s32 %v20007_v0, %v7533_v3  ;;  %v20009_v28 = vmov 0  ;;  %v7144_v8 = vpop.eup %7143  ;;  %v20016_v5 = vld [vmem:[#allocation88_spill] sm:$0xff] }
 0x307   : > { %vm20011_vm10 = vcmp.le.s32.totalorder %v19912_v1, 2  ;;  %vm20012_vm7 = vcmp.ge.s32.totalorder %v19912_v1, 4294967294  ;;  %v20013_v40 = vmov 0  ;;  %v13390_v58 = vmax.f32 %v13223_v44, %v3970_v12  ;;  %v20043_v12 = vld [vmem:[#allocation74_spill] sm:$0xff] }
 0x308   : > { %20005 = vst [vmem:[#allocation69_spill] sm:$0xff] %v13368_v27  ;;  %vm13377_vm11 = vcmp.eq.s32.totalorder %v20008_v21, %v19912_v1  ;;  %vm13385_vm9 = vmand %vm20012_vm7, %vm20011_vm10  ;;  %v3173_v42 = vmax.f32 %v3145_v15, %v19871_v31  ;;  %v13393_v55 = vmax.f32 %v2990_v32, %v3086_v13  ;;  %v3146_v0 = vmax.f32 %v13109_v53, %v13186_v37  ;;  %v20017_v21 = vld [vmem:[#allocation63_spill] sm:$0xff]  ;;  %v20072_v37 = vld [vmem:[#allocation68_spill] sm:$0xff] }
 0x309   : > { %v20010_v28 = vsel %vm13377_vm11, 4294967295, %v20009_v28  ;;  %v20014_v40 = vsel %vm13385_vm9, 4294967295, %v20013_v40  ;;  %20015 = vst [vmem:[#allocation144_spill] sm:$0xff] %v13390_v58  ;;  %v20018_v4 = vsub.s32 %v20016_v5, %v20017_v21  ;;  %v20019_v1 = vmov 0  ;;  %v20030_v5 = vld [vmem:[#allocation92_spill] sm:$0xff] }
 0x30a   : > { %vm20021_vm7 = vcmp.le.s32.totalorder %v19921_v2, 2  ;;  %vm20022_vm10 = vcmp.ge.s32.totalorder %v19921_v2, 4294967294  ;;  %v20023_v15 = vmov 0  ;;  %vm20025_vm5 = vcmp.le.s32.totalorder %v19922_v23, 2 }
 0x30b   : > { %vm13401_vm14 = vcmp.eq.s32.totalorder %v20018_v4, %v19921_v2  ;;  %vm13409_vm0 = vmand %vm20022_vm10, %vm20021_vm7  ;;  %vm20026_vm15 = vcmp.ge.s32.totalorder %v19922_v23, 4294967294  ;;  %v13422_v4 = vmul.f32 %v7142_v14, %v12829_v18  ;;  %v20031_v23 = vsub.s32 %v20030_v5, %v20017_v21 }
 0x30c   : > { %v20020_v1 = vsel %vm13401_vm14, 4294967295, %v20019_v1  ;;  %v20024_v15 = vsel %vm13409_vm0, 4294967295, %v20023_v15  ;;  %vm13417_vm11 = vmand %vm20026_vm15, %vm20025_vm5  ;;  %vm20029_vm14 = vcmask 15360   ;;  %v20032_v43 = vmov 0 }
 0x30d   : > { %6804 = vmatmul.mubr.msk.f32.gmra.mrb[10].mxu1 %vm20029_vm14, %v12364_v24  ;;  %vm13433_vm15 = vcmp.eq.s32.totalorder %v20031_v23, %v19964_v41  ;;  %v13438_v18 = vmul.f32 %v7144_v8, %v12849_v7  ;;  %vm20034_vm5 = vcmp.le.s32.totalorder %v19929_v36, 2  ;;  %vm20035_vm14 = vcmp.ge.s32.totalorder %v19929_v36, 4294967294  ;;  %v20038_v23 = vld [vmem:[#allocation76_spill] sm:$0xff] }
 0x30e   : > { %v20033_v43 = vsel %vm13433_vm15, 4294967295, %v20032_v43  ;;  %vm13444_vm7 = vmand %vm20035_vm14, %vm20034_vm5  ;;  %v3203_v13 = vmax.f32 %v3173_v42, %v13368_v27  ;;  %v13451_v5 = vmax.f32 %v3146_v0, %v19890_v49  ;;  %vm20039_vm5 = vcmp.le.s32.totalorder %v19935_v60, 2  ;;  %v7146_v0 = vpop.eup %7145 }
 0x30f   : > { %vm20040_vm14 = vcmp.ge.s32.totalorder %v19935_v60, 4294967294  ;;  %v20044_v26 = vsub.s32 %v20043_v12, %v20017_v21  ;;  %v20045_v7 = vmov 0  ;;  %vm20047_vm15 = vcmp.le.s32.totalorder %v19940_v33, 2  ;;  %v7148_v8 = vpop.eup %7147 }
 0x310   : > { %vm13463_vm0 = vmand %vm20040_vm14, %vm20039_vm5  ;;  %vm20048_vm9 = vcmp.ge.s32.totalorder %v19940_v33, 4294967294  ;;  %vm20051_vm5 = vcmp.le.s32.totalorder %v19941_v16, 2  ;;  %vm20052_vm14 = vcmp.ge.s32.totalorder %v19941_v16, 4294967294  ;;  %v2781_v12 = vrot.slane %v13438_v18, 6 }
 0x311   : > { %vm13471_vm10 = vcmp.eq.s32.totalorder %v20044_v26, %v19940_v33  ;;  %vm13479_vm2 = vmand %vm20048_vm9, %vm20047_vm15  ;;  %v2653_v26 = vrot.slane %v13438_v18, 7  ;;  %v2909_v36 = vrot.slane %v13438_v18, 1  ;;  %vm20055_vm9 = vcmask 15360  }
 0x312   : > { %v20046_v7 = vsel %vm13471_vm10, 4294967295, %v20045_v7  ;;  %vm13487_vm4 = vmand %vm20052_vm14, %vm20051_vm5  ;;  %6806 = vmatprep.mubr.msk.f32.mxu1 %vm20055_vm9, %v13438_v18  ;;  %v20057_v16 = vsub.s32 %v20056_v17, %v20017_v21  ;;  %v20058_v49 = vmov 0  ;;  %vm20060_vm5 = vcmp.le.s32.totalorder %v19949_v9, 2 }
 0x313   : > { %vm20061_vm14 = vcmp.ge.s32.totalorder %v19949_v9, 4294967294  ;;  %vm13517_vm9 = vmand %vm13245_vm3, %vm13444_vm7  ;;  %v20064_v33 = vmov 0  ;;  %v13522_v17 = vmul.f32 %v7146_v0, %v12903_v59  ;;  %v13533_v14 = vmax.f32 %v3203_v13, %v19856_v30 }
 0x314   : > { %vm13501_vm15 = vcmp.eq.s32.totalorder %v20057_v16, %v19949_v9  ;;  %vm13509_vm10 = vmand %vm20061_vm14, %vm20060_vm5  ;;  %v20065_v33 = vsel %vm13517_vm9, 4294967295, %v20064_v33  ;;  %v20069_v9 = vrot.slane %v13366_v25, 7  ;;  %v20070_v16 = vrot.slane %v13223_v44, 7 }
 0x315   : > { %v20059_v49 = vsel %vm13501_vm15, 4294967295, %v20058_v49  ;;  %20066 = vst [vmem:[#allocation86_spill] sm:$0xff] %v20065_v33  ;;  %20067 = vst [vmem:[#allocation29_spill] sm:$0xff] %v13522_v17  ;;  %vm20068_vm15 = vcmask 15360   ;;  %vm20071_vm5 = vcmp.lt.s32.totalorder %v7533_v3, 1  ;;  %v20073_v59 = vsub.s32 %v20072_v37, %v19892_v63 }
 0x316   : > { %6807 = vmatmul.mubr.msk.f32.gmra.mrb[12].mxu1 %vm20068_vm15, %v13422_v4  ;;  %v3956_v21 = vsel %vm20071_vm5, %v20070_v16, %v20069_v9  ;;  %v20074_v0 = vmov 0  ;;  %vm20076_vm7 = vcmp.le.s32.totalorder %v19957_v56, 2  ;;  %vm20077_vm15 = vcmp.ge.s32.totalorder %v19957_v56, 4294967294  ;;  %vm13557_vm5 = vmand %vm13268_vm8, %vm13463_vm0 }
 0x317   : > { %vm13541_vm3 = vcmp.eq.s32.totalorder %v20073_v59, %v19957_v56  ;;  %vm13549_vm14 = vmand %vm20077_vm15, %vm20076_vm7  ;;  %v20078_v9 = vmov 0  ;;  %v20080_v13 = vmov 0  ;;  %v20083_v37 = vrot.slane %v13422_v4, 7 }
 0x318   : > { %v20075_v0 = vsel %vm13541_vm3, 4294967295, %v20074_v0  ;;  %v20079_v9 = vsel %vm13549_vm14, 4294967295, %v20078_v9  ;;  %v20081_v13 = vsel %vm13557_vm5, 4294967295, %v20080_v13  ;;  %vm20084_vm3 = vcmp.lt.s32.totalorder %v7533_v3, 1 }
 0x319   : > { %20082 = vst [vmem:[#allocation91_spill] sm:$0xff] %v20081_v13  ;;  %v2659_v16 = vsel %vm20084_vm3, %v2653_v26, %v20083_v37  ;;  %v20085_v59 = vrot.slane %v12364_v24, 7  ;;  %vm20086_vm7 = vmmov %vm20084_vm3  ;;  %v20087_v51 = vrot.slane %v13422_v4, 6  ;;  %vm20088_vm15 = vcmp.lt.s32.totalorder %v7533_v3, 2 }
 0x31a   : > { %v20089_v45 = vrot.slane %v12364_v24, 6  ;;  %vm20090_vm0 = vmmov %vm20088_vm15  ;;  %v20092_v27 = vsub.s32 %v20091_v34, %v19892_v63  ;;  %vm20095_vm3 = vcmp.le.s32.totalorder %v19964_v41, 2  ;;  %v20106_v62 = vmov 0 }
 0x31b   : > { %v2660_v56 = vsel %vm20086_vm7, %v20085_v59, %v2653_v26  ;;  %v2787_v42 = vsel %vm20088_vm15, %v2781_v12, %v20087_v51  ;;  %vm20096_vm7 = vcmp.ge.s32.totalorder %v19964_v41, 4294967294  ;;  %vm13605_vm15 = vmand %vm13289_vm1, %vm13417_vm11  ;;  %v20099_v41 = vmov 0 }
 0x31c   : > { %v2788_v58 = vsel %vm20090_vm0, %v20089_v45, %v2781_v12  ;;  %vm13581_vm8 = vcmp.eq.s32.totalorder %v20092_v27, %v20038_v23  ;;  %vm13589_vm14 = vmand %vm20096_vm7, %vm20095_vm3  ;;  %v2717_v51 = vsel %vm13517_vm9, %v2660_v56, -inf  ;;  %v2718_v12 = vsel %vm13309_vm13, %v2659_v16, -inf }
 0x31d   : > { %v2845_v34 = vsel %vm13557_vm5, %v2788_v58, -inf  ;;  %v2846_v27 = vsel %vm13317_vm6, %v2787_v42, -inf  ;;  %v20100_v41 = vsel %vm13605_vm15, 4294967295, %v20099_v41  ;;  %v2749_v59 = vmax.f32 %v13438_v18, %v2717_v51  ;;  %vm13625_vm1 = vmand %vm13325_vm12, %vm13487_vm4 }
 0x31e   : > { %20101 = vst [vmem:[#allocation98_spill] sm:$0xff] %v20100_v41  ;;  %v2750_v56 = vmax.f32 %v13422_v4, %v2718_v12  ;;  %v20102_v16 = vrot.slane %v13422_v4, 1  ;;  %vm20103_vm0 = vcmp.lt.s32.totalorder %v7533_v3, 7  ;;  %v20104_v42 = vrot.slane %v12364_v24, 1 }
 0x31f   : > { %vm20105_vm3 = vmmov %vm20103_vm0  ;;  %v20107_v62 = vsel %vm13625_vm1, 4294967295, %v20106_v62  ;;  %v20109_v51 = vrot.slane %v13438_v18, 2  ;;  %v20110_v12 = vrot.slane %v12364_v24, 2  ;;  %vm20111_vm11 = vcmp.lt.s32.totalorder %v7533_v3, 6 }
 0x320   : > { %v13615_v58 = vsel %vm20103_vm0, %v2909_v36, %v20102_v16  ;;  %v2916_v32 = vsel %vm20105_vm3, %v20104_v42, %v2909_v36  ;;  %20108 = vst [vmem:[#allocation78_spill] sm:$0xff] %v20107_v62  ;;  %v2656_v36 = vrot.slane %v13522_v17, 7  ;;  %v2784_v60 = vrot.slane %v13522_v17, 6 }
 0x321   : > { %v2972_v45 = vsel %vm13605_vm15, %v2916_v32, -inf  ;;  %v3044_v16 = vsel %vm20111_vm11, %v20110_v12, %v20109_v51  ;;  %v13639_v42 = vmax.f32 %v2749_v59, %v2845_v34  ;;  %v2878_v38 = vmax.f32 %v2750_v56, %v2846_v27 }
 0x322   : > { %v3004_v29 = vmax.f32 %v12595_v35, %v2972_v45  ;;  %v3100_v22 = vsel %vm13625_vm1, %v3044_v16, -inf  ;;  %vm20113_vm12 = vnez %v20002_v57  ;;  %vm20114_vm4 = vnez %v19998_v46 }
 0x323   : > { %20112 = vst [vmem:[#allocation116_spill] sm:$0xff] %v13639_v42  ;;  %vm13648_vm7 = vmand %vm20114_vm4, %vm20113_vm12  ;;  %v20115_v24 = vmov 0  ;;  %vm20118_vm0 = vnez %v20014_v40  ;;  %vm20119_vm3 = vnez %v20010_v28  ;;  %v20120_v34 = vmov 0 }
 0x324   : > { %v20116_v24 = vsel %vm13648_vm7, 4294967295, %v20115_v24  ;;  %vm13656_vm11 = vmand %vm20119_vm3, %vm20118_vm0  ;;  %v20123_v35 = vrot.slane %v19801_v54, 7  ;;  %vm20124_vm6 = vcmp.lt.s32.totalorder %v7533_v3, 1  ;;  %v20125_v57 = vrot.slane %v19801_v54, 6 }
 0x325   : > { %20117 = vst [vmem:[#allocation159_spill] sm:$0xff] %v20116_v24  ;;  %v20121_v34 = vsel %vm13656_vm11, 4294967295, %v20120_v34  ;;  %vm20126_vm12 = vcmp.lt.s32.totalorder %v7533_v3, 2  ;;  %v17903_v59 = vrot.slane %v13522_v17, 1  ;;  %v17901_v40 = vrot.slane %v13522_v17, 2  ;;  %v20247_v24 = vld [vmem:[#allocation42_spill] sm:$0xff] }
 0x326   : > { %20122 = vst [vmem:[#allocation134_spill] sm:$0xff] %v20121_v34  ;;  %v2688_v27 = vsel %vm20124_vm6, %v2656_v36, %v20123_v35  ;;  %v2816_v46 = vsel %vm20126_vm12, %v2784_v60, %v20125_v57  ;;  %vm20127_vm4 = vnez %v20024_v15  ;;  %vm20128_vm0 = vnez %v20020_v1 }
 0x327   : > { %vm13674_vm3 = vmand %vm20128_vm0, %vm20127_vm4  ;;  %v20129_v28 = vmov 0  ;;  %v13678_v56 = vmax.f32 %v3004_v29, %v3100_v22  ;;  %v2689_v32 = vsel %vm13648_vm7, %v2688_v27, -inf  ;;  %v2817_v45 = vsel %vm13656_vm11, %v2816_v46, -inf }
 0x328   : > { %v20130_v28 = vsel %vm13674_vm3, 4294967295, %v20129_v28  ;;  %v13685_v51 = vmul.f32 %v7148_v8, %v12905_v11  ;;  %vm20133_vm6 = vnez %v20033_v43  ;;  %v20134_v1 = vmov 0  ;;  %v20141_v8 = vld [vmem:[#allocation30_spill] sm:$0xff] }
 0x329   : > { %20131 = vst [vmem:[#allocation80_spill] sm:$0xff] %v20130_v28  ;;  %vm13691_vm12 = vmand %vm20133_vm6, %vm13589_vm14  ;;  %v2721_v22 = vmax.f32 %v19801_v54, %v2689_v32  ;;  %v20137_v29 = vrot.slane %v19801_v54, 1  ;;  %vm20138_vm4 = vcmp.lt.s32.totalorder %v7533_v3, 7  ;;  %v20139_v11 = vrot.slane %v19801_v54, 2 }
 0x32a   : > { %20132 = vst [vmem:[#allocation113_spill] sm:$0xff] %v13685_v51  ;;  %v20135_v1 = vsel %vm13691_vm12, 4294967295, %v20134_v1  ;;  %vm20140_vm0 = vcmp.lt.s32.totalorder %v7533_v3, 6  ;;  %vm20142_vm14 = vnez %v20141_v8  ;;  %vm20143_vm6 = vcmp.le.s32.totalorder %v20038_v23, 2 }
 0x32b   : > { %20136 = vst [vmem:[#allocation119_spill] sm:$0xff] %v20135_v1  ;;  %v2944_v15 = vsel %vm20138_vm4, %v17903_v59, %v20137_v29  ;;  %v3072_v43 = vsel %vm20140_vm0, %v17901_v40, %v20139_v11  ;;  %v3971_v26 = vsel %vm20142_vm14, %v3956_v21, -inf  ;;  %vm20144_vm13 = vcmp.ge.s32.totalorder %v20038_v23, 4294967294 }
 0x32c   : > { %vm13714_vm5 = vmand %vm20144_vm13, %vm20143_vm6  ;;  %v2976_v16 = vsel %vm13674_vm3, %v2944_v15, -inf  ;;  %v3104_v35 = vsel %vm13691_vm12, %v3072_v43, -inf  ;;  %v2655_v27 = vrot.slane %v13685_v51, 7  ;;  %v2783_v57 = vrot.slane %v13685_v51, 6 }
 0x32d   : > { %vm20147_vm4 = vcmask 15360   ;;  %vm20148_vm13 = vnez %v20046_v7  ;;  %v20149_v21 = vmov 0  ;;  %v17902_v23 = vrot.slane %v13685_v51, 1 }
 0x32e   : > { %6809 = vmatprep.mubr.msk.f32.mxu1 %vm20147_vm4, %v13685_v51  ;;  %vm13730_vm0 = vmand %vm20148_vm13, %vm13479_vm2  ;;  %v17904_v46 = vrot.slane %v13685_v51, 2  ;;  %v2849_v32 = vmax.f32 %v2721_v22, %v2817_v45  ;;  %v13739_v29 = vmax.f32 %v13366_v25, %v3971_v26  ;;  %v20154_v2 = vmov 0 }
 0x32f   : > { %v20150_v21 = vsel %vm13730_vm0, 4294967295, %v20149_v21  ;;  %vm20152_vm6 = vmmov %vm20147_vm4  ;;  %vm20153_vm4 = vnez %v20059_v49  ;;  %vm20157_vm2 = vcmp.lt.s32.totalorder %v7533_v3, 1  ;;  %v20158_v15 = vrot.slane %v13422_v4, 7 }
 0x330   : > { %20151 = vst [vmem:[#allocation118_spill] sm:$0xff] %v20150_v21  ;;  %6810 = vmatmul.mubr.msk.f32.gmra.mrb[14].mxu1 %vm20152_vm6, %v13522_v17  ;;  %vm13745_vm14 = vmand %vm20153_vm4, %vm13509_vm10  ;;  %v2657_v7 = vsel %vm20157_vm2, %v2655_v27, %v2656_v36  ;;  %vm20160_vm6 = vcmp.lt.s32.totalorder %v7533_v3, 2  ;;  %v20161_v22 = vrot.slane %v13422_v4, 6  ;;  %vm20163_vm10 = vnez %v20079_v9  ;;  %v20168_v36 = vld [vmem:[#allocation28_spill] sm:$0xff] }
 0x331   : > { %v20155_v2 = vsel %vm13745_vm14, 4294967295, %v20154_v2  ;;  %vm20159_vm13 = vmmov %vm20157_vm2  ;;  %v2785_v45 = vsel %vm20160_vm6, %v2783_v57, %v2784_v60  ;;  %vm20164_vm4 = vnez %v20075_v0  ;;  %v20165_v49 = vmov 0  ;;  %v20170_v60 = vld [vmem:[#allocation32_spill] sm:$0xff] }
 0x332   : > { %20156 = vst [vmem:[#allocation21_spill] sm:$0xff] %v20155_v2  ;;  %v2658_v11 = vsel %vm20159_vm13, %v20158_v15, %v2655_v27  ;;  %vm20162_vm12 = vmmov %vm20160_vm6  ;;  %vm20169_vm2 = vnez %v20168_v36  ;;  %v2720_v26 = vsel %vm13730_vm0, %v2657_v7, -inf  ;;  %vm20171_vm13 = vnez %v20170_v60  ;;  %v20310_v36 = vld [vmem:[#allocation16_spill] sm:$0xff] }
 0x333   : > { %v2786_v53 = vsel %vm20162_vm12, %v20161_v22, %v2783_v57  ;;  %vm13765_vm3 = vmand %vm20164_vm4, %vm20163_vm10  ;;  %v2719_v43 = vsel %vm20169_vm2, %v2658_v11, -inf  ;;  %v2848_v57 = vsel %vm13745_vm14, %v2785_v45, -inf  ;;  %v20172_v0 = vmov 0 }
 0x334   : > { %v20166_v49 = vsel %vm13765_vm3, 4294967295, %v20165_v49  ;;  %v2847_v27 = vsel %vm20171_vm13, %v2786_v53, -inf  ;;  %vm13781_vm12 = vmand %vm13581_vm8, %vm13714_vm5  ;;  %v2751_v9 = vmax.f32 %v13685_v51, %v2719_v43  ;;  %v2752_v15 = vmax.f32 %v13522_v17, %v2720_v26  ;;  %v20492_v17 = vld [vmem:[#allocation129_spill] sm:$0xff] }
 0x335   : > { %20167 = vst [vmem:[#allocation180_spill] sm:$0xff] %v20166_v49  ;;  %v20173_v0 = vsel %vm13781_vm12, 4294967295, %v20172_v0  ;;  %v20175_v7 = vrot.slane %v13422_v4, 1  ;;  %vm20176_vm6 = vcmp.lt.s32.totalorder %v7533_v3, 7  ;;  %v20177_v12 = vrot.slane %v13422_v4, 2  ;;  %v20312_v49 = vld [vmem:[#allocation43_spill] sm:$0xff] }
 0x336   : > { %20174 = vst [vmem:[#allocation111_spill] sm:$0xff] %v20173_v0  ;;  %vm20178_vm5 = vcmp.lt.s32.totalorder %v7533_v3, 6  ;;  %vm20179_vm8 = vnez %v19689_v39  ;;  %v3908_v26 = vrot.slane %v13533_v14, 7  ;;  %v2880_v40 = vmax.f32 %v2752_v15, %v2848_v57 }
 0x337   : > { %v2914_v11 = vsel %vm20176_vm6, %v20175_v7, %v17902_v23  ;;  %v3042_v37 = vsel %vm20178_vm5, %v20177_v12, %v17904_v46  ;;  %v20180_v53 = vsel %vm20179_vm8, %v19796_v61, -inf  ;;  %v13808_v7 = vmax.f32 %v2751_v9, %v2847_v27 }
 0x338   : > { %v2974_v45 = vsel %vm13765_vm3, %v2914_v11, -inf  ;;  %v3102_v22 = vsel %vm13781_vm12, %v3042_v37, -inf  ;;  %v2977_v43 = vmax.f32 %v2849_v32, %v20180_v53  ;;  %vm20182_vm10 = vnez %v19741_v47 }
 0x339   : > { %20181 = vst [vmem:[#allocation121_spill] sm:$0xff] %v13808_v7  ;;  %v3006_v23 = vmax.f32 %v2878_v38, %v2974_v45  ;;  %v20183_v11 = vsel %vm20182_vm10, %v12938_v20, -inf  ;;  %v20184_v37 = vrot.slane %v13366_v25, 7  ;;  %vm20185_vm4 = vcmp.lt.s32.totalorder %v7533_v3, 1  ;;  %v20187_v38 = vld [vmem:[#allocation54_spill] sm:$0xff] }
 0x33a   : > { %v3105_v12 = vmax.f32 %v2977_v43, %v20183_v11  ;;  %v3008_v27 = vmax.f32 %v2880_v40, %v2976_v16  ;;  %vm20188_vm6 = vnez %v20187_v38  ;;  %v20189_v20 = vmax.f32 %v13451_v5, %v13393_v55  ;;  %v20190_v45 = vld [vmem:[#allocation170_spill] sm:$0xff] }
 0x33b   : > { %v3955_v46 = vsel %vm20185_vm4, %v20184_v37, %v3908_v26  ;;  %v13821_v9 = vmax.f32 %v3006_v23, %v3102_v22  ;;  %v20191_v40 = vmax.f32 %v12945_v10, %v19856_v30  ;;  %v20192_v23 = vld [vmem:[#allocation152_spill] sm:$0xff]  ;;  %v20204_v59 = vrot.slane %v13204_v50, 7  ;;  %v20490_v7 = vld [vmem:[#allocation114_spill] sm:$0xff] }
 0x33c   : > { %v3972_v57 = vsel %vm20188_vm6, %v3955_v46, -inf  ;;  %v13829_v15 = vmax.f32 %v20189_v20, %v19882_v48  ;;  %v3137_v53 = vmax.f32 %v3105_v12, %v12945_v10  ;;  %v20193_v22 = vmax.f32 %v20192_v23, %v13091_v52 }
 0x33d   : > { %20186 = vst [vmem:[#allocation205_spill] sm:$0xff] %v13821_v9  ;;  %v3167_v16 = vmax.f32 %v20191_v40, %v3105_v12  ;;  %v13843_v43 = vmax.f32 %v13533_v14, %v3972_v57  ;;  %v13845_v48 = vmax.f32 %v3008_v27, %v3104_v35  ;;  %v20196_v57 = vld [vmem:[#allocation166_spill] sm:$0xff]  ;;  %vm20201_vm6 = vcmask 15360   ;;  %v20214_v40 = vld [vmem:[#allocation73_spill] sm:$0xff] }
 0x33e   : > { %v13840_v46 = vmax.f32 %v20193_v22, %v3105_v12  ;;  %v17907_v5 = vrot.slane %v13829_v15, 7  ;;  %v13851_v20 = vmax.f32 %v3137_v53, %v19856_v30  ;;  %v20197_v35 = vld [vmem:[#allocation146_spill] sm:$0xff]  ;;  %vm20203_vm14 = vmmov %vm20201_vm6  ;;  %v20205_v32 = vrot.slane %v13206_v6, 7  ;;  %v20212_v30 = vld [vmem:[#allocation27_spill] sm:$0xff] }
 0x33f   : > { %20194 = vst [vmem:[#allocation62_spill] sm:$0xff] %v13845_v48  ;;  %v13854_v10 = vmax.f32 %v3167_v16, %v19871_v31  ;;  %v20198_v27 = vsub.s32 %v20196_v57, %v20197_v35  ;;  %v3166_v22 = vmax.f32 %v13821_v9, %v13845_v48  ;;  %vm20209_vm13 = vmmov %vm20203_vm14  ;;  %v20259_v34 = vrot.slane %v13201_v19, 2  ;;  %v20494_v9 = vld [vmem:[#allocation223_spill] sm:$0xff] }
 0x340   : > { %20195 = vst [vmem:[#allocation18_spill] sm:$0xff] %v13851_v20  ;;  %v3904_v12 = vrot.slane %v13840_v46, 7  ;;  %v3954_v16 = vsel %vm20185_vm4, %v3908_v26, %v17907_v5  ;;  %6714 = vmatprep.mubr.msk.f32.mxu0 %vm20201_vm6, %v13851_v20  ;;  %vm20206_vm6 = vmmov %vm20185_vm4  ;;  %v20207_v5 = vld [vmem:[#allocation110_spill] sm:$0xff]  ;;  %v20224_v38 = vrot.slane %v13851_v20, 7  ;;  %v20282_v21 = vrot.slane %v13201_v19, 7 }
 0x341   : > { %vm13862_vm5 = vcmp.eq.s32.totalorder %v20198_v27, %v20190_v45  ;;  %v17910_v35 = vrot.slane %v13854_v10, 7  ;;  %v13881_v37 = vmax.f32 %v3166_v22, %v13678_v56  ;;  %6715 = vmatmul.mubr.msk.f32.vlgmr.msra.gmra.mrb[32].mxu0 %vm20203_vm14, %v13201_v19  ;;  %vm20208_vm0 = vnez %v20207_v5  ;;  %v20210_v22 = vld [vmem:[#allocation14_spill] sm:$0xff] }
 0x342   : > { %v3959_v26 = vsel %vm20185_vm4, %v20204_v59, %v3904_v12  ;;  %v3958_v61 = vsel %vm20206_vm6, %v3904_v12, %v20205_v32  ;;  %v3973_v53 = vsel %vm20208_vm0, %v3954_v16, -inf  ;;  %6717 = vmatprep.mubr.msk.f32.mxu0 %vm20209_vm13, %v13854_v10  ;;  %vm20211_vm2 = vnez %v20210_v22  ;;  %vm20217_vm13 = vmmov %vm20206_vm6  ;;  %v20234_v22 = vld [vmem:[#allocation39_spill] sm:$0xff] }
 0x343   : > { %20202 = vst [vmem:[#allocation66_spill] sm:$0xff] %v13881_v37  ;;  %v3968_v11 = vsel %vm20211_vm2, %v3959_v26, -inf  ;;  %vm20213_vm14 = vnez %v20212_v30  ;;  %v13902_v57 = vmax.f32 %v13829_v15, %v3973_v53  ;;  %vm20215_vm4 = vcmask 1041408   ;;  %v20218_v53 = vld [vmem:[#allocation3_spill] sm:$0xff] }
 0x344   : > { %v3969_v27 = vsel %vm20213_vm14, %v3958_v61, -inf  ;;  %6763 = vmatpush3.msk.msra.mxu0 %vm20215_vm4, %v20214_v40  ;;  %v4000_v32 = vmax.f32 %v13840_v46, %v3968_v11  ;;  %v20216_v26 = vrot.slane %v13201_v19, 7  ;;  %vm20219_vm6 = vnez %v20218_v53 }
 0x345   : > { %v13909_v12 = vmax.f32 %v13206_v6, %v3969_v27  ;;  %v20220_v11 = vrot.slane %v13840_v46, 6  ;;  %v20221_v27 = vrot.slane %v13204_v50, 6  ;;  %vm20222_vm4 = vcmp.lt.s32.totalorder %v7533_v3, 2 }
 0x346   : > { %v3961_v61 = vsel %vm20217_vm13, %v20216_v26, %v17910_v35  ;;  %vm20223_vm0 = vcmask 15360   ;;  %v20225_v26 = vrot.slane %v13881_v37, 7  ;;  %v20226_v40 = vrot.slane %v13854_v10, 6  ;;  %vm20228_vm14 = vmmov %vm20222_vm4 }
 0x347   : > { %v3966_v59 = vsel %vm20219_vm6, %v3961_v61, -inf  ;;  %v4087_v16 = vsel %vm20222_vm4, %v20221_v27, %v20220_v11  ;;  %6718 = vmatmul.mubr.msk.f32.gmra.mrb[34].mxu0 %vm20223_vm0, %v13204_v50  ;;  %v20227_v5 = vrot.slane %v13201_v19, 6  ;;  %v20229_v11 = vld [vmem:[#allocation40_spill] sm:$0xff]  ;;  %vm20235_vm2 = vnez %v20234_v22 }
 0x348   : > { %v3963_v61 = vsel %vm20217_vm13, %v20225_v26, %v20224_v38  ;;  %v3998_v35 = vmax.f32 %v13854_v10, %v3966_v59  ;;  %vm20230_vm4 = vnez %v20229_v11  ;;  %6720 = vmatprep.mubr.msk.f32.mxu0 %vm20223_vm0, %v13840_v46  ;;  %v20231_v38 = vrot.slane %v13851_v20, 6  ;;  %vm20233_vm13 = vmmov %vm20228_vm14  ;;  %v20268_v22 = vld [vmem:[#allocation168_spill] sm:$0xff] }
 0x349   : > { %v4089_v8 = vsel %vm20228_vm14, %v20227_v5, %v20226_v40  ;;  %v4096_v27 = vsel %vm20230_vm4, %v4087_v16, -inf  ;;  %v3964_v30 = vsel %vm13648_vm7, %v3963_v61, -inf  ;;  %v20232_v59 = vrot.slane %v13881_v37, 6 }
 0x34a   : > { %v4094_v53 = vsel %vm20235_vm2, %v4089_v8, -inf  ;;  %v4128_v5 = vmax.f32 %v4000_v32, %v4096_v27  ;;  %vm20236_vm14 = vcmp.le.s32.totalorder %v20190_v45, 2  ;;  %vm20237_vm4 = vcmp.ge.s32.totalorder %v20190_v45, 4294967294 }
 0x34b   : > { %v4091_v26 = vsel %vm20233_vm13, %v20232_v59, %v20231_v38  ;;  %vm2574_vm6 = vmand %vm20237_vm4, %vm20236_vm14  ;;  %v3996_v16 = vmax.f32 %v13851_v20, %v3964_v30  ;;  %v4126_v61 = vmax.f32 %v3998_v35, %v4094_v53  ;;  %v20238_v38 = vrot.slane %v13206_v6, 1  ;;  %v20245_v59 = vld [vmem:[#allocation34_spill] sm:$0xff] }
 0x34c   : > { %v4092_v40 = vsel %vm13656_vm11, %v4091_v26, -inf  ;;  %v20239_v8 = vrot.slane %v13840_v46, 1  ;;  %vm20240_vm0 = vcmp.lt.s32.totalorder %v7533_v3, 7  ;;  %v20241_v45 = vrot.slane %v13204_v50, 1 }
 0x34d   : > { %v20242_v27 = vrot.slane %v13854_v10, 1  ;;  %vm20243_vm4 = vmmov %vm20240_vm0  ;;  %vm20244_vm13 = vcmask 15360   ;;  %v4124_v53 = vmax.f32 %v3996_v16, %v4092_v40  ;;  %vm20246_vm14 = vnez %v20245_v59 }
 0x34e   : > { %v4214_v32 = vsel %vm20240_vm0, %v20239_v8, %v20238_v38  ;;  %6721 = vmatmul.mubr.msk.f32.gmra.mrb[36].mxu0 %vm20244_vm13, %v13206_v6  ;;  %vm20248_vm11 = vnez %v20247_v24  ;;  %vm13988_vm0 = vmand %vm13862_vm5, %vm2574_vm6  ;;  %v20249_v8 = vmov 0  ;;  %v20254_v16 = vrot.slane %v13851_v20, 1 }
 0x34f   : > { %v4216_v30 = vsel %vm20243_vm4, %v20242_v27, %v20241_v45  ;;  %v4224_v11 = vsel %vm20248_vm11, %v4214_v32, -inf  ;;  %v20250_v8 = vsel %vm13988_vm0, 4294967295, %v20249_v8  ;;  %vm20252_vm4 = vmmov %vm20244_vm13  ;;  %v20253_v45 = vrot.slane %v13201_v19, 1 }
 0x350   : > { %v4222_v26 = vsel %vm20246_vm14, %v4216_v30, -inf  ;;  %20251 = vst [vmem:[#allocation84_spill] sm:$0xff] %v20250_v8  ;;  %6723 = vmatprep.mubr.msk.f32.mxu0 %vm20252_vm4, %v13223_v44  ;;  %vm20255_vm13 = vcmp.lt.s32.totalorder %v7533_v3, 7  ;;  %v4256_v32 = vmax.f32 %v4128_v5, %v4224_v11  ;;  %v4287_v35 = vrot.slane %v13204_v50, 2  ;;  %v20266_v30 = vld [vmem:[#allocation99_spill] sm:$0xff] }
 0x351   : > { %v4218_v40 = vsel %vm20255_vm13, %v20254_v16, %v20253_v45  ;;  %v4254_v27 = vmax.f32 %v4126_v61, %v4222_v26  ;;  %v20256_v38 = vrot.slane %v13206_v6, 2  ;;  %v20257_v24 = vrot.slane %v13840_v46, 2  ;;  %v20262_v26 = vld [vmem:[#allocation38_spill] sm:$0xff] }
 0x352   : > { %v4220_v23 = vsel %vm20179_vm8, %v4218_v40, -inf  ;;  %vm20258_vm5 = vcmp.lt.s32.totalorder %v7533_v3, 6  ;;  %v20260_v45 = vrot.slane %v13851_v20, 2  ;;  %vm20263_vm4 = vnez %v20262_v26  ;;  %v20264_v40 = vld [vmem:[#allocation169_spill] sm:$0xff] }
 0x353   : > { %v4342_v59 = vsel %vm20258_vm5, %v20257_v24, %v20256_v38  ;;  %vm20261_vm6 = vmmov %vm20258_vm5  ;;  %v4252_v5 = vmax.f32 %v4124_v53, %v4220_v23  ;;  %vm20265_vm13 = vnez %v20264_v40  ;;  %v20269_v38 = vld [vmem:[#allocation182_spill] sm:$0xff]  ;;  %vm20270_vm8 = vcmask 15360   ;;  %v20277_v26 = vld [vmem:[#allocation61_spill] sm:$0xff] }
 0x354   : > { %v4346_v11 = vsel %vm20261_vm6, %v20260_v45, %v20259_v34  ;;  %v4352_v16 = vsel %vm20263_vm4, %v4342_v59, -inf  ;;  %v20267_v39 = vsel %vm20265_vm13, %v20266_v30, -inf  ;;  %6724 = vmatmul.mubr.msk.f32.gmra.mrb[38].mxu0 %vm20270_vm8, %v13366_v25  ;;  %v20271_v34 = vrot.slane %v13854_v10, 2  ;;  %vm20272_vm6 = vmmov %vm20258_vm5  ;;  %v20273_v59 = vld [vmem:[#allocation156_spill] sm:$0xff]  ;;  %v20274_v45 = vld [vmem:[#allocation69_spill] sm:$0xff] }
 0x355   : > { %v4348_v61 = vsel %vm20182_vm10, %v4346_v11, -inf  ;;  %v2991_v24 = vmax.f32 %v20268_v22, %v20267_v39  ;;  %v14033_v23 = vmax.f32 %v4256_v32, %v4352_v16  ;;  %v3087_v30 = vsel %vm13988_vm0, %v20273_v59, -inf  ;;  %v20275_v39 = vld [vmem:[#allocation20_spill] sm:$0xff]  ;;  %v20276_v11 = vld [vmem:[#allocation189_spill] sm:$0xff]  ;;  %6726 = vmatprep.mubr.msk.f32.mxu0 %vm20270_vm8, %v13533_v14 }
 0x356   : > { %v4344_v53 = vsel %vm20272_vm6, %v20271_v34, %v4287_v35  ;;  %v3147_v22 = vmax.f32 %v20275_v39, %v20274_v45  ;;  %vm20278_vm4 = vnez %v20277_v26  ;;  %v14046_v34 = vmax.f32 %v4252_v5, %v4348_v61  ;;  %v20285_v61 = vld [vmem:[#allocation22_spill] sm:$0xff] }
 0x357   : > { %v4350_v47 = vsel %vm20278_vm4, %v4344_v53, -inf  ;;  %v14048_v32 = vmax.f32 %v2991_v24, %v3087_v30  ;;  %v20279_v16 = vrot.slane %v13204_v50, 7  ;;  %v20280_v59 = vrot.slane %v13854_v10, 7  ;;  %v20287_v53 = vld [vmem:[#allocation175_spill] sm:$0xff]  ;;  %v20288_v30 = vld [vmem:[#allocation153_spill] sm:$0xff] }
 0x358   : > { %vm20281_vm6 = vcmp.lt.s32.totalorder %v7533_v3, 1  ;;  %v14056_v28 = vmax.f32 %v4254_v27, %v4350_v47  ;;  %v3175_v2 = vmax.f32 %v3147_v22, %v13091_v52  ;;  %v20283_v26 = vrot.slane %v13851_v20, 7  ;;  %v20292_v47 = vld [vmem:[#allocation253_spill] sm:$0xff] }
 0x359   : > { %v3960_v1 = vsel %vm20281_vm6, %v20280_v59, %v20279_v16  ;;  %vm20284_vm8 = vmmov %vm20281_vm6  ;;  %vm20286_vm5 = vnez %v20285_v61  ;;  %v20289_v60 = vsub.s32 %v20287_v53, %v20288_v30  ;;  %vm20293_vm6 = vnez %v20292_v47  ;;  %v20300_v30 = vld [vmem:[#allocation184_spill] sm:$0xff]  ;;  %v20301_v61 = vld [vmem:[#allocation161_spill] sm:$0xff] }
 0x35a   : > { %v3962_v5 = vsel %vm20284_vm8, %v20283_v26, %v20282_v21  ;;  %v3967_v24 = vsel %vm20286_vm5, %v3960_v1, -inf  ;;  %v20294_v59 = vrot.slane %v13206_v6, 6  ;;  %v20295_v21 = vrot.slane %v13840_v46, 6 }
 0x35b   : > { %vm14071_vm11 = vcmp.eq.s32.totalorder %v20289_v60, %v20269_v38  ;;  %v3965_v27 = vsel %vm20293_vm6, %v3962_v5, -inf  ;;  %v3999_v22 = vmax.f32 %v13204_v50, %v3967_v24  ;;  %vm20296_vm8 = vcmp.lt.s32.totalorder %v7533_v3, 2  ;;  %v20385_v24 = vld [vmem:[#allocation176_spill] sm:$0xff] }
 0x35c   : > { %v4086_v1 = vsel %vm20296_vm8, %v20295_v21, %v20294_v59  ;;  %v20297_v26 = vrot.slane %v13204_v50, 6  ;;  %v20298_v53 = vrot.slane %v13854_v10, 6  ;;  %vm20299_vm5 = vmmov %vm20296_vm8  ;;  %v20302_v5 = vsub.s32 %v20300_v30, %v20301_v61  ;;  %v20308_v30 = vld [vmem:[#allocation254_spill] sm:$0xff] }
 0x35d   : > { %vm20305_vm6 = vcmask 15360   ;;  %v4412_v59 = vmax.f32 %v14046_v34, %v14056_v28  ;;  %v3205_v21 = vmax.f32 %v3175_v2, %v14048_v32  ;;  %v3997_v47 = vmax.f32 %v13201_v19, %v3965_v27 }
 0x35e   : > { %v4088_v60 = vsel %vm20299_vm5, %v20298_v53, %v20297_v26  ;;  %vm14094_vm4 = vcmp.eq.s32.totalorder %v20302_v5, %v20276_v11  ;;  %6727 = vmatmul.mubr.msk.f32.gmra.mrb[40].mxu0 %vm20305_vm6, %v13829_v15  ;;  %v20306_v26 = vrot.slane %v13201_v19, 6  ;;  %v20307_v53 = vrot.slane %v13851_v20, 6 }
 0x35f   : > { %vm20309_vm8 = vnez %v20308_v30  ;;  %vm20311_vm10 = vnez %v20310_v36  ;;  %vm20313_vm6 = vnez %v20312_v49  ;;  %v20314_v2 = vrot.slane %v13223_v44, 1 }
 0x360   : > { %v4090_v61 = vsel %vm20299_vm5, %v20307_v53, %v20306_v26  ;;  %v4095_v0 = vsel %vm20311_vm10, %v4088_v60, -inf  ;;  %v4097_v13 = vsel %vm20313_vm6, %v4086_v1, -inf  ;;  %v20315_v27 = vrot.slane %v13206_v6, 1 }
 0x361   : > { %v4093_v5 = vsel %vm20309_vm8, %v4090_v61, -inf  ;;  %vm20316_vm14 = vcmp.lt.s32.totalorder %v7533_v3, 7  ;;  %v14123_v20 = vmax.f32 %v4412_v59, %v14033_v23  ;;  %v14126_v26 = vmax.f32 %v3205_v21, %v19871_v31  ;;  %v20324_v31 = vld [vmem:[#allocation51_spill] sm:$0xff]  ;;  %v20330_v21 = vld [vmem:[#allocation25_spill] sm:$0xff] }
 0x362   : > { %v4213_v33 = vsel %vm20316_vm14, %v20315_v27, %v20314_v2  ;;  %v4125_v53 = vmax.f32 %v3997_v47, %v4093_v5  ;;  %v4127_v61 = vmax.f32 %v3999_v22, %v4095_v0  ;;  %v4129_v60 = vmax.f32 %v13909_v12, %v4097_v13  ;;  %vm20320_vm5 = vmmov %vm20316_vm14  ;;  %v20328_v12 = vld [vmem:[#allocation190_spill] sm:$0xff] }
 0x363   : > { %20317 = vst [vmem:[#allocation132_spill] sm:$0xff] %v14123_v20  ;;  %v20318_v49 = vrot.slane %v13840_v46, 1  ;;  %v20319_v1 = vrot.slane %v13204_v50, 1  ;;  %v20321_v30 = vrot.slane %v13854_v10, 1  ;;  %v20322_v2 = vrot.slane %v13201_v19, 1  ;;  %vm20323_vm14 = vmmov %vm20320_vm5 }
 0x364   : > { %vm20325_vm6 = vnez %v20324_v31  ;;  %vm20326_vm10 = vcmask 15360   ;;  %v17941_v50 = vrot.slane %v14126_v26, 7  ;;  %v20332_v5 = vrot.slane %v13223_v44, 2  ;;  %v20389_v31 = vld [vmem:[#allocation173_spill] sm:$0xff] }
 0x365   : > { %v4215_v36 = vsel %vm20320_vm5, %v20319_v1, %v20318_v49  ;;  %v4217_v59 = vsel %vm20323_vm14, %v20322_v2, %v20321_v30  ;;  %v4225_v47 = vsel %vm20325_vm6, %v4213_v33, -inf  ;;  %6814 = vmatprep.mubr.msk.f32.mxu1 %vm20326_vm10, %v14123_v20  ;;  %vm20327_vm8 = vmmov %vm20326_vm10  ;;  %vm20329_vm5 = vnez %v20328_v12  ;;  %v20392_v12 = vld [vmem:[#allocation53_spill] sm:$0xff] }
 0x366   : > { %6729 = vmatprep.mubr.msk.f32.mxu0 %vm20327_vm8, %v14126_v26  ;;  %v4221_v22 = vsel %vm20329_vm5, %v4217_v59, -inf  ;;  %vm20331_vm14 = vnez %v20330_v21  ;;  %v4257_v30 = vmax.f32 %v4129_v60, %v4225_v47  ;;  %v20333_v27 = vrot.slane %v13206_v6, 2  ;;  %v20341_v60 = vld [vmem:[#allocation85_spill] sm:$0xff] }
 0x367   : > { %v4223_v33 = vsel %vm20331_vm14, %v4215_v36, -inf  ;;  %vm20334_vm10 = vcmp.lt.s32.totalorder %v7533_v3, 6  ;;  %v20335_v2 = vrot.slane %v13829_v15, 7  ;;  %vm20336_vm8 = vcmp.lt.s32.totalorder %v7533_v3, 1 }
 0x368   : > { %v4341_v1 = vsel %vm20334_vm10, %v20333_v27, %v20332_v5  ;;  %v4253_v0 = vmax.f32 %v4125_v53, %v4221_v22  ;;  %v4255_v59 = vmax.f32 %v4127_v61, %v4223_v33  ;;  %v20337_v49 = vrot.slane %v13840_v46, 2  ;;  %vm20338_vm6 = vmmov %vm20334_vm10  ;;  %v20346_v61 = vld [vmem:[#allocation55_spill] sm:$0xff]  ;;  %v20348_v22 = vld [vmem:[#allocation41_spill] sm:$0xff] }
 0x369   : > { %v3953_v13 = vsel %vm20336_vm8, %v20335_v2, %v17941_v50  ;;  %vm20339_vm14 = vcmp.le.s32.totalorder %v20269_v38, 2  ;;  %vm20340_vm5 = vcmp.ge.s32.totalorder %v20269_v38, 4294967294  ;;  %vm20342_vm10 = vnez %v20341_v60  ;;  %vm20345_vm8 = vmmov %vm20338_vm6  ;;  %v20382_v50 = vld [vmem:[#allocation174_spill] sm:$0xff]  ;;  %v20384_v38 = vld [vmem:[#allocation171_spill] sm:$0xff] }
 0x36a   : > { %v4343_v36 = vsel %vm20338_vm6, %v4287_v35, %v20337_v49  ;;  %vm2575_vm7 = vmand %vm20340_vm5, %vm20339_vm14  ;;  %v3974_v47 = vsel %vm20342_vm10, %v3953_v13, -inf  ;;  %v20343_v5 = vrot.slane %v13854_v10, 2  ;;  %v20344_v27 = vrot.slane %v13201_v19, 2  ;;  %v20354_v19 = vld [vmem:[#allocation26_spill] sm:$0xff] }
 0x36b   : > { %vm20347_vm2 = vnez %v20346_v61  ;;  %vm20349_vm6 = vnez %v20348_v22  ;;  %vm20350_vm12 = vcmp.le.s32.totalorder %v20276_v11, 2  ;;  %vm20351_vm5 = vcmp.ge.s32.totalorder %v20276_v11, 4294967294  ;;  %v20386_v22 = vld [vmem:[#allocation167_spill] sm:$0xff] }
 0x36c   : > { %v4345_v53 = vsel %vm20345_vm8, %v20344_v27, %v20343_v5  ;;  %v4351_v46 = vsel %vm20347_vm2, %v4343_v36, -inf  ;;  %v4353_v35 = vsel %vm20349_vm6, %v4341_v1, -inf  ;;  %vm14191_vm14 = vmand %vm20351_vm5, %vm20350_vm12  ;;  %v14196_v10 = vmax.f32 %v14126_v26, %v3974_v47 }
 0x36d   : > { %vm20355_vm10 = vnez %v20354_v19  ;;  %v14200_v49 = vmax.f32 %v4255_v59, %v4351_v46  ;;  %v14202_v33 = vmax.f32 %v4257_v30, %v4353_v35  ;;  %v20356_v1 = vrot.slane %v13223_v44, 6  ;;  %vm14226_vm6 = vmand %vm14071_vm11, %vm2575_vm7  ;;  %v20369_v46 = vld [vmem:[#allocation9_spill] sm:$0xff]  ;;  %v20387_v19 = vld [vmem:[#allocation191_spill] sm:$0xff] }
 0x36e   : > { %v4349_v13 = vsel %vm20355_vm10, %v4345_v53, -inf  ;;  %v20357_v11 = vrot.slane %v13206_v6, 6  ;;  %vm20358_vm12 = vcmp.lt.s32.totalorder %v7533_v3, 2  ;;  %v20359_v5 = vrot.slane %v13366_v25, 1  ;;  %v20368_v53 = vld [vmem:[#allocation207_spill] sm:$0xff]  ;;  %vm14244_vm7 = vmand %vm14094_vm4, %vm14191_vm14 }
 0x36f   : > { %v14204_v2 = vmax.f32 %v4253_v0, %v4349_v13  ;;  %v20360_v47 = vrot.slane %v13223_v44, 1  ;;  %vm20361_vm8 = vcmp.lt.s32.totalorder %v7533_v3, 7  ;;  %v20362_v59 = vrot.slane %v13366_v25, 2  ;;  %v20371_v13 = vld [vmem:[#allocation56_spill] sm:$0xff] }
 0x370   : > { %v4085_v36 = vsel %vm20358_vm12, %v20357_v11, %v20356_v1  ;;  %v20363_v30 = vrot.slane %v13223_v44, 2  ;;  %vm20364_vm5 = vcmp.lt.s32.totalorder %v7533_v3, 6  ;;  %v20365_v6 = vmov 0  ;;  %v20373_v11 = vld [vmem:[#allocation103_spill] sm:$0xff] }
 0x371   : > { %v4212_v27 = vsel %vm20361_vm8, %v20360_v47, %v20359_v5  ;;  %v20366_v6 = vsel %vm14226_vm6, 4294967295, %v20365_v6  ;;  %vm20370_vm10 = vnez %v20369_v46  ;;  %vm20372_vm8 = vnez %v20371_v13 }
 0x372   : > { %v4340_v0 = vsel %vm20364_vm5, %v20363_v30, %v20362_v59  ;;  %20367 = vst [vmem:[#allocation120_spill] sm:$0xff] %v20366_v6  ;;  %v4098_v35 = vsel %vm20370_vm10, %v4085_v36, -inf  ;;  %v4226_v1 = vsel %vm20372_vm8, %v4212_v27, -inf  ;;  %vm20374_vm3 = vnez %v20373_v11  ;;  %v20378_v59 = vld [vmem:[#allocation210_spill] sm:$0xff]  ;;  %v20379_v27 = vld [vmem:[#allocation144_spill] sm:$0xff] }
 0x373   : > { %v4354_v5 = vsel %vm20374_vm3, %v4340_v0, -inf  ;;  %v4414_v16 = vmax.f32 %v14056_v28, %v14033_v23  ;;  %v20375_v47 = vmov 0  ;;  %v4413_v36 = vmax.f32 %v14204_v2, %v14200_v49  ;;  %v20380_v0 = vld [vmem:[#allocation183_spill] sm:$0xff] }
 0x374   : > { %v20376_v47 = vsel %vm14244_vm7, 4294967295, %v20375_v47  ;;  %v4130_v30 = vmax.f32 %v20379_v27, %v4098_v35  ;;  %vm20381_vm12 = vnez %v20380_v0  ;;  %v3088_v13 = vsel %vm14226_vm6, %v20385_v24, -inf  ;;  %v20391_v35 = vld [vmem:[#allocation186_spill] sm:$0xff]  ;;  %v20464_v24 = vld [vmem:[#allocation195_spill] sm:$0xff] }
 0x375   : > { %20377 = vst [vmem:[#allocation139_spill] sm:$0xff] %v20376_v47  ;;  %v20383_v60 = vsel %vm20381_vm12, %v20382_v50, -inf  ;;  %v4442_v46 = vmax.f32 %v4414_v16, %v14046_v34  ;;  %v3148_v61 = vmax.f32 %v20386_v22, %v13393_v55  ;;  %vm20388_vm4 = vnez %v20387_v19  ;;  %v20717_v19 = vld [vmem:[#allocation108_spill] sm:$0xff] }
 0x376   : > { %v2992_v11 = vmax.f32 %v20384_v38, %v20383_v60  ;;  %v20390_v21 = vsel %vm20388_vm4, %v20389_v31, -inf  ;;  %v3089_v50 = vsel %vm14244_vm7, %v20392_v12, -inf  ;;  %v20393_v60 = vld [vmem:[#allocation198_spill] sm:$0xff]  ;;  %v20394_v38 = vld [vmem:[#allocation172_spill] sm:$0xff]  ;;  %v14281_v16 = vmax.f32 %v4413_v36, %v14202_v33  ;;  %v20400_v12 = vld [vmem:[#allocation185_spill] sm:$0xff] }
 0x377   : > { %v2993_v27 = vmax.f32 %v20391_v35, %v20390_v21  ;;  %v20395_v20 = vsub.s32 %v20393_v60, %v20394_v38  ;;  %v4258_v62 = vmax.f32 %v4130_v30, %v4226_v1  ;;  %v3149_v31 = vmax.f32 %v20274_v45, %v14048_v32  ;;  %v20399_v21 = vld [vmem:[#allocation202_spill] sm:$0xff] }
 0x378   : > { %20398 = vst [vmem:[#allocation137_spill] sm:$0xff] %v14281_v16  ;;  %v14283_v41 = vmax.f32 %v2992_v11, %v3088_v13  ;;  %v20401_v35 = vsub.s32 %v20399_v21, %v20400_v12  ;;  %v20405_v36 = vrot.slane %v13366_v25, 6  ;;  %v20406_v13 = vrot.slane %v13223_v44, 6  ;;  %v20414_v12 = vld [vmem:[#allocation109_spill] sm:$0xff] }
 0x379   : > { %vm14276_vm14 = vcmp.eq.s32.totalorder %v20395_v20, %v20368_v53  ;;  %v20404_v20 = vld [vmem:[#allocation2_spill] sm:$0xff]  ;;  %v14296_v38 = vmax.f32 %v2993_v27, %v3089_v50  ;;  %vm20407_vm5 = vcmp.lt.s32.totalorder %v7533_v3, 2  ;;  %v20408_v11 = vrot.slane %v13533_v14, 1  ;;  %v20412_v50 = vld [vmem:[#allocation60_spill] sm:$0xff] }
 0x37a   : > { %vm14291_vm11 = vcmp.eq.s32.totalorder %v20401_v35, %v20378_v59  ;;  %v3176_v60 = vmax.f32 %v3148_v61, %v20404_v20  ;;  %v4084_v1 = vsel %vm20407_vm5, %v20406_v13, %v20405_v36  ;;  %v20409_v30 = vrot.slane %v13366_v25, 1  ;;  %v20416_v36 = vld [vmem:[#allocation64_spill] sm:$0xff] }
 0x37b   : > { %vm20410_vm2 = vcmp.lt.s32.totalorder %v7533_v3, 7  ;;  %vm20411_vm3 = vcmask 15360   ;;  %v14312_v61 = vmax.f32 %v4258_v62, %v4354_v5  ;;  %v3177_v27 = vmax.f32 %v3149_v31, %v20275_v39 }
 0x37c   : > { %v4211_v21 = vsel %vm20410_vm2, %v20409_v30, %v20408_v11  ;;  %6815 = vmatmul.mubr.msk.f32.vlgmr.msra.gmra.mrb[16].mxu1 %vm20411_vm3, %v14281_v16  ;;  %vm20413_vm8 = vnez %v20412_v50  ;;  %vm20415_vm10 = vnez %v20414_v12  ;;  %vm20417_vm5 = vcmask 1041408   ;;  %v20427_v50 = vld [vmem:[#allocation117_spill] sm:$0xff] }
 0x37d   : > { %v4099_v44 = vsel %vm20413_vm8, %v4084_v1, -inf  ;;  %v4227_v35 = vsel %vm20415_vm10, %v4211_v21, -inf  ;;  %6863 = vmatpush3.msk.msra.mxu1 %vm20417_vm5, %v20416_v36  ;;  %v3206_v13 = vmax.f32 %v3176_v60, %v14283_v41  ;;  %v20418_v30 = vrot.slane %v13533_v14, 2  ;;  %v20422_v36 = vld [vmem:[#allocation112_spill] sm:$0xff] }
 0x37e   : > { %v4131_v11 = vmax.f32 %v13739_v29, %v4099_v44  ;;  %v20419_v62 = vrot.slane %v13366_v25, 2  ;;  %vm20420_vm3 = vcmp.lt.s32.totalorder %v7533_v3, 6  ;;  %v4415_v31 = vmax.f32 %v14200_v49, %v14202_v33 }
 0x37f   : > { %v14332_v1 = vmax.f32 %v4442_v46, %v14312_v61  ;;  %v3207_v21 = vmax.f32 %v3177_v27, %v14296_v38  ;;  %vm20423_vm2 = vnez %v20422_v36  ;;  %v20424_v29 = vrot.slane %v13533_v14, 6  ;;  %v20428_v46 = vld [vmem:[#allocation7_spill] sm:$0xff] }
 0x380   : > { %v4339_v5 = vsel %vm20420_vm3, %v20419_v62, %v20418_v30  ;;  %v20425_v44 = vrot.slane %v13366_v25, 6  ;;  %vm20426_vm5 = vcmp.lt.s32.totalorder %v7533_v3, 2  ;;  %v14344_v30 = vmax.f32 %v3206_v13, %v20427_v50 }
 0x381   : > { %20421 = vst [vmem:[#allocation77_spill] sm:$0xff] %v14332_v1  ;;  %v4355_v60 = vsel %vm20423_vm2, %v4339_v5, -inf  ;;  %v4259_v62 = vmax.f32 %v4131_v11, %v4227_v35  ;;  %v4443_v16 = vmax.f32 %v4415_v31, %v14204_v2  ;;  %vm20429_vm3 = vnez %v20428_v46  ;;  %v20450_v11 = vld [vmem:[#allocation256_spill] sm:$0xff]  ;;  %v20462_v31 = vld [vmem:[#allocation206_spill] sm:$0xff] }
 0x382   : > { %v4083_v12 = vsel %vm20426_vm5, %v20425_v44, %v20424_v29  ;;  %vm20430_vm10 = vcmask 15360   ;;  %v14352_v27 = vmax.f32 %v3207_v21, %v13091_v52  ;;  %v20431_v5 = vrot.slane %v13829_v15, 1  ;;  %v20448_v44 = vld [vmem:[#allocation115_spill] sm:$0xff] }
 0x383   : > { %v4100_v37 = vsel %vm20429_vm3, %v4083_v12, -inf  ;;  %6817 = vmatprep.mubr.msk.f32.mxu1 %vm20430_vm10, %v14332_v1  ;;  %v20432_v29 = vrot.slane %v13533_v14, 1  ;;  %vm20433_vm5 = vcmp.lt.s32.totalorder %v7533_v3, 7  ;;  %v20434_v35 = vrot.slane %v13829_v15, 2  ;;  %6730 = vmatmul.mubr.msk.f32.gmra.mrb[42].mxu0 %vm20430_vm10, %v14344_v30  ;;  %v20480_v1 = vld [vmem:[#allocation193_spill] sm:$0xff] }
 0x384   : > { %v4132_v25 = vmax.f32 %v13843_v43, %v4100_v37  ;;  %v20435_v13 = vrot.slane %v13533_v14, 2  ;;  %vm20436_vm3 = vcmp.lt.s32.totalorder %v7533_v3, 6  ;;  %v3911_v52 = vrot.slane %v14344_v30, 7  ;;  %v20452_v37 = vld [vmem:[#allocation126_spill] sm:$0xff] }
 0x385   : > { %v4210_v50 = vsel %vm20433_vm5, %v20432_v29, %v20431_v5  ;;  %vm20437_vm5 = vcmp.le.s32.totalorder %v20368_v53, 2  ;;  %vm20438_vm2 = vcmp.ge.s32.totalorder %v20368_v53, 4294967294  ;;  %v17959_v21 = vrot.slane %v14352_v27, 7 }
 0x386   : > { %v4338_v12 = vsel %vm20436_vm3, %v20435_v13, %v20434_v35  ;;  %vm14377_vm8 = vmand %vm20438_vm2, %vm20437_vm5  ;;  %vm20443_vm9 = vcmp.ge.s32.totalorder %v20378_v59, 4294967294  ;;  %v20446_v35 = vrot.slane %v14126_v26, 7  ;;  %vm20447_vm2 = vcmp.lt.s32.totalorder %v7533_v3, 1 }
 0x387   : > { %vm20441_vm3 = vmmov %vm20430_vm10  ;;  %vm20442_vm10 = vcmp.le.s32.totalorder %v20378_v59, 2  ;;  %v14399_v43 = vmax.f32 %v4259_v62, %v4355_v60  ;;  %vm20449_vm5 = vnez %v20448_v44  ;;  %vm20453_vm15 = vnez %v20452_v37  ;;  %v20458_v62 = vld [vmem:[#allocation221_spill] sm:$0xff]  ;;  %v20479_v44 = vld [vmem:[#allocation218_spill] sm:$0xff] }
 0x388   : > { %6732 = vmatprep.mubr.msk.f32.mxu0 %vm20441_vm3, %v14352_v27  ;;  %vm14391_vm1 = vmand %vm20443_vm9, %vm20442_vm10  ;;  %v3952_v13 = vsel %vm20447_vm2, %v20446_v35, %v3911_v52  ;;  %v4228_v5 = vsel %vm20449_vm5, %v4210_v50, -inf  ;;  %vm20451_vm3 = vnez %v20450_v11  ;;  %v4416_v35 = vmax.f32 %v14033_v23, %v14312_v61  ;;  %v20478_v11 = vld [vmem:[#allocation196_spill] sm:$0xff] }
 0x389   : > { %v4356_v29 = vsel %vm20451_vm3, %v4338_v12, -inf  ;;  %v3975_v59 = vsel %vm20453_vm15, %v3952_v13, -inf  ;;  %vm20454_vm9 = vmmov %vm20447_vm2  ;;  %v4260_v36 = vmax.f32 %v4132_v25, %v4228_v5  ;;  %v20455_v60 = vmov 0  ;;  %v20459_v12 = vld [vmem:[#allocation90_spill] sm:$0xff]  ;;  %v20466_v13 = vld [vmem:[#allocation192_spill] sm:$0xff] }
 0x38a   : > { %v3951_v46 = vsel %vm20454_vm9, %v3911_v52, %v17959_v21  ;;  %vm14417_vm10 = vmand %vm14276_vm14, %vm14377_vm8  ;;  %v14424_v50 = vmax.f32 %v14344_v30, %v3975_v59  ;;  %vm20460_vm9 = vnez %v20459_v12  ;;  %v14429_v52 = vmax.f32 %v4443_v16, %v14399_v43  ;;  %v20470_v12 = vld [vmem:[#allocation197_spill] sm:$0xff] }
 0x38b   : > { %v20456_v60 = vsel %vm14417_vm10, 4294967295, %v20455_v60  ;;  %v3976_v25 = vsel %vm20460_vm9, %v3951_v46, -inf  ;;  %vm20463_vm3 = vnez %v20462_v31  ;;  %vm14440_vm8 = vmand %vm14291_vm11, %vm14391_vm1  ;;  %v20467_v37 = vmov 0 }
 0x38c   : > { %20457 = vst [vmem:[#allocation87_spill] sm:$0xff] %v20456_v60  ;;  %20461 = vst [vmem:[#allocation204_spill] sm:$0xff] %v14429_v52  ;;  %v20465_v5 = vsel %vm20463_vm3, %v20464_v24, -inf  ;;  %v20468_v37 = vsel %vm14440_vm8, 4294967295, %v20467_v37  ;;  %v14445_v59 = vmax.f32 %v14352_v27, %v3976_v25  ;;  %v14447_v46 = vmax.f32 %v4260_v36, %v4356_v29  ;;  %v20473_v36 = vld [vmem:[#allocation211_spill] sm:$0xff]  ;;  %v20475_v29 = vld [vmem:[#allocation194_spill] sm:$0xff] }
 0x38d   : > { %v2994_v21 = vmax.f32 %v20466_v13, %v20465_v5  ;;  %20469 = vst [vmem:[#allocation148_spill] sm:$0xff] %v20468_v37  ;;  %v4444_v16 = vmax.f32 %v4416_v35, %v14056_v28  ;;  %v3090_v24 = vsel %vm14417_vm10, %v20470_v12, -inf  ;;  %v20471_v5 = vld [vmem:[#allocation230_spill] sm:$0xff]  ;;  %vm20472_vm1 = vcmask 15360   ;;  %v20477_v25 = vld [vmem:[#allocation208_spill] sm:$0xff] }
 0x38e   : > { %6818 = vmatmul.mubr.msk.f32.gmra.mrb[18].mxu1 %vm20472_vm1, %v14429_v52  ;;  %v3150_v53 = vmax.f32 %v13393_v55, %v14283_v41  ;;  %vm20474_vm11 = vnez %v20473_v36  ;;  %v3091_v12 = vsel %vm14440_vm8, %v20478_v11, -inf  ;;  %v20481_v48 = vsub.s32 %v20479_v44, %v20480_v1 }
 0x38f   : > { %v14457_v54 = vmax.f32 %v2994_v21, %v3090_v24  ;;  %v20476_v35 = vsel %vm20474_vm11, %v20475_v29, -inf  ;;  %v4474_v24 = vmax.f32 %v4444_v16, %v14447_v46  ;;  %v3151_v52 = vmax.f32 %v14048_v32, %v14296_v38 }
 0x390   : > { %v2995_v13 = vmax.f32 %v20477_v25, %v20476_v35  ;;  %vm14473_vm1 = vcmp.eq.s32.totalorder %v20481_v48, %v20458_v62  ;;  %v20484_v29 = vrot.slane %v13829_v15, 6  ;;  %v20485_v35 = vrot.slane %v13533_v14, 6 }
 0x391   : > { %vm20486_vm14 = vcmp.lt.s32.totalorder %v7533_v3, 2  ;;  %v20487_v25 = vrot.slane %v14126_v26, 1  ;;  %v20488_v1 = vrot.slane %v13829_v15, 1  ;;  %vm20489_vm2 = vcmp.lt.s32.totalorder %v7533_v3, 7 }
 0x392   : > { %v4082_v11 = vsel %vm20486_vm14, %v20485_v35, %v20484_v29  ;;  %v3178_v44 = vmax.f32 %v3150_v53, %v20386_v22  ;;  %v14493_v16 = vmax.f32 %v2995_v13, %v3091_v12  ;;  %vm20491_vm15 = vnez %v20490_v7  ;;  %v20495_v29 = vld [vmem:[#allocation203_spill] sm:$0xff] }
 0x393   : > { %v4209_v48 = vsel %vm20489_vm2, %v20488_v1, %v20487_v25  ;;  %v4101_v51 = vsel %vm20491_vm15, %v4082_v11, -inf  ;;  %vm20493_vm9 = vnez %v20492_v17  ;;  %v20496_v35 = vsub.s32 %v20494_v9, %v20495_v29  ;;  %v20514_v17 = vld [vmem:[#allocation133_spill] sm:$0xff] }
 0x394   : > { %v4229_v14 = vsel %vm20493_vm9, %v4209_v48, -inf  ;;  %v14508_v25 = vmax.f32 %v4474_v24, %v14046_v34  ;;  %v3179_v53 = vmax.f32 %v3151_v52, %v20274_v45  ;;  %v4133_v13 = vmax.f32 %v13902_v57, %v4101_v51  ;;  %v20503_v48 = vld [vmem:[#allocation35_spill] sm:$0xff] }
 0x395   : > { %vm14503_vm14 = vcmp.eq.s32.totalorder %v20496_v35, %v20471_v5  ;;  %v20500_v12 = vrot.slane %v14126_v26, 2  ;;  %v20501_v11 = vrot.slane %v13829_v15, 2  ;;  %vm20502_vm2 = vcmp.lt.s32.totalorder %v7533_v3, 6 }
 0x396   : > { %20499 = vst [vmem:[#allocation96_spill] sm:$0xff] %v14508_v25  ;;  %v3208_v9 = vmax.f32 %v3178_v44, %v14457_v54  ;;  %vm20504_vm9 = vnez %v20503_v48  ;;  %v4417_v34 = vmax.f32 %v14202_v33, %v14399_v43  ;;  %v20505_v24 = vrot.slane %v14126_v26, 6  ;;  %v20509_v44 = vld [vmem:[#allocation127_spill] sm:$0xff] }
 0x397   : > { %v4337_v1 = vsel %vm20502_vm2, %v20501_v11, %v20500_v12  ;;  %v20506_v52 = vrot.slane %v13829_v15, 6  ;;  %vm20507_vm15 = vcmp.lt.s32.totalorder %v7533_v3, 2  ;;  %vm20508_vm5 = vcmask 15360  }
 0x398   : > { %v4357_v29 = vsel %vm20504_vm9, %v4337_v1, -inf  ;;  %6820 = vmatprep.mubr.msk.f32.mxu1 %vm20508_vm5, %v14508_v25  ;;  %v3209_v57 = vmax.f32 %v3179_v53, %v14493_v16  ;;  %v4261_v35 = vmax.f32 %v4133_v13, %v4229_v14  ;;  %vm20510_vm2 = vnez %v20509_v44  ;;  %v20564_v25 = vld [vmem:[#allocation215_spill] sm:$0xff] }
 0x399   : > { %v4081_v51 = vsel %vm20507_vm15, %v20506_v52, %v20505_v24  ;;  %v20511_v11 = vrot.slane %v14344_v30, 1  ;;  %v20512_v1 = vrot.slane %v14126_v26, 1  ;;  %vm20513_vm9 = vcmp.lt.s32.totalorder %v7533_v3, 7 }
 0x39a   : > { %v4102_v12 = vsel %vm20510_vm2, %v4081_v51, -inf  ;;  %v14541_v15 = vmax.f32 %v3208_v9, %v20404_v20  ;;  %v4445_v24 = vmax.f32 %v4417_v34, %v14200_v49  ;;  %vm20515_vm15 = vnez %v20514_v17  ;;  %v20549_v34 = vld [vmem:[#allocation216_spill] sm:$0xff] }
 0x39b   : > { %v4208_v48 = vsel %vm20513_vm9, %v20512_v1, %v20511_v11  ;;  %v4134_v52 = vmax.f32 %v14196_v10, %v4102_v12  ;;  %v14548_v53 = vmax.f32 %v3209_v57, %v20275_v39  ;;  %v14550_v13 = vmax.f32 %v4261_v35, %v4357_v29  ;;  %v20527_v39 = vld [vmem:[#allocation164_spill] sm:$0xff]  ;;  %v20533_v12 = vld [vmem:[#allocation239_spill] sm:$0xff] }
 0x39c   : > { %v4230_v14 = vsel %vm20515_vm15, %v4208_v48, -inf  ;;  %v20516_v51 = vrot.slane %v14344_v30, 2  ;;  %v20517_v44 = vrot.slane %v14126_v26, 2  ;;  %vm20518_vm5 = vcmp.lt.s32.totalorder %v7533_v3, 6  ;;  %v20541_v48 = vld [vmem:[#allocation212_spill] sm:$0xff] }
 0x39d   : > { %v4418_v9 = vmax.f32 %v14312_v61, %v14447_v46  ;;  %vm20519_vm9 = vcmask 15360   ;;  %v3913_v10 = vrot.slane %v14541_v15, 7  ;;  %vm20520_vm15 = vcmp.le.s32.totalorder %v20458_v62, 2 }
 0x39e   : > { %v4336_v20 = vsel %vm20518_vm5, %v20517_v44, %v20516_v51  ;;  %6733 = vmatmul.mubr.msk.f32.gmra.mrb[44].mxu0 %vm20519_vm9, %v14541_v15  ;;  %vm20521_vm2 = vcmp.ge.s32.totalorder %v20458_v62, 4294967294  ;;  %vm20524_vm5 = vmmov %vm20519_vm9  ;;  %v17977_v57 = vrot.slane %v14548_v53, 7  ;;  %v20525_v11 = vrot.slane %v14352_v27, 7  ;;  %v20534_v44 = vld [vmem:[#allocation93_spill] sm:$0xff] }
 0x39f   : > { %vm14570_vm8 = vmand %vm20521_vm2, %vm20520_vm15  ;;  %6735 = vmatprep.mubr.msk.f32.mxu0 %vm20524_vm5, %v14548_v53  ;;  %vm20526_vm9 = vcmp.lt.s32.totalorder %v7533_v3, 1  ;;  %v4475_v1 = vmax.f32 %v4445_v24, %v14550_v13  ;;  %v4262_v51 = vmax.f32 %v4134_v52, %v4230_v14  ;;  %vm20528_vm2 = vnez %v20527_v39  ;;  %v20537_v14 = vld [vmem:[#allocation226_spill] sm:$0xff] }
 0x3a0   : > { %v3950_v62 = vsel %vm20526_vm9, %v20525_v11, %v3913_v10  ;;  %v4358_v29 = vsel %vm20528_vm2, %v4336_v20, -inf  ;;  %vm20529_vm15 = vcmp.le.s32.totalorder %v20471_v5, 2  ;;  %vm20530_vm5 = vcmp.ge.s32.totalorder %v20471_v5, 4294967294  ;;  %v20539_v5 = vld [vmem:[#allocation214_spill] sm:$0xff] }
 0x3a1   : > { %vm14591_vm11 = vmand %vm20530_vm5, %vm20529_vm15  ;;  %vm20535_vm9 = vnez %v20534_v44  ;;  %vm20536_vm7 = vcmp.lt.s32.totalorder %v7533_v3, 1  ;;  %v4446_v52 = vmax.f32 %v4418_v9, %v14033_v23  ;;  %vm20538_vm2 = vnez %v20537_v14 }
 0x3a2   : > { %v3977_v11 = vsel %vm20535_vm9, %v3950_v62, -inf  ;;  %v3949_v24 = vsel %vm20536_vm7, %v3913_v10, %v17977_v57  ;;  %v20540_v20 = vsel %vm20538_vm2, %v20539_v5, -inf  ;;  %vm14613_vm15 = vmand %vm14473_vm1, %vm14570_vm8  ;;  %v20542_v44 = vmov 0  ;;  %v20545_v10 = vld [vmem:[#allocation97_spill] sm:$0xff] }
 0x3a3   : > { %v2996_v39 = vmax.f32 %v20541_v48, %v20540_v20  ;;  %v20543_v44 = vsel %vm14613_vm15, 4294967295, %v20542_v44  ;;  %v14618_v62 = vmax.f32 %v14541_v15, %v3977_v11  ;;  %vm20546_vm7 = vnez %v20545_v10  ;;  %v20548_v48 = vld [vmem:[#allocation245_spill] sm:$0xff]  ;;  %vm14646_vm1 = vmand %vm14503_vm14, %vm14591_vm11  ;;  %v20558_v10 = vld [vmem:[#allocation236_spill] sm:$0xff] }
 0x3a4   : > { %20544 = vst [vmem:[#allocation123_spill] sm:$0xff] %v20543_v44  ;;  %v3978_v9 = vsel %vm20546_vm7, %v3949_v24, -inf  ;;  %v14623_v57 = vmax.f32 %v4475_v1, %v14204_v2  ;;  %v14625_v5 = vmax.f32 %v4262_v51, %v4358_v29  ;;  %v3092_v11 = vsel %vm14613_vm15, %v20549_v34, -inf  ;;  %v20550_v24 = vld [vmem:[#allocation231_spill] sm:$0xff]  ;;  %v20552_v2 = vld [vmem:[#allocation213_spill] sm:$0xff] }
 0x3a5   : > { %v14630_v21 = vmax.f32 %v14548_v53, %v3978_v9  ;;  %v3152_v20 = vmax.f32 %v14283_v41, %v14457_v54  ;;  %vm20551_vm8 = vnez %v20550_v24  ;;  %v20554_v29 = vld [vmem:[#allocation227_spill] sm:$0xff]  ;;  %v20555_v9 = vmov 0  ;;  %v20559_v34 = vld [vmem:[#allocation217_spill] sm:$0xff] }
 0x3a6   : > { %20547 = vst [vmem:[#allocation225_spill] sm:$0xff] %v14623_v57  ;;  %v20553_v1 = vsel %vm20551_vm8, %v20552_v2, -inf  ;;  %v20556_v9 = vsel %vm14646_vm1, 4294967295, %v20555_v9  ;;  %v20560_v17 = vsub.s32 %v20558_v10, %v20559_v34  ;;  %vm20563_vm10 = vcmask 15360  }
 0x3a7   : > { %v2997_v51 = vmax.f32 %v20554_v29, %v20553_v1  ;;  %20557 = vst [vmem:[#allocation50_spill] sm:$0xff] %v20556_v9  ;;  %6821 = vmatmul.mubr.msk.f32.gmra.mrb[20].mxu1 %vm20563_vm10, %v14623_v57  ;;  %v4476_v42 = vmax.f32 %v4446_v52, %v14625_v5  ;;  %v14663_v1 = vmax.f32 %v2996_v39, %v3092_v11  ;;  %v20565_v34 = vrot.slane %v14344_v30, 6  ;;  %v20568_v52 = vld [vmem:[#allocation242_spill] sm:$0xff]  ;;  %v20569_v39 = vld [vmem:[#allocation229_spill] sm:$0xff]  ;;  %v20574_v57 = vld [vmem:[#allocation131_spill] sm:$0xff] }
 0x3a8   : > { %vm14654_vm5 = vcmp.eq.s32.totalorder %v20560_v17, %v20533_v12  ;;  %v3180_v29 = vmax.f32 %v3152_v20, %v13393_v55  ;;  %v3093_v17 = vsel %vm14646_vm1, %v20564_v25, -inf  ;;  %v3153_v10 = vmax.f32 %v14296_v38, %v14493_v16  ;;  %v20632_v20 = vld [vmem:[#allocation247_spill] sm:$0xff] }
 0x3a9   : > { %v20566_v24 = vrot.slane %v14126_v26, 6  ;;  %vm20567_vm10 = vcmp.lt.s32.totalorder %v7533_v3, 2  ;;  %v20570_v11 = vsub.s32 %v20568_v52, %v20569_v39  ;;  %v14686_v25 = vmax.f32 %v4476_v42, %v14056_v28  ;;  %v20579_v28 = vld [vmem:[#allocation141_spill] sm:$0xff] }
 0x3aa   : > { %v14688_v2 = vmax.f32 %v2997_v51, %v3093_v17  ;;  %vm20575_vm14 = vnez %v20574_v57  ;;  %v20576_v26 = vrot.slane %v14352_v27, 1  ;;  %v3210_v52 = vmax.f32 %v3180_v29, %v14663_v1 }
 0x3ab   : > { %v4080_v35 = vsel %vm20567_vm10, %v20566_v24, %v20565_v34  ;;  %vm14681_vm11 = vcmp.eq.s32.totalorder %v20570_v11, %v20548_v48  ;;  %20573 = vst [vmem:[#allocation122_spill] sm:$0xff] %v14686_v25  ;;  %v20577_v24 = vrot.slane %v14344_v30, 1  ;;  %vm20578_vm10 = vcmp.lt.s32.totalorder %v7533_v3, 7 }
 0x3ac   : > { %v4103_v9 = vsel %vm20575_vm14, %v4080_v35, -inf  ;;  %v3181_v39 = vmax.f32 %v3153_v10, %v14048_v32  ;;  %vm20580_vm3 = vnez %v20579_v28  ;;  %vm20581_vm7 = vcmask 15360   ;;  %v20588_v28 = vld [vmem:[#allocation58_spill] sm:$0xff] }
 0x3ad   : > { %v4207_v34 = vsel %vm20578_vm10, %v20577_v24, %v20576_v26  ;;  %v4135_v11 = vmax.f32 %v14424_v50, %v4103_v9  ;;  %6823 = vmatprep.mubr.msk.f32.mxu1 %vm20581_vm7, %v14686_v25  ;;  %v20582_v42 = vrot.slane %v14352_v27, 2  ;;  %v20583_v17 = vrot.slane %v14344_v30, 2 }
 0x3ae   : > { %v4231_v51 = vsel %vm20580_vm3, %v4207_v34, -inf  ;;  %vm20584_vm10 = vcmp.lt.s32.totalorder %v7533_v3, 6  ;;  %v4419_v29 = vmax.f32 %v14399_v43, %v14550_v13  ;;  %v20585_v50 = vrot.slane %v14352_v27, 6 }
 0x3af   : > { %v4335_v26 = vsel %vm20584_vm10, %v20583_v17, %v20582_v42  ;;  %v20586_v9 = vrot.slane %v14344_v30, 6  ;;  %vm20587_vm9 = vcmp.lt.s32.totalorder %v7533_v3, 2  ;;  %v14721_v24 = vmax.f32 %v3210_v52, %v20386_v22  ;;  %v20590_v17 = vld [vmem:[#allocation140_spill] sm:$0xff] }
 0x3b0   : > { %v3211_v34 = vmax.f32 %v3181_v39, %v14688_v2  ;;  %v4263_v35 = vmax.f32 %v4135_v11, %v4231_v51  ;;  %vm20589_vm7 = vnez %v20588_v28  ;;  %v4447_v42 = vmax.f32 %v4419_v29, %v14202_v33 }
 0x3b1   : > { %v4079_v10 = vsel %vm20587_vm9, %v20586_v9, %v20585_v50  ;;  %v4359_v57 = vsel %vm20589_vm7, %v4335_v26, -inf  ;;  %vm20591_vm10 = vnez %v20590_v17  ;;  %v20592_v44 = vrot.slane %v14541_v15, 1 }
 0x3b2   : > { %v4104_v25 = vsel %vm20591_vm10, %v4079_v10, -inf  ;;  %v20593_v30 = vrot.slane %v14352_v27, 1  ;;  %vm20594_vm9 = vcmp.lt.s32.totalorder %v7533_v3, 7  ;;  %v20595_v22 = vrot.slane %v14541_v15, 2 }
 0x3b3   : > { %v20596_v52 = vrot.slane %v14352_v27, 2  ;;  %vm20597_vm3 = vcmp.lt.s32.totalorder %v7533_v3, 6  ;;  %vm20598_vm7 = vcmask 15360   ;;  %v3915_v11 = vrot.slane %v14721_v24, 7 }
 0x3b4   : > { %v4206_v50 = vsel %vm20594_vm9, %v20593_v30, %v20592_v44  ;;  %6736 = vmatmul.mubr.msk.f32.gmra.mrb[46].mxu0 %vm20598_vm7, %v14721_v24  ;;  %vm20599_vm9 = vcmp.le.s32.totalorder %v20533_v12, 2  ;;  %vm20600_vm10 = vcmp.ge.s32.totalorder %v20533_v12, 4294967294  ;;  %v14756_v9 = vmax.f32 %v3211_v34, %v20274_v45  ;;  %v20607_v12 = vld [vmem:[#allocation163_spill] sm:$0xff]  ;;  %v20613_v34 = vld [vmem:[#allocation232_spill] sm:$0xff]  ;;  %v20625_v44 = vld [vmem:[#allocation237_spill] sm:$0xff] }
 0x3b5   : > { %v4334_v39 = vsel %vm20597_vm3, %v20596_v52, %v20595_v22  ;;  %vm14751_vm14 = vmand %vm20600_vm10, %vm20599_vm9  ;;  %v14758_v10 = vmax.f32 %v4263_v35, %v4359_v57  ;;  %v4136_v30 = vmax.f32 %v14445_v59, %v4104_v25  ;;  %v20603_v22 = vld [vmem:[#allocation151_spill] sm:$0xff]  ;;  %v20605_v51 = vrot.slane %v14548_v53, 7  ;;  %v20611_v57 = vld [vmem:[#allocation234_spill] sm:$0xff] }
 0x3b6   : > { %vm20604_vm3 = vnez %v20603_v22  ;;  %vm20606_vm7 = vcmp.lt.s32.totalorder %v7533_v3, 1  ;;  %vm20608_vm10 = vnez %v20607_v12  ;;  %v4420_v17 = vmax.f32 %v14447_v46, %v14625_v5  ;;  %v20609_v45 = vld [vmem:[#allocation243_spill] sm:$0xff] }
 0x3b7   : > { %v4232_v52 = vsel %vm20604_vm3, %v4206_v50, -inf  ;;  %v3948_v29 = vsel %vm20606_vm7, %v20605_v51, %v3915_v11  ;;  %v4360_v26 = vsel %vm20608_vm10, %v4334_v39, -inf  ;;  %vm20610_vm9 = vnez %v20609_v45  ;;  %v20618_v50 = vld [vmem:[#allocation157_spill] sm:$0xff] }
 0x3b8   : > { %v20612_v35 = vsel %vm20610_vm9, %v20611_v57, -inf  ;;  %vm20614_vm1 = vcmp.le.s32.totalorder %v20548_v48, 2  ;;  %vm20615_vm3 = vcmp.ge.s32.totalorder %v20548_v48, 4294967294  ;;  %vm20619_vm7 = vnez %v20618_v50 }
 0x3b9   : > { %v2998_v59 = vmax.f32 %v20613_v34, %v20612_v35  ;;  %vm14780_vm8 = vmand %vm20615_vm3, %vm20614_vm1  ;;  %v3979_v39 = vsel %vm20619_vm7, %v3948_v29, -inf  ;;  %vm20620_vm10 = vcmask 15360   ;;  %v3916_v51 = vrot.slane %v14756_v9, 7  ;;  %v20634_v29 = vld [vmem:[#allocation233_spill] sm:$0xff] }
 0x3ba   : > { %6738 = vmatprep.mubr.msk.f32.mxu0 %vm20620_vm10, %v14756_v9  ;;  %vm14795_vm1 = vmand %vm14654_vm5, %vm14751_vm14  ;;  %v20621_v48 = vmov 0  ;;  %v14800_v34 = vmax.f32 %v14721_v24, %v3979_v39  ;;  %v4477_v50 = vmax.f32 %v4447_v42, %v14758_v10  ;;  %v4264_v12 = vmax.f32 %v4136_v30, %v4232_v52  ;;  %v20629_v42 = vld [vmem:[#allocation177_spill] sm:$0xff] }
 0x3bb   : > { %v20622_v48 = vsel %vm14795_vm1, 4294967295, %v20621_v48  ;;  %vm20624_vm3 = vcmp.lt.s32.totalorder %v7533_v3, 1  ;;  %v4448_v35 = vmax.f32 %v4420_v17, %v14312_v61  ;;  %v3094_v7 = vsel %vm14795_vm1, %v20625_v44, -inf  ;;  %vm14816_vm5 = vmand %vm14681_vm11, %vm14780_vm8 }
 0x3bc   : > { %20623 = vst [vmem:[#allocation79_spill] sm:$0xff] %v20622_v48  ;;  %v3947_v57 = vsel %vm20624_vm3, %v3915_v11, %v3916_v51  ;;  %v3154_v22 = vmax.f32 %v14457_v54, %v14663_v1  ;;  %v20626_v39 = vmov 0  ;;  %vm20630_vm14 = vnez %v20629_v42  ;;  %v20636_v48 = vld [vmem:[#allocation244_spill] sm:$0xff]  ;;  %v20637_v42 = vld [vmem:[#allocation235_spill] sm:$0xff]  ;;  %vm20638_vm11 = vmmov %vm20620_vm10 }
 0x3bd   : > { %v20627_v39 = vsel %vm14816_vm5, 4294967295, %v20626_v39  ;;  %v3980_v11 = vsel %vm20630_vm14, %v3947_v57, -inf  ;;  %v14823_v17 = vmax.f32 %v4477_v50, %v14200_v49  ;;  %v14825_v30 = vmax.f32 %v4264_v12, %v4360_v26 }
 0x3be   : > { %20628 = vst [vmem:[#allocation128_spill] sm:$0xff] %v20627_v39  ;;  %v14827_v52 = vmax.f32 %v2998_v59, %v3094_v7  ;;  %v14830_v44 = vmax.f32 %v14756_v9, %v3980_v11  ;;  %v3182_v25 = vmax.f32 %v3154_v22, %v14283_v41  ;;  %vm20633_vm8 = vnez %v20632_v20  ;;  %v20645_v7 = vld [vmem:[#allocation150_spill] sm:$0xff]  ;;  %v20647_v11 = vld [vmem:[#allocation160_spill] sm:$0xff] }
 0x3bf   : > { %20631 = vst [vmem:[#allocation224_spill] sm:$0xff] %v14823_v17  ;;  %v20635_v28 = vsel %vm20633_vm8, %v20634_v29, -inf  ;;  %v3095_v49 = vsel %vm14816_vm5, %v20637_v42, -inf  ;;  %6824 = vmatmul.mubr.msk.f32.gmra.mrb[22].mxu1 %vm20638_vm11, %v14823_v17  ;;  %v4478_v26 = vmax.f32 %v4448_v35, %v14825_v30  ;;  %v3155_v12 = vmax.f32 %v14493_v16, %v14688_v2 }
 0x3c0   : > { %v2999_v45 = vmax.f32 %v20636_v48, %v20635_v28  ;;  %v20639_v22 = vrot.slane %v14541_v15, 6  ;;  %v20640_v59 = vrot.slane %v14352_v27, 6  ;;  %vm20641_vm10 = vcmp.lt.s32.totalorder %v7533_v3, 2 }
 0x3c1   : > { %v20642_v28 = vrot.slane %v14548_v53, 1  ;;  %v20643_v57 = vrot.slane %v14541_v15, 1  ;;  %vm20644_vm3 = vcmp.lt.s32.totalorder %v7533_v3, 7  ;;  %v3212_v29 = vmax.f32 %v3182_v25, %v14827_v52 }
 0x3c2   : > { %v4078_v50 = vsel %vm20641_vm10, %v20640_v59, %v20639_v22  ;;  %v14859_v35 = vmax.f32 %v2999_v45, %v3095_v49  ;;  %vm20646_vm11 = vnez %v20645_v7  ;;  %vm20648_vm14 = vnez %v20647_v11  ;;  %v20652_v49 = vld [vmem:[#allocation6_spill] sm:$0xff] }
 0x3c3   : > { %v4205_v48 = vsel %vm20644_vm3, %v20643_v57, %v20642_v28  ;;  %v4105_v42 = vsel %vm20646_vm11, %v4078_v50, -inf  ;;  %v14866_v17 = vmax.f32 %v4478_v26, %v14033_v23  ;;  %v3183_v22 = vmax.f32 %v3155_v12, %v14296_v38  ;;  %v20658_v57 = vld [vmem:[#allocation158_spill] sm:$0xff] }
 0x3c4   : > { %v4233_v27 = vsel %vm20648_vm14, %v4205_v48, -inf  ;;  %v4137_v59 = vmax.f32 %v14618_v62, %v4105_v42  ;;  %v20649_v39 = vrot.slane %v14548_v53, 2  ;;  %v20650_v28 = vrot.slane %v14541_v15, 2 }
 0x3c5   : > { %vm20651_vm10 = vcmp.lt.s32.totalorder %v7533_v3, 6  ;;  %v14877_v25 = vmax.f32 %v3212_v29, %v13393_v55  ;;  %vm20653_vm3 = vnez %v20652_v49  ;;  %v4421_v23 = vmax.f32 %v14550_v13, %v14758_v10 }
 0x3c6   : > { %v4333_v45 = vsel %vm20651_vm10, %v20650_v28, %v20649_v39  ;;  %v20654_v26 = vrot.slane %v14548_v53, 6  ;;  %v20655_v62 = vrot.slane %v14541_v15, 6  ;;  %vm20656_vm7 = vcmp.lt.s32.totalorder %v7533_v3, 2 }
 0x3c7   : > { %v4361_v50 = vsel %vm20653_vm3, %v4333_v45, -inf  ;;  %vm20657_vm14 = vcmask 15360   ;;  %v3213_v39 = vmax.f32 %v3183_v22, %v14859_v35  ;;  %v4265_v55 = vmax.f32 %v4137_v59, %v4233_v27  ;;  %v20671_v27 = vld [vmem:[#allocation125_spill] sm:$0xff] }
 0x3c8   : > { %v4077_v12 = vsel %vm20656_vm7, %v20655_v62, %v20654_v26  ;;  %6826 = vmatprep.mubr.msk.f32.mxu1 %vm20657_vm14, %v14866_v17  ;;  %vm20659_vm10 = vnez %v20658_v57  ;;  %v20660_v29 = vrot.slane %v14721_v24, 1  ;;  %v20661_v42 = vrot.slane %v14548_v53, 1  ;;  %vm20663_vm11 = vmmov %vm20657_vm14 }
 0x3c9   : > { %v4106_v48 = vsel %vm20659_vm10, %v4077_v12, -inf  ;;  %vm20662_vm3 = vcmp.lt.s32.totalorder %v7533_v3, 7  ;;  %6739 = vmatmul.mubr.msk.f32.gmra.mrb[48].mxu0 %vm20663_vm11, %v14877_v25  ;;  %v3917_v15 = vrot.slane %v14877_v25, 7  ;;  %v14907_v59 = vmax.f32 %v3213_v39, %v14048_v32  ;;  %v20668_v39 = vld [vmem:[#allocation179_spill] sm:$0xff] }
 0x3ca   : > { %v4204_v28 = vsel %vm20662_vm3, %v20661_v42, %v20660_v29  ;;  %v14909_v26 = vmax.f32 %v4265_v55, %v4361_v50  ;;  %v4449_v62 = vmax.f32 %v4421_v23, %v14399_v43  ;;  %v4138_v12 = vmax.f32 %v14630_v21, %v4106_v48 }
 0x3cb   : > { %vm20664_vm7 = vcmp.lt.s32.totalorder %v7533_v3, 1  ;;  %v4234_v42 = vsel %vm20265_vm13, %v4204_v28, -inf  ;;  %v20665_v45 = vrot.slane %v14721_v24, 2  ;;  %v20666_v22 = vrot.slane %v14548_v53, 2 }
 0x3cc   : > { %v3946_v29 = vsel %vm20664_vm7, %v3916_v51, %v3917_v15  ;;  %vm20667_vm14 = vcmp.lt.s32.totalorder %v7533_v3, 6  ;;  %v4422_v50 = vmax.f32 %v14625_v5, %v14825_v30  ;;  %vm20669_vm11 = vnez %v20668_v39  ;;  %v20673_v39 = vld [vmem:[#allocation130_spill] sm:$0xff] }
 0x3cd   : > { %v4332_v32 = vsel %vm20667_vm14, %v20666_v22, %v20665_v45  ;;  %v3981_v23 = vsel %vm20669_vm11, %v3946_v29, -inf  ;;  %vm20670_vm3 = vcmask 15360   ;;  %v3918_v21 = vrot.slane %v14907_v59, 7 }
 0x3ce   : > { %6741 = vmatprep.mubr.msk.f32.mxu0 %vm20670_vm3, %v14907_v59  ;;  %v14933_v48 = vmax.f32 %v14877_v25, %v3981_v23  ;;  %v4479_v45 = vmax.f32 %v4449_v62, %v14909_v26  ;;  %v4266_v22 = vmax.f32 %v4138_v12, %v4234_v42  ;;  %vm20672_vm3 = vmmov %vm20664_vm7  ;;  %v4362_v51 = vsel %vm13988_vm0, %v4332_v32, -inf  ;;  %v20674_v62 = vld [vmem:[#allocation199_spill] sm:$0xff] }
 0x3cf   : > { %v3945_v29 = vsel %vm20672_vm3, %v3917_v15, %v3918_v21  ;;  %v4450_v55 = vmax.f32 %v4422_v50, %v14447_v46  ;;  %v3156_v23 = vmax.f32 %v14663_v1, %v14827_v52  ;;  %vm20675_vm10 = vnez %v20674_v62 }
 0x3d0   : > { %v3982_v12 = vsel %vm20675_vm10, %v3945_v29, -inf  ;;  %v14951_v42 = vmax.f32 %v4479_v45, %v14202_v33  ;;  %v14953_v28 = vmax.f32 %v4266_v22, %v4362_v51  ;;  %v3157_v15 = vmax.f32 %v14688_v2, %v14859_v35 }
 0x3d1   : > { %v14958_v32 = vmax.f32 %v14907_v59, %v3982_v12  ;;  %v3184_v50 = vmax.f32 %v3156_v23, %v14457_v54  ;;  %v20676_v8 = vrot.slane %v14721_v24, 6  ;;  %v20677_v40 = vrot.slane %v14548_v53, 6  ;;  %v20683_v12 = vld [vmem:[#allocation165_spill] sm:$0xff] }
 0x3d2   : > { %vm20678_vm3 = vcmp.lt.s32.totalorder %v7533_v3, 2  ;;  %v20679_v33 = vrot.slane %v14756_v9, 1  ;;  %v20680_v51 = vrot.slane %v14721_v24, 1  ;;  %vm20681_vm11 = vcmp.lt.s32.totalorder %v7533_v3, 7 }
 0x3d3   : > { %v4076_v29 = vsel %vm20678_vm3, %v20677_v40, %v20676_v8  ;;  %vm20682_vm13 = vcmask 15360   ;;  %v4480_v22 = vmax.f32 %v4450_v55, %v14953_v28  ;;  %v3185_v23 = vmax.f32 %v3157_v15, %v14493_v16  ;;  %v20685_v40 = vld [vmem:[#allocation45_spill] sm:$0xff] }
 0x3d4   : > { %v4203_v45 = vsel %vm20681_vm11, %v20680_v51, %v20679_v33  ;;  %6827 = vmatmul.mubr.msk.f32.gmra.mrb[24].mxu1 %vm20682_vm13, %v14951_v42  ;;  %vm20684_vm7 = vnez %v20683_v12  ;;  %v3214_v62 = vmax.f32 %v3184_v50, %v20685_v40  ;;  %v20686_v49 = vrot.slane %v14756_v9, 2  ;;  %vm20688_vm13 = vmmov %vm20667_vm14 }
 0x3d5   : > { %v4107_v53 = vsel %vm20684_vm7, %v4076_v29, -inf  ;;  %v4235_v8 = vsel %vm20381_vm12, %v4203_v45, -inf  ;;  %v20687_v33 = vrot.slane %v14721_v24, 2  ;;  %v4423_v55 = vmax.f32 %v14758_v10, %v14909_v26  ;;  %v20689_v29 = vld [vmem:[#allocation142_spill] sm:$0xff]  ;;  %vm20692_vm11 = vmmov %vm20678_vm3 }
 0x3d6   : > { %v4139_v57 = vmax.f32 %v14800_v34, %v4107_v53  ;;  %v14992_v15 = vmax.f32 %v4480_v22, %v14312_v61  ;;  %v3215_v0 = vmax.f32 %v3185_v23, %v20689_v29  ;;  %v20690_v34 = vrot.slane %v14756_v9, 6  ;;  %v20693_v61 = vld [vmem:[#allocation178_spill] sm:$0xff] }
 0x3d7   : > { %v4331_v51 = vsel %vm20688_vm13, %v20687_v33, %v20686_v49  ;;  %v20691_v45 = vrot.slane %v14721_v24, 6  ;;  %v15004_v49 = vmax.f32 %v3214_v62, %v14283_v41  ;;  %v4451_v12 = vmax.f32 %v4423_v55, %v14550_v13  ;;  %v20714_v55 = vld [vmem:[#allocation219_spill] sm:$0xff] }
 0x3d8   : > { %v4363_v50 = vsel %vm14226_vm6, %v4331_v51, -inf  ;;  %v4267_v33 = vmax.f32 %v4139_v57, %v4235_v8  ;;  %vm20694_vm3 = vnez %v20693_v61  ;;  %vm20695_vm13 = vcmask 15360   ;;  %v20738_v61 = vld [vmem:[#allocation187_spill] sm:$0xff] }
 0x3d9   : > { %v4075_v53 = vsel %vm20692_vm11, %v20691_v45, %v20690_v34  ;;  %6829 = vmatprep.mubr.msk.f32.mxu1 %vm20695_vm13, %v14992_v15  ;;  %v15012_v23 = vmax.f32 %v3215_v0, %v14296_v38  ;;  %v20696_v51 = vrot.slane %v14877_v25, 1  ;;  %v20697_v34 = vrot.slane %v14756_v9, 1  ;;  %6742 = vmatmul.mubr.msk.f32.gmra.mrb[50].mxu0 %vm20695_vm13, %v15004_v49 }
 0x3da   : > { %v4108_v22 = vsel %vm20694_vm3, %v4075_v53, -inf  ;;  %vm20698_vm11 = vcmp.lt.s32.totalorder %v7533_v3, 7  ;;  %v20699_v57 = vrot.slane %v14877_v25, 2  ;;  %v20700_v62 = vrot.slane %v14756_v9, 2  ;;  %v20727_v53 = vld [vmem:[#allocation5_spill] sm:$0xff] }
 0x3db   : > { %v4140_v24 = vmax.f32 %v14830_v44, %v4108_v22  ;;  %v4202_v41 = vsel %vm20698_vm11, %v20697_v34, %v20696_v51  ;;  %v3919_v0 = vrot.slane %v15004_v49, 7  ;;  %vm20701_vm11 = vmmov %vm20695_vm13  ;;  %v3920_v45 = vrot.slane %v15012_v23, 7  ;;  %v20708_v51 = vld [vmem:[#allocation201_spill] sm:$0xff] }
 0x3dc   : > { %v4330_v8 = vsel %vm20667_vm14, %v20700_v62, %v20699_v57  ;;  %6744 = vmatprep.mubr.msk.f32.mxu0 %vm20701_vm11, %v15012_v23  ;;  %vm20702_vm14 = vcmp.lt.s32.totalorder %v7533_v3, 1  ;;  %v15041_v57 = vmax.f32 %v4267_v33, %v4363_v50  ;;  %v4236_v62 = vsel %vm20388_vm4, %v4202_v41, -inf }
 0x3dd   : > { %v3944_v34 = vsel %vm20702_vm14, %v3918_v21, %v3919_v0  ;;  %vm20703_vm13 = vnez %v20376_v47  ;;  %vm20704_vm11 = vcmp.le.s32.totalorder %v20671_v27, 2  ;;  %vm20705_vm10 = vcmp.ge.s32.totalorder %v20671_v27, 4294967294  ;;  %v20716_v47 = vld [vmem:[#allocation250_spill] sm:$0xff] }
 0x3de   : > { %v4364_v38 = vsel %vm20703_vm13, %v4330_v8, -inf  ;;  %vm15051_vm3 = vmand %vm20705_vm10, %vm20704_vm11  ;;  %vm20709_vm6 = vnez %v20708_v51  ;;  %v3943_v21 = vsel %vm20702_vm14, %v3919_v0, %v3920_v45  ;;  %v4268_v50 = vmax.f32 %v4140_v24, %v4236_v62 }
 0x3df   : > { %v3983_v22 = vsel %vm20709_vm6, %v3944_v34, -inf  ;;  %v4424_v33 = vmax.f32 %v14825_v30, %v14953_v28  ;;  %vm20710_vm13 = vcmp.le.s32.totalorder %v20673_v39, 2  ;;  %vm20711_vm4 = vcmp.ge.s32.totalorder %v20673_v39, 4294967294 }
 0x3e0   : > { %vm15065_vm12 = vmand %vm20711_vm4, %vm20710_vm13  ;;  %v15070_v8 = vmax.f32 %v15004_v49, %v3983_v22  ;;  %vm20715_vm10 = vnez %v20714_v55  ;;  %v4481_v0 = vmax.f32 %v4451_v12, %v15041_v57  ;;  %v3158_v24 = vmax.f32 %v14827_v52, %v20685_v40 }
 0x3e1   : > { %v3984_v34 = vsel %vm20715_vm10, %v3943_v21, -inf  ;;  %v15080_v44 = vmax.f32 %v4268_v50, %v4364_v38  ;;  %v4452_v51 = vmax.f32 %v4424_v33, %v14625_v5  ;;  %v20718_v22 = vsub.s32 %v20716_v47, %v20717_v19  ;;  %v20722_v38 = vld [vmem:[#allocation252_spill] sm:$0xff] }
 0x3e2   : > { %v15078_v62 = vmax.f32 %v15012_v23, %v3984_v34  ;;  %v15088_v55 = vmax.f32 %v4481_v0, %v14399_v43  ;;  %v3186_v12 = vmax.f32 %v3158_v24, %v14663_v1  ;;  %v20719_v21 = vmov 0  ;;  %v20735_v24 = vld [vmem:[#allocation31_spill] sm:$0xff] }
 0x3e3   : > { %vm2137_vm4 = vcmp.eq.s32.totalorder %v20718_v22, %v20671_v27  ;;  %v20723_v50 = vsub.s32 %v20722_v38, %v20717_v19  ;;  %v3159_v47 = vmax.f32 %v14859_v35, %v20689_v29  ;;  %v4482_v27 = vmax.f32 %v4452_v51, %v15080_v44  ;;  %v20736_v38 = vld [vmem:[#allocation249_spill] sm:$0xff] }
 0x3e4   : > { %vm15093_vm13 = vmand %vm2137_vm4, %vm15051_vm3  ;;  %v20724_v43 = vmov 0  ;;  %v20728_v34 = vrot.slane %v14877_v25, 6  ;;  %v20729_v19 = vrot.slane %v14756_v9, 6  ;;  %vm20730_vm3 = vcmp.lt.s32.totalorder %v7533_v3, 2 }
 0x3e5   : > { %v20720_v21 = vsel %vm15093_vm13, 4294967295, %v20719_v21  ;;  %vm2490_vm11 = vcmp.eq.s32.totalorder %v20723_v50, %v20673_v39  ;;  %v2971_v33 = vsel %vm15093_vm13, %v20727_v53, -inf  ;;  %v20731_v0 = vrot.slane %v14907_v59, 1  ;;  %v20737_v53 = vld [vmem:[#allocation11_spill] sm:$0xff] }
 0x3e6   : > { %20721 = vst [vmem:[#allocation138_spill] sm:$0xff] %v20720_v21  ;;  %vm15106_vm14 = vmand %vm2490_vm11, %vm15065_vm12  ;;  %v4074_v39 = vsel %vm20730_vm3, %v20729_v19, %v20728_v34  ;;  %v20732_v51 = vrot.slane %v14877_v25, 1  ;;  %vm20733_vm12 = vcmp.lt.s32.totalorder %v7533_v3, 7  ;;  %vm20734_vm4 = vcmask 15360  }
 0x3e7   : > { %v20725_v43 = vsel %vm15106_vm14, 4294967295, %v20724_v43  ;;  %6830 = vmatmul.mubr.msk.f32.gmra.mrb[26].mxu1 %vm20734_vm4, %v15088_v55  ;;  %v3216_v22 = vmax.f32 %v3186_v12, %v20735_v24  ;;  %v3003_v50 = vmax.f32 %v20736_v38, %v2971_v33  ;;  %v3099_v9 = vsel %vm15106_vm14, %v20737_v53, -inf }
 0x3e8   : > { %20726 = vst [vmem:[#allocation149_spill] sm:$0xff] %v20725_v43  ;;  %v4201_v41 = vsel %vm20733_vm12, %v20732_v51, %v20731_v0  ;;  %v3187_v34 = vmax.f32 %v3159_v47, %v14688_v2  ;;  %v15134_v19 = vmax.f32 %v4482_v27, %v14447_v46  ;;  %vm20739_vm11 = vnez %v20738_v61 }
 0x3e9   : > { %v4109_v6 = vsel %vm20739_vm11, %v4074_v39, -inf  ;;  %vm20740_vm3 = vnez %v20462_v31  ;;  %v20741_v51 = vrot.slane %v14907_v59, 2  ;;  %v20742_v12 = vrot.slane %v14877_v25, 2 }
 0x3ea   : > { %v4237_v0 = vsel %vm20740_vm3, %v4201_v41, -inf  ;;  %vm20743_vm12 = vcmp.lt.s32.totalorder %v7533_v3, 6  ;;  %v15147_v38 = vmax.f32 %v3216_v22, %v14457_v54  ;;  %v15149_v47 = vmax.f32 %v3003_v50, %v3099_v9 }
 0x3eb   : > { %v4329_v33 = vsel %vm20743_vm12, %v20742_v12, %v20741_v51  ;;  %v4141_v46 = vmax.f32 %v14933_v48, %v4109_v6  ;;  %vm20744_vm4 = vnez %v20456_v60  ;;  %vm20745_vm10 = vcmask 15360   ;;  %v20756_v60 = vld [vmem:[#allocation200_spill] sm:$0xff] }
 0x3ec   : > { %v4365_v27 = vsel %vm20744_vm4, %v4329_v33, -inf  ;;  %6832 = vmatprep.mubr.msk.f32.mxu1 %vm20745_vm10, %v15134_v19  ;;  %v4425_v39 = vmax.f32 %v14909_v26, %v15041_v57  ;;  %v20746_v41 = vrot.slane %v14907_v59, 6  ;;  %v20747_v53 = vrot.slane %v14877_v25, 6 }
 0x3ed   : > { %vm20748_vm12 = vcmp.lt.s32.totalorder %v7533_v3, 2  ;;  %v20749_v22 = vrot.slane %v15004_v49, 1  ;;  %v20750_v6 = vrot.slane %v14907_v59, 1  ;;  %vm20751_vm6 = vcmp.lt.s32.totalorder %v7533_v3, 7 }
 0x3ee   : > { %v4073_v54 = vsel %vm20748_vm12, %v20747_v53, %v20746_v41  ;;  %v20752_v50 = vrot.slane %v15004_v49, 2  ;;  %v20753_v9 = vmov %v20741_v51  ;;  %vm20754_vm10 = vcmp.lt.s32.totalorder %v7533_v3, 6  ;;  %v20761_v41 = vld [vmem:[#allocation222_spill] sm:$0xff] }
 0x3ef   : > { %v4200_v48 = vsel %vm20751_vm6, %v20750_v6, %v20749_v22  ;;  %vm20755_vm4 = vcmask 15360   ;;  %v3921_v25 = vrot.slane %v15147_v38, 7  ;;  %v3217_v53 = vmax.f32 %v3187_v34, %v15149_v47 }
 0x3f0   : > { %v4328_v51 = vsel %vm20754_vm10, %v20753_v9, %v20752_v50  ;;  %6745 = vmatmul.mubr.msk.f32.gmra.mrb[52].mxu0 %vm20755_vm4, %v15147_v38  ;;  %v4269_v22 = vmax.f32 %v4141_v46, %v4237_v0  ;;  %v4453_v6 = vmax.f32 %v4425_v39, %v14758_v10  ;;  %vm20757_vm6 = vnez %v20756_v60 }
 0x3f1   : > { %v4110_v31 = vsel %vm20757_vm6, %v4073_v54, -inf  ;;  %vm20758_vm12 = vcmp.lt.s32.totalorder %v7533_v3, 1  ;;  %vm20759_vm4 = vnez %v20473_v36  ;;  %vm20760_vm10 = vnez %v20468_v37 }
 0x3f2   : > { %v3942_v50 = vsel %vm20758_vm12, %v3920_v45, %v3921_v25  ;;  %v4142_v9 = vmax.f32 %v14958_v32, %v4110_v31  ;;  %v4238_v12 = vsel %vm20759_vm4, %v4200_v48, -inf  ;;  %v4366_v33 = vsel %vm20760_vm10, %v4328_v51, -inf  ;;  %v20764_v48 = vld [vmem:[#allocation17_spill] sm:$0xff] }
 0x3f3   : > { %vm20762_vm3 = vnez %v20761_v41  ;;  %v15196_v0 = vmax.f32 %v3217_v53, %v14493_v16  ;;  %v15198_v46 = vmax.f32 %v4269_v22, %v4365_v27  ;;  %v4426_v39 = vmax.f32 %v14953_v28, %v15080_v44  ;;  %v20769_v41 = vld [vmem:[#allocation71_spill] sm:$0xff]  ;;  %v20770_v53 = vld [vmem:[#allocation238_spill] sm:$0xff] }
 0x3f4   : > { %v3985_v34 = vsel %vm20762_vm3, %v3942_v50, -inf  ;;  %v4270_v31 = vmax.f32 %v4142_v9, %v4238_v12  ;;  %v3160_v32 = vmax.f32 %v20685_v40, %v20735_v24  ;;  %v20763_v54 = vrot.slane %v19892_v63, 2 }
 0x3f5   : > { %v15203_v45 = vmax.f32 %v15147_v38, %v3985_v34  ;;  %v20765_v51 = vrot.slane %v20764_v48, 2  ;;  %vm20766_vm12 = vcmp.lt.s32.totalorder %v7533_v3, 6  ;;  %vm20767_vm3 = vcmask 15360  }
 0x3f6   : > { %6747 = vmatprep.mubr.msk.f32.mxu0 %vm20767_vm3, %v15196_v0  ;;  %v3922_v27 = vrot.slane %v15196_v0, 7  ;;  %v4483_v50 = vmax.f32 %v4453_v6, %v15198_v46  ;;  %v15220_v9 = vmax.f32 %v4270_v31, %v4366_v33  ;;  %v4454_v63 = vmax.f32 %v4426_v39, %v14825_v30 }
 0x3f7   : > { %v2306_v16 = vsel %vm20766_vm12, %v20765_v51, %v20763_v54  ;;  %v3188_v34 = vmax.f32 %v3160_v32, %v14827_v52  ;;  %vm20768_vm12 = vcmp.lt.s32.totalorder %v7533_v3, 1  ;;  %vm2524_vm3 = vcmp.ge.s32.totalorder %v20769_v41, 4294967294 }
 0x3f8   : > { %v3941_v54 = vsel %vm20768_vm12, %v3921_v25, %v3922_v27  ;;  %v2364_v51 = vsub.s32 %v2306_v16, %v20764_v48  ;;  %vm2556_vm10 = vcmp.le.s32.totalorder %v20769_v41, 2  ;;  %vm20771_vm4 = vnez %v20770_v53  ;;  %v20772_v25 = vld [vmem:[#allocation65_spill] sm:$0xff] }
 0x3f9   : > { %v3986_v12 = vsel %vm20771_vm4, %v3941_v54, -inf  ;;  %v15232_v6 = vmax.f32 %v4483_v50, %v14550_v13  ;;  %v4484_v33 = vmax.f32 %v4454_v63, %v15220_v9  ;;  %v3218_v39 = vmax.f32 %v3188_v34, %v13678_v56  ;;  %vm2588_vm6 = vmand %vm2524_vm3, %vm2556_vm10 }
 0x3fa   : > { %v15237_v31 = vmax.f32 %v15196_v0, %v3986_v12  ;;  %vm2492_vm12 = vcmp.eq.s32.totalorder %v2364_v51, %v20769_v41  ;;  %vm20773_vm11 = vnez %v20772_v25  ;;  %v20774_v48 = vrot.slane %v13422_v4, 2 }
 0x3fb   : > { %v2973_v32 = vsel %vm20773_vm11, %v13615_v58, -inf  ;;  %v20775_v16 = vrot.slane %v13438_v18, 2  ;;  %vm20776_vm4 = vcmp.lt.s32.totalorder %v7533_v3, 6  ;;  %vm20777_vm7 = vcmask 15360   ;;  %vm15257_vm10 = vmand %vm2492_vm12, %vm2588_vm6  ;;  %v20781_v58 = vld [vmem:[#allocation116_spill] sm:$0xff] }
 0x3fc   : > { %6833 = vmatmul.mubr.msk.f32.gmra.mrb[28].mxu1 %vm20777_vm7, %v15232_v6  ;;  %v15252_v50 = vmax.f32 %v4484_v33, %v14625_v5  ;;  %v15255_v12 = vmax.f32 %v3218_v39, %v14663_v1  ;;  %v20778_v41 = vmov 0  ;;  %v3005_v4 = vmax.f32 %v20781_v58, %v2973_v32 }
 0x3fd   : > { %v3043_v13 = vsel %vm20776_vm4, %v20775_v16, %v20774_v48  ;;  %v20779_v41 = vsel %vm15257_vm10, 4294967295, %v20778_v41  ;;  %v3161_v18 = vmax.f32 %v20689_v29, %v15149_v47  ;;  %v20782_v34 = vrot.slane %v15004_v49, 6 }
 0x3fe   : > { %20780 = vst [vmem:[#allocation94_spill] sm:$0xff] %v20779_v41  ;;  %v3101_v63 = vsel %vm15257_vm10, %v3043_v13, -inf  ;;  %v20783_v5 = vrot.slane %v14907_v59, 6  ;;  %vm20784_vm7 = vcmp.lt.s32.totalorder %v7533_v3, 2  ;;  %v20785_v54 = vrot.slane %v15012_v23, 1 }
 0x3ff   : > { %v20786_v51 = vrot.slane %v15004_v49, 1  ;;  %vm20787_vm6 = vcmp.lt.s32.totalorder %v7533_v3, 7  ;;  %v20788_v39 = vrot.slane %v15012_v23, 2  ;;  %v20789_v32 = vrot.slane %v15004_v49, 2 }
 0x400   : > { %v4072_v1 = vsel %vm20784_vm7, %v20783_v5, %v20782_v34  ;;  %vm20790_vm3 = vcmask 15360   ;;  %v3923_v59 = vrot.slane %v15255_v12, 7  ;;  %v15292_v34 = vmax.f32 %v3005_v4, %v3101_v63  ;;  %v20796_v63 = vld [vmem:[#allocation241_spill] sm:$0xff] }
 0x401   : > { %v4199_v33 = vsel %vm20787_vm6, %v20786_v51, %v20785_v54  ;;  %v4327_v48 = vsel %vm20776_vm4, %v20789_v32, %v20788_v39  ;;  %6835 = vmatprep.mubr.msk.f32.mxu1 %vm20790_vm3, %v15252_v50  ;;  %vm20791_vm12 = vmmov %vm20790_vm3  ;;  %v3189_v5 = vmax.f32 %v3161_v18, %v14859_v35  ;;  %v20792_v54 = vld [vmem:[#allocation209_spill] sm:$0xff]  ;;  %vm20794_vm6 = vcmp.lt.s32.totalorder %v7533_v3, 1 }
 0x402   : > { %6748 = vmatmul.mubr.msk.f32.gmra.mrb[54].mxu0 %vm20791_vm12, %v15255_v12  ;;  %vm20793_vm7 = vnez %v20792_v54  ;;  %v4239_v39 = vsel %vm20538_vm2, %v4199_v33, -inf  ;;  %v3940_v32 = vsel %vm20794_vm6, %v3922_v27, %v3923_v59  ;;  %v4367_v13 = vsel %vm14613_vm15, %v4327_v48, -inf }
 0x403   : > { %v4111_v51 = vsel %vm20793_vm7, %v4072_v1, -inf  ;;  %v4427_v4 = vmax.f32 %v15041_v57, %v15198_v46  ;;  %vm20797_vm4 = vnez %v20796_v63  ;;  %v3219_v58 = vmax.f32 %v3189_v5, %v15292_v34  ;;  %v20804_v63 = vld [vmem:[#allocation220_spill] sm:$0xff] }
 0x404   : > { %v4143_v22 = vmax.f32 %v15070_v8, %v4111_v51  ;;  %v3987_v18 = vsel %vm20797_vm4, %v3940_v32, -inf  ;;  %v20798_v1 = vrot.slane %v15012_v23, 6  ;;  %v20799_v33 = vrot.slane %v15004_v49, 6 }
 0x405   : > { %vm20800_vm3 = vcmp.lt.s32.totalorder %v7533_v3, 2  ;;  %v20801_v8 = vrot.slane %v15147_v38, 1  ;;  %v20802_v51 = vrot.slane %v15012_v23, 1  ;;  %vm20803_vm12 = vcmp.lt.s32.totalorder %v7533_v3, 7 }
 0x406   : > { %v4071_v27 = vsel %vm20800_vm3, %v20799_v33, %v20798_v1  ;;  %v15322_v53 = vmax.f32 %v15255_v12, %v3987_v18  ;;  %v4271_v32 = vmax.f32 %v4143_v22, %v4239_v39  ;;  %v4455_v5 = vmax.f32 %v4427_v4, %v14909_v26  ;;  %v20806_v33 = vld [vmem:[#allocation231_spill] sm:$0xff]  ;;  %v20811_v4 = vld [vmem:[#allocation50_spill] sm:$0xff] }
 0x407   : > { %v4198_v48 = vsel %vm20803_vm12, %v20802_v51, %v20801_v8  ;;  %vm20805_vm6 = vnez %v20804_v63  ;;  %v15328_v49 = vmax.f32 %v3219_v58, %v14688_v2  ;;  %vm20807_vm3 = vnez %v20806_v33  ;;  %v20817_v33 = vld [vmem:[#allocation23_spill] sm:$0xff] }
 0x408   : > { %v4112_v16 = vsel %vm20805_vm6, %v4071_v27, -inf  ;;  %v4240_v14 = vsel %vm20807_vm3, %v4198_v48, -inf  ;;  %v20808_v54 = vrot.slane %v15147_v38, 2  ;;  %v20809_v8 = vrot.slane %v15012_v23, 2 }
 0x409   : > { %v4144_v1 = vmax.f32 %v15078_v62, %v4112_v16  ;;  %vm20810_vm12 = vcmp.lt.s32.totalorder %v7533_v3, 6  ;;  %v15339_v39 = vmax.f32 %v4271_v32, %v4367_v13  ;;  %vm20812_vm4 = vnez %v20811_v4 }
 0x40a   : > { %v4326_v22 = vsel %vm20810_vm12, %v20809_v8, %v20808_v54  ;;  %v4428_v2 = vmax.f32 %v15080_v44, %v15220_v9  ;;  %v3162_v62 = vmax.f32 %v20735_v24, %v13678_v56  ;;  %vm20813_vm3 = vcmask 15360   ;;  %v20820_v54 = vld [vmem:[#allocation95_spill] sm:$0xff] }
 0x40b   : > { %v4368_v18 = vsel %vm20812_vm4, %v4326_v22, -inf  ;;  %6750 = vmatprep.mubr.msk.f32.mxu0 %vm20813_vm3, %v15328_v49  ;;  %v3924_v16 = vrot.slane %v15328_v49, 7  ;;  %v4485_v27 = vmax.f32 %v4455_v5, %v15339_v39  ;;  %v4272_v51 = vmax.f32 %v4144_v1, %v4240_v14  ;;  %v20815_v22 = vld [vmem:[#allocation63_spill] sm:$0xff]  ;;  %v20821_v5 = vld [vmem:[#allocation248_spill] sm:$0xff] }
 0x40c   : > { %v4456_v48 = vmax.f32 %v4428_v2, %v14953_v28  ;;  %v3190_v32 = vmax.f32 %v3162_v62, %v20685_v40  ;;  %vm20814_vm12 = vcmp.lt.s32.totalorder %v7533_v3, 1  ;;  %v20816_v4 = vrot.slane %v20815_v22, 1 }
 0x40d   : > { %v3939_v8 = vsel %vm20814_vm12, %v3923_v59, %v3924_v16  ;;  %v20818_v63 = vrot.slane %v20817_v33, 1  ;;  %vm20819_vm3 = vcmp.lt.s32.totalorder %v7533_v3, 7  ;;  %vm2173_vm4 = vcmp.ge.s32.totalorder %v20820_v54, 4294967294  ;;  %v20823_v59 = vld [vmem:[#allocation205_spill] sm:$0xff] }
 0x40e   : > { %vm2205_vm6 = vcmp.le.s32.totalorder %v20820_v54, 2  ;;  %vm20822_vm15 = vnez %v20821_v5  ;;  %v15369_v1 = vmax.f32 %v4485_v27, %v14758_v10  ;;  %v15371_v2 = vmax.f32 %v4272_v51, %v4368_v18  ;;  %v20829_v18 = vld [vmem:[#allocation100_spill] sm:$0xff] }
 0x40f   : > { %v1951_v58 = vsel %vm20819_vm3, %v20818_v63, %v20816_v4  ;;  %v3988_v14 = vsel %vm20822_vm15, %v3939_v8, -inf  ;;  %v3220_v62 = vmax.f32 %v3190_v32, %v20823_v59  ;;  %vm15378_vm12 = vmand %vm2173_vm4, %vm2205_vm6  ;;  %v20826_v4 = vrot.slane %v20815_v22, 2  ;;  %v20833_v22 = vld [vmem:[#allocation29_spill] sm:$0xff]  ;;  %v20856_v32 = vld [vmem:[#allocation10_spill] sm:$0xff] }
 0x410   : > { %v15375_v13 = vmax.f32 %v15328_v49, %v3988_v14  ;;  %v2013_v37 = vsub.s32 %v1951_v58, %v20817_v33  ;;  %v20827_v8 = vrot.slane %v20817_v33, 2  ;;  %vm20828_vm3 = vcmp.lt.s32.totalorder %v7533_v3, 6 }
 0x411   : > { %vm2526_vm15 = vcmp.ge.s32.totalorder %v20829_v18, 4294967294  ;;  %vm20830_vm2 = vcmask 15360   ;;  %v4486_v27 = vmax.f32 %v4456_v48, %v15371_v2  ;;  %v15393_v58 = vmax.f32 %v3220_v62, %v14827_v52 }
 0x412   : > { %v2304_v10 = vsel %vm20828_vm3, %v20827_v8, %v20826_v4  ;;  %6836 = vmatmul.mubr.msk.f32.gmra.mrb[30].mxu1 %vm20830_vm2, %v15369_v1  ;;  %vm2558_vm4 = vcmp.le.s32.totalorder %v20829_v18, 2  ;;  %vm2141_vm6 = vcmp.eq.s32.totalorder %v2013_v37, %v20820_v54  ;;  %v20834_v14 = vrot.slane %v20833_v22, 1  ;;  %v20835_v4 = vld [vmem:[#allocation113_spill] sm:$0xff] }
 0x413   : > { %v2366_v51 = vsub.s32 %v2304_v10, %v20817_v33  ;;  %vm15398_vm7 = vmand %vm2526_vm15, %vm2558_vm4  ;;  %v20836_v8 = vrot.slane %v20835_v4, 1  ;;  %vm20837_vm2 = vcmp.lt.s32.totalorder %v7533_v3, 7  ;;  %v20838_v52 = vrot.slane %v20833_v22, 2 }
 0x414   : > { %v20839_v62 = vrot.slane %v20835_v4, 2  ;;  %v3163_v37 = vmax.f32 %v15149_v47, %v15292_v34  ;;  %v15417_v54 = vmax.f32 %v4486_v27, %v14825_v30  ;;  %vm20840_vm15 = vcmask 15360   ;;  %vm15426_vm4 = vmand %vm2141_vm6, %vm15378_vm12 }
 0x415   : > { %v2913_v48 = vsel %vm20837_vm2, %v20836_v8, %v20834_v14  ;;  %6751 = vmatmul.mubr.msk.f32.gmra.mrb[56].mxu0 %vm20840_vm15, %v15393_v58  ;;  %v18012_v10 = vrot.slane %v15393_v58, 7  ;;  %v20841_v4 = vmov 0  ;;  %vm2494_vm2 = vcmp.eq.s32.totalorder %v2366_v51, %v20829_v18  ;;  %v20849_v18 = vld [vmem:[#allocation121_spill] sm:$0xff] }
 0x416   : > { %v3041_v33 = vsel %vm20828_vm3, %v20839_v62, %v20838_v52  ;;  %v20842_v4 = vsel %vm15426_vm4, 4294967295, %v20841_v4  ;;  %v2975_v30 = vsel %vm15426_vm4, %v2913_v48, -inf  ;;  %v3191_v27 = vmax.f32 %v3163_v37, %v20689_v29  ;;  %vm20844_vm3 = vmmov %vm20840_vm15 }
 0x417   : > { %20843 = vst [vmem:[#allocation72_spill] sm:$0xff] %v20842_v4  ;;  %6838 = vmatprep.mubr.msk.f32.mxu1 %vm20844_vm3, %v15417_v54  ;;  %vm20845_vm15 = vcmp.lt.s32.totalorder %v7533_v3, 1  ;;  %vm15443_vm12 = vmand %vm2494_vm2, %vm15398_vm7  ;;  %v20846_v52 = vmov 0  ;;  %v3007_v51 = vmax.f32 %v20849_v18, %v2975_v30  ;;  %v20850_v48 = vrot.slane %v15147_v38, 6  ;;  %v20858_v18 = vld [vmem:[#allocation228_spill] sm:$0xff] }
 0x418   : > { %v3938_v63 = vsel %vm20845_vm15, %v3924_v16, %v18012_v10  ;;  %v20847_v52 = vsel %vm15443_vm12, 4294967295, %v20846_v52  ;;  %v20851_v62 = vrot.slane %v15012_v23, 6  ;;  %vm20852_vm6 = vcmp.lt.s32.totalorder %v7533_v3, 2 }
 0x419   : > { %20848 = vst [vmem:[#allocation101_spill] sm:$0xff] %v20847_v52  ;;  %v20853_v14 = vrot.slane %v15196_v0, 1  ;;  %v20854_v8 = vrot.slane %v15147_v38, 1  ;;  %vm20855_vm3 = vcmp.lt.s32.totalorder %v7533_v3, 7  ;;  %vm20857_vm7 = vnez %v20856_v32 }
 0x41a   : > { %v4070_v37 = vsel %vm20852_vm6, %v20851_v62, %v20850_v48  ;;  %v3989_v10 = vsel %vm20857_vm7, %v3938_v63, -inf  ;;  %v3103_v30 = vsel %vm15443_vm12, %v3041_v33, -inf  ;;  %vm20859_vm2 = vnez %v20858_v18  ;;  %v20869_v33 = vld [vmem:[#allocation240_spill] sm:$0xff] }
 0x41b   : > { %v4197_v16 = vsel %vm20855_vm3, %v20854_v8, %v20853_v14  ;;  %v4113_v22 = vsel %vm20859_vm2, %v4070_v37, -inf  ;;  %v15469_v48 = vmax.f32 %v15393_v58, %v3989_v10  ;;  %v3135_v62 = vmax.f32 %v3007_v51, %v3103_v30 }
 0x41c   : > { %v4241_v5 = vsel %vm20610_vm9, %v4197_v16, -inf  ;;  %v4145_v36 = vmax.f32 %v15203_v45, %v4113_v22  ;;  %v20861_v14 = vrot.slane %v15196_v0, 2  ;;  %v20862_v8 = vrot.slane %v15147_v38, 2 }
 0x41d   : > { %vm20863_vm15 = vcmp.lt.s32.totalorder %v7533_v3, 6  ;;  %v4429_v37 = vmax.f32 %v15198_v46, %v15339_v39  ;;  %v20865_v16 = vrot.slane %v15196_v0, 6  ;;  %v20866_v10 = vrot.slane %v15147_v38, 6 }
 0x41e   : > { %v4325_v63 = vsel %vm20863_vm15, %v20862_v8, %v20861_v14  ;;  %v20867_v22 = vrot.slane %v15255_v12, 1  ;;  %v20868_v51 = vrot.slane %v15196_v0, 1  ;;  %v3165_v14 = vmax.f32 %v15292_v34, %v3135_v62 }
 0x41f   : > { %v4369_v32 = vsel %vm14795_vm1, %v4325_v63, -inf  ;;  %v4069_v45 = vsel %vm20852_vm6, %v20866_v10, %v20865_v16  ;;  %v3221_v8 = vmax.f32 %v3191_v27, %v3135_v62  ;;  %v4273_v63 = vmax.f32 %v4145_v36, %v4241_v5  ;;  %v20874_v27 = vld [vmem:[#allocation128_spill] sm:$0xff] }
 0x420   : > { %v4196_v30 = vsel %vm20855_vm3, %v20868_v51, %v20867_v22  ;;  %vm20870_vm15 = vnez %v20869_v33  ;;  %v4457_v18 = vmax.f32 %v4429_v37, %v15041_v57  ;;  %v20871_v10 = vrot.slane %v15255_v12, 2  ;;  %v20915_v51 = vld [vmem:[#allocation19_spill] sm:$0xff] }
 0x421   : > { %v4114_v23 = vsel %vm20870_vm15, %v4069_v45, -inf  ;;  %v4242_v16 = vsel %vm20633_vm8, %v4196_v30, -inf  ;;  %v20872_v60 = vrot.slane %v15196_v0, 2  ;;  %vm20873_vm6 = vcmp.lt.s32.totalorder %v7533_v3, 6 }
 0x422   : > { %v4146_v38 = vmax.f32 %v15237_v31, %v4114_v23  ;;  %v15508_v34 = vmax.f32 %v3165_v14, %v15149_v47  ;;  %v15511_v36 = vmax.f32 %v3221_v8, %v14859_v35  ;;  %v15513_v5 = vmax.f32 %v4273_v63, %v4369_v32  ;;  %v20879_v63 = vld [vmem:[#allocation246_spill] sm:$0xff]  ;;  %v20890_v32 = vld [vmem:[#allocation44_spill] sm:$0xff] }
 0x423   : > { %v4324_v22 = vsel %vm20873_vm6, %v20872_v60, %v20871_v10  ;;  %v4430_v62 = vmax.f32 %v15220_v9, %v15371_v2  ;;  %v3164_v37 = vmax.f32 %v13678_v56, %v20823_v59  ;;  %v20875_v60 = vrot.slane %v15255_v12, 6 }
 0x424   : > { %v4370_v31 = vsel %vm14816_vm5, %v4324_v22, -inf  ;;  %v4274_v23 = vmax.f32 %v4146_v38, %v4242_v16  ;;  %v20876_v47 = vrot.slane %v15196_v0, 6  ;;  %vm20877_vm3 = vcmp.lt.s32.totalorder %v7533_v3, 2 }
 0x425   : > { %vm20878_vm6 = vcmask 15360   ;;  %v4487_v56 = vmax.f32 %v4457_v18, %v15513_v5  ;;  %v4458_v0 = vmax.f32 %v4430_v62, %v15080_v44  ;;  %v3192_v14 = vmax.f32 %v3164_v37, %v20735_v24  ;;  %v20887_v37 = vld [vmem:[#allocation62_spill] sm:$0xff] }
 0x426   : > { %v4068_v35 = vsel %vm20877_vm3, %v20876_v47, %v20875_v60  ;;  %6753 = vmatprep.mubr.msk.f32.mxu0 %vm20878_vm6, %v15511_v36  ;;  %v15534_v59 = vmax.f32 %v4274_v23, %v4370_v31  ;;  %v15540_v8 = vmax.f32 %v15508_v34, %v20689_v29  ;;  %vm20880_vm3 = vnez %v20879_v63 }
 0x427   : > { %v4115_v38 = vsel %vm20880_vm3, %v4068_v35, -inf  ;;  %v20881_v16 = vrot.slane %v15328_v49, 1  ;;  %v20882_v10 = vrot.slane %v15255_v12, 1  ;;  %vm20883_vm6 = vcmp.lt.s32.totalorder %v7533_v3, 7 }
 0x428   : > { %v20884_v22 = vrot.slane %v15328_v49, 2  ;;  %v20885_v31 = vrot.slane %v15255_v12, 2  ;;  %vm20886_vm7 = vcmp.lt.s32.totalorder %v7533_v3, 6  ;;  %v15557_v29 = vmax.f32 %v4487_v56, %v14909_v26 }
 0x429   : > { %v4195_v18 = vsel %vm20883_vm6, %v20882_v10, %v20881_v16  ;;  %v4488_v62 = vmax.f32 %v4458_v0, %v15534_v59  ;;  %v3222_v60 = vmax.f32 %v3192_v14, %v20887_v37  ;;  %v4147_v47 = vmax.f32 %v15322_v53, %v4115_v38  ;;  %v20888_v10 = vld [vmem:[#allocation46_spill] sm:$0xff] }
 0x42a   : > { %v4323_v23 = vsel %vm20886_vm7, %v20885_v31, %v20884_v22  ;;  %vm20889_vm6 = vnez %v20888_v10  ;;  %vm20891_vm3 = vnez %v20890_v32  ;;  %vm20892_vm7 = vcmask 15360  }
 0x42b   : > { %v4243_v45 = vsel %vm20889_vm6, %v4195_v18, -inf  ;;  %v4371_v30 = vsel %vm20891_vm3, %v4323_v23, -inf  ;;  %6839 = vmatmul.mubr.msk.f32.gmra.mrb[0].mxu1 %vm20892_vm7, %v15557_v29  ;;  %v15571_v26 = vmax.f32 %v4488_v62, %v14953_v28  ;;  %v15574_v56 = vmax.f32 %v3222_v60, %v20685_v40 }
 0x42c   : > { %v4275_v53 = vmax.f32 %v4147_v47, %v4243_v45  ;;  %v4431_v0 = vmax.f32 %v15339_v39, %v15513_v5  ;;  %v20893_v14 = vrot.slane %v15328_v49, 6  ;;  %v20894_v38 = vrot.slane %v15255_v12, 6 }
 0x42d   : > { %vm20895_vm6 = vcmp.lt.s32.totalorder %v7533_v3, 2  ;;  %v20896_v22 = vrot.slane %v15393_v58, 1  ;;  %v20897_v31 = vmov %v20881_v16  ;;  %vm20898_vm7 = vcmp.lt.s32.totalorder %v7533_v3, 7 }
 0x42e   : > { %v4067_v18 = vsel %vm20895_vm6, %v20894_v38, %v20893_v14  ;;  %v20899_v40 = vrot.slane %v15393_v58, 2  ;;  %v20900_v45 = vrot.slane %v15328_v49, 2  ;;  %vm20901_vm3 = vcmp.lt.s32.totalorder %v7533_v3, 6  ;;  %v20905_v38 = vld [vmem:[#allocation4_spill] sm:$0xff] }
 0x42f   : > { %v4194_v28 = vsel %vm20898_vm7, %v20897_v31, %v20896_v22  ;;  %v4432_v12 = vmax.f32 %v15371_v2, %v15534_v59  ;;  %vm20902_vm5 = vcmask 15360   ;;  %v4183_v60 = vrot.slane %v15574_v56, 1  ;;  %v20907_v31 = vld [vmem:[#allocation251_spill] sm:$0xff] }
 0x430   : > { %v4322_v23 = vsel %vm20901_vm3, %v20900_v45, %v20899_v40  ;;  %6841 = vmatprep.mubr.msk.f32.mxu1 %vm20902_vm5, %v15571_v26  ;;  %vm20903_vm6 = vmmov %vm20902_vm5  ;;  %v15605_v47 = vmax.f32 %v4275_v53, %v4371_v30  ;;  %v4459_v14 = vmax.f32 %v4431_v0, %v15198_v46  ;;  %vm20906_vm3 = vnez %v20905_v38  ;;  %v20909_v45 = vld [vmem:[#allocation257_spill] sm:$0xff]  ;;  %v20911_v30 = vld [vmem:[#allocation66_spill] sm:$0xff] }
 0x431   : > { %6754 = vmatmul.mubr.msk.f32.gmra.mrb[58].mxu0 %vm20903_vm6, %v15574_v56  ;;  %vm20904_vm7 = vmmov %vm20902_vm5  ;;  %v4116_v22 = vsel %vm20906_vm3, %v4067_v18, -inf  ;;  %vm20908_vm5 = vnez %v20907_v31  ;;  %vm20910_vm6 = vnez %v20909_v45  ;;  %v4460_v37 = vmax.f32 %v4432_v12, %v15220_v9 }
 0x432   : > { %6756 = vmatprep.mubr.msk.f32.mxu0 %vm20904_vm7, %v15540_v8  ;;  %v4244_v40 = vsel %vm20908_vm5, %v4194_v28, -inf  ;;  %v4372_v35 = vsel %vm20910_vm6, %v4322_v23, -inf  ;;  %v4148_v16 = vmax.f32 %v15375_v13, %v4116_v22  ;;  %v15620_v53 = vmax.f32 %v20911_v30, %v20735_v24 }
 0x433   : > { %v20912_v62 = vrot.slane %v15393_v58, 6  ;;  %v20913_v0 = vrot.slane %v15328_v49, 6  ;;  %vm20914_vm7 = vcmp.lt.s32.totalorder %v7533_v3, 2  ;;  %v4489_v28 = vmax.f32 %v4459_v14, %v15605_v47 }
 0x434   : > { %vm20916_vm5 = vnez %v20915_v51  ;;  %v20917_v13 = vrot.slane %v15511_v36, 1  ;;  %v20918_v12 = vrot.slane %v15393_v58, 1  ;;  %vm20919_vm6 = vcmp.lt.s32.totalorder %v7533_v3, 7 }
 0x435   : > { %v4066_v18 = vsel %vm20914_vm7, %v20913_v0, %v20912_v62  ;;  %v20920_v22 = vrot.slane %v15511_v36, 2  ;;  %v20921_v45 = vrot.slane %v15393_v58, 2  ;;  %vm20922_vm3 = vcmp.lt.s32.totalorder %v7533_v3, 6 }
 0x436   : > { %v4117_v23 = vsel %vm20916_vm5, %v4066_v18, -inf  ;;  %v4193_v24 = vsel %vm20919_vm6, %v20918_v12, %v20917_v13  ;;  %v4276_v62 = vmax.f32 %v4148_v16, %v4244_v40  ;;  %vm20923_vm7 = vcmask 15360   ;;  %v20924_v18 = vld [vmem:[#allocation8_spill] sm:$0xff] }
 0x437   : > { %v4321_v49 = vsel %vm20922_vm3, %v20921_v45, %v20920_v22  ;;  %6757 = vmatmul.mubr.msk.f32.gmra.mrb[60].mxu0 %vm20923_vm7, %v15620_v53  ;;  %v4149_v0 = vmax.f32 %v15469_v48, %v4117_v23  ;;  %vm20925_vm5 = vnez %v20924_v18  ;;  %v15650_v13 = vmax.f32 %v4489_v28, %v15041_v57  ;;  %vm20926_vm6 = vmmov %vm20923_vm7  ;;  %v20927_v12 = vld [vmem:[#allocation188_spill] sm:$0xff] }
 0x438   : > { %v4245_v51 = vsel %vm20925_vm5, %v4193_v24, -inf  ;;  %6759 = vmatprep.mubr.msk.f32.mxu0 %vm20926_vm6, %v15508_v34  ;;  %vm20928_vm8 = vnez %v20927_v12  ;;  %v4433_v16 = vmax.f32 %v15513_v5, %v15605_v47  ;;  %v20929_v40 = vrot.slane %v15511_v36, 7  ;;  %v20932_v28 = vld [vmem:[#allocation36_spill] sm:$0xff] }
 0x439   : > { %v4373_v45 = vsel %vm20928_vm8, %v4321_v49, -inf  ;;  %v20930_v22 = vrot.slane %v15393_v58, 7  ;;  %vm20931_vm3 = vcmp.lt.s32.totalorder %v7533_v3, 1  ;;  %v15664_v23 = vmax.f32 %v4276_v62, %v4372_v35  ;;  %v20938_v35 = vld [vmem:[#allocation13_spill] sm:$0xff] }
 0x43a   : > { %v4277_v57 = vmax.f32 %v4149_v0, %v4245_v51  ;;  %vm20933_vm7 = vnez %v20932_v28  ;;  %v20934_v14 = vrot.slane %v15511_v36, 6  ;;  %v20935_v49 = vrot.slane %v15393_v58, 6 }
 0x43b   : > { %v3937_v48 = vsel %vm20931_vm3, %v20930_v22, %v20929_v40  ;;  %vm20936_vm6 = vcmp.lt.s32.totalorder %v7533_v3, 2  ;;  %vm20937_vm8 = vcmask 15360   ;;  %v4461_v18 = vmax.f32 %v4433_v16, %v15339_v39 }
 0x43c   : > { %v3990_v24 = vsel %vm20933_vm7, %v3937_v48, -inf  ;;  %v4065_v12 = vsel %vm20936_vm6, %v20935_v49, %v20934_v14  ;;  %6842 = vmatmul.mubr.msk.f32.gmra.mrb[2].mxu1 %vm20937_vm8, %v15650_v13  ;;  %vm20939_vm3 = vnez %v20938_v35  ;;  %v20940_v62 = vrot.slane %v15511_v36, 1  ;;  %6760 = vmatmul.mubr.msk.f32.gmra.mrb[62].mxu0 %vm20937_vm8, %v20911_v30  ;;  %vm20943_vm6 = vmmov %vm20937_vm8  ;;  %v20952_v35 = vld [vmem:[#allocation49_spill] sm:$0xff] }
 0x43d   : > { %v4022_v40 = vmax.f32 %v15511_v36, %v3990_v24  ;;  %v4118_v51 = vsel %vm20939_vm3, %v4065_v12, -inf  ;;  %vm20941_vm7 = vcmp.lt.s32.totalorder %v7533_v3, 7  ;;  %v4490_v58 = vmax.f32 %v4460_v37, %v15664_v23  ;;  %v20942_v24 = vld [vmem:[#allocation59_spill] sm:$0xff] }
 0x43e   : > { %v4192_v0 = vsel %vm20941_vm7, %v20940_v62, %v4183_v60  ;;  %v15685_v22 = vmax.f32 %v4277_v57, %v4373_v45  ;;  %v4311_v48 = vrot.slane %v15574_v56, 2  ;;  %v4434_v12 = vmax.f32 %v15534_v59, %v15664_v23  ;;  %6764 = vmatprep.mubr.msk.f32.mxu0 %vm20943_vm6, %v20942_v24 }
 0x43f   : > { %v4246_v14 = vsel %vm15093_vm13, %v4192_v0, -inf  ;;  %v4150_v16 = vmax.f32 %v4022_v40, %v4118_v51  ;;  %v20944_v49 = vrot.slane %v15574_v56, 7  ;;  %v20945_v37 = vrot.slane %v15511_v36, 7 }
 0x440   : > { %vm20946_vm7 = vcmp.lt.s32.totalorder %v7533_v3, 1  ;;  %v20947_v57 = vrot.slane %v15574_v56, 6  ;;  %v20948_v62 = vrot.slane %v15511_v36, 6  ;;  %vm20949_vm8 = vcmp.lt.s32.totalorder %v7533_v3, 2 }
 0x441   : > { %v3936_v45 = vsel %vm20946_vm7, %v20945_v37, %v20944_v49  ;;  %v15709_v51 = vmax.f32 %v4490_v58, %v15080_v44  ;;  %v4491_v0 = vmax.f32 %v4461_v18, %v15685_v22  ;;  %v20950_v24 = vrot.slane %v15511_v36, 2  ;;  %v20955_v36 = vld [vmem:[#allocation12_spill] sm:$0xff] }
 0x442   : > { %v4064_v40 = vsel %vm20949_vm8, %v20948_v62, %v20947_v57  ;;  %vm20951_vm6 = vcmp.lt.s32.totalorder %v7533_v3, 6  ;;  %vm20953_vm13 = vnez %v20952_v35  ;;  %v4278_v37 = vmax.f32 %v4150_v16, %v4246_v14  ;;  %v20959_v16 = vld [vmem:[#allocation52_spill] sm:$0xff]  ;;  %v20961_v62 = vld [vmem:[#allocation98_spill] sm:$0xff] }
 0x443   : > { %v4320_v21 = vsel %vm20951_vm6, %v20950_v24, %v4311_v48  ;;  %v3991_v49 = vsel %vm20953_vm13, %v3936_v45, -inf  ;;  %v4462_v31 = vmax.f32 %v4434_v12, %v15371_v2  ;;  %vm20954_vm7 = vcmask 15360  }
 0x444   : > { %v4374_v28 = vsel %vm15106_vm14, %v4320_v21, -inf  ;;  %v4023_v57 = vmax.f32 %v15574_v56, %v3991_v49  ;;  %6844 = vmatprep.mubr.msk.f32.mxu1 %vm20954_vm7, %v15709_v51  ;;  %v15725_v44 = vmax.f32 %v4491_v0, %v15198_v46  ;;  %vm20956_vm8 = vnez %v20955_v36  ;;  %vm20960_vm13 = vmmov %vm20954_vm7 }
 0x445   : > { %v4119_v18 = vsel %vm20956_vm8, %v4064_v40, -inf  ;;  %v20957_v58 = vrot.slane %v15540_v8, 1  ;;  %vm20958_vm6 = vcmp.lt.s32.totalorder %v7533_v3, 7  ;;  %v4312_v21 = vrot.slane %v15540_v8, 2  ;;  %6765 = vmatmul.mubr.msk.f32.vlgmr.msra.gmra.mrb[32].mxu0 %vm20960_vm13, %v20959_v16  ;;  %v20963_v40 = vld [vmem:[#allocation105_spill] sm:$0xff]  ;;  %vm20964_vm8 = vmmov %vm20960_vm13 }
 0x446   : > { %v15736_v12 = vmax.f32 %v4278_v37, %v4374_v28  ;;  %v4151_v45 = vmax.f32 %v4023_v57, %v4119_v18  ;;  %vm20962_vm7 = vnez %v20961_v62  ;;  %v4435_v0 = vmax.f32 %v15605_v47, %v15685_v22  ;;  %6767 = vmatprep.mubr.msk.f32.mxu0 %vm20964_vm8, %v20963_v40  ;;  %vm20965_vm14 = vmmov %vm20964_vm8 }
 0x447   : > { %v4191_v14 = vsel %vm20958_vm6, %v4183_v60, %v20957_v58  ;;  %6845 = vmatmul.mubr.msk.f32.gmra.mrb[4].mxu1 %vm20965_vm14, %v15725_v44  ;;  %vm20966_vm6 = vcmp.lt.s32.totalorder %v7533_v3, 6  ;;  %v20967_v24 = vrot.slane %v15540_v8, 7  ;;  %v20968_v28 = vrot.slane %v15574_v56, 7 }
 0x448   : > { %v4247_v46 = vsel %vm20962_vm7, %v4191_v14, -inf  ;;  %v4319_v60 = vsel %vm20966_vm6, %v4311_v48, %v4312_v21  ;;  %vm20969_vm13 = vcmp.lt.s32.totalorder %v7533_v3, 1  ;;  %v4056_v37 = vrot.slane %v15540_v8, 6  ;;  %v20970_v14 = vld [vmem:[#allocation78_spill] sm:$0xff] }
 0x449   : > { %v3935_v49 = vsel %vm20969_vm13, %v20968_v28, %v20967_v24  ;;  %v4185_v57 = vrot.slane %v15620_v53, 1  ;;  %v4492_v18 = vmax.f32 %v4462_v31, %v15736_v12  ;;  %v4279_v58 = vmax.f32 %v4151_v45, %v4247_v46  ;;  %v20972_v48 = vld [vmem:[#allocation86_spill] sm:$0xff]  ;;  %v20978_v45 = vld [vmem:[#allocation33_spill] sm:$0xff] }
 0x44a   : > { %vm20971_vm8 = vnez %v20970_v14  ;;  %v4463_v40 = vmax.f32 %v4435_v0, %v15513_v5  ;;  %vm20973_vm14 = vnez %v20972_v48  ;;  %v20974_v36 = vrot.slane %v15574_v56, 6 }
 0x44b   : > { %v4375_v16 = vsel %vm20971_vm8, %v4319_v60, -inf  ;;  %v3992_v62 = vsel %vm20973_vm14, %v3935_v49, -inf  ;;  %vm20975_vm6 = vcmp.lt.s32.totalorder %v7533_v3, 2  ;;  %v20976_v28 = vrot.slane %v15540_v8, 1  ;;  %v20980_v60 = vld [vmem:[#allocation91_spill] sm:$0xff]  ;;  %v20982_v49 = vld [vmem:[#allocation37_spill] sm:$0xff] }
 0x44c   : > { %v4063_v24 = vsel %vm20975_vm6, %v20974_v36, %v4056_v37  ;;  %vm20977_vm13 = vcmp.lt.s32.totalorder %v7533_v3, 7  ;;  %v4313_v31 = vrot.slane %v15620_v53, 2  ;;  %vm20979_vm7 = vcmask 15360  }
 0x44d   : > { %v4190_v35 = vsel %vm20977_vm13, %v20976_v28, %v4185_v57  ;;  %6768 = vmatmul.mubr.msk.f32.gmra.mrb[34].mxu0 %vm20979_vm7, %v20978_v45  ;;  %v15774_v46 = vmax.f32 %v4492_v18, %v15220_v9  ;;  %v15776_v0 = vmax.f32 %v4279_v58, %v4375_v16  ;;  %v4024_v56 = vmax.f32 %v15540_v8, %v3992_v62  ;;  %vm20983_vm6 = vmmov %vm20979_vm7 }
 0x44e   : > { %vm20981_vm14 = vnez %v20980_v60  ;;  %6770 = vmatprep.mubr.msk.f32.mxu0 %vm20983_vm6, %v20982_v49  ;;  %v4248_v28 = vsel %vm20773_vm11, %v4190_v35, -inf  ;;  %vm20984_vm13 = vcmp.lt.s32.totalorder %v7533_v3, 6  ;;  %v4436_v9 = vmax.f32 %v15664_v23, %v15736_v12  ;;  %v21002_v60 = vld [vmem:[#allocation111_spill] sm:$0xff] }
 0x44f   : > { %v4120_v36 = vsel %vm20981_vm14, %v4063_v24, -inf  ;;  %v4318_v48 = vsel %vm20984_vm13, %v4312_v21, %v4313_v31  ;;  %v20985_v18 = vrot.slane %v15620_v53, 7  ;;  %v20986_v58 = vrot.slane %v15540_v8, 7  ;;  %vm20988_vm14 = vmmov %vm20983_vm6  ;;  %v20989_v21 = vld [vmem:[#allocation67_spill] sm:$0xff] }
 0x450   : > { %vm20987_vm7 = vcmp.lt.s32.totalorder %v7533_v3, 1  ;;  %6847 = vmatprep.mubr.msk.f32.mxu1 %vm20988_vm14, %v15774_v46  ;;  %v4493_v16 = vmax.f32 %v4463_v40, %v15776_v0  ;;  %v4152_v24 = vmax.f32 %v4024_v56, %v4120_v36  ;;  %v4376_v35 = vsel %vm15257_vm10, %v4318_v48, -inf  ;;  %vm20992_vm13 = vmmov %vm20988_vm14 }
 0x451   : > { %v3934_v62 = vsel %vm20987_vm7, %v20986_v58, %v20985_v18  ;;  %vm20990_vm6 = vnez %v20989_v21  ;;  %v4464_v49 = vmax.f32 %v4436_v9, %v15534_v59  ;;  %v4057_v8 = vrot.slane %v15620_v53, 6  ;;  %v20991_v58 = vld [vmem:[#allocation15_spill] sm:$0xff]  ;;  %vm20994_vm14 = vmmov %vm20992_vm13  ;;  %v20999_v21 = vld [vmem:[#allocation180_spill] sm:$0xff] }
 0x452   : > { %v3993_v45 = vsel %vm20990_vm6, %v3934_v62, -inf  ;;  %v4186_v18 = vrot.slane %v15508_v34, 1  ;;  %6771 = vmatmul.mubr.msk.f32.gmra.mrb[36].mxu0 %vm20992_vm13, %v20991_v58  ;;  %v15809_v40 = vmax.f32 %v4493_v16, %v15339_v39  ;;  %v4280_v56 = vmax.f32 %v4152_v24, %v4248_v28  ;;  %v20993_v62 = vld [vmem:[#allocation57_spill] sm:$0xff] }
 0x453   : > { %v4025_v25 = vmax.f32 %v15620_v53, %v3993_v45  ;;  %v4314_v48 = vrot.slane %v15508_v34, 2  ;;  %v4437_v36 = vmax.f32 %v15685_v22, %v15776_v0  ;;  %6773 = vmatprep.mubr.msk.f32.mxu0 %vm20994_vm14, %v20993_v62  ;;  %vm20995_vm7 = vcmp.lt.s32.totalorder %v7533_v3, 2  ;;  %v20997_v16 = vld [vmem:[#allocation181_spill] sm:$0xff] }
 0x454   : > { %v4062_v9 = vsel %vm20995_vm7, %v4056_v37, %v4057_v8  ;;  %vm20996_vm6 = vcmp.lt.s32.totalorder %v7533_v3, 7  ;;  %v3930_v58 = vrot.slane %v15508_v34, 7  ;;  %v4058_v39 = vrot.slane %v15508_v34, 6  ;;  %6848 = vmatmul.mubr.msk.f32.gmra.mrb[6].mxu1 %vm20992_vm13, %v15809_v40 }
 0x455   : > { %v4189_v45 = vsel %vm20996_vm6, %v4185_v57, %v4186_v18  ;;  %v4408_v28 = vmax.f32 %v4280_v56, %v4376_v35  ;;  %vm20998_vm10 = vnez %v20997_v16  ;;  %vm21000_vm11 = vnez %v20999_v21  ;;  %v21006_v56 = vld [vmem:[#allocation47_spill] sm:$0xff]  ;;  %v21007_v21 = vld [vmem:[#allocation28_spill] sm:$0xff] }
 0x456   : > { %v4121_v24 = vsel %vm20998_vm10, %v4062_v9, -inf  ;;  %v4249_v62 = vsel %vm21000_vm11, %v4189_v45, -inf  ;;  %vm21001_vm14 = vcmp.lt.s32.totalorder %v7533_v3, 6  ;;  %vm21003_vm6 = vnez %v21002_v60  ;;  %6774 = vmatmul.mubr.msk.f32.gmra.mrb[38].mxu0 %vm20992_vm13, %v21006_v56 }
 0x457   : > { %v4317_v37 = vsel %vm21001_vm14, %v4313_v31, %v4314_v48  ;;  %v4153_v41 = vmax.f32 %v4025_v25, %v4121_v24  ;;  %v4465_v14 = vmax.f32 %v4437_v36, %v15605_v47  ;;  %v21004_v43 = vrot.slane %v15620_v53, 7  ;;  %v21010_v24 = vld [vmem:[#allocation83_spill] sm:$0xff] }
 0x458   : > { %v4377_v57 = vsel %vm21003_vm6, %v4317_v37, -inf  ;;  %vm21005_vm7 = vcmp.lt.s32.totalorder %v7533_v3, 1  ;;  %v4494_v9 = vmax.f32 %v4464_v49, %v4408_v28  ;;  %vm21008_vm11 = vnez %v21007_v21  ;;  %vm21011_vm6 = vmmov %vm20992_vm13  ;;  %v21012_v37 = vld [vmem:[#allocation32_spill] sm:$0xff] }
 0x459   : > { %v3933_v35 = vsel %vm21005_vm7, %v21004_v43, %v3930_v58  ;;  %vm21009_vm14 = vcmp.lt.s32.totalorder %v7533_v3, 2  ;;  %v4187_v31 = vrot.slane %v20911_v30, 1  ;;  %6776 = vmatprep.mubr.msk.f32.mxu0 %vm21011_vm6, %v21010_v24  ;;  %v4281_v36 = vmax.f32 %v4153_v41, %v4249_v62 }
 0x45a   : > { %v3994_v45 = vsel %vm21008_vm11, %v3933_v35, -inf  ;;  %v4061_v25 = vsel %vm21009_vm14, %v4057_v8, %v4058_v39  ;;  %vm21013_vm7 = vnez %v21012_v37  ;;  %v4315_v56 = vrot.slane %v20911_v30, 2  ;;  %v21043_v37 = vld [vmem:[#allocation136_spill] sm:$0xff] }
 0x45b   : > { %v4026_v53 = vmax.f32 %v15508_v34, %v3994_v45  ;;  %v4122_v43 = vsel %vm21013_vm7, %v4061_v25, -inf  ;;  %v15851_v49 = vmax.f32 %v4494_v9, %v15371_v2  ;;  %vm21014_vm13 = vcmp.lt.s32.totalorder %v7533_v3, 7  ;;  %v21018_v2 = vld [vmem:[#allocation89_spill] sm:$0xff] }
 0x45c   : > { %v4188_v35 = vsel %vm21014_vm13, %v4186_v18, %v4187_v31  ;;  %v4438_v8 = vmax.f32 %v15736_v12, %v4408_v28  ;;  %v21015_v21 = vrot.slane %v20911_v30, 7  ;;  %vm21016_vm6 = vcmp.lt.s32.totalorder %v7533_v3, 1 }
 0x45d   : > { %v4409_v62 = vmax.f32 %v4281_v36, %v4377_v57  ;;  %v4154_v34 = vmax.f32 %v4026_v53, %v4122_v43  ;;  %v4250_v45 = vsel %vm15426_vm4, %v4188_v35, -inf  ;;  %vm21017_vm14 = vcmp.lt.s32.totalorder %v7533_v3, 6  ;;  %v21027_v35 = vld [vmem:[#allocation21_spill] sm:$0xff] }
 0x45e   : > { %v3932_v41 = vsel %vm21016_vm6, %v3930_v58, %v21015_v21  ;;  %v4316_v25 = vsel %vm21017_vm14, %v4314_v48, %v4315_v56  ;;  %vm21019_vm7 = vcmask 15360   ;;  %v4466_v9 = vmax.f32 %v4438_v8, %v15664_v23  ;;  %v21021_v21 = vld [vmem:[#allocation118_spill] sm:$0xff]  ;;  %v21025_v48 = vld [vmem:[#allocation104_spill] sm:$0xff] }
 0x45f   : > { %6777 = vmatmul.mubr.msk.f32.gmra.mrb[40].mxu0 %vm21019_vm7, %v21018_v2  ;;  %vm21020_vm13 = vmmov %vm21019_vm7  ;;  %v4378_v18 = vsel %vm15443_vm12, %v4316_v25, -inf  ;;  %vm21022_vm6 = vnez %v21021_v21  ;;  %v21023_v57 = vrot.slane %v20911_v30, 6  ;;  %vm21024_vm4 = vcmp.lt.s32.totalorder %v7533_v3, 2  ;;  %v21029_v2 = vld [vmem:[#allocation18_spill] sm:$0xff]  ;;  %v21042_v21 = vld [vmem:[#allocation77_spill] sm:$0xff] }
 0x460   : > { %6850 = vmatprep.mubr.msk.f32.mxu1 %vm21020_vm13, %v15851_v49  ;;  %v3995_v58 = vsel %vm21022_vm6, %v3932_v41, -inf  ;;  %vm21026_vm14 = vmmov %vm21019_vm7  ;;  %v4495_v36 = vmax.f32 %v4465_v14, %v4409_v62  ;;  %v4282_v53 = vmax.f32 %v4154_v34, %v4250_v45  ;;  %vm21028_vm7 = vnez %v21027_v35  ;;  %v21038_v35 = vld [vmem:[#allocation102_spill] sm:$0xff] }
 0x461   : > { %v4060_v24 = vsel %vm21024_vm4, %v4058_v39, %v21023_v57  ;;  %6779 = vmatprep.mubr.msk.f32.mxu0 %vm21026_vm14, %v21025_v48  ;;  %v4027_v43 = vmax.f32 %v20911_v30, %v3995_v58  ;;  %v21030_v8 = vrot.slane %v21029_v2, 1  ;;  %vm21031_vm13 = vcmp.lt.s32.totalorder %v7533_v3, 7  ;;  %v21034_v48 = vld [vmem:[#allocation132_spill] sm:$0xff] }
 0x462   : > { %v4123_v25 = vsel %vm21028_vm7, %v4060_v24, -inf  ;;  %v21032_v52 = vrot.slane %v21029_v2, 2  ;;  %vm21033_vm12 = vcmp.lt.s32.totalorder %v7533_v3, 6  ;;  %v4439_v57 = vmax.f32 %v15776_v0, %v4409_v62  ;;  %v21036_v58 = vld [vmem:[#allocation80_spill] sm:$0xff] }
 0x463   : > { %v4219_v41 = vsel %vm21031_vm13, %v4187_v31, %v21030_v8  ;;  %v4881_v14 = vrot.slane %v21034_v48, 7  ;;  %v15893_v34 = vmax.f32 %v4495_v36, %v15513_v5  ;;  %v4410_v30 = vmax.f32 %v4282_v53, %v4378_v18  ;;  %6780 = vmatmul.mubr.msk.f32.gmra.mrb[42].mxu0 %vm21026_vm14, %v21038_v35  ;;  %v21039_v31 = vld [vmem:[#allocation119_spill] sm:$0xff]  ;;  %v21046_v53 = vld [vmem:[#allocation204_spill] sm:$0xff] }
 0x464   : > { %v4347_v39 = vsel %vm21033_vm12, %v4315_v56, %v21032_v52  ;;  %v4155_v45 = vmax.f32 %v4027_v43, %v4123_v25  ;;  %vm21037_vm4 = vnez %v21036_v58  ;;  %vm21040_vm13 = vnez %v21039_v31  ;;  %v21041_v56 = vld [vmem:[#allocation137_spill] sm:$0xff]  ;;  %vm21044_vm12 = vmmov %vm21026_vm14  ;;  %v21047_v35 = vld [vmem:[#allocation96_spill] sm:$0xff] }
 0x465   : > { %21035 = vst [vmem:[#allocation107_spill] sm:$0xff] %v15893_v34  ;;  %v4251_v24 = vsel %vm21037_vm4, %v4219_v41, -inf  ;;  %v4379_v2 = vsel %vm21040_vm13, %v4347_v39, -inf  ;;  %v4467_v52 = vmax.f32 %v4439_v57, %v15685_v22  ;;  %v4882_v8 = vrot.slane %v21041_v56, 7  ;;  %6782 = vmatprep.mubr.msk.f32.mxu0 %vm21044_vm12, %v21043_v37  ;;  %vm21045_vm7 = vmmov %vm21044_vm12 }
 0x466   : > { %v4883_v4 = vrot.slane %v21042_v21, 7  ;;  %6851 = vmatmul.mubr.msk.f32.gmra.mrb[8].mxu1 %vm21045_vm7, %v15893_v34  ;;  %v4440_v5 = vmax.f32 %v4408_v28, %v4410_v30  ;;  %v4496_v18 = vmax.f32 %v4466_v9, %v4410_v30  ;;  %v4283_v36 = vmax.f32 %v4155_v45, %v4251_v24  ;;  %v21053_v45 = vld [vmem:[#allocation135_spill] sm:$0xff]  ;;  %v21054_v24 = vld [vmem:[#allocation225_spill] sm:$0xff] }
 0x467   : > { %v4884_v43 = vrot.slane %v21046_v53, 7  ;;  %v4885_v25 = vrot.slane %v21047_v35, 7  ;;  %vm21048_vm14 = vcmp.lt.s32.totalorder %v7533_v3, 1  ;;  %v5009_v57 = vrot.slane %v21034_v48, 6  ;;  %6783 = vmatmul.mubr.msk.f32.gmra.mrb[44].mxu0 %vm21044_vm12, %v21053_v45  ;;  %v21064_v45 = vld [vmem:[#allocation14_spill] sm:$0xff] }
 0x468   : > { %v4942_v41 = vsel %vm21048_vm14, %v4882_v8, %v4883_v4  ;;  %vm21049_vm13 = vmmov %vm21048_vm14  ;;  %v15918_v37 = vmax.f32 %v4440_v5, %v15736_v12  ;;  %v15921_v28 = vmax.f32 %v4496_v18, %v15534_v59  ;;  %v4411_v9 = vmax.f32 %v4283_v36, %v4379_v2  ;;  %v21058_v5 = vld [vmem:[#allocation3_spill] sm:$0xff]  ;;  %v21060_v18 = vld [vmem:[#allocation145_spill] sm:$0xff] }
 0x469   : > { %v15914_v39 = vsel %vm21049_vm13, %v4881_v14, %v4882_v8  ;;  %vm21052_vm7 = vmmov %vm21049_vm13  ;;  %v21055_v31 = vrot.slane %v21054_v24, 7  ;;  %vm21059_vm4 = vnez %v21058_v5  ;;  %v5010_v2 = vrot.slane %v21041_v56, 6 }
 0x46a   : > { %21050 = vst [vmem:[#allocation24_spill] sm:$0xff] %v15918_v37  ;;  %21051 = vst [vmem:[#allocation124_spill] sm:$0xff] %v15921_v28  ;;  %v15925_v30 = vsel %vm21052_vm7, %v4883_v4, %v4884_v43  ;;  %v4947_v59 = vsel %vm21059_vm4, %v4942_v41, -inf  ;;  %v4441_v4 = vmax.f32 %v4409_v62, %v4411_v9  ;;  %v4497_v36 = vmax.f32 %v4467_v52, %v4411_v9  ;;  %v21069_v9 = vld [vmem:[#allocation143_spill] sm:$0xff] }
 0x46b   : > { %vm21056_vm13 = vmmov %vm21052_vm7  ;;  %v5011_v5 = vrot.slane %v21042_v21, 6  ;;  %v5141_v34 = vrot.slane %v21047_v35, 1 }
 0x46c   : > { %v15933_v8 = vsel %vm21056_vm13, %v4885_v25, %v21055_v31  ;;  %vm21057_vm14 = vmmov %vm21052_vm7  ;;  %v15946_v31 = vmax.f32 %v15918_v37, %v15664_v23  ;;  %v15955_v58 = vmax.f32 %v4441_v4, %v15776_v0  ;;  %v15958_v62 = vmax.f32 %v4497_v36, %v15605_v47 }
 0x46d   : > { %v4940_v12 = vsel %vm21057_vm14, %v4884_v43, %v4885_v25  ;;  %vm21061_vm7 = vmmov %vm21044_vm12  ;;  %vm21065_vm12 = vnez %v21064_v45  ;;  %v4979_v25 = vmax.f32 %v21042_v21, %v4947_v59  ;;  %v5013_v23 = vrot.slane %v21047_v35, 6 }
 0x46e   : > { %6785 = vmatprep.mubr.msk.f32.mxu0 %vm21061_vm7, %v21060_v18  ;;  %vm21062_vm6 = vmmov %vm21061_vm7  ;;  %21063 = vst [vmem:[#allocation147_spill] sm:$0xff] %v15946_v31  ;;  %v4949_v43 = vsel %vm21065_vm12, %v4940_v12, -inf  ;;  %v5012_v18 = vrot.slane %v21046_v53, 6  ;;  %v5138_v47 = vrot.slane %v21041_v56, 1  ;;  %v15979_v4 = vmax.f32 %v15955_v58, %v15685_v22 }
 0x46f   : > { %6853 = vmatprep.mubr.msk.f32.mxu1 %vm21062_vm6, %v15921_v28  ;;  %v4981_v41 = vmax.f32 %v21047_v35, %v4949_v43  ;;  %21066 = vst [vmem:[#allocation155_spill] sm:$0xff] %v15955_v58  ;;  %21067 = vst [vmem:[#allocation154_spill] sm:$0xff] %v15958_v62  ;;  %vm21068_vm6 = vcmp.lt.s32.totalorder %v7533_v3, 2  ;;  %v21074_v43 = vrot.slane %v21054_v24, 6  ;;  %v5139_v59 = vrot.slane %v21042_v21, 1 }
 0x470   : > { %v15963_v52 = vsel %vm21068_vm6, %v5009_v57, %v5010_v2  ;;  %vm21070_vm4 = vmmov %vm21061_vm7  ;;  %v5140_v36 = vrot.slane %v21046_v53, 1  ;;  %v21080_v45 = vrot.slane %v15955_v58, 7 }
 0x471   : > { %6786 = vmatmul.mubr.msk.f32.gmra.mrb[46].mxu0 %vm21070_vm4, %v21069_v9  ;;  %vm21071_vm13 = vmmov %vm21068_vm6  ;;  %v21078_v9 = vld [vmem:[#allocation39_spill] sm:$0xff] }
 0x472   : > { %v15969_v12 = vsel %vm21071_vm13, %v5011_v5, %v5012_v18  ;;  %vm21072_vm14 = vmmov %vm21068_vm6  ;;  %vm21079_vm13 = vnez %v21078_v9  ;;  %v21086_v9 = vld [vmem:[#allocation159_spill] sm:$0xff] }
 0x473   : > { %v5070_v0 = vsel %vm21072_vm14, %v5010_v2, %v5011_v5  ;;  %vm21073_vm7 = vmmov %vm21070_vm4  ;;  %vm21081_vm14 = vcmp.lt.s32.totalorder %v7533_v3, 1 }
 0x474   : > { %6854 = vmatmul.mubr.msk.f32.gmra.mrb[10].mxu1 %vm21073_vm7, %v15958_v62  ;;  %vm21075_vm12 = vmmov %vm21068_vm6  ;;  %v5075_v22 = vsel %vm21079_vm13, %v5070_v0, -inf  ;;  %v4944_v60 = vsel %vm21081_vm14, %v21080_v45, %v4881_v14  ;;  %v21088_v62 = vld [vmem:[#allocation134_spill] sm:$0xff]  ;;  %vm21090_vm13 = vcmask 15360   ;;  %vm21091_vm14 = vcmp.lt.s32.totalorder %v7533_v3, 7 }
 0x475   : > { %v15987_v2 = vsel %vm21075_vm12, %v5013_v23, %v21074_v43  ;;  %vm21076_vm6 = vmmov %vm21070_vm4  ;;  %v21082_v43 = vrot.slane %v15955_v58, 6 }
 0x476   : > { %6856 = vmatprep.mubr.msk.f32.mxu1 %vm21076_vm6, %v15946_v31  ;;  %vm21077_vm4 = vmmov %vm21075_vm12  ;;  %v21084_v31 = vld [vmem:[#allocation40_spill] sm:$0xff]  ;;  %vm21087_vm6 = vnez %v21086_v9 }
 0x477   : > { %v5068_v5 = vsel %vm21077_vm4, %v5012_v18, %v5013_v23  ;;  %vm21083_vm7 = vmmov %vm21077_vm4  ;;  %vm21085_vm12 = vnez %v21084_v31  ;;  %v5107_v23 = vmax.f32 %v4979_v25, %v5075_v22  ;;  %v4945_v0 = vsel %vm21087_vm6, %v4944_v60, -inf }
 0x478   : > { %v5072_v16 = vsel %vm21083_vm7, %v21082_v43, %v5009_v57  ;;  %v5077_v18 = vsel %vm21085_vm12, %v5068_v5, -inf  ;;  %vm21089_vm4 = vnez %v21088_v62  ;;  %6857 = vmatmul.mubr.msk.f32.gmra.mrb[12].mxu1 %vm21090_vm13, %v15979_v4  ;;  %v4977_v14 = vmax.f32 %v21034_v48, %v4945_v0  ;;  %vm21092_vm7 = vmmov %vm21091_vm14  ;;  %v21097_v62 = vld [vmem:[#allocation34_spill] sm:$0xff] }
 0x479   : > { %v5073_v28 = vsel %vm21089_vm4, %v5072_v16, -inf  ;;  %v5109_v38 = vmax.f32 %v4981_v41, %v5077_v18  ;;  %v5142_v57 = vrot.slane %v21054_v24, 1  ;;  %v5197_v31 = vsel %vm21091_vm14, %v5139_v59, %v5140_v36  ;;  %vm21093_vm12 = vmmov %vm21090_vm13  ;;  %v21099_v43 = vld [vmem:[#allocation122_spill] sm:$0xff] }
 0x47a   : > { %v5198_v25 = vsel %vm21092_vm7, %v5138_v47, %v5139_v59  ;;  %6859 = vmatprep.mubr.msk.f32.mxu1 %vm21093_vm12, %v15918_v37  ;;  %vm21094_vm6 = vmmov %vm21092_vm7  ;;  %v21095_v16 = vrot.slane %v21034_v48, 1  ;;  %vm21098_vm13 = vnez %v21097_v62  ;;  %v18038_v5 = vrot.slane %v21034_v48, 2  ;;  %v21105_v37 = vld [vmem:[#allocation42_spill] sm:$0xff] }
 0x47b   : > { %v5196_v60 = vsel %vm21094_vm6, %v5140_v36, %v5141_v34  ;;  %vm21096_vm4 = vmmov %vm21094_vm6  ;;  %v5203_v45 = vsel %vm21098_vm13, %v5197_v31, -inf  ;;  %v5105_v22 = vmax.f32 %v4977_v14, %v5073_v28  ;;  %v21100_v18 = vrot.slane %v21099_v43, 1  ;;  %v21103_v36 = vld [vmem:[#allocation106_spill] sm:$0xff] }
 0x47c   : > { %v5199_v41 = vsel %vm21096_vm4, %v21095_v16, %v5138_v47  ;;  %vm21101_vm14 = vmmov %vm21096_vm4  ;;  %vm21104_vm12 = vnez %v21103_v36  ;;  %vm21106_vm6 = vnez %v21105_v37  ;;  %v5235_v16 = vmax.f32 %v5107_v23, %v5203_v45  ;;  %v21112_v45 = vld [vmem:[#allocation255_spill] sm:$0xff]  ;;  %v21120_v48 = vld [vmem:[#allocation38_spill] sm:$0xff] }
 0x47d   : > { %v5194_v59 = vsel %vm21101_vm14, %v5142_v57, %v21100_v18  ;;  %vm21102_vm7 = vmmov %vm21096_vm4  ;;  %v5201_v0 = vsel %vm21104_vm12, %v5199_v41, -inf  ;;  %v5266_v31 = vrot.slane %v21041_v56, 2  ;;  %v5267_v62 = vrot.slane %v21042_v21, 2 }
 0x47e   : > { %v5195_v9 = vsel %vm21102_vm7, %v5141_v34, %v5142_v57  ;;  %vm21107_vm4 = vcmask 15360   ;;  %v5233_v28 = vmax.f32 %v5105_v22, %v5201_v0  ;;  %v5268_v18 = vrot.slane %v21046_v53, 2  ;;  %v21114_v22 = vld [vmem:[#allocation253_spill] sm:$0xff] }
 0x47f   : > { %v5205_v47 = vsel %vm21106_vm6, %v5195_v9, -inf  ;;  %6860 = vmatmul.mubr.msk.f32.gmra.mrb[14].mxu1 %vm21107_vm4, %v15955_v58  ;;  %v5269_v34 = vrot.slane %v21047_v35, 2  ;;  %v5270_v57 = vrot.slane %v21054_v24, 2  ;;  %v5271_v41 = vrot.slane %v21099_v43, 2 }
 0x480   : > { %v5237_v14 = vmax.f32 %v5109_v38, %v5205_v47  ;;  %vm21108_vm13 = vcmp.lt.s32.totalorder %v7533_v3, 6  ;;  %vm21113_vm6 = vnez %v21112_v45  ;;  %vm21115_vm4 = vnez %v21114_v22  ;;  %v21118_v47 = vld [vmem:[#allocation61_spill] sm:$0xff]  ;;  %v21124_v45 = vld [vmem:[#allocation27_spill] sm:$0xff] }
 0x481   : > { %v5326_v37 = vsel %vm21108_vm13, %v5266_v31, %v5267_v62  ;;  %vm21109_vm14 = vmmov %vm21108_vm13  ;;  %v4946_v9 = vsel %vm21115_vm4, %v15914_v39, -inf }
 0x482   : > { %v5327_v21 = vsel %vm21109_vm14, %v18038_v5, %v5266_v31  ;;  %vm21110_vm7 = vmmov %vm21108_vm13  ;;  %vm21119_vm14 = vnez %v21118_v47 }
 0x483   : > { %v5324_v23 = vsel %vm21110_vm7, %v5268_v18, %v5269_v34  ;;  %vm21111_vm12 = vmmov %vm21110_vm7  ;;  %v5329_v35 = vsel %vm21113_vm6, %v5327_v21, -inf  ;;  %v21122_v21 = vld [vmem:[#allocation22_spill] sm:$0xff]  ;;  %vm21125_vm6 = vnez %v21124_v45 }
 0x484   : > { %v5325_v38 = vsel %vm21111_vm12, %v5267_v62, %v5268_v18  ;;  %vm21116_vm13 = vmmov %vm21110_vm7  ;;  %v16070_v5 = vmax.f32 %v5233_v28, %v5329_v35  ;;  %vm21123_vm12 = vnez %v21122_v21  ;;  %v4950_v22 = vsel %vm21125_vm6, %v15933_v8, -inf  ;;  %v21130_v8 = vld [vmem:[#allocation43_spill] sm:$0xff]  ;;  %v21138_v45 = vld [vmem:[#allocation26_spill] sm:$0xff] }
 0x485   : > { %v5322_v36 = vsel %vm21116_vm13, %v5270_v57, %v5271_v41  ;;  %vm21117_vm11 = vmmov %vm21110_vm7  ;;  %v5331_v31 = vsel %vm21119_vm14, %v5325_v38, -inf  ;;  %vm21121_vm7 = vnez %v21120_v48  ;;  %v4948_v39 = vsel %vm21123_vm12, %v15925_v30, -inf  ;;  %v21128_v30 = vld [vmem:[#allocation16_spill] sm:$0xff] }
 0x486   : > { %v5323_v0 = vsel %vm21117_vm11, %v5269_v34, %v5270_v57  ;;  %v16074_v18 = vmax.f32 %v5235_v16, %v5331_v31  ;;  %v4978_v34 = vmax.f32 %v21041_v56, %v4946_v9  ;;  %v4980_v28 = vmax.f32 %v21046_v53, %v4948_v39  ;;  %v21126_v16 = vld [vmem:[#allocation254_spill] sm:$0xff] }
 0x487   : > { %v5333_v62 = vsel %vm21121_vm7, %v5323_v0, -inf  ;;  %v4982_v57 = vmax.f32 %v21054_v24, %v4950_v22  ;;  %vm21127_vm11 = vnez %v21126_v16  ;;  %vm21129_vm4 = vnez %v21128_v30  ;;  %v21132_v0 = vld [vmem:[#allocation190_spill] sm:$0xff] }
 0x488   : > { %v16082_v58 = vmax.f32 %v5237_v14, %v5333_v62  ;;  %v5393_v48 = vmax.f32 %v16070_v5, %v16074_v18  ;;  %v5074_v38 = vsel %vm21127_vm11, %v15963_v52, -inf  ;;  %v5076_v35 = vsel %vm21129_vm4, %v15969_v12, -inf  ;;  %v21134_v62 = vld [vmem:[#allocation25_spill] sm:$0xff]  ;;  %v21136_v52 = vld [vmem:[#allocation51_spill] sm:$0xff] }
 0x489   : > { %vm21131_vm13 = vnez %v21130_v8  ;;  %v5106_v56 = vmax.f32 %v4978_v34, %v5074_v38  ;;  %v5108_v9 = vmax.f32 %v4980_v28, %v5076_v35  ;;  %vm21133_vm14 = vnez %v21132_v0  ;;  %v21140_v34 = vld [vmem:[#allocation55_spill] sm:$0xff]  ;;  %v21145_v38 = vld [vmem:[#allocation224_spill] sm:$0xff] }
 0x48a   : > { %v5078_v14 = vsel %vm21131_vm13, %v15987_v2, -inf  ;;  %v5202_v47 = vsel %vm21133_vm14, %v5198_v25, -inf  ;;  %v5451_v31 = vmax.f32 %v5393_v48, %v16082_v58  ;;  %vm21135_vm7 = vnez %v21134_v62  ;;  %v21143_v25 = vld [vmem:[#allocation41_spill] sm:$0xff] }
 0x48b   : > { %v5110_v53 = vmax.f32 %v4982_v57, %v5078_v14  ;;  %v5204_v21 = vsel %vm21135_vm7, %v5196_v60, -inf  ;;  %vm21137_vm12 = vnez %v21136_v52  ;;  %vm21139_vm6 = vnez %v21138_v45  ;;  %v21156_v52 = vld [vmem:[#allocation56_spill] sm:$0xff] }
 0x48c   : > { %v5206_v39 = vsel %vm21137_vm12, %v5194_v59, -inf  ;;  %v5330_v12 = vsel %vm21139_vm6, %v5326_v37, -inf  ;;  %v5234_v22 = vmax.f32 %v5106_v56, %v5202_v47  ;;  %v5236_v16 = vmax.f32 %v5108_v9, %v5204_v21  ;;  %v21154_v21 = vld [vmem:[#allocation9_spill] sm:$0xff] }
 0x48d   : > { %v5238_v2 = vmax.f32 %v5110_v53, %v5206_v39  ;;  %vm21141_vm11 = vnez %v21140_v34  ;;  %vm21142_vm4 = vcmask 15360   ;;  %vm21144_vm13 = vnez %v21143_v25  ;;  %v21159_v34 = vld [vmem:[#allocation103_spill] sm:$0xff] }
 0x48e   : > { %v5332_v28 = vsel %vm21141_vm11, %v5324_v23, -inf  ;;  %6864 = vmatprep.mubr.msk.f32.mxu1 %vm21142_vm4, %v5451_v31  ;;  %v5334_v57 = vsel %vm21144_vm13, %v5322_v36, -inf  ;;  %v4887_v48 = vrot.slane %v21099_v43, 7  ;;  %v5015_v60 = vrot.slane %v21099_v43, 6  ;;  %v21152_v31 = vld [vmem:[#allocation48_spill] sm:$0xff] }
 0x48f   : > { %v5144_v59 = vrot.slane %v21145_v38, 1  ;;  %v16115_v30 = vmax.f32 %v5234_v22, %v5330_v12  ;;  %v16117_v37 = vmax.f32 %v5236_v16, %v5332_v28  ;;  %v16119_v35 = vmax.f32 %v5238_v2, %v5334_v57 }
 0x490   : > { %v5272_v8 = vrot.slane %v21145_v38, 2  ;;  %v21146_v23 = vrot.slane %v21054_v24, 7  ;;  %vm21147_vm14 = vcmp.lt.s32.totalorder %v7533_v3, 1  ;;  %v21148_v36 = vrot.slane %v21054_v24, 6 }
 0x491   : > { %vm21149_vm7 = vcmp.lt.s32.totalorder %v7533_v3, 2  ;;  %v21150_v9 = vrot.slane %v21099_v43, 1  ;;  %vm21151_vm12 = vcmp.lt.s32.totalorder %v7533_v3, 7  ;;  %v5395_v0 = vmax.f32 %v16074_v18, %v16082_v58 }
 0x492   : > { %v4938_v14 = vsel %vm21147_vm14, %v21146_v23, %v4887_v48  ;;  %v5066_v56 = vsel %vm21149_vm7, %v21148_v36, %v5015_v60  ;;  %v5394_v47 = vmax.f32 %v16115_v30, %v16117_v37  ;;  %vm21153_vm6 = vnez %v21152_v31  ;;  %v21163_v36 = vld [vmem:[#allocation30_spill] sm:$0xff]  ;;  %v21167_v31 = vld [vmem:[#allocation60_spill] sm:$0xff] }
 0x493   : > { %v5193_v53 = vsel %vm21151_vm12, %v21150_v9, %v5144_v59  ;;  %v4951_v62 = vsel %vm21153_vm6, %v4938_v14, -inf  ;;  %vm21155_vm11 = vnez %v21154_v21  ;;  %vm21157_vm4 = vnez %v21156_v52  ;;  %v21169_v21 = vld [vmem:[#allocation109_spill] sm:$0xff] }
 0x494   : > { %v5079_v24 = vsel %vm21155_vm11, %v5066_v56, -inf  ;;  %v5207_v39 = vsel %vm21157_vm4, %v5193_v53, -inf  ;;  %v4983_v45 = vmax.f32 %v21099_v43, %v4951_v62  ;;  %vm21158_vm13 = vcmp.lt.s32.totalorder %v7533_v3, 6 }
 0x495   : > { %v5321_v12 = vsel %vm21158_vm13, %v5271_v41, %v5272_v8  ;;  %v5423_v22 = vmax.f32 %v5395_v0, %v16070_v5  ;;  %v4888_v16 = vrot.slane %v21145_v38, 7  ;;  %v5452_v2 = vmax.f32 %v5394_v47, %v16119_v35 }
 0x496   : > { %vm21160_vm14 = vnez %v21159_v34  ;;  %v5016_v25 = vrot.slane %v21145_v38, 6  ;;  %v5145_v57 = vrot.slane %v14866_v17, 1  ;;  %v5111_v23 = vmax.f32 %v4983_v45, %v5079_v24  ;;  %v21175_v34 = vld [vmem:[#allocation54_spill] sm:$0xff] }
 0x497   : > { %v5335_v28 = vsel %vm21160_vm14, %v5321_v12, -inf  ;;  %vm21161_vm7 = vcmp.lt.s32.totalorder %v7533_v3, 1  ;;  %v5273_v14 = vrot.slane %v14866_v17, 2  ;;  %v5396_v41 = vmax.f32 %v16117_v37, %v16119_v35 }
 0x498   : > { %v4937_v43 = vsel %vm21161_vm7, %v4887_v48, %v4888_v16  ;;  %vm21162_vm12 = vcmask 15360   ;;  %vm21164_vm6 = vnez %v21163_v36  ;;  %vm21165_vm11 = vcmp.lt.s32.totalorder %v7533_v3, 2 }
 0x499   : > { %6865 = vmatmul.mubr.msk.f32.vlgmr.msra.gmra.mrb[16].mxu1 %vm21162_vm12, %v5452_v2  ;;  %v4952_v56 = vsel %vm21164_vm6, %v4937_v43, -inf  ;;  %v5065_v9 = vsel %vm21165_vm11, %v5015_v60, %v5016_v25  ;;  %vm21166_vm4 = vcmp.lt.s32.totalorder %v7533_v3, 7  ;;  %v4889_v0 = vrot.slane %v14866_v17, 7 }
 0x49a   : > { %v5192_v53 = vsel %vm21166_vm4, %v5144_v59, %v5145_v57  ;;  %v5239_v47 = vmax.f32 %v5111_v23, %v5207_v39  ;;  %v4984_v48 = vmax.f32 %v21145_v38, %v4952_v56  ;;  %vm21168_vm13 = vnez %v21167_v31  ;;  %v21173_v38 = vld [vmem:[#allocation112_spill] sm:$0xff]  ;;  %v21178_v56 = vld [vmem:[#allocation7_spill] sm:$0xff] }
 0x49b   : > { %v5080_v62 = vsel %vm21168_vm13, %v5065_v9, -inf  ;;  %vm21170_vm14 = vnez %v21169_v21  ;;  %vm21171_vm7 = vcmp.lt.s32.totalorder %v7533_v3, 6  ;;  %v5424_v45 = vmax.f32 %v5396_v41, %v16115_v30  ;;  %v21184_v21 = vld [vmem:[#allocation256_spill] sm:$0xff] }
 0x49c   : > { %v5208_v24 = vsel %vm21170_vm14, %v5192_v53, -inf  ;;  %v5320_v52 = vsel %vm21171_vm7, %v5272_v8, %v5273_v14  ;;  %vm21172_vm12 = vcmp.lt.s32.totalorder %v7533_v3, 1  ;;  %v5017_v59 = vrot.slane %v14866_v17, 6 }
 0x49d   : > { %v4936_v60 = vsel %vm21172_vm12, %v4888_v16, %v4889_v0  ;;  %v16178_v12 = vmax.f32 %v5239_v47, %v5335_v28  ;;  %v5112_v39 = vmax.f32 %v4984_v48, %v5080_v62  ;;  %vm21174_vm6 = vnez %v21173_v38 }
 0x49e   : > { %v5336_v2 = vsel %vm21174_vm6, %v5320_v52, -inf  ;;  %vm21176_vm11 = vnez %v21175_v34  ;;  %vm21177_vm4 = vcmp.lt.s32.totalorder %v7533_v3, 2  ;;  %v5146_v41 = vrot.slane %v14951_v42, 1 }
 0x49f   : > { %v4953_v23 = vsel %vm21176_vm11, %v4936_v60, -inf  ;;  %v5064_v8 = vsel %vm21177_vm4, %v5016_v25, %v5017_v59  ;;  %v5274_v16 = vrot.slane %v14951_v42, 2  ;;  %v5453_v36 = vmax.f32 %v5423_v22, %v16178_v12  ;;  %v21182_v22 = vld [vmem:[#allocation115_spill] sm:$0xff] }
 0x4a0   : > { %v4985_v43 = vmax.f32 %v14866_v17, %v4953_v23  ;;  %v5240_v28 = vmax.f32 %v5112_v39, %v5208_v24  ;;  %vm21179_vm13 = vnez %v21178_v56  ;;  %v5397_v53 = vmax.f32 %v16082_v58, %v16178_v12 }
 0x4a1   : > { %v5081_v9 = vsel %vm21179_vm13, %v5064_v8, -inf  ;;  %vm21180_vm14 = vcmp.lt.s32.totalorder %v7533_v3, 7  ;;  %v5319_v25 = vsel %vm21171_vm7, %v5273_v14, %v5274_v16  ;;  %v4890_v48 = vrot.slane %v14951_v42, 7 }
 0x4a2   : > { %v5113_v47 = vmax.f32 %v4985_v43, %v5081_v9  ;;  %v5191_v17 = vsel %vm21180_vm14, %v5145_v57, %v5146_v41  ;;  %vm21181_vm12 = vcmask 15360   ;;  %v16200_v31 = vmax.f32 %v5240_v28, %v5336_v2  ;;  %v21187_v2 = vld [vmem:[#allocation110_spill] sm:$0xff]  ;;  %v21193_v9 = vld [vmem:[#allocation129_spill] sm:$0xff] }
 0x4a3   : > { %6867 = vmatprep.mubr.msk.f32.mxu1 %vm21181_vm12, %v5453_v36  ;;  %vm21183_vm6 = vnez %v21182_v22  ;;  %vm21185_vm11 = vnez %v21184_v21  ;;  %v5425_v52 = vmax.f32 %v5397_v53, %v16074_v18  ;;  %vm21186_vm4 = vcmp.lt.s32.totalorder %v7533_v3, 1 }
 0x4a4   : > { %v5209_v62 = vsel %vm21183_vm6, %v5191_v17, -inf  ;;  %v5337_v24 = vsel %vm21185_vm11, %v5319_v25, -inf  ;;  %v4935_v57 = vsel %vm21186_vm4, %v4889_v0, %v4890_v48  ;;  %v5018_v14 = vrot.slane %v14951_v42, 6 }
 0x4a5   : > { %v5241_v60 = vmax.f32 %v5113_v47, %v5209_v62  ;;  %v5147_v39 = vrot.slane %v14992_v15, 1  ;;  %v5454_v38 = vmax.f32 %v5424_v45, %v16200_v31  ;;  %vm21188_vm13 = vnez %v21187_v2  ;;  %v21191_v45 = vld [vmem:[#allocation114_spill] sm:$0xff]  ;;  %v21199_v2 = vld [vmem:[#allocation85_spill] sm:$0xff] }
 0x4a6   : > { %v4954_v34 = vsel %vm21188_vm13, %v4935_v57, -inf  ;;  %v5275_v23 = vrot.slane %v14992_v15, 2  ;;  %v5398_v43 = vmax.f32 %v16119_v35, %v16200_v31  ;;  %vm21189_vm14 = vcmp.lt.s32.totalorder %v7533_v3, 2 }
 0x4a7   : > { %v16217_v8 = vmax.f32 %v5241_v60, %v5337_v24  ;;  %v4986_v36 = vmax.f32 %v14951_v42, %v4954_v34  ;;  %v5063_v0 = vsel %vm21189_vm14, %v5017_v59, %v5018_v14  ;;  %vm21190_vm7 = vcmp.lt.s32.totalorder %v7533_v3, 7  ;;  %6868 = vmatmul.mubr.msk.f32.gmra.mrb[18].mxu1 %vm21181_vm12, %v5454_v38  ;;  %v21196_v59 = vld [vmem:[#allocation35_spill] sm:$0xff] }
 0x4a8   : > { %v5190_v28 = vsel %vm21190_vm7, %v5146_v41, %v5147_v39  ;;  %vm21192_vm6 = vnez %v21191_v45  ;;  %vm21194_vm11 = vnez %v21193_v9  ;;  %vm21195_vm4 = vcmp.lt.s32.totalorder %v7533_v3, 6 }
 0x4a9   : > { %v5082_v56 = vsel %vm21192_vm6, %v5063_v0, -inf  ;;  %v5210_v53 = vsel %vm21194_vm11, %v5190_v28, -inf  ;;  %v5318_v47 = vsel %vm21195_vm4, %v5274_v16, %v5275_v23  ;;  %v5426_v17 = vmax.f32 %v5398_v43, %v16117_v37  ;;  %vm21203_vm11 = vmmov %vm21195_vm4  ;;  %v21205_v28 = vld [vmem:[#allocation127_spill] sm:$0xff] }
 0x4aa   : > { %v5455_v42 = vmax.f32 %v5425_v52, %v16217_v8  ;;  %v5114_v25 = vmax.f32 %v4986_v36, %v5082_v56  ;;  %vm21197_vm13 = vnez %v21196_v59  ;;  %v4891_v41 = vrot.slane %v14992_v15, 7  ;;  %v21207_v56 = vld [vmem:[#allocation133_spill] sm:$0xff] }
 0x4ab   : > { %v5338_v22 = vsel %vm21197_vm13, %v5318_v47, -inf  ;;  %v5019_v62 = vrot.slane %v14992_v15, 6  ;;  %v5148_v21 = vrot.slane %v15088_v55, 1  ;;  %v5276_v24 = vrot.slane %v15088_v55, 2 }
 0x4ac   : > { %v5399_v60 = vmax.f32 %v16178_v12, %v16217_v8  ;;  %v5479_v16 = vmax.f32 %v5455_v42, %v16070_v5  ;;  %v5242_v57 = vmax.f32 %v5114_v25, %v5210_v53  ;;  %vm21198_vm14 = vcmp.lt.s32.totalorder %v7533_v3, 1  ;;  %v21209_v53 = vld [vmem:[#allocation164_spill] sm:$0xff] }
 0x4ad   : > { %v4934_v52 = vsel %vm21198_vm14, %v4890_v48, %v4891_v41  ;;  %v4892_v38 = vrot.slane %v15088_v55, 7  ;;  %vm21200_vm7 = vnez %v21199_v2  ;;  %vm21201_vm12 = vcmp.lt.s32.totalorder %v7533_v3, 2 }
 0x4ae   : > { %v4955_v34 = vsel %vm21200_vm7, %v4934_v52, -inf  ;;  %v5062_v43 = vsel %vm21201_vm12, %v5018_v14, %v5019_v62  ;;  %vm21202_vm6 = vcmp.lt.s32.totalorder %v7533_v3, 7  ;;  %v5317_v0 = vsel %vm21203_vm11, %v5275_v23, %v5276_v24 }
 0x4af   : > { %v5189_v36 = vsel %vm21202_vm6, %v5147_v39, %v5148_v21  ;;  %vm21204_vm4 = vcmask 15360   ;;  %v16254_v5 = vmax.f32 %v5242_v57, %v5338_v22  ;;  %v4987_v48 = vmax.f32 %v14992_v15, %v4955_v34  ;;  %v21212_v15 = vld [vmem:[#allocation126_spill] sm:$0xff] }
 0x4b0   : > { %6870 = vmatprep.mubr.msk.f32.mxu1 %vm21204_vm4, %v5479_v16  ;;  %vm21206_vm13 = vnez %v21205_v28  ;;  %vm21208_vm14 = vnez %v21207_v56  ;;  %vm21210_vm7 = vnez %v21209_v53  ;;  %v5427_v39 = vmax.f32 %v5399_v60, %v16082_v58 }
 0x4b1   : > { %v5083_v45 = vsel %vm21206_vm13, %v5062_v43, -inf  ;;  %v5211_v9 = vsel %vm21208_vm14, %v5189_v36, -inf  ;;  %v5339_v14 = vsel %vm21210_vm7, %v5317_v0, -inf  ;;  %vm21211_vm12 = vcmp.lt.s32.totalorder %v7533_v3, 1  ;;  %v21218_v0 = vld [vmem:[#allocation141_spill] sm:$0xff] }
 0x4b2   : > { %v4933_v23 = vsel %vm21211_vm12, %v4891_v41, %v4892_v38  ;;  %v5020_v47 = vrot.slane %v15088_v55, 6  ;;  %v5456_v42 = vmax.f32 %v5426_v17, %v16254_v5  ;;  %v5115_v25 = vmax.f32 %v4987_v48, %v5083_v45  ;;  %v21215_v17 = vld [vmem:[#allocation131_spill] sm:$0xff] }
 0x4b3   : > { %vm21213_vm6 = vnez %v21212_v15  ;;  %v5149_v22 = vrot.slane %v15134_v19, 1  ;;  %vm21214_vm11 = vcmp.lt.s32.totalorder %v7533_v3, 2  ;;  %v5277_v60 = vrot.slane %v15134_v19, 2 }
 0x4b4   : > { %v4956_v59 = vsel %vm21213_vm6, %v4933_v23, -inf  ;;  %v5061_v57 = vsel %vm21214_vm11, %v5019_v62, %v5020_v47  ;;  %v5400_v41 = vmax.f32 %v16200_v31, %v16254_v5  ;;  %v5480_v52 = vmax.f32 %v5456_v42, %v16115_v30  ;;  %v21222_v30 = vld [vmem:[#allocation58_spill] sm:$0xff] }
 0x4b5   : > { %v4988_v16 = vmax.f32 %v15088_v55, %v4956_v59  ;;  %v5243_v2 = vmax.f32 %v5115_v25, %v5211_v9  ;;  %vm21216_vm4 = vnez %v21215_v17  ;;  %vm21217_vm13 = vcmp.lt.s32.totalorder %v7533_v3, 7  ;;  %v21231_v17 = vld [vmem:[#allocation151_spill] sm:$0xff] }
 0x4b6   : > { %v5084_v34 = vsel %vm21216_vm4, %v5061_v57, -inf  ;;  %v5188_v43 = vsel %vm21217_vm13, %v5148_v21, %v5149_v22  ;;  %vm21219_vm14 = vnez %v21218_v0  ;;  %vm21220_vm7 = vcmp.lt.s32.totalorder %v7533_v3, 6 }
 0x4b7   : > { %v5116_v36 = vmax.f32 %v4988_v16, %v5084_v34  ;;  %v5212_v55 = vsel %vm21219_vm14, %v5188_v43, -inf  ;;  %v5316_v62 = vsel %vm21220_vm7, %v5276_v24, %v5277_v60  ;;  %v5428_v48 = vmax.f32 %v5400_v41, %v16119_v35  ;;  %v21226_v16 = vld [vmem:[#allocation90_spill] sm:$0xff]  ;;  %v21228_v41 = vld [vmem:[#allocation140_spill] sm:$0xff] }
 0x4b8   : > { %vm21221_vm12 = vcmask 15360   ;;  %v16288_v28 = vmax.f32 %v5243_v2, %v5339_v14  ;;  %vm21223_vm6 = vnez %v21222_v30  ;;  %v4893_v56 = vrot.slane %v15134_v19, 7 }
 0x4b9   : > { %6871 = vmatmul.mubr.msk.f32.gmra.mrb[20].mxu1 %vm21221_vm12, %v5480_v52  ;;  %v5340_v45 = vsel %vm21223_vm6, %v5316_v62, -inf  ;;  %v5021_v21 = vrot.slane %v15134_v19, 6  ;;  %v5244_v9 = vmax.f32 %v5116_v36, %v5212_v55  ;;  %v5150_v53 = vrot.slane %v15232_v6, 1  ;;  %v21234_v36 = vld [vmem:[#allocation163_spill] sm:$0xff] }
 0x4ba   : > { %v5278_v23 = vrot.slane %v15232_v6, 2  ;;  %v4894_v24 = vrot.slane %v15232_v6, 7  ;;  %v5457_v42 = vmax.f32 %v5427_v39, %v16288_v28  ;;  %vm21224_vm11 = vcmp.lt.s32.totalorder %v7533_v3, 1 }
 0x4bb   : > { %v4932_v14 = vsel %vm21224_vm11, %v4892_v38, %v4893_v56  ;;  %vm21225_vm4 = vcmp.lt.s32.totalorder %v7533_v3, 2  ;;  %v5401_v15 = vmax.f32 %v16217_v8, %v16288_v28  ;;  %v16304_v59 = vmax.f32 %v5244_v9, %v5340_v45 }
 0x4bc   : > { %v5060_v25 = vsel %vm21225_vm4, %v5020_v47, %v5021_v21  ;;  %vm21227_vm13 = vnez %v21226_v16  ;;  %vm21229_vm14 = vnez %v21228_v41  ;;  %vm21230_vm7 = vcmp.lt.s32.totalorder %v7533_v3, 7 }
 0x4bd   : > { %v4957_v57 = vsel %vm21227_vm13, %v4932_v14, -inf  ;;  %v5085_v52 = vsel %vm21229_vm14, %v5060_v25, -inf  ;;  %v5187_v39 = vsel %vm21230_vm7, %v5149_v22, %v5150_v53  ;;  %v5481_v2 = vmax.f32 %v5457_v42, %v16074_v18 }
 0x4be   : > { %v4989_v38 = vmax.f32 %v15134_v19, %v4957_v57  ;;  %vm21232_vm12 = vnez %v21231_v17  ;;  %vm21233_vm6 = vcmp.lt.s32.totalorder %v7533_v3, 6  ;;  %v5458_v43 = vmax.f32 %v5428_v48, %v16304_v59  ;;  %v21238_v19 = vld [vmem:[#allocation93_spill] sm:$0xff] }
 0x4bf   : > { %v5213_v47 = vsel %vm21232_vm12, %v5187_v39, -inf  ;;  %v5315_v34 = vsel %vm21233_vm6, %v5277_v60, %v5278_v23  ;;  %vm21235_vm11 = vnez %v21234_v36  ;;  %v5429_v55 = vmax.f32 %v5401_v15, %v16178_v12 }
 0x4c0   : > { %v5341_v0 = vsel %vm21235_vm11, %v5315_v34, -inf  ;;  %vm21236_vm4 = vcmp.lt.s32.totalorder %v7533_v3, 1  ;;  %vm21237_vm13 = vcmask 15360   ;;  %v5117_v18 = vmax.f32 %v4989_v38, %v5085_v52  ;;  %v21246_v52 = vld [vmem:[#allocation6_spill] sm:$0xff] }
 0x4c1   : > { %v4931_v22 = vsel %vm21236_vm4, %v4893_v56, %v4894_v24  ;;  %6873 = vmatprep.mubr.msk.f32.mxu1 %vm21237_vm13, %v5481_v2  ;;  %vm21239_vm14 = vnez %v21238_v19  ;;  %v5022_v30 = vrot.slane %v15232_v6, 6  ;;  %v5151_v60 = vrot.slane %v15252_v50, 1  ;;  %vm21242_vm6 = vmmov %vm21237_vm13  ;;  %v21249_v2 = vld [vmem:[#allocation97_spill] sm:$0xff]  ;;  %v21254_v19 = vld [vmem:[#allocation158_spill] sm:$0xff] }
 0x4c2   : > { %v4958_v62 = vsel %vm21239_vm14, %v4931_v22, -inf  ;;  %v5482_v48 = vmax.f32 %v5458_v43, %v16117_v37  ;;  %v5279_v9 = vrot.slane %v15252_v50, 2  ;;  %v5402_v42 = vmax.f32 %v16254_v5, %v16304_v59 }
 0x4c3   : > { %v4990_v45 = vmax.f32 %v15232_v6, %v4958_v62  ;;  %v5245_v56 = vmax.f32 %v5117_v18, %v5213_v47  ;;  %vm21240_vm7 = vcmp.lt.s32.totalorder %v7533_v3, 2  ;;  %vm21241_vm12 = vcmp.lt.s32.totalorder %v7533_v3, 7  ;;  %v21256_v62 = vld [vmem:[#allocation169_spill] sm:$0xff] }
 0x4c4   : > { %v5059_v14 = vsel %vm21240_vm7, %v5021_v21, %v5022_v30  ;;  %v5186_v25 = vsel %vm21241_vm12, %v5150_v53, %v5151_v60  ;;  %v4895_v15 = vrot.slane %v15252_v50, 7  ;;  %6874 = vmatmul.mubr.msk.f32.gmra.mrb[22].mxu1 %vm21242_vm6, %v5482_v48  ;;  %vm21243_vm11 = vnez %v20645_v7 }
 0x4c5   : > { %v5086_v37 = vsel %vm21243_vm11, %v5059_v14, -inf  ;;  %vm21244_vm4 = vnez %v20647_v11  ;;  %vm21245_vm13 = vcmp.lt.s32.totalorder %v7533_v3, 6  ;;  %v5430_v57 = vmax.f32 %v5402_v42, %v16200_v31 }
 0x4c6   : > { %v5214_v6 = vsel %vm21244_vm4, %v5186_v25, -inf  ;;  %v5314_v16 = vsel %vm21245_vm13, %v5278_v23, %v5279_v9  ;;  %v16347_v41 = vmax.f32 %v5245_v56, %v5341_v0  ;;  %v5118_v21 = vmax.f32 %v4990_v45, %v5086_v37  ;;  %vm21253_vm4 = vmmov %vm21245_vm13  ;;  %v21260_v56 = vld [vmem:[#allocation157_spill] sm:$0xff] }
 0x4c7   : > { %vm21247_vm14 = vnez %v21246_v52  ;;  %vm21248_vm7 = vcmp.lt.s32.totalorder %v7533_v3, 1  ;;  %vm21250_vm12 = vnez %v21249_v2  ;;  %v5023_v11 = vrot.slane %v15252_v50, 6 }
 0x4c8   : > { %v5342_v53 = vsel %vm21247_vm14, %v5314_v16, -inf  ;;  %v4930_v39 = vsel %vm21248_vm7, %v4894_v24, %v4895_v15  ;;  %v5152_v38 = vrot.slane %v15369_v1, 1  ;;  %v5280_v23 = vrot.slane %v15369_v1, 2 }
 0x4c9   : > { %v4959_v7 = vsel %vm21250_vm12, %v4930_v39, -inf  ;;  %v5459_v17 = vmax.f32 %v5429_v55, %v16347_v41  ;;  %v5246_v47 = vmax.f32 %v5118_v21, %v5214_v6  ;;  %v5403_v43 = vmax.f32 %v16288_v28, %v16347_v41 }
 0x4ca   : > { %v4991_v34 = vmax.f32 %v15252_v50, %v4959_v7  ;;  %vm21251_vm6 = vcmp.lt.s32.totalorder %v7533_v3, 2  ;;  %vm21252_vm11 = vcmp.lt.s32.totalorder %v7533_v3, 7  ;;  %v5313_v0 = vsel %vm21253_vm4, %v5279_v9, %v5280_v23  ;;  %v21263_v7 = vld [vmem:[#allocation165_spill] sm:$0xff] }
 0x4cb   : > { %v5058_v24 = vsel %vm21251_vm6, %v5022_v30, %v5023_v11  ;;  %v5185_v36 = vsel %vm21252_vm11, %v5151_v60, %v5152_v38  ;;  %v4896_v22 = vrot.slane %v15369_v1, 7  ;;  %v5483_v18 = vmax.f32 %v5459_v17, %v16082_v58  ;;  %v21265_v17 = vld [vmem:[#allocation183_spill] sm:$0xff] }
 0x4cc   : > { %v16370_v55 = vmax.f32 %v5246_v47, %v5342_v53  ;;  %vm21255_vm13 = vnez %v21254_v19  ;;  %vm21257_vm14 = vnez %v21256_v62  ;;  %v5343_v42 = vsel %vm13988_vm0, %v5313_v0, -inf  ;;  %v21272_v0 = vld [vmem:[#allocation177_spill] sm:$0xff] }
 0x4cd   : > { %v5087_v50 = vsel %vm21255_vm13, %v5058_v24, -inf  ;;  %v5215_v48 = vsel %vm21257_vm14, %v5185_v36, -inf  ;;  %v5431_v60 = vmax.f32 %v5403_v43, %v16217_v8  ;;  %v4929_v9 = vsel %vm21248_vm7, %v4895_v15, %v4896_v22 }
 0x4ce   : > { %v5119_v45 = vmax.f32 %v4991_v34, %v5087_v50  ;;  %vm21259_vm12 = vcmask 15360   ;;  %v5460_v58 = vmax.f32 %v5430_v57, %v16370_v55  ;;  %vm21261_vm6 = vnez %v21260_v56  ;;  %v21278_v56 = vld [vmem:[#allocation191_spill] sm:$0xff] }
 0x4cf   : > { %6876 = vmatprep.mubr.msk.f32.mxu1 %vm21259_vm12, %v5483_v18  ;;  %v4960_v14 = vsel %vm21261_vm6, %v4929_v9, -inf  ;;  %v5024_v25 = vrot.slane %v15369_v1, 6  ;;  %v5153_v37 = vrot.slane %v15417_v54, 1  ;;  %v5281_v21 = vrot.slane %v15417_v54, 2  ;;  %vm21268_vm7 = vmmov %vm21259_vm12 }
 0x4d0   : > { %v5247_v6 = vmax.f32 %v5119_v45, %v5215_v48  ;;  %v4992_v16 = vmax.f32 %v15369_v1, %v4960_v14  ;;  %v5404_v52 = vmax.f32 %v16304_v59, %v16370_v55  ;;  %v5484_v15 = vmax.f32 %v5460_v58, %v16119_v35  ;;  %v21276_v58 = vld [vmem:[#allocation178_spill] sm:$0xff] }
 0x4d1   : > { %vm21262_vm0 = vcmp.lt.s32.totalorder %v7533_v3, 2  ;;  %v5184_v53 = vsel %vm21252_vm11, %v5152_v38, %v5153_v37  ;;  %v4897_v39 = vrot.slane %v15417_v54, 7  ;;  %vm21264_vm4 = vnez %v21263_v7 }
 0x4d2   : > { %v5057_v57 = vsel %vm21262_vm0, %v5023_v11, %v5024_v25  ;;  %v16397_v2 = vmax.f32 %v5247_v6, %v5343_v42  ;;  %vm21266_vm13 = vnez %v21265_v17  ;;  %vm21267_vm14 = vcmp.lt.s32.totalorder %v7533_v3, 6  ;;  %6877 = vmatmul.mubr.msk.f32.gmra.mrb[24].mxu1 %vm21268_vm7, %v5484_v15  ;;  %v21269_v11 = vld [vmem:[#allocation120_spill] sm:$0xff] }
 0x4d3   : > { %v5088_v1 = vsel %vm21264_vm4, %v5057_v57, -inf  ;;  %v5216_v47 = vsel %vm21266_vm13, %v5184_v53, -inf  ;;  %v5312_v34 = vsel %vm21267_vm14, %v5280_v23, %v5281_v21  ;;  %vm21270_vm12 = vnez %v21269_v11  ;;  %v21285_v57 = vld [vmem:[#allocation179_spill] sm:$0xff] }
 0x4d4   : > { %v5120_v35 = vmax.f32 %v4992_v16, %v5088_v1  ;;  %v5344_v43 = vsel %vm21270_vm12, %v5312_v34, -inf  ;;  %v5432_v38 = vmax.f32 %v5404_v52, %v16254_v5  ;;  %vm21271_vm6 = vcmp.lt.s32.totalorder %v7533_v3, 1 }
 0x4d5   : > { %v4928_v24 = vsel %vm21271_vm6, %v4896_v22, %v4897_v39  ;;  %v5461_v36 = vmax.f32 %v5431_v60, %v16397_v2  ;;  %vm21273_vm0 = vnez %v21272_v0  ;;  %v5025_v19 = vrot.slane %v15417_v54, 6 }
 0x4d6   : > { %v4961_v18 = vsel %vm21273_vm0, %v4928_v24, -inf  ;;  %v5154_v23 = vrot.slane %v15557_v29, 1  ;;  %v5248_v50 = vmax.f32 %v5120_v35, %v5216_v47  ;;  %v5282_v48 = vrot.slane %v15557_v29, 2  ;;  %v21290_v24 = vld [vmem:[#allocation206_spill] sm:$0xff] }
 0x4d7   : > { %v4993_v62 = vmax.f32 %v15417_v54, %v4961_v18  ;;  %v5405_v45 = vmax.f32 %v16347_v41, %v16397_v2  ;;  %v5485_v30 = vmax.f32 %v5461_v36, %v16178_v12  ;;  %vm21274_vm11 = vcmp.lt.s32.totalorder %v7533_v3, 2  ;;  %v21294_v18 = vld [vmem:[#allocation87_spill] sm:$0xff] }
 0x4d8   : > { %v5056_v22 = vsel %vm21274_vm11, %v5024_v25, %v5025_v19  ;;  %vm21275_vm4 = vcmp.lt.s32.totalorder %v7533_v3, 7  ;;  %v4898_v60 = vrot.slane %v15557_v29, 7  ;;  %v16426_v9 = vmax.f32 %v5248_v50, %v5344_v43  ;;  %v21282_v25 = vld [vmem:[#allocation139_spill] sm:$0xff] }
 0x4d9   : > { %v5183_v42 = vsel %vm21275_vm4, %v5153_v37, %v5154_v23  ;;  %vm21277_vm13 = vnez %v21276_v58  ;;  %vm21279_vm14 = vnez %v21278_v56  ;;  %vm21280_vm7 = vcmp.lt.s32.totalorder %v7533_v3, 6 }
 0x4da   : > { %v5089_v54 = vsel %vm21277_vm13, %v5056_v22, -inf  ;;  %v5217_v14 = vsel %vm21279_vm14, %v5183_v42, -inf  ;;  %v5311_v6 = vsel %vm21280_vm7, %v5281_v21, %v5282_v48  ;;  %vm21281_vm12 = vcmask 15360  }
 0x4db   : > { %6879 = vmatprep.mubr.msk.f32.mxu1 %vm21281_vm12, %v5485_v30  ;;  %v5121_v12 = vmax.f32 %v4993_v62, %v5089_v54  ;;  %vm21283_vm6 = vnez %v21282_v25  ;;  %v5433_v37 = vmax.f32 %v5405_v45, %v16288_v28  ;;  %vm21284_vm0 = vcmp.lt.s32.totalorder %v7533_v3, 1  ;;  %v21297_v62 = vld [vmem:[#allocation199_spill] sm:$0xff]  ;;  %v21301_v25 = vld [vmem:[#allocation200_spill] sm:$0xff] }
 0x4dc   : > { %v5345_v16 = vsel %vm21283_vm6, %v5311_v6, -inf  ;;  %v4927_v52 = vsel %vm21284_vm0, %v4897_v39, %v4898_v60  ;;  %v5462_v15 = vmax.f32 %v5432_v38, %v16426_v9  ;;  %vm21286_vm11 = vnez %v21285_v57 }
 0x4dd   : > { %v4962_v53 = vsel %vm21286_vm11, %v4927_v52, -inf  ;;  %v5026_v7 = vrot.slane %v15557_v29, 6  ;;  %v5155_v21 = vrot.slane %v15571_v26, 1  ;;  %v5249_v1 = vmax.f32 %v5121_v12, %v5217_v14 }
 0x4de   : > { %v4994_v17 = vmax.f32 %v15557_v29, %v4962_v53  ;;  %v5283_v47 = vrot.slane %v15571_v26, 2  ;;  %v5406_v34 = vmax.f32 %v16370_v55, %v16426_v9  ;;  %v5486_v35 = vmax.f32 %v5462_v15, %v16200_v31  ;;  %v21307_v15 = vld [vmem:[#allocation148_spill] sm:$0xff] }
 0x4df   : > { %vm21287_vm4 = vcmp.lt.s32.totalorder %v7533_v3, 2  ;;  %vm21288_vm13 = vcmp.lt.s32.totalorder %v7533_v3, 7  ;;  %v4899_v43 = vrot.slane %v15571_v26, 7  ;;  %v16455_v38 = vmax.f32 %v5249_v1, %v5345_v16  ;;  %v21303_v16 = vld [vmem:[#allocation211_spill] sm:$0xff]  ;;  %v21310_v1 = vld [vmem:[#allocation201_spill] sm:$0xff] }
 0x4e0   : > { %v5055_v39 = vsel %vm21287_vm4, %v5025_v19, %v5026_v7  ;;  %v5182_v11 = vsel %vm21288_vm13, %v5154_v23, %v5155_v21  ;;  %vm21289_vm14 = vnez %v20738_v61  ;;  %vm21291_vm7 = vnez %v21290_v24 }
 0x4e1   : > { %v5090_v29 = vsel %vm21289_vm14, %v5055_v39, -inf  ;;  %v5218_v36 = vsel %vm21291_vm7, %v5182_v11, -inf  ;;  %vm21292_vm12 = vcmp.lt.s32.totalorder %v7533_v3, 6  ;;  %vm21293_vm6 = vcmask 15360  }
 0x4e2   : > { %v5310_v0 = vsel %vm21292_vm12, %v5282_v48, %v5283_v47  ;;  %6880 = vmatmul.mubr.msk.f32.gmra.mrb[26].mxu1 %vm21293_vm6, %v5486_v35  ;;  %v5122_v31 = vmax.f32 %v4994_v17, %v5090_v29  ;;  %vm21295_vm0 = vnez %v21294_v18  ;;  %v5434_v23 = vmax.f32 %v5406_v34, %v16304_v59  ;;  %v21314_v18 = vld [vmem:[#allocation209_spill] sm:$0xff] }
 0x4e3   : > { %v5346_v19 = vsel %vm21295_vm0, %v5310_v0, -inf  ;;  %vm21296_vm11 = vcmp.lt.s32.totalorder %v7533_v3, 1  ;;  %v5463_v61 = vmax.f32 %v5433_v37, %v16455_v38  ;;  %vm21298_vm4 = vnez %v21297_v62 }
 0x4e4   : > { %v4926_v50 = vsel %vm21296_vm11, %v4898_v60, %v4899_v43  ;;  %v5027_v30 = vrot.slane %v15571_v26, 6  ;;  %v5156_v48 = vrot.slane %v15650_v13, 1  ;;  %v5250_v22 = vmax.f32 %v5122_v31, %v5218_v36 }
 0x4e5   : > { %v4963_v45 = vsel %vm21298_vm4, %v4926_v50, -inf  ;;  %v5284_v58 = vrot.slane %v15650_v13, 2  ;;  %v5407_v54 = vmax.f32 %v16397_v2, %v16455_v38  ;;  %v5487_v56 = vmax.f32 %v5463_v61, %v16217_v8  ;;  %v21320_v61 = vld [vmem:[#allocation123_spill] sm:$0xff] }
 0x4e6   : > { %v4995_v42 = vmax.f32 %v15571_v26, %v4963_v45  ;;  %vm21299_vm13 = vcmp.lt.s32.totalorder %v7533_v3, 2  ;;  %vm21300_vm14 = vcmp.lt.s32.totalorder %v7533_v3, 7  ;;  %v4900_v6 = vrot.slane %v15650_v13, 7 }
 0x4e7   : > { %v5054_v60 = vsel %vm21299_vm13, %v5026_v7, %v5027_v30  ;;  %v5181_v14 = vsel %vm21300_vm14, %v5155_v21, %v5156_v48  ;;  %v16484_v12 = vmax.f32 %v5250_v22, %v5346_v19  ;;  %vm21302_vm7 = vnez %v21301_v25  ;;  %v21316_v19 = vld [vmem:[#allocation226_spill] sm:$0xff]  ;;  %v21323_v22 = vld [vmem:[#allocation219_spill] sm:$0xff] }
 0x4e8   : > { %v5091_v26 = vsel %vm21302_vm7, %v5054_v60, -inf  ;;  %vm21304_vm12 = vnez %v21303_v16  ;;  %vm21305_vm6 = vcmp.lt.s32.totalorder %v7533_v3, 6  ;;  %vm21306_vm0 = vcmask 15360  }
 0x4e9   : > { %v5219_v37 = vsel %vm21304_vm12, %v5181_v14, -inf  ;;  %v5309_v52 = vsel %vm21305_vm6, %v5283_v47, %v5284_v58  ;;  %6882 = vmatprep.mubr.msk.f32.mxu1 %vm21306_vm0, %v5487_v56  ;;  %v5123_v8 = vmax.f32 %v4995_v42, %v5091_v26  ;;  %vm21308_vm11 = vnez %v21307_v15  ;;  %v21329_v15 = vld [vmem:[#allocation231_spill] sm:$0xff] }
 0x4ea   : > { %v5347_v57 = vsel %vm21308_vm11, %v5309_v52, -inf  ;;  %v5435_v53 = vmax.f32 %v5407_v54, %v16347_v41  ;;  %vm21309_vm4 = vcmp.lt.s32.totalorder %v7533_v3, 1  ;;  %v5464_v21 = vmax.f32 %v5434_v23, %v16484_v12 }
 0x4eb   : > { %v4925_v7 = vsel %vm21309_vm4, %v4899_v43, %v4900_v6  ;;  %vm21311_vm13 = vnez %v21310_v1  ;;  %v5028_v34 = vrot.slane %v15650_v13, 6  ;;  %v5157_v47 = vrot.slane %v15709_v51, 1 }
 0x4ec   : > { %v4964_v17 = vsel %vm21311_vm13, %v4925_v7, -inf  ;;  %v5251_v35 = vmax.f32 %v5123_v8, %v5219_v37  ;;  %v5285_v11 = vrot.slane %v15709_v51, 2  ;;  %v5408_v29 = vmax.f32 %v16426_v9, %v16484_v12  ;;  %v21327_v8 = vld [vmem:[#allocation220_spill] sm:$0xff]  ;;  %v21333_v7 = vld [vmem:[#allocation50_spill] sm:$0xff] }
 0x4ed   : > { %v4996_v39 = vmax.f32 %v15650_v13, %v4964_v17  ;;  %v5488_v24 = vmax.f32 %v5464_v21, %v16254_v5  ;;  %vm21312_vm14 = vcmp.lt.s32.totalorder %v7533_v3, 2  ;;  %vm21313_vm7 = vcmp.lt.s32.totalorder %v7533_v3, 7 }
 0x4ee   : > { %v5053_v43 = vsel %vm21312_vm14, %v5027_v30, %v5028_v34  ;;  %v5180_v36 = vsel %vm21313_vm7, %v5156_v48, %v5157_v47  ;;  %v4901_v0 = vrot.slane %v15709_v51, 7  ;;  %v16513_v31 = vmax.f32 %v5251_v35, %v5347_v57 }
 0x4ef   : > { %vm21315_vm12 = vnez %v21314_v18  ;;  %vm21317_vm6 = vnez %v21316_v19  ;;  %vm21318_vm0 = vcmp.lt.s32.totalorder %v7533_v3, 6  ;;  %vm21319_vm11 = vcmask 15360  }
 0x4f0   : > { %v5092_v13 = vsel %vm21315_vm12, %v5053_v43, -inf  ;;  %v5220_v23 = vsel %vm21317_vm6, %v5180_v36, -inf  ;;  %v5308_v50 = vsel %vm21318_vm0, %v5284_v58, %v5285_v11  ;;  %6883 = vmatmul.mubr.msk.f32.gmra.mrb[28].mxu1 %vm21319_vm11, %v5488_v24  ;;  %vm21321_vm4 = vnez %v21320_v61 }
 0x4f1   : > { %v5124_v5 = vmax.f32 %v4996_v39, %v5092_v13  ;;  %v5348_v62 = vsel %vm21321_vm4, %v5308_v50, -inf  ;;  %v5436_v45 = vmax.f32 %v5408_v29, %v16370_v55  ;;  %vm21322_vm13 = vcmp.lt.s32.totalorder %v7533_v3, 1 }
 0x4f2   : > { %v4924_v30 = vsel %vm21322_vm13, %v4900_v6, %v4901_v0  ;;  %v5465_v48 = vmax.f32 %v5435_v53, %v16513_v31  ;;  %vm21324_vm14 = vnez %v21323_v22  ;;  %v5029_v54 = vrot.slane %v15709_v51, 6 }
 0x4f3   : > { %v4965_v42 = vsel %vm21324_vm14, %v4924_v30, -inf  ;;  %v5158_v58 = vrot.slane %v15725_v44, 1  ;;  %v5252_v56 = vmax.f32 %v5124_v5, %v5220_v23  ;;  %v5286_v14 = vrot.slane %v15725_v44, 2 }
 0x4f4   : > { %v4997_v60 = vmax.f32 %v15709_v51, %v4965_v42  ;;  %v5409_v25 = vmax.f32 %v16455_v38, %v16513_v31  ;;  %v5489_v26 = vmax.f32 %v5465_v48, %v16288_v28  ;;  %vm21325_vm7 = vcmp.lt.s32.totalorder %v7533_v3, 2 }
 0x4f5   : > { %v5052_v6 = vsel %vm21325_vm7, %v5028_v34, %v5029_v54  ;;  %vm21326_vm12 = vcmp.lt.s32.totalorder %v7533_v3, 7  ;;  %v4902_v37 = vrot.slane %v15725_v44, 7  ;;  %v16542_v52 = vmax.f32 %v5252_v56, %v5348_v62 }
 0x4f6   : > { %v5179_v16 = vsel %vm21326_vm12, %v5157_v47, %v5158_v58  ;;  %vm21328_vm6 = vnez %v21327_v8  ;;  %vm21330_vm0 = vnez %v21329_v15  ;;  %vm21331_vm11 = vcmp.lt.s32.totalorder %v7533_v3, 6  ;;  %v21336_v47 = vld [vmem:[#allocation222_spill] sm:$0xff] }
 0x4f7   : > { %v5093_v51 = vsel %vm21328_vm6, %v5052_v6, -inf  ;;  %v5221_v57 = vsel %vm21330_vm0, %v5179_v16, -inf  ;;  %v5307_v53 = vsel %vm21331_vm11, %v5285_v11, %v5286_v14  ;;  %vm21332_vm4 = vcmask 15360   ;;  %vm21342_vm0 = vmmov %vm21331_vm11 }
 0x4f8   : > { %6885 = vmatprep.mubr.msk.f32.mxu1 %vm21332_vm4, %v5489_v26  ;;  %v5125_v28 = vmax.f32 %v4997_v60, %v5093_v51  ;;  %vm21334_vm13 = vnez %v21333_v7  ;;  %v5437_v1 = vmax.f32 %v5409_v25, %v16397_v2  ;;  %vm21335_vm14 = vcmp.lt.s32.totalorder %v7533_v3, 1  ;;  %vm21343_vm11 = vmmov %vm21332_vm4 }
 0x4f9   : > { %v5349_v21 = vsel %vm21334_vm13, %v5307_v53, -inf  ;;  %v4923_v17 = vsel %vm21335_vm14, %v4901_v0, %v4902_v37  ;;  %v5466_v34 = vmax.f32 %v5436_v45, %v16542_v52  ;;  %vm21337_vm7 = vnez %v21336_v47  ;;  %vm21345_vm4 = vmmov %vm21335_vm14 }
 0x4fa   : > { %v4966_v35 = vsel %vm21337_vm7, %v4923_v17, -inf  ;;  %v5030_v39 = vrot.slane %v15725_v44, 6  ;;  %v5159_v11 = vrot.slane %v15774_v46, 1  ;;  %v5253_v29 = vmax.f32 %v5125_v28, %v5221_v57  ;;  %vm21351_vm14 = vmmov %vm21342_vm0  ;;  %v21355_v17 = vld [vmem:[#allocation241_spill] sm:$0xff] }
 0x4fb   : > { %v4998_v24 = vmax.f32 %v15725_v44, %v4966_v35  ;;  %v5287_v43 = vrot.slane %v15774_v46, 2  ;;  %v5410_v36 = vmax.f32 %v16484_v12, %v16542_v52  ;;  %v5490_v18 = vmax.f32 %v5466_v34, %v16304_v59  ;;  %vm21352_vm7 = vmmov %vm21343_vm11 }
 0x4fc   : > { %vm21338_vm12 = vcmp.lt.s32.totalorder %v7533_v3, 2  ;;  %vm21339_vm6 = vcmp.lt.s32.totalorder %v7533_v3, 7  ;;  %v4903_v19 = vrot.slane %v15774_v46, 7  ;;  %v16571_v23 = vmax.f32 %v5253_v29, %v5349_v21 }
 0x4fd   : > { %v5051_v0 = vsel %vm21338_vm12, %v5029_v54, %v5030_v39  ;;  %v5178_v13 = vsel %vm21339_vm6, %v5158_v58, %v5159_v11  ;;  %v5306_v62 = vsel %vm21342_vm0, %v5286_v14, %v5287_v43  ;;  %6886 = vmatmul.mubr.msk.f32.gmra.mrb[30].mxu1 %vm21343_vm11, %v5490_v18  ;;  %v5438_v48 = vmax.f32 %v5410_v36, %v16426_v9  ;;  %v21346_v54 = vld [vmem:[#allocation238_spill] sm:$0xff] }
 0x4fe   : > { %v5094_v44 = vsel %vm20859_vm2, %v5051_v0, -inf  ;;  %v5222_v61 = vsel %vm20610_vm9, %v5178_v13, -inf  ;;  %v5350_v30 = vsel %vm14795_vm1, %v5306_v62, -inf  ;;  %v4922_v22 = vsel %vm21345_vm4, %v4902_v37, %v4903_v19  ;;  %vm21348_vm9 = vmmov %vm21338_vm12 }
 0x4ff   : > { %v5126_v59 = vmax.f32 %v4998_v24, %v5094_v44  ;;  %v5467_v42 = vmax.f32 %v5437_v1, %v16571_v23  ;;  %vm21347_vm2 = vnez %v21346_v54  ;;  %v5031_v56 = vrot.slane %v15774_v46, 6  ;;  %vm21349_vm1 = vmmov %vm21339_vm6 }
 0x500   : > { %v4967_v58 = vsel %vm21347_vm2, %v4922_v22, -inf  ;;  %v5160_v60 = vrot.slane %v15809_v40, 1  ;;  %v5288_v26 = vrot.slane %v15809_v40, 2  ;;  %v5411_v6 = vmax.f32 %v16513_v31, %v16571_v23  ;;  %vm21354_vm6 = vmmov %vm21345_vm4 }
 0x501   : > { %v5254_v14 = vmax.f32 %v5126_v59, %v5222_v61  ;;  %v4999_v25 = vmax.f32 %v15774_v46, %v4967_v58  ;;  %v5491_v16 = vmax.f32 %v5467_v42, %v16347_v41  ;;  %v5050_v37 = vsel %vm21348_vm9, %v5030_v39, %v5031_v56  ;;  %v16608_v41 = vpop.f32.mrb[48].mxu0  ;;  %vm21357_vm0 = vmmov %vm21348_vm9  ;;  %v21365_v61 = vld [vmem:[#allocation248_spill] sm:$0xff]  ;;  %v21367_v59 = vld [vmem:[#allocation107_spill] sm:$0xff] }
 0x502   : > { %v5177_v8 = vsel %vm21349_vm1, %v5159_v11, %v5160_v60  ;;  %v4904_v51 = vrot.slane %v15809_v40, 7  ;;  %v5095_v46 = vsel %vm20870_vm15, %v5050_v37, -inf  ;;  %vm21350_vm13 = vnez %v20632_v20  ;;  %v16616_v1 = vpop.f32.mrb[49].mxu0  ;;  %vm21358_vm11 = vmmov %vm21349_vm1 }
 0x503   : > { %v16600_v15 = vmax.f32 %v5254_v14, %v5350_v30  ;;  %v5223_v57 = vsel %vm21350_vm13, %v5177_v8, -inf  ;;  %v5305_v53 = vsel %vm21351_vm14, %v5287_v43, %v5288_v26  ;;  %6888 = vmatprep.mubr.msk.f32.mxu1 %vm21352_vm7, %v5491_v16  ;;  %v5127_v28 = vmax.f32 %v4999_v25, %v5095_v46  ;;  %vm21361_vm9 = vmmov %vm21351_vm14  ;;  %v21370_v14 = vld [vmem:[#allocation4_spill] sm:$0xff]  ;;  %v21372_v25 = vld [vmem:[#allocation251_spill] sm:$0xff] }
 0x504   : > { %vm21353_vm12 = vnez %v20874_v27  ;;  %v5439_v21 = vmax.f32 %v5411_v6, %v16455_v38  ;;  %v4921_v33 = vsel %vm21354_vm6, %v4903_v19, %v4904_v51  ;;  %vm21356_vm15 = vnez %v21355_v17  ;;  %vm21362_vm1 = vmmov %vm21352_vm7  ;;  %v21376_v16 = vld [vmem:[#allocation257_spill] sm:$0xff] }
 0x505   : > { %v5351_v7 = vsel %vm21353_vm12, %v5305_v53, -inf  ;;  %v5468_v20 = vmax.f32 %v5438_v48, %v16600_v15  ;;  %v4968_v34 = vsel %vm21356_vm15, %v4921_v33, -inf  ;;  %v5032_v47 = vrot.slane %v15809_v40, 6  ;;  %vm21364_vm14 = vmmov %vm21354_vm6 }
 0x506   : > { %v5161_v35 = vrot.slane %v15851_v49, 1  ;;  %v5255_v39 = vmax.f32 %v5127_v28, %v5223_v57  ;;  %v5000_v27 = vmax.f32 %v15809_v40, %v4968_v34  ;;  %v5289_v11 = vrot.slane %v15851_v49, 2  ;;  %vm21368_vm12 = vmmov %vm21357_vm0  ;;  %v21379_v57 = vld [vmem:[#allocation10_spill] sm:$0xff] }
 0x507   : > { %v5412_v29 = vmax.f32 %v16542_v52, %v16600_v15  ;;  %v5492_v24 = vmax.f32 %v5468_v20, %v16370_v55  ;;  %v5049_v43 = vsel %vm21357_vm0, %v5031_v56, %v5032_v47  ;;  %v4905_v18 = vrot.slane %v15851_v49, 7  ;;  %vm21369_vm6 = vmmov %vm21358_vm11 }
 0x508   : > { %v5176_v36 = vsel %vm21358_vm11, %v5160_v60, %v5161_v35  ;;  %v16633_v0 = vmax.f32 %v5255_v39, %v5351_v7  ;;  %vm21359_vm4 = vnez %v20879_v63  ;;  %vm21360_vm2 = vnez %v20888_v10  ;;  %vm21374_vm11 = vmmov %vm21361_vm9  ;;  %v21381_v7 = vld [vmem:[#allocation124_spill] sm:$0xff] }
 0x509   : > { %v5096_v40 = vsel %vm21359_vm4, %v5049_v43, -inf  ;;  %v5224_v13 = vsel %vm21360_vm2, %v5176_v36, -inf  ;;  %v5304_v19 = vsel %vm21361_vm9, %v5288_v26, %v5289_v11  ;;  %6889 = vmatmul.mubr.msk.f32.gmra.mrb[0].mxu1 %vm21362_vm1, %v5492_v24  ;;  %vm21363_vm13 = vnez %v20890_v32  ;;  %vm21375_vm4 = vmmov %vm21362_vm1  ;;  %v21384_v43 = vld [vmem:[#allocation19_spill] sm:$0xff] }
 0x50a   : > { %v5128_v55 = vmax.f32 %v5000_v27, %v5096_v40  ;;  %v5352_v50 = vsel %vm21363_vm13, %v5304_v19, -inf  ;;  %v5440_v44 = vmax.f32 %v5412_v29, %v16484_v12  ;;  %v4920_v5 = vsel %vm21364_vm14, %v4904_v51, %v4905_v18  ;;  %vm21378_vm9 = vmmov %vm21364_vm14  ;;  %v21389_v19 = vld [vmem:[#allocation188_spill] sm:$0xff] }
 0x50b   : > { %v5469_v63 = vmax.f32 %v5439_v21, %v16633_v0  ;;  %vm21366_vm7 = vnez %v21365_v61  ;;  %v5033_v62 = vrot.slane %v15851_v49, 6  ;;  %v5162_v45 = vrot.slane %v21367_v59, 1  ;;  %vm21382_vm13 = vmmov %vm21368_vm12 }
 0x50c   : > { %v4969_v10 = vsel %vm21366_vm7, %v4920_v5, -inf  ;;  %v5256_v30 = vmax.f32 %v5128_v55, %v5224_v13  ;;  %v5290_v32 = vrot.slane %v21367_v59, 2  ;;  %v5413_v22 = vmax.f32 %v16571_v23, %v16633_v0  ;;  %vm21383_vm14 = vmmov %vm21369_vm6 }
 0x50d   : > { %v5001_v48 = vmax.f32 %v15851_v49, %v4969_v10  ;;  %v5493_v42 = vmax.f32 %v5469_v63, %v16397_v2  ;;  %v5048_v54 = vsel %vm21368_vm12, %v5032_v47, %v5033_v62  ;;  %v5175_v58 = vsel %vm21369_vm6, %v5161_v35, %v5162_v45  ;;  %v16685_v47 = vpop.f32.mrb[50].mxu0  ;;  %vm21387_vm12 = vmmov %vm21374_vm11  ;;  %v21392_v63 = vld [vmem:[#allocation36_spill] sm:$0xff] }
 0x50e   : > { %v4906_v56 = vrot.slane %v21367_v59, 7  ;;  %v16662_v60 = vmax.f32 %v5256_v30, %v5352_v50  ;;  %vm21371_vm15 = vnez %v21370_v14  ;;  %vm21373_vm0 = vnez %v21372_v25  ;;  %v16693_v29 = vpop.f32.mrb[51].mxu0  ;;  %vm21388_vm6 = vmmov %vm21375_vm4  ;;  %v21398_v25 = vld [vmem:[#allocation138_spill] sm:$0xff] }
 0x50f   : > { %v5097_v49 = vsel %vm21371_vm15, %v5048_v54, -inf  ;;  %v5225_v26 = vsel %vm21373_vm0, %v5175_v58, -inf  ;;  %v5303_v6 = vsel %vm21374_vm11, %v5289_v11, %v5290_v32  ;;  %6891 = vmatprep.mubr.msk.f32.mxu1 %vm21375_vm4, %v5493_v42  ;;  %vm21377_vm2 = vnez %v21376_v16  ;;  %vm21391_vm0 = vmmov %vm21378_vm9 }
 0x510   : > { %v5129_v2 = vmax.f32 %v5001_v48, %v5097_v49  ;;  %v5353_v37 = vsel %vm21377_vm2, %v5303_v6, -inf  ;;  %v5441_v8 = vmax.f32 %v5413_v22, %v16513_v31  ;;  %v4919_v51 = vsel %vm21378_vm9, %v4905_v18, %v4906_v56  ;;  %vm21396_vm4 = vmmov %vm21383_vm14  ;;  %v21412_v18 = vld [vmem:[#allocation98_spill] sm:$0xff] }
 0x511   : > { %v5470_v46 = vmax.f32 %v5440_v44, %v16662_v60  ;;  %vm21380_vm1 = vnez %v21379_v57  ;;  %v5034_v28 = vrot.slane %v21367_v59, 6  ;;  %v5163_v21 = vrot.slane %v21381_v7, 1  ;;  %vm21400_vm9 = vmmov %vm21387_vm12 }
 0x512   : > { %v4970_v53 = vsel %vm21380_vm1, %v4919_v51, -inf  ;;  %v5257_v33 = vmax.f32 %v5129_v2, %v5225_v26  ;;  %v5291_v17 = vrot.slane %v21381_v7, 2  ;;  %v5414_v34 = vmax.f32 %v16600_v15, %v16662_v60  ;;  %vm21401_vm1 = vmmov %vm21388_vm6  ;;  %v21402_v2 = vld [vmem:[#allocation149_spill] sm:$0xff] }
 0x513   : > { %v5002_v20 = vmax.f32 %v21367_v59, %v4970_v53  ;;  %v5494_v35 = vmax.f32 %v5470_v46, %v16426_v9  ;;  %v5047_v39 = vsel %vm21382_vm13, %v5033_v62, %v5034_v28  ;;  %v5174_v27 = vsel %vm21383_vm14, %v5162_v45, %v5163_v21  ;;  %v21394_v62 = vld [vmem:[#allocation154_spill] sm:$0xff]  ;;  %vm21404_vm14 = vmmov %vm21391_vm0  ;;  %v21405_v46 = vld [vmem:[#allocation49_spill] sm:$0xff] }
 0x514   : > { %v4907_v11 = vrot.slane %v21381_v7, 7  ;;  %v16695_v24 = vmax.f32 %v5257_v33, %v5353_v37  ;;  %vm21385_vm7 = vnez %v21384_v43  ;;  %v5226_v40 = vsel %vm20925_vm5, %v5174_v27, -inf  ;;  %vm21395_vm5 = vmmov %vm21382_vm13  ;;  %v21410_v43 = vld [vmem:[#allocation12_spill] sm:$0xff] }
 0x515   : > { %v5098_v36 = vsel %vm21385_vm7, %v5047_v39, -inf  ;;  %v5302_v9 = vsel %vm21387_vm12, %v5290_v32, %v5291_v17  ;;  %6892 = vmatmul.mubr.msk.f32.gmra.mrb[2].mxu1 %vm21388_vm6, %v5494_v35  ;;  %vm21390_vm15 = vnez %v21389_v19  ;;  %v5442_v50 = vmax.f32 %v5414_v34, %v16542_v52  ;;  %vm21408_vm7 = vmmov %vm21395_vm5 }
 0x516   : > { %v5130_v13 = vmax.f32 %v5002_v20, %v5098_v36  ;;  %v5354_v55 = vsel %vm21390_vm15, %v5302_v9, -inf  ;;  %v4918_v44 = vsel %vm21391_vm0, %v4906_v56, %v4907_v11  ;;  %v5471_v5 = vmax.f32 %v5441_v8, %v16695_v24  ;;  %vm21409_vm12 = vmmov %vm21396_vm4 }
 0x517   : > { %vm21393_vm11 = vnez %v21392_v63  ;;  %v5035_v10 = vrot.slane %v21381_v7, 6  ;;  %v5164_v59 = vrot.slane %v21394_v62, 1  ;;  %v5292_v48 = vrot.slane %v21394_v62, 2  ;;  %vm21414_vm0 = vmmov %vm21400_vm9 }
 0x518   : > { %v4971_v61 = vsel %vm21393_vm11, %v4918_v44, -inf  ;;  %v5258_v45 = vmax.f32 %v5130_v13, %v5226_v40  ;;  %v5415_v32 = vmax.f32 %v16633_v0, %v16695_v24  ;;  %v5495_v22 = vmax.f32 %v5471_v5, %v16455_v38  ;;  %vm21415_vm11 = vmmov %vm21401_vm1 }
 0x519   : > { %v5003_v30 = vmax.f32 %v21381_v7, %v4971_v61  ;;  %v5046_v42 = vsel %vm21395_vm5, %v5034_v28, %v5035_v10  ;;  %v5173_v54 = vsel %vm21396_vm4, %v5163_v21, %v5164_v59  ;;  %v4908_v58 = vrot.slane %v21394_v62, 7  ;;  %v21407_v28 = vld [vmem:[#allocation147_spill] sm:$0xff]  ;;  %vm21417_vm5 = vmmov %vm21404_vm14  ;;  %v21418_v61 = vld [vmem:[#allocation86_spill] sm:$0xff] }
 0x51a   : > { %v16724_v56 = vmax.f32 %v5258_v45, %v5354_v55  ;;  %v5099_v49 = vsel %vm20939_vm3, %v5046_v42, -inf  ;;  %vm21399_vm2 = vnez %v21398_v25  ;;  %v5301_v6 = vsel %vm21400_vm9, %v5291_v17, %v5292_v48  ;;  %6894 = vmatprep.mubr.msk.f32.mxu1 %vm21401_vm1, %v5495_v22 }
 0x51b   : > { %v5227_v26 = vsel %vm21399_vm2, %v5173_v54, -inf  ;;  %v5131_v38 = vmax.f32 %v5003_v30, %v5099_v49  ;;  %vm21403_vm13 = vnez %v21402_v2  ;;  %v5443_v37 = vmax.f32 %v5415_v32, %v16571_v23  ;;  %vm21421_vm2 = vmmov %vm21409_vm12  ;;  %v21422_v49 = vld [vmem:[#allocation91_spill] sm:$0xff]  ;;  %v21428_v2 = vld [vmem:[#allocation94_spill] sm:$0xff] }
 0x51c   : > { %v5355_v16 = vsel %vm21403_vm13, %v5301_v6, -inf  ;;  %v4917_v8 = vsel %vm21404_vm14, %v4907_v11, %v4908_v58  ;;  %v5472_v51 = vmax.f32 %v5442_v50, %v16724_v56  ;;  %vm21406_vm3 = vnez %v21405_v46  ;;  %vm21426_vm13 = vmmov %vm21414_vm0  ;;  %v21431_v46 = vld [vmem:[#allocation67_spill] sm:$0xff] }
 0x51d   : > { %v4972_v57 = vsel %vm21406_vm3, %v4917_v8, -inf  ;;  %v5036_v53 = vrot.slane %v21394_v62, 6  ;;  %v5165_v7 = vrot.slane %v21407_v28, 1  ;;  %v5259_v21 = vmax.f32 %v5131_v38, %v5227_v26  ;;  %v21424_v26 = vld [vmem:[#allocation65_spill] sm:$0xff]  ;;  %vm21427_vm14 = vmmov %vm21415_vm11 }
 0x51e   : > { %v5004_v33 = vmax.f32 %v21394_v62, %v4972_v57  ;;  %v5293_v20 = vrot.slane %v21407_v28, 2  ;;  %v5416_v17 = vmax.f32 %v16662_v60, %v16724_v56  ;;  %v5496_v34 = vmax.f32 %v5472_v51, %v16484_v12  ;;  %v16761_v12 = vpop.f32.mrb[52].mxu0 }
 0x51f   : > { %v5045_v35 = vsel %vm21408_vm7, %v5035_v10, %v5036_v53  ;;  %v5172_v39 = vsel %vm21409_vm12, %v5164_v59, %v5165_v7  ;;  %v4909_v27 = vrot.slane %v21407_v28, 7  ;;  %v16753_v11 = vmax.f32 %v5259_v21, %v5355_v16  ;;  %v16769_v5 = vpop.f32.mrb[53].mxu0 }
 0x520   : > { %vm21411_vm6 = vnez %v21410_v43  ;;  %vm21413_vm15 = vnez %v21412_v18  ;;  %v5300_v9 = vsel %vm21414_vm0, %v5292_v48, %v5293_v20  ;;  %6895 = vmatmul.mubr.msk.f32.gmra.mrb[4].mxu1 %vm21415_vm11, %v5496_v34  ;;  %v5444_v50 = vmax.f32 %v5416_v17, %v16600_v15  ;;  %vm21439_vm11 = vmmov %vm21426_vm13 }
 0x521   : > { %v5100_v36 = vsel %vm21411_vm6, %v5045_v35, -inf  ;;  %v5228_v40 = vsel %vm21413_vm15, %v5172_v39, -inf  ;;  %v5356_v55 = vsel %vm20971_vm8, %v5300_v9, -inf  ;;  %v4916_v44 = vsel %vm21417_vm5, %v4908_v58, %v4909_v27  ;;  %vm21420_vm8 = vmmov %vm21408_vm7 }
 0x522   : > { %v5132_v13 = vmax.f32 %v5004_v33, %v5100_v36  ;;  %v5473_v63 = vmax.f32 %v5443_v37, %v16753_v11  ;;  %vm21419_vm4 = vnez %v21418_v61  ;;  %v5037_v62 = vrot.slane %v21407_v28, 6  ;;  %vm21430_vm7 = vmmov %vm21417_vm5 }
 0x523   : > { %v4973_v10 = vsel %vm21419_vm4, %v4916_v44, -inf  ;;  %v5166_v59 = vrot.slane %v15979_v4, 1  ;;  %v5294_v48 = vrot.slane %v15979_v4, 2  ;;  %v5417_v32 = vmax.f32 %v16695_v24, %v16753_v11  ;;  %vm21434_vm6 = vmmov %vm21420_vm8 }
 0x524   : > { %v5260_v45 = vmax.f32 %v5132_v13, %v5228_v40  ;;  %v5005_v30 = vmax.f32 %v21407_v28, %v4973_v10  ;;  %v5497_v22 = vmax.f32 %v5473_v63, %v16513_v31  ;;  %v5044_v42 = vsel %vm21420_vm8, %v5036_v53, %v5037_v62  ;;  %v21433_v28 = vld [vmem:[#allocation24_spill] sm:$0xff]  ;;  %vm21435_vm15 = vmmov %vm21421_vm2  ;;  %v21441_v13 = vld [vmem:[#allocation111_spill] sm:$0xff] }
 0x525   : > { %v5171_v54 = vsel %vm21421_vm2, %v5165_v7, %v5166_v59  ;;  %v4910_v58 = vrot.slane %v15979_v4, 7  ;;  %vm21423_vm9 = vnez %v21422_v49  ;;  %vm21425_vm1 = vnez %v21424_v26  ;;  %vm21440_vm5 = vmmov %vm21427_vm14  ;;  %v21444_v63 = vld [vmem:[#allocation28_spill] sm:$0xff] }
 0x526   : > { %v16786_v14 = vmax.f32 %v5260_v45, %v5356_v55  ;;  %v5101_v25 = vsel %vm21423_vm9, %v5044_v42, -inf  ;;  %v5229_v6 = vsel %vm21425_vm1, %v5171_v54, -inf  ;;  %v5299_v38 = vsel %vm21426_vm13, %v5293_v20, %v5294_v48  ;;  %6897 = vmatprep.mubr.msk.f32.mxu1 %vm21427_vm14, %v5497_v22  ;;  %vm21443_vm8 = vmmov %vm21430_vm7  ;;  %v16831_v45 = vpop.f32.mrb[54].mxu0 }
 0x527   : > { %v5133_v31 = vmax.f32 %v5005_v30, %v5101_v25  ;;  %vm21429_vm3 = vnez %v21428_v2  ;;  %v5445_v37 = vmax.f32 %v5417_v32, %v16633_v0  ;;  %v4915_v8 = vsel %vm21430_vm7, %v4909_v27, %v4910_v58  ;;  %v16836_v42 = vpop.f32.mrb[55].mxu0  ;;  %vm21447_vm2 = vmmov %vm21434_vm6 }
 0x528   : > { %v5357_v16 = vsel %vm21429_vm3, %v5299_v38, -inf  ;;  %v5474_v51 = vmax.f32 %v5444_v50, %v16786_v14  ;;  %vm21432_vm12 = vnez %v21431_v46  ;;  %v5038_v53 = vrot.slane %v15979_v4, 6  ;;  %vm21448_vm9 = vmmov %vm21435_vm15  ;;  %v21451_v38 = vld [vmem:[#allocation32_spill] sm:$0xff] }
 0x529   : > { %v4974_v57 = vsel %vm21432_vm12, %v4915_v8, -inf  ;;  %v5167_v7 = vrot.slane %v21433_v28, 1  ;;  %v5261_v21 = vmax.f32 %v5133_v31, %v5229_v6  ;;  %v5295_v20 = vrot.slane %v21433_v28, 2  ;;  %vm21450_vm1 = vmmov %vm21430_vm7  ;;  %v21457_v8 = vld [vmem:[#allocation118_spill] sm:$0xff] }
 0x52a   : > { %v5006_v33 = vmax.f32 %v15979_v4, %v4974_v57  ;;  %v5418_v17 = vmax.f32 %v16724_v56, %v16786_v14  ;;  %v5498_v34 = vmax.f32 %v5474_v51, %v16542_v52  ;;  %v5043_v35 = vsel %vm21434_vm6, %v5037_v62, %v5038_v53  ;;  %v21437_v4 = vld [vmem:[#allocation180_spill] sm:$0xff]  ;;  %v21446_v62 = vld [vmem:[#allocation155_spill] sm:$0xff]  ;;  %vm21453_vm14 = vmmov %vm21439_vm11 }
 0x52b   : > { %v5170_v39 = vsel %vm21435_vm15, %v5166_v59, %v5167_v7  ;;  %v4911_v27 = vrot.slane %v21433_v28, 7  ;;  %v5389_v43 = vmax.f32 %v5261_v21, %v5357_v16  ;;  %v5102_v18 = vsel %vm20998_vm10, %v5043_v35, -inf  ;;  %vm21454_vm3 = vmmov %vm21440_vm5  ;;  %v21455_v16 = vld [vmem:[#allocation72_spill] sm:$0xff] }
 0x52c   : > { %vm21438_vm0 = vnez %v21437_v4  ;;  %v5298_v9 = vsel %vm21439_vm11, %v5294_v48, %v5295_v20  ;;  %6898 = vmatmul.mubr.msk.f32.gmra.mrb[6].mxu1 %vm21440_vm5, %v5498_v34  ;;  %v5134_v52 = vmax.f32 %v5006_v33, %v5102_v18  ;;  %vm21442_vm4 = vnez %v21441_v13  ;;  %vm21460_vm6 = vmmov %vm21447_vm2  ;;  %v21470_v13 = vld [vmem:[#allocation80_spill] sm:$0xff] }
 0x52d   : > { %v5230_v40 = vsel %vm21438_vm0, %v5170_v39, -inf  ;;  %v5358_v19 = vsel %vm21442_vm4, %v5298_v9, -inf  ;;  %v5446_v55 = vmax.f32 %v5418_v17, %v16662_v60  ;;  %v4914_v50 = vsel %vm21443_vm8, %v4910_v58, %v4911_v27  ;;  %vm21463_vm15 = vmmov %vm21448_vm9  ;;  %v21464_v17 = vld [vmem:[#allocation101_spill] sm:$0xff] }
 0x52e   : > { %v5475_v44 = vmax.f32 %v5445_v37, %v5389_v43  ;;  %vm21445_vm10 = vnez %v21444_v63  ;;  %v5039_v10 = vrot.slane %v21433_v28, 6  ;;  %v5168_v59 = vrot.slane %v21446_v62, 1  ;;  %v21466_v39 = vld [vmem:[#allocation21_spill] sm:$0xff]  ;;  %vm21469_vm5 = vmmov %vm21453_vm14  ;;  %v21473_v63 = vld [vmem:[#allocation119_spill] sm:$0xff] }
 0x52f   : > { %v4975_v61 = vsel %vm21445_vm10, %v4914_v50, -inf  ;;  %v5262_v30 = vmax.f32 %v5134_v52, %v5230_v40  ;;  %v5296_v32 = vrot.slane %v21446_v62, 2  ;;  %v5419_v22 = vmax.f32 %v16753_v11, %v5389_v43  ;;  %vm21472_vm8 = vmmov %vm21454_vm3 }
 0x530   : > { %v5007_v48 = vmax.f32 %v21433_v28, %v4975_v61  ;;  %v5499_v54 = vmax.f32 %v5475_v44, %v16571_v23  ;;  %v5042_v58 = vsel %vm21447_vm2, %v5038_v53, %v5039_v10  ;;  %v5169_v49 = vsel %vm21448_vm9, %v5167_v7, %v5168_v59  ;;  %v21461_v7 = vld [vmem:[#allocation132_spill] sm:$0xff]  ;;  %vm21475_vm2 = vmmov %vm21454_vm3 }
 0x531   : > { %v21449_v25 = vrot.slane %v21446_v62, 7  ;;  %v5390_v6 = vmax.f32 %v5262_v30, %v5358_v19  ;;  %vm21452_vm13 = vnez %v21451_v38  ;;  %v5297_v2 = vsel %vm21453_vm14, %v5295_v20, %v5296_v32  ;;  %vm21476_vm9 = vmmov %vm21475_vm2 }
 0x532   : > { %v5103_v31 = vsel %vm21452_vm13, %v5042_v58, -inf  ;;  %6900 = vmatprep.mubr.msk.f32.mxu1 %vm21454_vm3, %v5499_v54  ;;  %vm21456_vm7 = vnez %v21455_v16  ;;  %vm21458_vm12 = vnez %v21457_v8  ;;  %v21459_v53 = vrot.slane %v21446_v62, 6 }
 0x533   : > { %v4913_v26 = vsel %vm21450_vm1, %v4911_v27, %v21449_v25  ;;  %v5135_v23 = vmax.f32 %v5007_v48, %v5103_v31  ;;  %v5231_v37 = vsel %vm21456_vm7, %v5169_v49, -inf  ;;  %v5476_v46 = vmax.f32 %v5446_v55, %v5390_v6  ;;  %v16885_v48 = vpop.f32.mrb[56].mxu0  ;;  %vm21477_vm1 = vmmov %vm21475_vm2 }
 0x534   : > { %v4976_v51 = vsel %vm21458_vm12, %v4913_v26, -inf  ;;  %v5041_v28 = vsel %vm21460_vm6, %v5039_v10, %v21459_v53  ;;  %v21462_v21 = vrot.slane %v21461_v7, 1  ;;  %vm21465_vm0 = vnez %v21464_v17  ;;  %v16889_v54 = vpop.f32.mrb[57].mxu0  ;;  %vm21478_vm13 = vmmov %vm21477_vm1  ;;  %v16936_v17 = vld [vmem:[%s17207_s10] ss:$0 sm:$0xff] }
 0x535   : > { %v5008_v57 = vmax.f32 %v21446_v62, %v4976_v51  ;;  %v5263_v20 = vmax.f32 %v5135_v23, %v5231_v37  ;;  %v5359_v34 = vsel %vm21465_vm0, %v5297_v2, -inf  ;;  %v5447_v35 = vmax.f32 %v5419_v22, %v16695_v24  ;;  %vm21479_vm14 = vmmov %vm21477_vm1 }
 0x536   : > { %v5200_v33 = vsel %vm21463_vm15, %v5168_v59, %v21462_v21  ;;  %vm21467_vm11 = vnez %v21466_v39  ;;  %v5500_v36 = vmax.f32 %v5476_v46, %v16600_v15  ;;  %v21468_v4 = vrot.slane %v21461_v7, 2  ;;  %vm21480_vm3 = vmmov %vm21477_vm1  ;;  %v16931_v21 = vld [vmem:[%s17206_s9] ss:$0 sm:$0xff] }
 0x537   : > { %v5104_v27 = vsel %vm21467_vm11, %v5041_v28, -inf  ;;  %v5420_v9 = vmax.f32 %v16786_v14, %v5390_v6  ;;  %v5391_v52 = vmax.f32 %v5263_v20, %v5359_v34  ;;  %vm21471_vm4 = vnez %v21470_v13 }
 0x538   : > { %v5136_v18 = vmax.f32 %v5008_v57, %v5104_v27  ;;  %v5328_v40 = vsel %vm21469_vm5, %v5296_v32, %v21468_v4  ;;  %v5232_v19 = vsel %vm21471_vm4, %v5200_v33, -inf  ;;  %6901 = vmatmul.mubr.msk.f32.gmra.mrb[8].mxu1 %vm21472_vm8, %v5500_v36  ;;  %vm21474_vm10 = vnez %v21473_v63 }
 0x539   : > { %v5448_v50 = vmax.f32 %v5420_v9, %v16724_v56  ;;  %v5477_v44 = vmax.f32 %v5447_v35, %v5391_v52  ;;  %v5360_v15 = vsel %vm21474_vm10, %v5328_v40, -inf  ;;  %v5421_v61 = vmax.f32 %v5389_v43, %v5391_v52 }
 0x53a   : > { %v5264_v55 = vmax.f32 %v5136_v18, %v5232_v19  ;;  %vm6164_vm7 = vcmask 64512  }
 0x53b   : > { %v5501_v3 = vmax.f32 %v5477_v44, %v16633_v0  ;;  %v5449_v62 = vmax.f32 %v5421_v61, %v16753_v11  ;;  %v16898_v11 = vpop.f32.mrb[58].mxu0 }
 0x53c   : > { %v5392_v10 = vmax.f32 %v5264_v55, %v5360_v15 }
 0x53d   : > { %6903 = vmatprep.mubr.msk.f32.mxu1 %vm21475_vm2, %v5501_v3  ;;  %v5503_v58 = vmax.f32 %v5449_v62, %v16695_v24 }
 0x53e   : > { %v5478_v59 = vmax.f32 %v5448_v50, %v5392_v10  ;;  %v5422_v30 = vmax.f32 %v5390_v6, %v5392_v10 }
 0x540   : > { %v5502_v32 = vmax.f32 %v5478_v59, %v16662_v60  ;;  %v5450_v22 = vmax.f32 %v5422_v30, %v16786_v14  ;;  %v16900_v60 = vpop.f32.mrb[59].mxu0 }
 0x541   : > { %v16902_v14 = vpop.f32.mrb[60].mxu0 }
 0x542   : > { %6904 = vmatmul.mubr.msk.f32.gmra.mrb[10].mxu1 %vm21476_vm9, %v5502_v32  ;;  %v5504_v0 = vmax.f32 %v5450_v22, %v16724_v56  ;;  %v16904_v43 = vpop.f32.mrb[61].mxu0 }
 0x543   : > { %6906 = vmatprep.mubr.msk.f32.mxu1 %vm21477_vm1, %v5503_v58  ;;  %v16906_v24 = vpop.f32.mrb[62].mxu0 }
 0x544   : > { %v16908_v49 = vpop.f32.mrb[63].mxu0 }
 0x545   : > { %v6766_v25 = vpop.f32.mrb[32].mxu0 }
 0x546   : > { %6907 = vmatmul.mubr.msk.f32.gmra.mrb[12].mxu1 %vm21478_vm13, %v5504_v0  ;;  %v3741_v56 = vpop.f32.mrb[33].mxu0 }
 0x547   : > { %6909 = vmatprep.mubr.msk.f32.mxu1 %vm21479_vm14, %v5449_v62  ;;  %v6769_v26 = vpop.f32.mrb[34].mxu0 }
 0x548   : > { %v3751_v6 = vpop.f32.mrb[35].mxu0 }
 0x549   : > { %v6772_v38 = vpop.f32.mrb[36].mxu0 }
 0x54a   : > { %6910 = vmatmul.mubr.msk.f32.gmra.mrb[14].mxu1 %vm21480_vm3, %v5450_v22  ;;  %v3761_v31 = vpop.f32.mrb[37].mxu0 }
 0x54b   : > { %v6775_v2 = vpop.f32.mrb[38].mxu0 }
 0x54c   : > { %v16910_v23 = vpop.f32.mrb[39].mxu0 }
 0x54d   : > { %v16912_v16 = vpop.f32.mrb[40].mxu0 }
 0x54e   : > { %v16914_v37 = vpop.f32.mrb[41].mxu0 }
 0x54f   : > { %v16916_v8 = vpop.f32.mrb[42].mxu0 }
 0x550   : > { %v16918_v51 = vpop.f32.mrb[43].mxu0 }
 0x551   : > { %v16920_v46 = vpop.f32.mrb[44].mxu0 }
 0x552   : > { %v16922_v57 = vpop.f32.mrb[45].mxu0 }
 0x553   : > { %v16924_v53 = vpop.f32.mrb[46].mxu0 }
 0x554   : > { %v16926_v28 = vpop.f32.mrb[47].mxu0 }
 0x56c   : > { %v6866_v7 = vpop.f32.mrb[16].mxu1 }
 0x56d   : > { %v6914_v33 = vadd.f32 %v6866_v7, %v6766_v25  ;;  %v5671_v20 = vpop.f32.mrb[17].mxu1 }
 0x56e   : > { %v6915_v34 = vadd.f32 %v5671_v20, %v3741_v56 }
 0x56f   : > { %v5870_v35 = vmul.f32 %v6914_v33, %v16931_v21 }
 0x570   : > { %v5869_v39 = vmul.f32 %v6915_v34, %v16931_v21 }
 0x571   : > { %v5909_v27 = vadd.f32 %v16936_v17, %v5870_v35 }
 0x572   : > { %v5908_v36 = vadd.f32 %v16936_v17, %v5869_v39 }
 0x573   : > { %v6464_v18 = vmul.f32 -1.442695, %v5909_v27 }
 0x574   : > { %v6463_v4 = vmul.f32 -1.442695, %v5908_v36 }
 0x575   : > { %7149 = vpow2.f32 %v6464_v18 }
 0x576   : > { %7151 = vpow2.f32 %v6463_v4 }
 0x57a   : > { %v6869_v40 = vpop.f32.mrb[18].mxu1 }
 0x57b   : > { %v6916_v9 = vadd.f32 %v6869_v40, %v6769_v26  ;;  %v5681_v52 = vpop.f32.mrb[19].mxu1 }
 0x57c   : > { %v6917_v13 = vadd.f32 %v5681_v52, %v3751_v6 }
 0x57d   : > { %v5872_v19 = vmul.f32 %v6916_v9, %v16931_v21 }
 0x57e   : > { %v5871_v55 = vmul.f32 %v6917_v13, %v16931_v21 }
 0x57f   : > { %v5911_v50 = vadd.f32 %v16936_v17, %v5872_v19  ;;  %v7150_v15 = vpop.eup %7149 }
 0x580   : > { %v5910_v44 = vadd.f32 %v16936_v17, %v5871_v55  ;;  %v7152_v10 = vpop.eup %7151  ;;  %v6037_v3 = vadd.f32 1.0, %v7150_v15 }
 0x581   : > { %v6466_v63 = vmul.f32 -1.442695, %v5911_v50  ;;  %v6036_v62 = vadd.f32 1.0, %v7152_v10 }
 0x582   : > { %v6465_v61 = vmul.f32 -1.442695, %v5910_v44 }
 0x583   : > { %7153 = vpow2.f32 %v6466_v63 }
 0x584   : > { %7155 = vpow2.f32 %v6465_v61 }
 0x585   : > { %7157 = vrcp.f32 %v6037_v3 }
 0x586   : > { %7159 = vrcp.f32 %v6036_v62 }
 0x58c   : > { %v6872_v59 = vpop.f32.mrb[20].mxu1 }
 0x58d   : > { %v6918_v30 = vadd.f32 %v6872_v59, %v6772_v38  ;;  %v5691_v32 = vpop.f32.mrb[21].mxu1  ;;  %v7154_v6 = vpop.eup %7153 }
 0x58e   : > { %v6919_v22 = vadd.f32 %v5691_v32, %v3761_v31  ;;  %v7156_v33 = vpop.eup %7155  ;;  %v6039_v20 = vadd.f32 1.0, %v7154_v6 }
 0x58f   : > { %v5874_v58 = vmul.f32 %v6918_v30, %v16931_v21  ;;  %v7158_v31 = vpop.eup %7157  ;;  %v6038_v34 = vadd.f32 1.0, %v7156_v33 }
 0x590   : > { %v5873_v0 = vmul.f32 %v6919_v22, %v16931_v21  ;;  %v7160_v18 = vpop.eup %7159  ;;  %v6133_v4 = vmul.f32 %v7158_v31, %v5909_v27 }
 0x591   : > { %v16949_v25 = vadd.f32 %v16936_v17, %v5874_v58  ;;  %v6132_v9 = vmul.f32 %v7160_v18, %v5908_v36 }
 0x592   : > { %v16952_v56 = vadd.f32 %v16936_v17, %v5873_v0  ;;  %6166 = vst.msk [vmem:[%s16961_s26 + $0x8] sm:$0xff] %vm6164_vm7, %v6133_v4 }
 0x593   : > { %v6468_v26 = vmul.f32 -1.442695, %v16949_v25  ;;  %6165 = vst.msk [vmem:[%s16961_s26] sm:$0xff] %vm6164_vm7, %v6132_v9 }
 0x594   : > { %v6467_v7 = vmul.f32 -1.442695, %v16952_v56 }
 0x595   : > { %7161 = vpow2.f32 %v6468_v26 }
 0x596   : > { %7163 = vpow2.f32 %v6467_v7 }
 0x597   : > { %v6875_v38 = vpop.f32.mrb[22].mxu1  ;;  %7165 = vrcp.f32 %v6039_v20 }
 0x598   : > { %v6920_v35 = vadd.f32 %v6875_v38, %v6775_v2  ;;  %v5701_v39 = vpop.f32.mrb[23].mxu1  ;;  %7167 = vrcp.f32 %v6038_v34 }
 0x599   : > { %v6921_v40 = vadd.f32 %v5701_v39, %v16910_v23 }
 0x59a   : > { %v5876_v52 = vmul.f32 %v6920_v35, %v16931_v21 }
 0x59b   : > { %v5875_v13 = vmul.f32 %v6921_v40, %v16931_v21 }
 0x59c   : > { %v16971_v19 = vadd.f32 %v16936_v17, %v5876_v52 }
 0x59d   : > { %v16974_v2 = vadd.f32 %v16936_v17, %v5875_v13 }
 0x59e   : > { %v6470_v27 = vmul.f32 -1.442695, %v16971_v19 }
 0x59f   : > { %v6469_v23 = vmul.f32 -1.442695, %v16974_v2  ;;  %v7162_v36 = vpop.eup %7161 }
 0x5a0   : > { %7169 = vpow2.f32 %v6470_v27  ;;  %v7164_v55 = vpop.eup %7163  ;;  %v6041_v63 = vadd.f32 1.0, %v7162_v36 }
 0x5a1   : > { %7171 = vpow2.f32 %v6469_v23  ;;  %v7166_v61 = vpop.eup %7165  ;;  %v6040_v10 = vadd.f32 1.0, %v7164_v55 }
 0x5a2   : > { %v7168_v59 = vpop.eup %7167  ;;  %v6135_v30 = vmul.f32 %v7166_v61, %v5911_v50  ;;  %7173 = vrcp.f32 %v6041_v63 }
 0x5a3   : > { %v6134_v22 = vmul.f32 %v7168_v59, %v5910_v44  ;;  %7175 = vrcp.f32 %v6040_v10 }
 0x5a4   : > { %6168 = vst.msk [vmem:[%s16961_s26 + $0x18] sm:$0xff] %vm6164_vm7, %v6135_v30 }
 0x5a5   : > { %v6878_v15 = vpop.f32.mrb[24].mxu1  ;;  %6167 = vst.msk [vmem:[%s16961_s26 + $0x10] sm:$0xff] %vm6164_vm7, %v6134_v22 }
 0x5a6   : > { %v6922_v3 = vadd.f32 %v6878_v15, %v16912_v16  ;;  %v5711_v62 = vpop.f32.mrb[25].mxu1 }
 0x5a7   : > { %v6923_v32 = vadd.f32 %v5711_v62, %v16914_v37 }
 0x5a8   : > { %v5878_v58 = vmul.f32 %v6922_v3, %v16931_v21 }
 0x5a9   : > { %v5877_v0 = vmul.f32 %v6923_v32, %v16931_v21 }
 0x5aa   : > { %v16987_v26 = vadd.f32 %v16936_v17, %v5878_v58  ;;  %v7170_v6 = vpop.eup %7169 }
 0x5ab   : > { %v16990_v16 = vadd.f32 %v16936_v17, %v5877_v0  ;;  %v7172_v44 = vpop.eup %7171  ;;  %v6043_v7 = vadd.f32 1.0, %v7170_v6 }
 0x5ac   : > { %v6472_v50 = vmul.f32 -1.442695, %v16987_v26  ;;  %v6042_v33 = vadd.f32 1.0, %v7172_v44  ;;  %v7174_v34 = vpop.eup %7173 }
 0x5ad   : > { %v6471_v37 = vmul.f32 -1.442695, %v16990_v16  ;;  %v7176_v39 = vpop.eup %7175  ;;  %v6137_v18 = vmul.f32 %v7174_v34, %v16949_v25 }
 0x5ae   : > { %7177 = vpow2.f32 %v6472_v50  ;;  %v6136_v40 = vmul.f32 %v7176_v39, %v16952_v56 }
 0x5af   : > { %7179 = vpow2.f32 %v6471_v37  ;;  %6170 = vst.msk [vmem:[%s16961_s26 + $0x28] sm:$0xff] %vm6164_vm7, %v6137_v18 }
 0x5b0   : > { %7181 = vrcp.f32 %v6043_v7  ;;  %6169 = vst.msk [vmem:[%s16961_s26 + $0x20] sm:$0xff] %vm6164_vm7, %v6136_v40 }
 0x5b1   : > { %7183 = vrcp.f32 %v6042_v33 }
 0x5b5   : > { %v6881_v20 = vpop.f32.mrb[26].mxu1 }
 0x5b6   : > { %v6924_v38 = vadd.f32 %v6881_v20, %v16916_v8  ;;  %v5721_v31 = vpop.f32.mrb[27].mxu1 }
 0x5b7   : > { %v6925_v35 = vadd.f32 %v5721_v31, %v16918_v51 }
 0x5b8   : > { %v5880_v4 = vmul.f32 %v6924_v38, %v16931_v21  ;;  %v7178_v13 = vpop.eup %7177 }
 0x5b9   : > { %v5879_v9 = vmul.f32 %v6925_v35, %v16931_v21  ;;  %v7180_v56 = vpop.eup %7179  ;;  %v6045_v27 = vadd.f32 1.0, %v7178_v13 }
 0x5ba   : > { %v17003_v52 = vadd.f32 %v16936_v17, %v5880_v4  ;;  %v7182_v36 = vpop.eup %7181  ;;  %v6044_v55 = vadd.f32 1.0, %v7180_v56 }
 0x5bb   : > { %v17008_v8 = vadd.f32 %v16936_v17, %v5879_v9  ;;  %v7184_v61 = vpop.eup %7183  ;;  %v6139_v10 = vmul.f32 %v7182_v36, %v16971_v19 }
 0x5bc   : > { %v6474_v51 = vmul.f32 -1.442695, %v17003_v52  ;;  %v6138_v62 = vmul.f32 %v7184_v61, %v16974_v2 }
 0x5bd   : > { %v6473_v25 = vmul.f32 -1.442695, %v17008_v8  ;;  %6172 = vst.msk [vmem:[%s16961_s26 + $0x38] sm:$0xff] %vm6164_vm7, %v6139_v10 }
 0x5be   : > { %7185 = vpow2.f32 %v6474_v51  ;;  %6171 = vst.msk [vmem:[%s16961_s26 + $0x30] sm:$0xff] %vm6164_vm7, %v6138_v62 }
 0x5bf   : > { %7187 = vpow2.f32 %v6473_v25 }
 0x5c0   : > { %7189 = vrcp.f32 %v6045_v27 }
 0x5c1   : > { %7191 = vrcp.f32 %v6044_v55 }
 0x5c3   : > { %v6884_v23 = vpop.f32.mrb[28].mxu1 }
 0x5c4   : > { %v6926_v63 = vadd.f32 %v6884_v23, %v16920_v46  ;;  %v5731_v15 = vpop.f32.mrb[29].mxu1 }
 0x5c5   : > { %v6927_v3 = vadd.f32 %v5731_v15, %v16922_v57 }
 0x5c6   : > { %v5882_v59 = vmul.f32 %v6926_v63, %v16931_v21 }
 0x5c7   : > { %v5881_v30 = vmul.f32 %v6927_v3, %v16931_v21 }
 0x5c8   : > { %v17023_v46 = vadd.f32 %v16936_v17, %v5882_v59  ;;  %v7186_v2 = vpop.eup %7185 }
 0x5c9   : > { %v17026_v32 = vadd.f32 %v16936_v17, %v5881_v30  ;;  %v7188_v22 = vpop.eup %7187  ;;  %v6047_v58 = vadd.f32 1.0, %v7186_v2 }
 0x5ca   : > { %v6476_v19 = vmul.f32 -1.442695, %v17023_v46  ;;  %v6046_v50 = vadd.f32 1.0, %v7188_v22  ;;  %v7190_v44 = vpop.eup %7189 }
 0x5cb   : > { %v6475_v57 = vmul.f32 -1.442695, %v17026_v32  ;;  %v7192_v33 = vpop.eup %7191  ;;  %v6141_v20 = vmul.f32 %v7190_v44, %v16987_v26 }
 0x5cc   : > { %7193 = vpow2.f32 %v6476_v19  ;;  %v6140_v31 = vmul.f32 %v7192_v33, %v16990_v16 }
 0x5cd   : > { %7195 = vpow2.f32 %v6475_v57  ;;  %6174 = vst.msk [vmem:[%s16961_s26 + $0x48] sm:$0xff] %vm6164_vm7, %v6141_v20 }
 0x5ce   : > { %7197 = vrcp.f32 %v6047_v58  ;;  %6173 = vst.msk [vmem:[%s16961_s26 + $0x40] sm:$0xff] %vm6164_vm7, %v6140_v31 }
 0x5cf   : > { %7199 = vrcp.f32 %v6046_v50 }
 0x5d0   : > { %v6887_v0 = vpop.f32.mrb[30].mxu1 }
 0x5d1   : > { %v6928_v6 = vadd.f32 %v6887_v0, %v16924_v53  ;;  %v5741_v37 = vpop.f32.mrb[31].mxu1 }
 0x5d2   : > { %v6929_v7 = vadd.f32 %v5741_v37, %v16926_v28 }
 0x5d3   : > { %v5884_v38 = vmul.f32 %v6928_v6, %v16931_v21 }
 0x5d4   : > { %v5883_v34 = vmul.f32 %v6929_v7, %v16931_v21 }
 0x5d5   : > { %v17039_v35 = vadd.f32 %v16936_v17, %v5884_v38 }
 0x5d6   : > { %v17044_v53 = vadd.f32 %v16936_v17, %v5883_v34  ;;  %v7194_v39 = vpop.eup %7193 }
 0x5d7   : > { %v6478_v28 = vmul.f32 -1.442695, %v17039_v35  ;;  %v7196_v18 = vpop.eup %7195  ;;  %v6049_v16 = vadd.f32 1.0, %v7194_v39 }
 0x5d8   : > { %v6477_v26 = vmul.f32 -1.442695, %v17044_v53  ;;  %v6048_v40 = vadd.f32 1.0, %v7196_v18  ;;  %v7198_v25 = vpop.eup %7197 }
 0x5d9   : > { %7201 = vpow2.f32 %v6478_v28  ;;  %v7200_v56 = vpop.eup %7199  ;;  %v6143_v27 = vmul.f32 %v7198_v25, %v17003_v52 }
 0x5da   : > { %7203 = vpow2.f32 %v6477_v26  ;;  %v6142_v36 = vmul.f32 %v7200_v56, %v17008_v8 }
 0x5db   : > { %7205 = vrcp.f32 %v6049_v16  ;;  %6176 = vst.msk [vmem:[%s16961_s26 + $0x58] sm:$0xff] %vm6164_vm7, %v6143_v27 }
 0x5dc   : > { %v6890_v4 = vpop.f32.mrb[0].mxu1  ;;  %7207 = vrcp.f32 %v6048_v40  ;;  %6175 = vst.msk [vmem:[%s16961_s26 + $0x50] sm:$0xff] %vm6164_vm7, %v6142_v36 }
 0x5dd   : > { %v6930_v9 = vadd.f32 %v6890_v4, %v16608_v41  ;;  %v5751_v51 = vpop.f32.mrb[1].mxu1 }
 0x5de   : > { %v6931_v13 = vadd.f32 %v5751_v51, %v16616_v1 }
 0x5df   : > { %v5886_v23 = vmul.f32 %v6930_v9, %v16931_v21 }
 0x5e0   : > { %v5885_v55 = vmul.f32 %v6931_v13, %v16931_v21 }
 0x5e1   : > { %v17057_v63 = vadd.f32 %v16936_v17, %v5886_v23 }
 0x5e2   : > { %v17062_v41 = vadd.f32 %v16936_v17, %v5885_v55 }
 0x5e3   : > { %v6480_v1 = vmul.f32 -1.442695, %v17057_v63  ;;  %v7202_v15 = vpop.eup %7201 }
 0x5e4   : > { %v6479_v52 = vmul.f32 -1.442695, %v17062_v41  ;;  %v7204_v61 = vpop.eup %7203  ;;  %v6051_v8 = vadd.f32 1.0, %v7202_v15 }
 0x5e5   : > { %7209 = vpow2.f32 %v6480_v1  ;;  %v6050_v3 = vadd.f32 1.0, %v7204_v61  ;;  %v7206_v30 = vpop.eup %7205 }
 0x5e6   : > { %7211 = vpow2.f32 %v6479_v52  ;;  %v7208_v57 = vpop.eup %7207  ;;  %v6145_v2 = vmul.f32 %v7206_v30, %v17023_v46 }
 0x5e7   : > { %7213 = vrcp.f32 %v6051_v8  ;;  %v6144_v58 = vmul.f32 %v7208_v57, %v17026_v32 }
 0x5e8   : > { %v6893_v10 = vpop.f32.mrb[2].mxu1  ;;  %7215 = vrcp.f32 %v6050_v3  ;;  %6178 = vst.msk [vmem:[%s16961_s26 + $0x68] sm:$0xff] %vm6164_vm7, %v6145_v2 }
 0x5e9   : > { %v6932_v62 = vadd.f32 %v6893_v10, %v16685_v47  ;;  %v5761_v59 = vpop.f32.mrb[3].mxu1  ;;  %6177 = vst.msk [vmem:[%s16961_s26 + $0x60] sm:$0xff] %vm6164_vm7, %v6144_v58 }
 0x5ea   : > { %v6933_v19 = vadd.f32 %v5761_v59, %v16693_v29 }
 0x5eb   : > { %v5888_v22 = vmul.f32 %v6932_v62, %v16931_v21 }
 0x5ec   : > { %v5887_v0 = vmul.f32 %v6933_v19, %v16931_v21 }
 0x5ed   : > { %v17075_v50 = vadd.f32 %v16936_v17, %v5888_v22 }
 0x5ee   : > { %v17080_v47 = vadd.f32 %v16936_v17, %v5887_v0 }
 0x5ef   : > { %v6482_v29 = vmul.f32 -1.442695, %v17075_v50  ;;  %v7210_v6 = vpop.eup %7209 }
 0x5f0   : > { %v6481_v46 = vmul.f32 -1.442695, %v17080_v47  ;;  %v7212_v37 = vpop.eup %7211  ;;  %v6053_v32 = vadd.f32 1.0, %v7210_v6 }
 0x5f1   : > { %7217 = vpow2.f32 %v6482_v29  ;;  %v6052_v7 = vadd.f32 1.0, %v7212_v37  ;;  %v7214_v38 = vpop.eup %7213 }
 0x5f2   : > { %7219 = vpow2.f32 %v6481_v46  ;;  %v7216_v34 = vpop.eup %7215  ;;  %v6147_v28 = vmul.f32 %v7214_v38, %v17039_v35 }
 0x5f3   : > { %v6896_v44 = vpop.f32.mrb[4].mxu1  ;;  %7221 = vrcp.f32 %v6053_v32  ;;  %v6146_v39 = vmul.f32 %v7216_v34, %v17044_v53 }
 0x5f4   : > { %v6934_v33 = vadd.f32 %v6896_v44, %v16761_v12  ;;  %v5771_v20 = vpop.f32.mrb[5].mxu1  ;;  %7223 = vrcp.f32 %v6052_v7  ;;  %6180 = vst.msk [vmem:[%s16961_s26 + $0x78] sm:$0xff] %vm6164_vm7, %v6147_v28 }
 0x5f5   : > { %v6935_v31 = vadd.f32 %v5771_v20, %v16769_v5  ;;  %6179 = vst.msk [vmem:[%s16961_s26 + $0x70] sm:$0xff] %vm6164_vm7, %v6146_v39 }
 0x5f6   : > { %v5890_v26 = vmul.f32 %v6934_v33, %v16931_v21 }
 0x5f7   : > { %v5889_v18 = vmul.f32 %v6935_v31, %v16931_v21 }
 0x5f8   : > { %v17093_v16 = vadd.f32 %v16936_v17, %v5890_v26 }
 0x5f9   : > { %v17098_v12 = vadd.f32 %v16936_v17, %v5889_v18 }
 0x5fa   : > { %v6484_v5 = vmul.f32 -1.442695, %v17093_v16 }
 0x5fb   : > { %v6483_v35 = vmul.f32 -1.442695, %v17098_v12  ;;  %v7218_v4 = vpop.eup %7217 }
 0x5fc   : > { %7225 = vpow2.f32 %v6484_v5  ;;  %v7220_v40 = vpop.eup %7219  ;;  %v6055_v53 = vadd.f32 1.0, %v7218_v4 }
 0x5fd   : > { %7227 = vpow2.f32 %v6483_v35  ;;  %v6054_v51 = vadd.f32 1.0, %v7220_v40  ;;  %v7222_v56 = vpop.eup %7221 }
 0x5fe   : > { %7229 = vrcp.f32 %v6055_v53  ;;  %v7224_v23 = vpop.eup %7223  ;;  %v6149_v36 = vmul.f32 %v7222_v56, %v17057_v63 }
 0x5ff   : > { %v6899_v9 = vpop.f32.mrb[6].mxu1  ;;  %7231 = vrcp.f32 %v6054_v51  ;;  %v6148_v1 = vmul.f32 %v7224_v23, %v17062_v41 }
 0x600   : > { %v6936_v25 = vadd.f32 %v6899_v9, %v16831_v45  ;;  %v5781_v13 = vpop.f32.mrb[7].mxu1  ;;  %6182 = vst.msk [vmem:[%s16961_s26 + $0x88] sm:$0xff] %vm6164_vm7, %v6149_v36 }
 0x601   : > { %v6937_v27 = vadd.f32 %v5781_v13, %v16836_v42  ;;  %6181 = vst.msk [vmem:[%s16961_s26 + $0x80] sm:$0xff] %vm6164_vm7, %v6148_v1 }
 0x602   : > { %v5892_v55 = vmul.f32 %v6936_v25, %v16931_v21 }
 0x603   : > { %v5891_v52 = vmul.f32 %v6937_v27, %v16931_v21 }
 0x604   : > { %v17111_v15 = vadd.f32 %v16936_v17, %v5892_v55 }
 0x605   : > { %v17116_v45 = vadd.f32 %v16936_v17, %v5891_v52 }
 0x606   : > { %v6486_v42 = vmul.f32 -1.442695, %v17111_v15  ;;  %v7226_v61 = vpop.eup %7225 }
 0x607   : > { %v6485_v63 = vmul.f32 -1.442695, %v17116_v45  ;;  %v7228_v8 = vpop.eup %7227  ;;  %v6057_v41 = vadd.f32 1.0, %v7226_v61 }
 0x608   : > { %7233 = vpow2.f32 %v6486_v42  ;;  %v6056_v3 = vadd.f32 1.0, %v7228_v8  ;;  %v7230_v30 = vpop.eup %7229 }
 0x609   : > { %7235 = vpow2.f32 %v6485_v63  ;;  %v7232_v57 = vpop.eup %7231  ;;  %v6151_v2 = vmul.f32 %v7230_v30, %v17075_v50 }
 0x60a   : > { %7237 = vrcp.f32 %v6057_v41  ;;  %v6150_v58 = vmul.f32 %v7232_v57, %v17080_v47 }
 0x60b   : > { %v6902_v10 = vpop.f32.mrb[8].mxu1  ;;  %7239 = vrcp.f32 %v6056_v3  ;;  %6184 = vst.msk [vmem:[%s16961_s26 + $0x98] sm:$0xff] %vm6164_vm7, %v6151_v2 }
 0x60c   : > { %v6938_v62 = vadd.f32 %v6902_v10, %v16885_v48  ;;  %v5791_v59 = vpop.f32.mrb[9].mxu1  ;;  %6183 = vst.msk [vmem:[%s16961_s26 + $0x90] sm:$0xff] %vm6164_vm7, %v6150_v58 }
 0x60d   : > { %v6939_v19 = vadd.f32 %v5791_v59, %v16889_v54 }
 0x60e   : > { %v5894_v22 = vmul.f32 %v6938_v62, %v16931_v21 }
 0x60f   : > { %v5893_v0 = vmul.f32 %v6939_v19, %v16931_v21 }
 0x610   : > { %v17129_v29 = vadd.f32 %v16936_v17, %v5894_v22 }
 0x611   : > { %v17134_v48 = vadd.f32 %v16936_v17, %v5893_v0 }
 0x612   : > { %v6488_v54 = vmul.f32 -1.442695, %v17129_v29  ;;  %v7234_v6 = vpop.eup %7233 }
 0x613   : > { %v6487_v50 = vmul.f32 -1.442695, %v17134_v48  ;;  %v7236_v32 = vpop.eup %7235  ;;  %v6059_v44 = vadd.f32 1.0, %v7234_v6 }
 0x614   : > { %7241 = vpow2.f32 %v6488_v54  ;;  %v6058_v33 = vadd.f32 1.0, %v7236_v32  ;;  %v7238_v38 = vpop.eup %7237 }
 0x615   : > { %v6905_v46 = vpop.f32.mrb[10].mxu1  ;;  %7243 = vpow2.f32 %v6487_v50  ;;  %v7240_v28 = vpop.eup %7239  ;;  %v6153_v26 = vmul.f32 %v7238_v38, %v17093_v16 }
 0x616   : > { %v6940_v47 = vadd.f32 %v6905_v46, %v16898_v11  ;;  %v5801_v37 = vpop.f32.mrb[11].mxu1  ;;  %7245 = vrcp.f32 %v6059_v44  ;;  %v6152_v18 = vmul.f32 %v7240_v28, %v17098_v12 }
 0x617   : > { %v6941_v7 = vadd.f32 %v5801_v37, %v16900_v60  ;;  %7247 = vrcp.f32 %v6058_v33  ;;  %6186 = vst.msk [vmem:[%s16961_s26 + $0xa8] sm:$0xff] %vm6164_vm7, %v6153_v26 }
 0x618   : > { %v5896_v20 = vmul.f32 %v6940_v47, %v16931_v21  ;;  %6185 = vst.msk [vmem:[%s16961_s26 + $0xa0] sm:$0xff] %vm6164_vm7, %v6152_v18 }
 0x619   : > { %v5895_v31 = vmul.f32 %v6941_v7, %v16931_v21  ;;  %v6908_v34 = vpop.f32.mrb[12].mxu1 }
 0x61a   : > { %v17144_v11 = vadd.f32 %v16936_v17, %v5896_v20  ;;  %v6942_v39 = vadd.f32 %v6908_v34, %v16902_v14  ;;  %v5811_v60 = vpop.f32.mrb[13].mxu1 }
 0x61b   : > { %v17149_v5 = vadd.f32 %v16936_v17, %v5895_v31  ;;  %v6943_v35 = vadd.f32 %v5811_v60, %v16904_v43 }
 0x61c   : > { %v6490_v4 = vmul.f32 -1.442695, %v17144_v11  ;;  %v5898_v16 = vmul.f32 %v6942_v39, %v16931_v21 }
 0x61d   : > { %v6489_v40 = vmul.f32 -1.442695, %v17149_v5  ;;  %v5897_v14 = vmul.f32 %v6943_v35, %v16931_v21  ;;  %v6911_v53 = vpop.f32.mrb[14].mxu1 }
 0x61e   : > { %7249 = vpow2.f32 %v6490_v4  ;;  %v5937_v12 = vadd.f32 %v16936_v17, %v5898_v16  ;;  %v6944_v9 = vadd.f32 %v6911_v53, %v16906_v24  ;;  %v5821_v51 = vpop.f32.mrb[15].mxu1  ;;  %v7242_v13 = vpop.eup %7241 }
 0x61f   : > { %7251 = vpow2.f32 %v6489_v40  ;;  %v5936_v43 = vadd.f32 %v16936_v17, %v5897_v14  ;;  %v6945_v25 = vadd.f32 %v5821_v51, %v16908_v49  ;;  %v7244_v23 = vpop.eup %7243  ;;  %v6061_v36 = vadd.f32 1.0, %v7242_v13 }
 0x620   : > { %v6492_v56 = vmul.f32 -1.442695, %v5937_v12  ;;  %v5900_v27 = vmul.f32 %v6944_v9, %v16931_v21  ;;  %v6060_v52 = vadd.f32 1.0, %v7244_v23  ;;  %v7246_v42 = vpop.eup %7245 }
 0x621   : > { %v6491_v55 = vmul.f32 -1.442695, %v5936_v43  ;;  %v5899_v1 = vmul.f32 %v6945_v25, %v16931_v21  ;;  %v7248_v49 = vpop.eup %7247  ;;  %v6155_v61 = vmul.f32 %v7246_v42, %v17111_v15 }
 0x622   : > { %7253 = vpow2.f32 %v6492_v56  ;;  %v5939_v24 = vadd.f32 %v16936_v17, %v5900_v27  ;;  %v6154_v41 = vmul.f32 %v7248_v49, %v17116_v45 }
 0x623   : > { %7255 = vrcp.f32 %v6061_v36  ;;  %v5938_v63 = vadd.f32 %v16936_v17, %v5899_v1  ;;  %6188 = vst.msk [vmem:[%s16961_s26 + $0xb8] sm:$0xff] %vm6164_vm7, %v6155_v61 }
 0x624   : > { %7257 = vrcp.f32 %v6060_v52  ;;  %v6494_v8 = vmul.f32 -1.442695, %v5939_v24  ;;  %6187 = vst.msk [vmem:[%s16961_s26 + $0xb0] sm:$0xff] %vm6164_vm7, %v6154_v41 }
 0x625   : > { %7259 = vpow2.f32 %v6491_v55  ;;  %v6493_v10 = vmul.f32 -1.442695, %v5938_v63 }
 0x626   : > { %7261 = vpow2.f32 %v6494_v8 }
 0x627   : > { %7263 = vpow2.f32 %v6493_v10 }
 0x628   : > { %v7250_v21 = vpop.eup %7249 }
 0x629   : > { %v7252_v3 = vpop.eup %7251  ;;  %v6063_v62 = vadd.f32 1.0, %v7250_v21 }
 0x62a   : > { %v6062_v17 = vadd.f32 1.0, %v7252_v3 }
 0x62b   : > { %7265 = vrcp.f32 %v6063_v62 }
 0x62c   : > { %v7254_v15 = vpop.eup %7253  ;;  %7267 = vrcp.f32 %v6062_v17 }
 0x62d   : > { %v7256_v59 = vpop.eup %7255  ;;  %v6065_v30 = vadd.f32 1.0, %v7254_v15 }
 0x62e   : > { %v7258_v45 = vpop.eup %7257  ;;  %v6157_v19 = vmul.f32 %v7256_v59, %v17129_v29 }
 0x62f   : > { %v7260_v57 = vpop.eup %7259  ;;  %v6156_v2 = vmul.f32 %v7258_v45, %v17134_v48  ;;  %7269 = vrcp.f32 %v6065_v30 }
 0x630   : > { %v7262_v22 = vpop.eup %7261  ;;  %6190 = vst.msk [vmem:[%s16961_s26 + $0xc8] sm:$0xff] %vm6164_vm7, %v6157_v19  ;;  %v6064_v58 = vadd.f32 1.0, %v7260_v57 }
 0x631   : > { %v7264_v0 = vpop.eup %7263  ;;  %6189 = vst.msk [vmem:[%s16961_s26 + $0xc0] sm:$0xff] %vm6164_vm7, %v6156_v2  ;;  %v6067_v54 = vadd.f32 1.0, %v7262_v22 }
 0x632   : > { %7271 = vrcp.f32 %v6064_v58  ;;  %v6066_v50 = vadd.f32 1.0, %v7264_v0 }
 0x633   : > { %7273 = vrcp.f32 %v6067_v54 }
 0x634   : > { %7275 = vrcp.f32 %v6066_v50 }
 0x635   : > { %v7266_v29 = vpop.eup %7265 }
 0x636   : > { %v7268_v48 = vpop.eup %7267  ;;  %v6159_v46 = vmul.f32 %v7266_v29, %v17144_v11 }
 0x637   : > { %v6158_v6 = vmul.f32 %v7268_v48, %v17149_v5 }
 0x638   : > { %6192 = vst.msk [vmem:[%s16961_s26 + $0xd8] sm:$0xff] %vm6164_vm7, %v6159_v46 }
 0x639   : > { %v7270_v47 = vpop.eup %7269  ;;  %6191 = vst.msk [vmem:[%s16961_s26 + $0xd0] sm:$0xff] %vm6164_vm7, %v6158_v6 }
 0x63a   : > { %v6161_v37 = vmul.f32 %v7270_v47, %v5937_v12 }
 0x63c   : > { %v7272_v32 = vpop.eup %7271  ;;  %6194 = vst.msk [vmem:[%s16961_s26 + $0xe8] sm:$0xff] %vm6164_vm7, %v6161_v37 }
 0x63d   : > { %v7274_v44 = vpop.eup %7273  ;;  %v6160_v7 = vmul.f32 %v7272_v32, %v5936_v43 }
 0x63e   : > { %v7276_v33 = vpop.eup %7275  ;;  %v6163_v20 = vmul.f32 %v7274_v44, %v5939_v24 }
 0x63f   : > { %6193 = vst.msk [vmem:[%s16961_s26 + $0xe0] sm:$0xff] %vm6164_vm7, %v6160_v7  ;;  %v6162_v38 = vmul.f32 %v7276_v33, %v5938_v63 }
 0x640   : > { %6196 = vst.msk [vmem:[%s16961_s26 + $0xf8] sm:$0xff] %vm6164_vm7, %v6163_v20 }
 0x641   : > { %6195 = vst.msk [vmem:[%s16961_s26 + $0xf0] sm:$0xff] %vm6164_vm7, %v6162_v38 }
 0x642 PF: > { %s21_s17 = sadd.s32 1, %s7289_s17  }
 0x643   : > { %p18_p4 = scmp.ge.s32.totalorder %s21_s17, 4  }
 0x645   :  { %20 = sbr.rel (!%p18_p4) target bundleno = 1 (0x1), region = 94 }

</bundles_post_ra>
